<compile_context>
chip_gen: v5e
topology: v5e:2x2
jax: 0.10.0
libtpu: 0.0.40
codegen_flags: <defaults>
</compile_context>

<pallas_src>
import functools

import jax
import jax.numpy as jnp
from jax.experimental import pallas as pl
from jax.experimental.pallas import tpu as pltpu


# --------------------------------------------------------------------------
# Hardware / feature probes (cached; warmed once outside jit in __main__)
# --------------------------------------------------------------------------
@functools.lru_cache(maxsize=None)
def _vmem_limit_bytes():
    """Generation-aware scoped-VMEM limit: ~75% of physical VMEM, capped at 96 MiB."""
    try:
        cap = int(pltpu.get_tpu_info().vmem_capacity_bytes)
    except Exception:
        cap = 64 * 1024 * 1024                  # conservative (v7x-sized) fallback
    return min(int(0.75 * cap), 96 * 1024 * 1024)


@functools.lru_cache(maxsize=None)
def _single_buffering_supported():
    """Probe whether pipeline_mode=pl.Buffered(1) lowers & runs on this jax/libtpu."""
    try:
        def _probe(x_ref, o_ref):
            o_ref[...] = x_ref[...] * 2.0
        out = pl.pallas_call(
            _probe,
            grid=(2,),
            in_specs=[pl.BlockSpec((8, 128), lambda i: (0, 0),
                                   pipeline_mode=pl.Buffered(1))],
            out_specs=pl.BlockSpec((8, 128), lambda i: (i, 0)),
            out_shape=jax.ShapeDtypeStruct((16, 128), jnp.float32),
        )(jnp.ones((8, 128), jnp.float32))
        jax.block_until_ready(out)
        return True
    except Exception:
        return False


def _maybe_single_buffered(block_shape, index_map, constant_block):
    """Single-buffer blocks whose index map is constant across the grid (weights/bias)."""
    if constant_block and _single_buffering_supported():
        return pl.BlockSpec(block_shape, index_map, pipeline_mode=pl.Buffered(1))
    return pl.BlockSpec(block_shape, index_map)


# --------------------------------------------------------------------------
# Kernels
# --------------------------------------------------------------------------
def _conv_plain_kernel(x_ref, w_ref, b_ref, o_ref, *, kh, wo, tp, use_act, alpha=0.2):
    """Conv (+ bias) (+ LeakyReLU). One (row-tile, cout-block) per grid step."""
    acc = jnp.dot(x_ref[0:tp, :], w_ref[0], preferred_element_type=jnp.float32)
    for di in range(1, kh):
        acc = acc + jnp.dot(x_ref[di * wo: di * wo + tp, :], w_ref[di],
                            preferred_element_type=jnp.float32)
    y = acc + b_ref[...]
    if use_act:
        y = jnp.where(y > 0, y, alpha * y)
    o_ref[...] = y.astype(o_ref.dtype)


def _conv_norm_single_kernel(x_ref, w_ref, o_ref, *, kh, wo, tp,
                             use_act, eps=1e-5, alpha=0.2):
    """Conv + InstanceNorm + LeakyReLU, whole sample in one row tile.

    Exact two-pass mean/variance straight from the f32 accumulator (no scratch,
    no E[y^2]-mean^2 cancellation).  Bias is skipped (cancelled by the mean).
    """
    acc = jnp.dot(x_ref[0:tp, :], w_ref[0], preferred_element_type=jnp.float32)
    for di in range(1, kh):
        acc = acc + jnp.dot(x_ref[di * wo: di * wo + tp, :], w_ref[di],
                            preferred_element_type=jnp.float32)
    mean = jnp.mean(acc, axis=0, keepdims=True)
    d = acc - mean
    var = jnp.mean(d * d, axis=0, keepdims=True)
    y = d * jax.lax.rsqrt(var + eps)
    if use_act:
        y = jnp.where(y > 0, y, alpha * y)
    o_ref[...] = y.astype(o_ref.dtype)


def _conv_norm_multi_kernel(x_ref, w_ref, o_ref, s_sum, *, kh, wo, tp, p_total,
                            use_act, eps=1e-5, alpha=0.2):
    """Conv + InstanceNorm + LeakyReLU across several row tiles.

    Per tile: store the un-normalized activations (bf16) into the resident output
    block and accumulate the per-channel f32 sum.  Last tile: chunked second-pass
    variance + in-place normalization of the output block (no f32 y_acc scratch).
    """
    t = pl.program_id(2)
    n_t = pl.num_programs(2)
    al = 16 if tp % 16 == 0 else 8

    acc = jnp.dot(x_ref[0:tp, :], w_ref[0], preferred_element_type=jnp.float32)
    for di in range(1, kh):
        acc = acc + jnp.dot(x_ref[di * wo: di * wo + tp, :], w_ref[di],
                            preferred_element_type=jnp.float32)

    @pl.when(t == 0)
    def _init():
        s_sum[...] = jnp.zeros_like(s_sum)

    start = pl.multiple_of(t * tp, al)
    o_ref[pl.ds(start, tp), :] = acc.astype(o_ref.dtype)
    s_sum[...] += jnp.sum(acc, axis=0, keepdims=True)

    @pl.when(t == n_t - 1)
    def _epilogue():
        inv_n = 1.0 / p_total
        mean = s_sum[...] * inv_n

        def ssd_body(tt, carry):
            st = pl.multiple_of(tt * tp, al)
            y = o_ref[pl.ds(st, tp), :].astype(jnp.float32)
            d = y - mean
            return carry + jnp.sum(d * d, axis=0, keepdims=True)

        ssd = jax.lax.fori_loop(0, n_t, ssd_body,
                                jnp.zeros(s_sum.shape, jnp.float32))
        inv_std = jax.lax.rsqrt(ssd * inv_n + eps)

        def norm_body(tt, carry):
            st = pl.multiple_of(tt * tp, al)
            y = (o_ref[pl.ds(st, tp), :].astype(jnp.float32) - mean) * inv_std
            if use_act:
                y = jnp.where(y > 0, y, alpha * y)
            o_ref[pl.ds(st, tp), :] = y.astype(o_ref.dtype)
            return carry

        jax.lax.fori_loop(0, n_t, norm_body, 0)


# --------------------------------------------------------------------------
# VMEM-budgeted row-tile selection
# --------------------------------------------------------------------------
def _pick_row_tile(*, ho, wo, k_dim, cb, kh, act_bytes, use_norm, budget_bytes):
    """Largest output-row tile (divisor of ho) whose per-step VMEM model fits the budget.

    The model counts: double-buffered haloed input, (conservatively double-buffered)
    weight block, resident (norm) or streamed (plain) output block, kh-tap shifted-slice
    temporaries, and f32 accumulator / epilogue temporaries.
    """
    p_total = ho * wo
    align = 16 if act_bytes == 2 else 8          # keep dynamic bf16 stores tile-aligned
    fixed = kh * k_dim * cb * act_bytes * 2 + 4 * cb * 4
    if use_norm:
        fixed += 2 * p_total * cb * act_bytes    # resident (revisited) output block

    def step_bytes(th):
        tp = th * wo
        rows_in = (th + kh - 1) * wo
        b = fixed
        b += 2 * rows_in * k_dim * act_bytes     # double-buffered haloed input block
        if not use_norm:
            b += 2 * tp * cb * act_bytes         # streamed output block
        b += 2 * tp * k_dim * act_bytes          # kh-tap shifted-slice temporaries
        b += 2 * tp * cb * 4                     # f32 accumulator + epilogue temps
        return b

    for th in range(ho, 0, -1):
        if ho % th:
            continue
        if th != ho and (th * wo) % align != 0:  # non-full tiles must stay tile-aligned
            continue
        if step_bytes(th) <= budget_bytes:
            return th, ho // th

    # Budget unattainable (fixed blocks alone exceed it): best effort = smallest
    # aligned tile, else whole sample.
    # TODO(synk): pad ho/wo so an aligned tiling always exists instead of falling back.
    aligned = [th for th in range(1, ho) if ho % th == 0 and (th * wo) % align == 0]
    best = min(aligned) if aligned else ho
    return best, ho // best


# --------------------------------------------------------------------------
# One conv [+ InstanceNorm] [+ LeakyReLU] layer
# --------------------------------------------------------------------------
def _conv_layer(x, w, b, *, stride, use_norm, use_act, act_dtype=jnp.bfloat16,
                row_tile_budget=None):
    """Conv2d(4x4, stride, pad=1) [+ InstanceNorm2d] [+ LeakyReLU(0.2)].

    x: (N, H, W, Cin) NHWC activations; w: (4, 4, Cin, Cout) f32; b: (Cout,) f32.
    Returns (N, Ho, Wo, Cout) in `act_dtype`.
    """
    n, h, wd, cin = x.shape
    _, _, _, cout = w.shape
    pad = 1

    if stride == 2:
        # 4x4/stride-2 conv == 2x2/stride-1 conv on a space-to-depth(2) input.
        assert h % 2 == 0 and wd % 2 == 0, "stride-2 layers need even H, W"
        xp = jnp.pad(x, ((0, 0), (pad, pad), (pad, pad), (0, 0)))
        hp, wp = h + 2 * pad, wd + 2 * pad
        x_eff = (xp.reshape(n, hp // 2, 2, wp // 2, 2, cin)
                   .transpose(0, 1, 3, 2, 4, 5)
                   .reshape(n, hp // 2, wp // 2, 4 * cin))
        w_eff = (w.reshape(2, 2, 2, 2, cin, cout)        # (di, pi, dj, pj, c, co)
                  .transpose(0, 2, 1, 3, 4, 5)           # (di, dj, pi, pj, c, co)
                  .reshape(2, 2, 4 * cin, cout))
        kh = kw = 2
        ce = 4 * cin
        ho, wo = h // 2, wd // 2
    else:
        x_eff = jnp.pad(x, ((0, 0), (pad, pad), (pad, pad), (0, 0)))
        w_eff = w
        kh = kw = 4
        ce = cin
        ho, wo = h + 2 * pad - 4 + 1, wd + 2 * pad - 4 + 1

    # Width-axis im2col only (factor kw); the height axis is folded inside the kernel.
    # TODO(synk): fold kw inside the kernel as well for the stride-1 layers to drop this
    # concat (one extra HBM pass over the small late-layer activations).
    k_dim = kw * ce
    x_cols = jnp.concatenate([x_eff[:, :, dj:dj + wo, :] for dj in range(kw)], axis=3)
    x_flat = x_cols.reshape(n, (ho + kh - 1) * wo, k_dim).astype(act_dtype)
    w_flat = w_eff.reshape(kh, k_dim, cout).astype(act_dtype)

    # Lane-dense output for the 1-channel head: pad Cout to 128, slice after the call.
    coutp = cout
    if cout < 8:
        coutp = 128
        w_flat = jnp.pad(w_flat, ((0, 0), (0, 0), (0, coutp - cout)))
        b = jnp.pad(b, (0, coutp - cout))
    # TODO(synk): layer-1 (cout=64) stores are 64-lane (masked); folding two adjacent
    # width pixels into the lane dim would make them lane-dense at no extra HBM cost.

    # Channel blocking: InstanceNorm stats are per-channel, so cout blocks of 128 are
    # independent -> parallel grid axis (feeds v7x's 2nd TensorCore, shrinks VMEM blocks).
    cb = 128 if (coutp % 128 == 0) else coutp
    n_c = coutp // cb

    act_bytes = jnp.dtype(act_dtype).itemsize
    budget = (row_tile_budget if row_tile_budget is not None
              else int(0.7 * _vmem_limit_bytes()))
    th, n_t = _pick_row_tile(ho=ho, wo=wo, k_dim=k_dim, cb=cb, kh=kh,
                             act_bytes=act_bytes, use_norm=use_norm,
                             budget_bytes=budget)
    tp = th * wo
    rows_in = (th + kh - 1) * wo
    p_total = ho * wo

    single_w = (n_c == 1)   # weight/bias block index is then constant -> single-buffer
    w_spec = _maybe_single_buffered((kh, k_dim, cb), lambda i, c, t: (0, 0, c), single_w)

    if n_t == 1:
        # Whole sample in one row tile: read x_flat directly (no haloed stack in HBM).
        x_in = x_flat
        x_spec = pl.BlockSpec((None, rows_in, k_dim), lambda i, c, t: (i, 0, 0))
    else:
        # TODO(synk): replace the stacked overlapping row tiles with a manual
        # double-buffered DMA from an ANY-space x_flat to avoid this extra HBM pass.
        x_in = jnp.stack([x_flat[:, t * tp: t * tp + rows_in, :] for t in range(n_t)],
                         axis=1)
        x_spec = pl.BlockSpec((None, None, rows_in, k_dim), lambda i, c, t: (i, t, 0, 0))

    cparams = pltpu.CompilerParams(
        dimension_semantics=("parallel", "parallel",
                             "arbitrary" if use_norm else "parallel"),
        vmem_limit_bytes=_vmem_limit_bytes())
    grid = (n, n_c, n_t)
    out_shape = jax.ShapeDtypeStruct((n, p_total, coutp), act_dtype)

    if use_norm:
        out_spec = pl.BlockSpec((None, p_total, cb), lambda i, c, t: (i, 0, c))
        if n_t == 1:
            kern = functools.partial(_conv_norm_single_kernel, kh=kh, wo=wo, tp=tp,
                                     use_act=use_act)
            out = pl.pallas_call(
                kern, out_shape=out_shape, grid=grid,
                in_specs=[x_spec, w_spec], out_specs=out_spec,
                compiler_params=cparams,
            )(x_in, w_flat)
        else:
            kern = functools.partial(_conv_norm_multi_kernel, kh=kh, wo=wo, tp=tp,
                                     p_total=p_total, use_act=use_act)
            out = pl.pallas_call(
                kern, out_shape=out_shape, grid=grid,
                in_specs=[x_spec, w_spec], out_specs=out_spec,
                scratch_shapes=[pltpu.VMEM((1, cb), jnp.float32)],   # per-channel sum
                compiler_params=cparams,
            )(x_in, w_flat)
    else:
        b_flat = b.reshape(1, coutp).astype(jnp.float32)
        b_spec = _maybe_single_buffered((1, cb), lambda i, c, t: (0, c), single_w)
        out_spec = pl.BlockSpec((None, tp, cb), lambda i, c, t: (i, t, c))
        kern = functools.partial(_conv_plain_kernel, kh=kh, wo=wo, tp=tp, use_act=use_act)
        out = pl.pallas_call(
            kern, out_shape=out_shape, grid=grid,
            in_specs=[x_spec, w_spec, b_spec], out_specs=out_spec,
            compiler_params=cparams,
        )(x_in, w_flat, b_flat)

    out = out.reshape(n, ho, wo, coutp)
    if coutp != cout:
        out = out[..., :cout]
    return out


# --------------------------------------------------------------------------
# Parameter init (deterministic, synthetic weights)
# --------------------------------------------------------------------------
def init_params(key, in_ch):
    layer_dims = [(in_ch, 64), (64, 128), (128, 256), (256, 512), (512, 1)]
    params = []
    for (cin, cout) in layer_dims:
        key, kw_, kb_ = jax.random.split(key, 3)
        fan_in = 4 * 4 * cin
        scale = 1.0 / jnp.sqrt(jnp.float32(fan_in))
        w = jax.random.uniform(kw_, (4, 4, cin, cout), jnp.float32, -scale, scale)
        b = jax.random.uniform(kb_, (cout,), jnp.float32, -scale, scale)
        params.append((w, b))
    return params


# --------------------------------------------------------------------------
# Full forward (NCHW in, NCHW out — matches the PyTorch module)
# --------------------------------------------------------------------------
def discriminator_forward(x_nchw, params, *, row_tile_budget=None):
    # TODO(synk): fuse the small-spatial tail (layers 3-5) into one pallas_call keeping
    # inter-layer activations in VMEM to cut launch + HBM round-trip overhead.
    x = jnp.transpose(x_nchw, (0, 2, 3, 1)).astype(jnp.bfloat16)   # -> NHWC, bf16
    (w1, b1), (w2, b2), (w3, b3), (w4, b4), (w5, b5) = params
    cl = functools.partial(_conv_layer, row_tile_budget=row_tile_budget)
    x = cl(x, w1, b1, stride=2, use_norm=False, use_act=True)
    x = cl(x, w2, b2, stride=2, use_norm=True, use_act=True)
    x = cl(x, w3, b3, stride=2, use_norm=True, use_act=True)
    x = cl(x, w4, b4, stride=1, use_norm=True, use_act=True)
    x = cl(x, w5, b5, stride=1, use_norm=False, use_act=False)
    return jnp.transpose(x.astype(jnp.float32), (0, 3, 1, 2))       # -> NCHW


# --------------------------------------------------------------------------
# Pure-JAX references (compute_dtype=bf16 matches the kernel's MXU/activation
# precision; compute_dtype=f32 is the original-module semantics)
# --------------------------------------------------------------------------
def _ref_forward(x_nchw, params, compute_dtype):
    def conv(x, w, b, stride):
        y = jax.lax.conv_general_dilated(
            x.astype(compute_dtype), w.astype(compute_dtype),
            (stride, stride), ((1, 1), (1, 1)),
            dimension_numbers=("NHWC", "HWIO", "NHWC"),
            preferred_element_type=jnp.float32)
        return y + b.reshape(1, 1, 1, -1)

    def inorm(y, eps=1e-5):
        m = jnp.mean(y, axis=(1, 2), keepdims=True)
        v = jnp.mean((y - m) ** 2, axis=(1, 2), keepdims=True)
        return (y - m) * jax.lax.rsqrt(v + eps)

    def lrelu(y):
        return jnp.where(y > 0, y, 0.2 * y)

    x = jnp.transpose(x_nchw, (0, 2, 3, 1))
    (w1, b1), (w2, b2), (w3, b3), (w4, b4), (w5, b5) = params
    x = lrelu(conv(x, w1, b1, 2)).astype(compute_dtype)
    x = lrelu(inorm(conv(x, w2, b2, 2))).astype(compute_dtype)
    x = lrelu(inorm(conv(x, w3, b3, 2))).astype(compute_dtype)
    x = lrelu(inorm(conv(x, w4, b4, 1))).astype(compute_dtype)
    x = conv(x, w5, b5, 1)
    return jnp.transpose(x.astype(jnp.float32), (0, 3, 1, 2))


if __name__ == "__main__":
    key = jax.random.PRNGKey(0)
    in_ch, batch, spatial = 4, 2, 32   # 32x32 so all 5 conv layers have valid spatial extent

    k_x, k_p = jax.random.split(key)
    x = jax.random.normal(k_x, (batch, in_ch, spatial, spatial), jnp.float32)  # NCHW input
    params = init_params(k_p, in_ch)

    # Warm the hardware/feature probes outside of jit tracing.
    _vmem_limit_bytes()
    _single_buffering_supported()

    fwd = jax.jit(discriminator_forward)
    out = jax.block_until_ready(fwd(x, params))

    ref_bf16 = jax.block_until_ready(_ref_forward(x, params, jnp.bfloat16))
    ref_f32 = jax.block_until_ready(_ref_forward(x, params, jnp.float32))

    assert out.shape == ref_f32.shape == (batch, 1, 2, 2), out.shape
    assert bool(jnp.all(jnp.isfinite(out)))
    # Tight check against a reference with matching bf16 MXU / bf16 inter-layer precision.
    assert jnp.allclose(out, ref_bf16, rtol=1e-2, atol=1e-2), \
        float(jnp.max(jnp.abs(out - ref_bf16)))
    # Loose check against full-f32 (original-module) semantics (bf16 drift allowance).
    assert jnp.allclose(out, ref_f32, rtol=1e-1, atol=1e-1), \
        float(jnp.max(jnp.abs(out - ref_f32)))

    # Exercise the multi-row-tile paths (haloed tiles, resident-output accumulate +
    # epilogue InstanceNorm) by forcing a tiny per-step VMEM budget.
    fwd_tiled = jax.jit(functools.partial(discriminator_forward,
                                          row_tile_budget=256 * 1024))
    out_tiled = jax.block_until_ready(fwd_tiled(x, params))
    assert bool(jnp.all(jnp.isfinite(out_tiled)))
    assert jnp.allclose(out_tiled, out, rtol=3e-2, atol=3e-2), \
        float(jnp.max(jnp.abs(out_tiled - out)))

    print("KERNEL_OK")
</pallas_src>

<mosaic_0001>
module attributes {stable_mosaic.version = 11 : i64} {
  func.func @_probe(%arg0: i32, %arg1: memref<8x128xf32, #tpu.memory_space<vmem>>, %arg2: memref<8x128xf32, #tpu.memory_space<vmem>>) attributes {dimension_semantics = [#tpu.dimension_semantics<arbitrary>], iteration_bounds = array<i64: 2>, scalar_prefetch = 0 : i64, scratch_operands = 0 : i64, tpu.core_type = #tpu.core_type<tc>, window_params = [{pipeline_mode = #tpu.pipeline_mode<synchronous>, transform_indices = @transform_0, window_bounds = array<i64: 8, 128>}, {transform_indices = @transform_1, window_bounds = array<i64: 8, 128>}]} {
    %c0 = arith.constant 0 : index
    %c0_0 = arith.constant 0 : index
    %0 = vector.load %arg1[%c0, %c0_0] : memref<8x128xf32, #tpu.memory_space<vmem>>, vector<8x128xf32>
    %cst = arith.constant 2.000000e+00 : f32
    %1 = vector.broadcast %cst : f32 to vector<8x128xf32>
    %2 = arith.mulf %0, %1 : vector<8x128xf32>
    %c0_1 = arith.constant 0 : index
    %c0_2 = arith.constant 0 : index
    %3 = vector.load %arg2[%c0_1, %c0_2] : memref<8x128xf32, #tpu.memory_space<vmem>>, vector<8x128xf32>
    tpu.vector_store %arg2[%c0_1, %c0_2], %2 {strides = array<i32>} : memref<8x128xf32, #tpu.memory_space<vmem>>, vector<8x128xf32>,
    return
  }
  func.func @transform_0(%arg0: i32) -> (i32, i32) {
    %c0_i32 = arith.constant 0 : i32
    %c0_i32_0 = arith.constant 0 : i32
    %c0_i32_1 = arith.constant 0 : i32
    return %c0_i32, %c0_i32_0 : i32, i32
  }
  func.func @transform_1(%arg0: i32) -> (i32, i32) {
    %c0_i32 = arith.constant 0 : i32
    %c0_i32_0 = arith.constant 0 : i32
    return %arg0, %c0_i32 : i32, i32
  }
}

module attributes {stable_mosaic.version = 11 : i64} {
  func.func @_conv_plain_kernel(%arg0: i32, %arg1: i32, %arg2: i32, %arg3: memref<1x272x32xbf16, #tpu.memory_space<vmem>>, %arg4: memref<2x32x64xbf16, #tpu.memory_space<vmem>>, %arg5: memref<1x64xf32, #tpu.memory_space<vmem>>, %arg6: memref<1x256x64xbf16, #tpu.memory_space<vmem>>) attributes {dimension_semantics = [#tpu.dimension_semantics<parallel>, #tpu.dimension_semantics<parallel>, #tpu.dimension_semantics<parallel>], iteration_bounds = array<i64: 2, 1, 1>, scalar_prefetch = 0 : i64, scratch_operands = 0 : i64, tpu.core_type = #tpu.core_type<tc>, window_params = [{transform_indices = @transform_0, window_bounds = array<i64: 1, 272, 32>}, {transform_indices = @transform_1, window_bounds = array<i64: 2, 32, 64>}, {transform_indices = @transform_2, window_bounds = array<i64: 1, 64>}, {transform_indices = @transform_3, window_bounds = array<i64: 1, 256, 64>}]} {
    %c0 = arith.constant 0 : index
    %c0_0 = arith.constant 0 : index
    %c0_1 = arith.constant 0 : index
    %0 = vector.load %arg3[%c0, %c0_0, %c0_1] : memref<1x272x32xbf16, #tpu.memory_space<vmem>>, vector<1x256x32xbf16>
    %1 = vector.shape_cast %0 : vector<1x256x32xbf16> to vector<256x32xbf16>
    %c0_2 = arith.constant 0 : index
    %c0_3 = arith.constant 0 : index
    %c0_4 = arith.constant 0 : index
    %2 = vector.load %arg4[%c0_2, %c0_3, %c0_4] : memref<2x32x64xbf16, #tpu.memory_space<vmem>>, vector<1x32x64xbf16>
    %3 = vector.shape_cast %2 : vector<1x32x64xbf16> to vector<32x64xbf16>
    %cst = arith.constant dense<0.000000e+00> : vector<256x64xf32>
    %4 = tpu.matmul %1, %3, %cst {dimension_numbers = #tpu.dot_dimension_numbers<[1], [0], [0], [1], [0, 0, 1, 1], [], []>} : vector<256x32xbf16>, vector<32x64xbf16>, vector<256x64xf32> -> vector<256x64xf32>
    %c0_5 = arith.constant 0 : index
    %c16 = arith.constant 16 : index
    %c0_6 = arith.constant 0 : index
    %5 = vector.load %arg3[%c0_5, %c16, %c0_6] : memref<1x272x32xbf16, #tpu.memory_space<vmem>>, vector<1x256x32xbf16>
    %6 = vector.shape_cast %5 : vector<1x256x32xbf16> to vector<256x32xbf16>
    %c1 = arith.constant 1 : index
    %c0_7 = arith.constant 0 : index
    %c0_8 = arith.constant 0 : index
    %7 = vector.load %arg4[%c1, %c0_7, %c0_8] : memref<2x32x64xbf16, #tpu.memory_space<vmem>>, vector<1x32x64xbf16>
    %8 = vector.shape_cast %7 : vector<1x32x64xbf16> to vector<32x64xbf16>
    %cst_9 = arith.constant dense<0.000000e+00> : vector<256x64xf32>
    %9 = tpu.matmul %6, %8, %cst_9 {dimension_numbers = #tpu.dot_dimension_numbers<[1], [0], [0], [1], [0, 0, 1, 1], [], []>} : vector<256x32xbf16>, vector<32x64xbf16>, vector<256x64xf32> -> vector<256x64xf32>
    %10 = arith.addf %4, %9 : vector<256x64xf32>
    %c0_10 = arith.constant 0 : index
    %c0_11 = arith.constant 0 : index
    %11 = vector.load %arg5[%c0_10, %c0_11] : memref<1x64xf32, #tpu.memory_space<vmem>>, vector<1x64xf32>
    %12 = vector.broadcast %11 : vector<1x64xf32> to vector<256x64xf32>
    %13 = arith.addf %10, %12 : vector<256x64xf32>
    %cst_12 = arith.constant 0.000000e+00 : f32
    %14 = vector.broadcast %cst_12 : f32 to vector<256x64xf32>
    %15 = arith.cmpf ogt, %13, %14 : vector<256x64xf32>
    %cst_13 = arith.constant 2.000000e-01 : f32
    %16 = vector.broadcast %cst_13 : f32 to vector<256x64xf32>
    %17 = arith.mulf %16, %13 : vector<256x64xf32>
    %18 = arith.select %15, %13, %17 : vector<256x64xi1>, vector<256x64xf32>
    %19 = arith.truncf %18 : vector<256x64xf32> to vector<256x64xbf16>
    %c0_14 = arith.constant 0 : index
    %c0_15 = arith.constant 0 : index
    %c0_16 = arith.constant 0 : index
    %20 = vector.load %arg6[%c0_14, %c0_15, %c0_16] : memref<1x256x64xbf16, #tpu.memory_space<vmem>>, vector<1x256x64xbf16>
    %21 = vector.shape_cast %20 : vector<1x256x64xbf16> to vector<256x64xbf16>
    %22 = vector.shape_cast %19 : vector<256x64xbf16> to vector<1x256x64xbf16>
    tpu.vector_store %arg6[%c0_14, %c0_15, %c0_16], %22 {strides = array<i32>} : memref<1x256x64xbf16, #tpu.memory_space<vmem>>, vector<1x256x64xbf16>,
    return
  }
  func.func @transform_0(%arg0: i32, %arg1: i32, %arg2: i32) -> (i32, i32, i32) {
    %c0_i32 = arith.constant 0 : i32
    %c0_i32_0 = arith.constant 0 : i32
    %c0_i32_1 = arith.constant 0 : i32
    return %arg0, %c0_i32, %c0_i32_0 : i32, i32, i32
  }
  func.func @transform_1(%arg0: i32, %arg1: i32, %arg2: i32) -> (i32, i32, i32) {
    %c0_i32 = arith.constant 0 : i32
    %c0_i32_0 = arith.constant 0 : i32
    %c0_i32_1 = arith.constant 0 : i32
    return %c0_i32, %c0_i32_0, %arg1 : i32, i32, i32
  }
  func.func @transform_2(%arg0: i32, %arg1: i32, %arg2: i32) -> (i32, i32) {
    %c0_i32 = arith.constant 0 : i32
    %c0_i32_0 = arith.constant 0 : i32
    return %c0_i32, %arg1 : i32, i32
  }
  func.func @transform_3(%arg0: i32, %arg1: i32, %arg2: i32) -> (i32, i32, i32) {
    %c0_i32 = arith.constant 0 : i32
    return %arg0, %arg2, %arg1 : i32, i32, i32
  }
}

module attributes {stable_mosaic.version = 11 : i64} {
  func.func @_conv_norm_single_kernel(%arg0: i32, %arg1: i32, %arg2: i32, %arg3: memref<1x72x512xbf16, #tpu.memory_space<vmem>>, %arg4: memref<2x512x128xbf16, #tpu.memory_space<vmem>>, %arg5: memref<1x64x128xbf16, #tpu.memory_space<vmem>>) attributes {dimension_semantics = [#tpu.dimension_semantics<parallel>, #tpu.dimension_semantics<parallel>, #tpu.dimension_semantics<arbitrary>], iteration_bounds = array<i64: 2, 1, 1>, scalar_prefetch = 0 : i64, scratch_operands = 0 : i64, tpu.core_type = #tpu.core_type<tc>, window_params = [{transform_indices = @transform_0, window_bounds = array<i64: 1, 72, 512>}, {transform_indices = @transform_1, window_bounds = array<i64: 2, 512, 128>}, {transform_indices = @transform_2, window_bounds = array<i64: 1, 64, 128>}]} {
    %c0 = arith.constant 0 : index
    %c0_0 = arith.constant 0 : index
    %c0_1 = arith.constant 0 : index
    %0 = vector.load %arg3[%c0, %c0_0, %c0_1] : memref<1x72x512xbf16, #tpu.memory_space<vmem>>, vector<1x64x512xbf16>
    %1 = vector.shape_cast %0 : vector<1x64x512xbf16> to vector<64x512xbf16>
    %c0_2 = arith.constant 0 : index
    %c0_3 = arith.constant 0 : index
    %c0_4 = arith.constant 0 : index
    %2 = vector.load %arg4[%c0_2, %c0_3, %c0_4] : memref<2x512x128xbf16, #tpu.memory_space<vmem>>, vector<1x512x128xbf16>
    %3 = vector.shape_cast %2 : vector<1x512x128xbf16> to vector<512x128xbf16>
    %cst = arith.constant dense<0.000000e+00> : vector<64x128xf32>
    %4 = tpu.matmul %1, %3, %cst {dimension_numbers = #tpu.dot_dimension_numbers<[1], [0], [0], [1], [0, 0, 1, 1], [], []>} : vector<64x512xbf16>, vector<512x128xbf16>, vector<64x128xf32> -> vector<64x128xf32>
    %c0_5 = arith.constant 0 : index
    %c8 = arith.constant 8 : index
    %c0_6 = arith.constant 0 : index
    %5 = vector.load %arg3[%c0_5, %c8, %c0_6] : memref<1x72x512xbf16, #tpu.memory_space<vmem>>, vector<1x64x512xbf16>
    %6 = vector.shape_cast %5 : vector<1x64x512xbf16> to vector<64x512xbf16>
    %c1 = arith.constant 1 : index
    %c0_7 = arith.constant 0 : index
    %c0_8 = arith.constant 0 : index
    %7 = vector.load %arg4[%c1, %c0_7, %c0_8] : memref<2x512x128xbf16, #tpu.memory_space<vmem>>, vector<1x512x128xbf16>
    %8 = vector.shape_cast %7 : vector<1x512x128xbf16> to vector<512x128xbf16>
    %cst_9 = arith.constant dense<0.000000e+00> : vector<64x128xf32>
    %9 = tpu.matmul %6, %8, %cst_9 {dimension_numbers = #tpu.dot_dimension_numbers<[1], [0], [0], [1], [0, 0, 1, 1], [], []>} : vector<64x512xbf16>, vector<512x128xbf16>, vector<64x128xf32> -> vector<64x128xf32>
    %10 = arith.addf %4, %9 : vector<64x128xf32>
    %cst_10 = arith.constant dense<0.000000e+00> : vector<128xf32>
    %11 = vector.multi_reduction <add>, %10, %cst_10 [0] : vector<64x128xf32> to vector<128xf32>
    %12 = vector.shape_cast %11 : vector<128xf32> to vector<1x128xf32>
    %cst_11 = arith.constant 6.400000e+01 : f32
    %13 = vector.broadcast %cst_11 : f32 to vector<1x128xf32>
    %14 = arith.divf %12, %13 : vector<1x128xf32>
    %15 = vector.broadcast %14 : vector<1x128xf32> to vector<64x128xf32>
    %16 = arith.subf %10, %15 : vector<64x128xf32>
    %17 = arith.mulf %16, %16 : vector<64x128xf32>
    %cst_12 = arith.constant dense<0.000000e+00> : vector<128xf32>
    %18 = vector.multi_reduction <add>, %17, %cst_12 [0] : vector<64x128xf32> to vector<128xf32>
    %19 = vector.shape_cast %18 : vector<128xf32> to vector<1x128xf32>
    %cst_13 = arith.constant 6.400000e+01 : f32
    %20 = vector.broadcast %cst_13 : f32 to vector<1x128xf32>
    %21 = arith.divf %19, %20 : vector<1x128xf32>
    %cst_14 = arith.constant 9.99999974E-6 : f32
    %22 = vector.broadcast %cst_14 : f32 to vector<1x128xf32>
    %23 = arith.addf %21, %22 : vector<1x128xf32>
    %24 = math.rsqrt %23 : vector<1x128xf32>
    %25 = vector.broadcast %24 : vector<1x128xf32> to vector<64x128xf32>
    %26 = arith.mulf %16, %25 : vector<64x128xf32>
    %cst_15 = arith.constant 0.000000e+00 : f32
    %27 = vector.broadcast %cst_15 : f32 to vector<64x128xf32>
    %28 = arith.cmpf ogt, %26, %27 : vector<64x128xf32>
    %cst_16 = arith.constant 2.000000e-01 : f32
    %29 = vector.broadcast %cst_16 : f32 to vector<64x128xf32>
    %30 = arith.mulf %29, %26 : vector<64x128xf32>
    %31 = arith.select %28, %26, %30 : vector<64x128xi1>, vector<64x128xf32>
    %32 = arith.truncf %31 : vector<64x128xf32> to vector<64x128xbf16>
    %c0_17 = arith.constant 0 : index
    %c0_18 = arith.constant 0 : index
    %c0_19 = arith.constant 0 : index
    %33 = vector.load %arg5[%c0_17, %c0_18, %c0_19] : memref<1x64x128xbf16, #tpu.memory_space<vmem>>, vector<1x64x128xbf16>
    %34 = vector.shape_cast %33 : vector<1x64x128xbf16> to vector<64x128xbf16>
    %35 = vector.shape_cast %32 : vector<64x128xbf16> to vector<1x64x128xbf16>
    tpu.vector_store %arg5[%c0_17, %c0_18, %c0_19], %35 {strides = array<i32>} : memref<1x64x128xbf16, #tpu.memory_space<vmem>>, vector<1x64x128xbf16>,
    return
  }
  func.func @transform_0(%arg0: i32, %arg1: i32, %arg2: i32) -> (i32, i32, i32) {
    %c0_i32 = arith.constant 0 : i32
    %c0_i32_0 = arith.constant 0 : i32
    %c0_i32_1 = arith.constant 0 : i32
    return %arg0, %c0_i32, %c0_i32_0 : i32, i32, i32
  }
  func.func @transform_1(%arg0: i32, %arg1: i32, %arg2: i32) -> (i32, i32, i32) {
    %c0_i32 = arith.constant 0 : i32
    %c0_i32_0 = arith.constant 0 : i32
    %c0_i32_1 = arith.constant 0 : i32
    return %c0_i32, %c0_i32_0, %arg1 : i32, i32, i32
  }
  func.func @transform_2(%arg0: i32, %arg1: i32, %arg2: i32) -> (i32, i32, i32) {
    %c0_i32 = arith.constant 0 : i32
    %c0_i32_0 = arith.constant 0 : i32
    return %arg0, %c0_i32, %arg1 : i32, i32, i32
  }
}

module attributes {stable_mosaic.version = 11 : i64} {
  func.func @_conv_norm_single_kernel(%arg0: i32, %arg1: i32, %arg2: i32, %arg3: memref<1x20x1024xbf16, #tpu.memory_space<vmem>>, %arg4: memref<2x1024x128xbf16, #tpu.memory_space<vmem>>, %arg5: memref<1x16x128xbf16, #tpu.memory_space<vmem>>) attributes {dimension_semantics = [#tpu.dimension_semantics<parallel>, #tpu.dimension_semantics<parallel>, #tpu.dimension_semantics<arbitrary>], iteration_bounds = array<i64: 2, 2, 1>, scalar_prefetch = 0 : i64, scratch_operands = 0 : i64, tpu.core_type = #tpu.core_type<tc>, window_params = [{transform_indices = @transform_0, window_bounds = array<i64: 1, 20, 1024>}, {transform_indices = @transform_1, window_bounds = array<i64: 2, 1024, 128>}, {transform_indices = @transform_2, window_bounds = array<i64: 1, 16, 128>}]} {
    %c0 = arith.constant 0 : index
    %c0_0 = arith.constant 0 : index
    %c0_1 = arith.constant 0 : index
    %0 = vector.load %arg3[%c0, %c0_0, %c0_1] : memref<1x20x1024xbf16, #tpu.memory_space<vmem>>, vector<1x16x1024xbf16>
    %1 = vector.shape_cast %0 : vector<1x16x1024xbf16> to vector<16x1024xbf16>
    %c0_2 = arith.constant 0 : index
    %c0_3 = arith.constant 0 : index
    %c0_4 = arith.constant 0 : index
    %2 = vector.load %arg4[%c0_2, %c0_3, %c0_4] : memref<2x1024x128xbf16, #tpu.memory_space<vmem>>, vector<1x1024x128xbf16>
    %3 = vector.shape_cast %2 : vector<1x1024x128xbf16> to vector<1024x128xbf16>
    %cst = arith.constant dense<0.000000e+00> : vector<16x128xf32>
    %4 = tpu.matmul %1, %3, %cst {dimension_numbers = #tpu.dot_dimension_numbers<[1], [0], [0], [1], [0, 0, 1, 1], [], []>} : vector<16x1024xbf16>, vector<1024x128xbf16>, vector<16x128xf32> -> vector<16x128xf32>
    %c0_5 = arith.constant 0 : index
    %c4 = arith.constant 4 : index
    %c0_6 = arith.constant 0 : index
    %5 = vector.load %arg3[%c0_5, %c4, %c0_6] : memref<1x20x1024xbf16, #tpu.memory_space<vmem>>, vector<1x16x1024xbf16>
    %6 = vector.shape_cast %5 : vector<1x16x1024xbf16> to vector<16x1024xbf16>
    %c1 = arith.constant 1 : index
    %c0_7 = arith.constant 0 : index
    %c0_8 = arith.constant 0 : index
    %7 = vector.load %arg4[%c1, %c0_7, %c0_8] : memref<2x1024x128xbf16, #tpu.memory_space<vmem>>, vector<1x1024x128xbf16>
    %8 = vector.shape_cast %7 : vector<1x1024x128xbf16> to vector<1024x128xbf16>
    %cst_9 = arith.constant dense<0.000000e+00> : vector<16x128xf32>
    %9 = tpu.matmul %6, %8, %cst_9 {dimension_numbers = #tpu.dot_dimension_numbers<[1], [0], [0], [1], [0, 0, 1, 1], [], []>} : vector<16x1024xbf16>, vector<1024x128xbf16>, vector<16x128xf32> -> vector<16x128xf32>
    %10 = arith.addf %4, %9 : vector<16x128xf32>
    %cst_10 = arith.constant dense<0.000000e+00> : vector<128xf32>
    %11 = vector.multi_reduction <add>, %10, %cst_10 [0] : vector<16x128xf32> to vector<128xf32>
    %12 = vector.shape_cast %11 : vector<128xf32> to vector<1x128xf32>
    %cst_11 = arith.constant 1.600000e+01 : f32
    %13 = vector.broadcast %cst_11 : f32 to vector<1x128xf32>
    %14 = arith.divf %12, %13 : vector<1x128xf32>
    %15 = vector.broadcast %14 : vector<1x128xf32> to vector<16x128xf32>
    %16 = arith.subf %10, %15 : vector<16x128xf32>
    %17 = arith.mulf %16, %16 : vector<16x128xf32>
    %cst_12 = arith.constant dense<0.000000e+00> : vector<128xf32>
    %18 = vector.multi_reduction <add>, %17, %cst_12 [0] : vector<16x128xf32> to vector<128xf32>
    %19 = vector.shape_cast %18 : vector<128xf32> to vector<1x128xf32>
    %cst_13 = arith.constant 1.600000e+01 : f32
    %20 = vector.broadcast %cst_13 : f32 to vector<1x128xf32>
    %21 = arith.divf %19, %20 : vector<1x128xf32>
    %cst_14 = arith.constant 9.99999974E-6 : f32
    %22 = vector.broadcast %cst_14 : f32 to vector<1x128xf32>
    %23 = arith.addf %21, %22 : vector<1x128xf32>
    %24 = math.rsqrt %23 : vector<1x128xf32>
    %25 = vector.broadcast %24 : vector<1x128xf32> to vector<16x128xf32>
    %26 = arith.mulf %16, %25 : vector<16x128xf32>
    %cst_15 = arith.constant 0.000000e+00 : f32
    %27 = vector.broadcast %cst_15 : f32 to vector<16x128xf32>
    %28 = arith.cmpf ogt, %26, %27 : vector<16x128xf32>
    %cst_16 = arith.constant 2.000000e-01 : f32
    %29 = vector.broadcast %cst_16 : f32 to vector<16x128xf32>
    %30 = arith.mulf %29, %26 : vector<16x128xf32>
    %31 = arith.select %28, %26, %30 : vector<16x128xi1>, vector<16x128xf32>
    %32 = arith.truncf %31 : vector<16x128xf32> to vector<16x128xbf16>
    %c0_17 = arith.constant 0 : index
    %c0_18 = arith.constant 0 : index
    %c0_19 = arith.constant 0 : index
    %33 = vector.load %arg5[%c0_17, %c0_18, %c0_19] : memref<1x16x128xbf16, #tpu.memory_space<vmem>>, vector<1x16x128xbf16>
    %34 = vector.shape_cast %33 : vector<1x16x128xbf16> to vector<16x128xbf16>
    %35 = vector.shape_cast %32 : vector<16x128xbf16> to vector<1x16x128xbf16>
    tpu.vector_store %arg5[%c0_17, %c0_18, %c0_19], %35 {strides = array<i32>} : memref<1x16x128xbf16, #tpu.memory_space<vmem>>, vector<1x16x128xbf16>,
    return
  }
  func.func @transform_0(%arg0: i32, %arg1: i32, %arg2: i32) -> (i32, i32, i32) {
    %c0_i32 = arith.constant 0 : i32
    %c0_i32_0 = arith.constant 0 : i32
    %c0_i32_1 = arith.constant 0 : i32
    return %arg0, %c0_i32, %c0_i32_0 : i32, i32, i32
  }
  func.func @transform_1(%arg0: i32, %arg1: i32, %arg2: i32) -> (i32, i32, i32) {
    %c0_i32 = arith.constant 0 : i32
    %c0_i32_0 = arith.constant 0 : i32
    %c0_i32_1 = arith.constant 0 : i32
    return %c0_i32, %c0_i32_0, %arg1 : i32, i32, i32
  }
  func.func @transform_2(%arg0: i32, %arg1: i32, %arg2: i32) -> (i32, i32, i32) {
    %c0_i32 = arith.constant 0 : i32
    %c0_i32_0 = arith.constant 0 : i32
    return %arg0, %c0_i32, %arg1 : i32, i32, i32
  }
}

module attributes {stable_mosaic.version = 11 : i64} {
  func.func @_conv_norm_single_kernel(%arg0: i32, %arg1: i32, %arg2: i32, %arg3: memref<1x18x1024xbf16, #tpu.memory_space<vmem>>, %arg4: memref<4x1024x128xbf16, #tpu.memory_space<vmem>>, %arg5: memref<1x9x128xbf16, #tpu.memory_space<vmem>>) attributes {dimension_semantics = [#tpu.dimension_semantics<parallel>, #tpu.dimension_semantics<parallel>, #tpu.dimension_semantics<arbitrary>], iteration_bounds = array<i64: 2, 4, 1>, scalar_prefetch = 0 : i64, scratch_operands = 0 : i64, tpu.core_type = #tpu.core_type<tc>, window_params = [{transform_indices = @transform_0, window_bounds = array<i64: 1, 18, 1024>}, {transform_indices = @transform_1, window_bounds = array<i64: 4, 1024, 128>}, {transform_indices = @transform_2, window_bounds = array<i64: 1, 9, 128>}]} {
    %c0 = arith.constant 0 : index
    %c0_0 = arith.constant 0 : index
    %c0_1 = arith.constant 0 : index
    %0 = vector.load %arg3[%c0, %c0_0, %c0_1] : memref<1x18x1024xbf16, #tpu.memory_space<vmem>>, vector<1x9x1024xbf16>
    %1 = vector.shape_cast %0 : vector<1x9x1024xbf16> to vector<9x1024xbf16>
    %c0_2 = arith.constant 0 : index
    %c0_3 = arith.constant 0 : index
    %c0_4 = arith.constant 0 : index
    %2 = vector.load %arg4[%c0_2, %c0_3, %c0_4] : memref<4x1024x128xbf16, #tpu.memory_space<vmem>>, vector<1x1024x128xbf16>
    %3 = vector.shape_cast %2 : vector<1x1024x128xbf16> to vector<1024x128xbf16>
    %cst = arith.constant dense<0.000000e+00> : vector<9x128xf32>
    %4 = tpu.matmul %1, %3, %cst {dimension_numbers = #tpu.dot_dimension_numbers<[1], [0], [0], [1], [0, 0, 1, 1], [], []>} : vector<9x1024xbf16>, vector<1024x128xbf16>, vector<9x128xf32> -> vector<9x128xf32>
    %c0_5 = arith.constant 0 : index
    %c3 = arith.constant 3 : index
    %c0_6 = arith.constant 0 : index
    %5 = vector.load %arg3[%c0_5, %c3, %c0_6] : memref<1x18x1024xbf16, #tpu.memory_space<vmem>>, vector<1x9x1024xbf16>
    %6 = vector.shape_cast %5 : vector<1x9x1024xbf16> to vector<9x1024xbf16>
    %c1 = arith.constant 1 : index
    %c0_7 = arith.constant 0 : index
    %c0_8 = arith.constant 0 : index
    %7 = vector.load %arg4[%c1, %c0_7, %c0_8] : memref<4x1024x128xbf16, #tpu.memory_space<vmem>>, vector<1x1024x128xbf16>
    %8 = vector.shape_cast %7 : vector<1x1024x128xbf16> to vector<1024x128xbf16>
    %cst_9 = arith.constant dense<0.000000e+00> : vector<9x128xf32>
    %9 = tpu.matmul %6, %8, %cst_9 {dimension_numbers = #tpu.dot_dimension_numbers<[1], [0], [0], [1], [0, 0, 1, 1], [], []>} : vector<9x1024xbf16>, vector<1024x128xbf16>, vector<9x128xf32> -> vector<9x128xf32>
    %10 = arith.addf %4, %9 : vector<9x128xf32>
    %c0_10 = arith.constant 0 : index
    %c6 = arith.constant 6 : index
    %c0_11 = arith.constant 0 : index
    %11 = vector.load %arg3[%c0_10, %c6, %c0_11] : memref<1x18x1024xbf16, #tpu.memory_space<vmem>>, vector<1x9x1024xbf16>
    %12 = vector.shape_cast %11 : vector<1x9x1024xbf16> to vector<9x1024xbf16>
    %c2 = arith.constant 2 : index
    %c0_12 = arith.constant 0 : index
    %c0_13 = arith.constant 0 : index
    %13 = vector.load %arg4[%c2, %c0_12, %c0_13] : memref<4x1024x128xbf16, #tpu.memory_space<vmem>>, vector<1x1024x128xbf16>
    %14 = vector.shape_cast %13 : vector<1x1024x128xbf16> to vector<1024x128xbf16>
    %cst_14 = arith.constant dense<0.000000e+00> : vector<9x128xf32>
    %15 = tpu.matmul %12, %14, %cst_14 {dimension_numbers = #tpu.dot_dimension_numbers<[1], [0], [0], [1], [0, 0, 1, 1], [], []>} : vector<9x1024xbf16>, vector<1024x128xbf16>, vector<9x128xf32> -> vector<9x128xf32>
    %16 = arith.addf %10, %15 : vector<9x128xf32>
    %c0_15 = arith.constant 0 : index
    %c9 = arith.constant 9 : index
    %c0_16 = arith.constant 0 : index
    %17 = vector.load %arg3[%c0_15, %c9, %c0_16] : memref<1x18x1024xbf16, #tpu.memory_space<vmem>>, vector<1x9x1024xbf16>
    %18 = vector.shape_cast %17 : vector<1x9x1024xbf16> to vector<9x1024xbf16>
    %c3_17 = arith.constant 3 : index
    %c0_18 = arith.constant 0 : index
    %c0_19 = arith.constant 0 : index
    %19 = vector.load %arg4[%c3_17, %c0_18, %c0_19] : memref<4x1024x128xbf16, #tpu.memory_space<vmem>>, vector<1x1024x128xbf16>
    %20 = vector.shape_cast %19 : vector<1x1024x128xbf16> to vector<1024x128xbf16>
    %cst_20 = arith.constant dense<0.000000e+00> : vector<9x128xf32>
    %21 = tpu.matmul %18, %20, %cst_20 {dimension_numbers = #tpu.dot_dimension_numbers<[1], [0], [0], [1], [0, 0, 1, 1], [], []>} : vector<9x1024xbf16>, vector<1024x128xbf16>, vector<9x128xf32> -> vector<9x128xf32>
    %22 = arith.addf %16, %21 : vector<9x128xf32>
    %cst_21 = arith.constant dense<0.000000e+00> : vector<128xf32>
    %23 = vector.multi_reduction <add>, %22, %cst_21 [0] : vector<9x128xf32> to vector<128xf32>
    %24 = vector.shape_cast %23 : vector<128xf32> to vector<1x128xf32>
    %cst_22 = arith.constant 9.000000e+00 : f32
    %25 = vector.broadcast %cst_22 : f32 to vector<1x128xf32>
    %26 = arith.divf %24, %25 : vector<1x128xf32>
    %27 = vector.broadcast %26 : vector<1x128xf32> to vector<9x128xf32>
    %28 = arith.subf %22, %27 : vector<9x128xf32>
    %29 = arith.mulf %28, %28 : vector<9x128xf32>
    %cst_23 = arith.constant dense<0.000000e+00> : vector<128xf32>
    %30 = vector.multi_reduction <add>, %29, %cst_23 [0] : vector<9x128xf32> to vector<128xf32>
    %31 = vector.shape_cast %30 : vector<128xf32> to vector<1x128xf32>
    %cst_24 = arith.constant 9.000000e+00 : f32
    %32 = vector.broadcast %cst_24 : f32 to vector<1x128xf32>
    %33 = arith.divf %31, %32 : vector<1x128xf32>
    %cst_25 = arith.constant 9.99999974E-6 : f32
    %34 = vector.broadcast %cst_25 : f32 to vector<1x128xf32>
    %35 = arith.addf %33, %34 : vector<1x128xf32>
    %36 = math.rsqrt %35 : vector<1x128xf32>
    %37 = vector.broadcast %36 : vector<1x128xf32> to vector<9x128xf32>
    %38 = arith.mulf %28, %37 : vector<9x128xf32>
    %cst_26 = arith.constant 0.000000e+00 : f32
    %39 = vector.broadcast %cst_26 : f32 to vector<9x128xf32>
    %40 = arith.cmpf ogt, %38, %39 : vector<9x128xf32>
    %cst_27 = arith.constant 2.000000e-01 : f32
    %41 = vector.broadcast %cst_27 : f32 to vector<9x128xf32>
    %42 = arith.mulf %41, %38 : vector<9x128xf32>
    %43 = arith.select %40, %38, %42 : vector<9x128xi1>, vector<9x128xf32>
    %44 = arith.truncf %43 : vector<9x128xf32> to vector<9x128xbf16>
    %c0_28 = arith.constant 0 : index
    %c0_29 = arith.constant 0 : index
    %c0_30 = arith.constant 0 : index
    %45 = vector.load %arg5[%c0_28, %c0_29, %c0_30] : memref<1x9x128xbf16, #tpu.memory_space<vmem>>, vector<1x9x128xbf16>
    %46 = vector.shape_cast %45 : vector<1x9x128xbf16> to vector<9x128xbf16>
    %47 = vector.shape_cast %44 : vector<9x128xbf16> to vector<1x9x128xbf16>
    tpu.vector_store %arg5[%c0_28, %c0_29, %c0_30], %47 {strides = array<i32>} : memref<1x9x128xbf16, #tpu.memory_space<vmem>>, vector<1x9x128xbf16>,
    return
  }
  func.func @transform_0(%arg0: i32, %arg1: i32, %arg2: i32) -> (i32, i32, i32) {
    %c0_i32 = arith.constant 0 : i32
    %c0_i32_0 = arith.constant 0 : i32
    %c0_i32_1 = arith.constant 0 : i32
    return %arg0, %c0_i32, %c0_i32_0 : i32, i32, i32
  }
  func.func @transform_1(%arg0: i32, %arg1: i32, %arg2: i32) -> (i32, i32, i32) {
    %c0_i32 = arith.constant 0 : i32
    %c0_i32_0 = arith.constant 0 : i32
    %c0_i32_1 = arith.constant 0 : i32
    return %c0_i32, %c0_i32_0, %arg1 : i32, i32, i32
  }
  func.func @transform_2(%arg0: i32, %arg1: i32, %arg2: i32) -> (i32, i32, i32) {
    %c0_i32 = arith.constant 0 : i32
    %c0_i32_0 = arith.constant 0 : i32
    return %arg0, %c0_i32, %arg1 : i32, i32, i32
  }
}

module attributes {stable_mosaic.version = 11 : i64} {
  func.func @_conv_plain_kernel(%arg0: i32, %arg1: i32, %arg2: i32, %arg3: memref<1x10x2048xbf16, #tpu.memory_space<vmem>>, %arg4: memref<4x2048x128xbf16, #tpu.memory_space<vmem>>, %arg5: memref<1x128xf32, #tpu.memory_space<vmem>>, %arg6: memref<1x4x128xbf16, #tpu.memory_space<vmem>>) attributes {dimension_semantics = [#tpu.dimension_semantics<parallel>, #tpu.dimension_semantics<parallel>, #tpu.dimension_semantics<parallel>], iteration_bounds = array<i64: 2, 1, 1>, scalar_prefetch = 0 : i64, scratch_operands = 0 : i64, tpu.core_type = #tpu.core_type<tc>, window_params = [{transform_indices = @transform_0, window_bounds = array<i64: 1, 10, 2048>}, {transform_indices = @transform_1, window_bounds = array<i64: 4, 2048, 128>}, {transform_indices = @transform_2, window_bounds = array<i64: 1, 128>}, {transform_indices = @transform_3, window_bounds = array<i64: 1, 4, 128>}]} {
    %c0 = arith.constant 0 : index
    %c0_0 = arith.constant 0 : index
    %c0_1 = arith.constant 0 : index
    %0 = vector.load %arg3[%c0, %c0_0, %c0_1] : memref<1x10x2048xbf16, #tpu.memory_space<vmem>>, vector<1x4x2048xbf16>
    %1 = vector.shape_cast %0 : vector<1x4x2048xbf16> to vector<4x2048xbf16>
    %c0_2 = arith.constant 0 : index
    %c0_3 = arith.constant 0 : index
    %c0_4 = arith.constant 0 : index
    %2 = vector.load %arg4[%c0_2, %c0_3, %c0_4] : memref<4x2048x128xbf16, #tpu.memory_space<vmem>>, vector<1x2048x128xbf16>
    %3 = vector.shape_cast %2 : vector<1x2048x128xbf16> to vector<2048x128xbf16>
    %cst = arith.constant dense<0.000000e+00> : vector<4x128xf32>
    %4 = tpu.matmul %1, %3, %cst {dimension_numbers = #tpu.dot_dimension_numbers<[1], [0], [0], [1], [0, 0, 1, 1], [], []>} : vector<4x2048xbf16>, vector<2048x128xbf16>, vector<4x128xf32> -> vector<4x128xf32>
    %c0_5 = arith.constant 0 : index
    %c2 = arith.constant 2 : index
    %c0_6 = arith.constant 0 : index
    %5 = vector.load %arg3[%c0_5, %c2, %c0_6] : memref<1x10x2048xbf16, #tpu.memory_space<vmem>>, vector<1x4x2048xbf16>
    %6 = vector.shape_cast %5 : vector<1x4x2048xbf16> to vector<4x2048xbf16>
    %c1 = arith.constant 1 : index
    %c0_7 = arith.constant 0 : index
    %c0_8 = arith.constant 0 : index
    %7 = vector.load %arg4[%c1, %c0_7, %c0_8] : memref<4x2048x128xbf16, #tpu.memory_space<vmem>>, vector<1x2048x128xbf16>
    %8 = vector.shape_cast %7 : vector<1x2048x128xbf16> to vector<2048x128xbf16>
    %cst_9 = arith.constant dense<0.000000e+00> : vector<4x128xf32>
    %9 = tpu.matmul %6, %8, %cst_9 {dimension_numbers = #tpu.dot_dimension_numbers<[1], [0], [0], [1], [0, 0, 1, 1], [], []>} : vector<4x2048xbf16>, vector<2048x128xbf16>, vector<4x128xf32> -> vector<4x128xf32>
    %10 = arith.addf %4, %9 : vector<4x128xf32>
    %c0_10 = arith.constant 0 : index
    %c4 = arith.constant 4 : index
    %c0_11 = arith.constant 0 : index
    %11 = vector.load %arg3[%c0_10, %c4, %c0_11] : memref<1x10x2048xbf16, #tpu.memory_space<vmem>>, vector<1x4x2048xbf16>
    %12 = vector.shape_cast %11 : vector<1x4x2048xbf16> to vector<4x2048xbf16>
    %c2_12 = arith.constant 2 : index
    %c0_13 = arith.constant 0 : index
    %c0_14 = arith.constant 0 : index
    %13 = vector.load %arg4[%c2_12, %c0_13, %c0_14] : memref<4x2048x128xbf16, #tpu.memory_space<vmem>>, vector<1x2048x128xbf16>
    %14 = vector.shape_cast %13 : vector<1x2048x128xbf16> to vector<2048x128xbf16>
    %cst_15 = arith.constant dense<0.000000e+00> : vector<4x128xf32>
    %15 = tpu.matmul %12, %14, %cst_15 {dimension_numbers = #tpu.dot_dimension_numbers<[1], [0], [0], [1], [0, 0, 1, 1], [], []>} : vector<4x2048xbf16>, vector<2048x128xbf16>, vector<4x128xf32> -> vector<4x128xf32>
    %16 = arith.addf %10, %15 : vector<4x128xf32>
    %c0_16 = arith.constant 0 : index
    %c6 = arith.constant 6 : index
    %c0_17 = arith.constant 0 : index
    %17 = vector.load %arg3[%c0_16, %c6, %c0_17] : memref<1x10x2048xbf16, #tpu.memory_space<vmem>>, vector<1x4x2048xbf16>
    %18 = vector.shape_cast %17 : vector<1x4x2048xbf16> to vector<4x2048xbf16>
    %c3 = arith.constant 3 : index
    %c0_18 = arith.constant 0 : index
    %c0_19 = arith.constant 0 : index
    %19 = vector.load %arg4[%c3, %c0_18, %c0_19] : memref<4x2048x128xbf16, #tpu.memory_space<vmem>>, vector<1x2048x128xbf16>
    %20 = vector.shape_cast %19 : vector<1x2048x128xbf16> to vector<2048x128xbf16>
    %cst_20 = arith.constant dense<0.000000e+00> : vector<4x128xf32>
    %21 = tpu.matmul %18, %20, %cst_20 {dimension_numbers = #tpu.dot_dimension_numbers<[1], [0], [0], [1], [0, 0, 1, 1], [], []>} : vector<4x2048xbf16>, vector<2048x128xbf16>, vector<4x128xf32> -> vector<4x128xf32>
    %22 = arith.addf %16, %21 : vector<4x128xf32>
    %c0_21 = arith.constant 0 : index
    %c0_22 = arith.constant 0 : index
    %23 = vector.load %arg5[%c0_21, %c0_22] : memref<1x128xf32, #tpu.memory_space<vmem>>, vector<1x128xf32>
    %24 = vector.broadcast %23 : vector<1x128xf32> to vector<4x128xf32>
    %25 = arith.addf %22, %24 : vector<4x128xf32>
    %26 = arith.truncf %25 : vector<4x128xf32> to vector<4x128xbf16>
    %c0_23 = arith.constant 0 : index
    %c0_24 = arith.constant 0 : index
    %c0_25 = arith.constant 0 : index
    %27 = vector.load %arg6[%c0_23, %c0_24, %c0_25] : memref<1x4x128xbf16, #tpu.memory_space<vmem>>, vector<1x4x128xbf16>
    %28 = vector.shape_cast %27 : vector<1x4x128xbf16> to vector<4x128xbf16>
    %29 = vector.shape_cast %26 : vector<4x128xbf16> to vector<1x4x128xbf16>
    tpu.vector_store %arg6[%c0_23, %c0_24, %c0_25], %29 {strides = array<i32>} : memref<1x4x128xbf16, #tpu.memory_space<vmem>>, vector<1x4x128xbf16>,
    return
  }
  func.func @transform_0(%arg0: i32, %arg1: i32, %arg2: i32) -> (i32, i32, i32) {
    %c0_i32 = arith.constant 0 : i32
    %c0_i32_0 = arith.constant 0 : i32
    %c0_i32_1 = arith.constant 0 : i32
    return %arg0, %c0_i32, %c0_i32_0 : i32, i32, i32
  }
  func.func @transform_1(%arg0: i32, %arg1: i32, %arg2: i32) -> (i32, i32, i32) {
    %c0_i32 = arith.constant 0 : i32
    %c0_i32_0 = arith.constant 0 : i32
    %c0_i32_1 = arith.constant 0 : i32
    return %c0_i32, %c0_i32_0, %arg1 : i32, i32, i32
  }
  func.func @transform_2(%arg0: i32, %arg1: i32, %arg2: i32) -> (i32, i32) {
    %c0_i32 = arith.constant 0 : i32
    %c0_i32_0 = arith.constant 0 : i32
    return %c0_i32, %arg1 : i32, i32
  }
  func.func @transform_3(%arg0: i32, %arg1: i32, %arg2: i32) -> (i32, i32, i32) {
    %c0_i32 = arith.constant 0 : i32
    return %arg0, %arg2, %arg1 : i32, i32, i32
  }
}

</mosaic_0001>

<bundles_post_ra>
// kernel: tpu_custom_call.1
= control target key start
LH: loop header
LB: loop body
LE: loop exit
PB: predicated region body
PF: predicated region fallthrough
CT: control target
= control target key end

     0   :  { %6 = vsyncpa [#allocation3], 0  ;;  %s441_s0 = inlined_call_operand.hbm [shape: f32[8,128], index: 0, kind: input, shape index: {}]   ;;  %s442_s1 = inlined_call_operand.hbm [shape: f32[16,128], index: 1, kind: output, shape index: {}]  }
   0x1   :  { %7 = vsyncpa [#allocation4], 0 }
   0x2   :  { %9 = vsyncpa [#allocation4 + $0x1], 0  ;;  %s357_s6 = smov 0   ;;  %s359_s7 = smov 0  }
   0x3   :  { %s361_s8 = smov 0   ;;  %s363_s9 = smov 0  }
   0x4 LB: > { %s378_s10 = sadd.s32 4294967295, %s344_s9   ;;  %s188_s11 = sadd.s32 4294967294, %s344_s9   ;;  %s344_s9 = sphi %s363_s9, %s448_s9   ;;  %s340_s8 = sphi %s361_s8, %s447_s8   ;;  %s336_s7 = sphi %s359_s7, %s446_s7   ;;  %s332_s6 = sphi %s357_s6, %s445_s6  }
   0x5   : > { %s382_s12 = sadd.s32 1, %s344_s9   ;;  %s43_s13 = sadd.s32 1, %s340_s8 }
   0x6   : > { %s40_s14 = ssub.s32 %s344_s9, %s382_s12  ;;  %p53_p0 = scmp.ne.s32.totalorder %s340_s8, %s336_s7 }
   0x7   : > { %p41_p1 = scmp.eq.s32.totalorder %s40_s14, 0  ;;  %p54_p2 = scmp.eq.s32.totalorder %s378_s10, 1 }
   0x8   : > { %p59_p3 = scmp.ne.s32.totalorder %s336_s7, %s332_s6  ;;  %p60_p4 = scmp.eq.s32.totalorder %s188_s11, 1 }
   0x9   : > { %s393_s15 = scalar_select %p41_p1, %s340_s8, %s43_s13  }
   0xa   : > { %p395_p5 = por %p54_p2, %p53_p0  ;;  %p399_p6 = por %p60_p4, %p59_p3 }
   0xb   : > { %p189_p7 = scmp.ge.s32.totalorder %s344_s9, 1  ;;  %p67_p8 = scmp.lt.s32.totalorder %s344_s9, 3 }
   0xc   : > { %p212_p9 = scmp.eq.s32.totalorder %s378_s10, 0  ;;  %s79_s20 = sshll.u32 %s441_s0, 4  ;;  %s80_s20 = int_to_ptr.hbm [resolvable:$true] %s79_s20 }
   0xd   : > { %p68_p10 = pnand %p189_p7, %p67_p8  ;;  %s346_s21 = smov [#allocation2]  }
   0xe   : > { %s81_s22 = sshll.u32 %s346_s21, 4  ;;  %s82_s22 = int_to_ptr.vmem [resolvable:$true] %s81_s22 }
   0xf   : > { %p204_p11 = pneg %p68_p10  ;;  %94 = sbr.rel (%p68_p10) target bundleno = 37 (0x25), region = 24 }
  0x11   : > { %p205_p12 = pnand %p212_p9, %p204_p11 }
  0x13   : > { %207 = dma.hbm_to_vmem [thread:$0]  (!%p205_p12), %s80_s20, 128, %s82_s22, [#allocation3]  }
  0x14   : > { %323 = dma.done.wait (%p212_p9), [#allocation3], 128  }
  0x15   : > { %325 = vsyncadd (%p212_p9), [#allocation3], 4294967168  ;;  %s107_s23 = sand.u32 1, %s336_s7   ;;  %s195_s24 = sshll.u32 %s378_s10, 3  ;;  %v110_v0 = vld [vmem:[#allocation2] sm:$0xff] }
  0x16   : > { %s193_s25 = sshll.u32 %s107_s23, 3  ;;  %s124_s28 = scalar_lea.hbm %s442_s1, %s195_s24  ;;  %v111_v1 = vmul.f32 2.0, %v110_v0 }
  0x17   : > { %s109_s29 = scalar_lea.vmem [#allocation5], %s193_s25  ;;  %s128_s2 = sshll.u32 %s124_s28, 4  ;;  %s129_s2 = int_to_ptr.hbm [resolvable:$true] %s128_s2 }
  0x18   : > { %s126_s30 = sshll.u32 %s109_s29, 4  ;;  %112 = vst [vmem:[%s109_s29] sm:$0xff] %v111_v1  ;;  %s114_s3 = scalar_lea.sflag [#allocation4], %s107_s23  ;;  %s127_s30 = int_to_ptr.vmem [resolvable:$true] %s126_s30 }
  0x19   : > { %s292_s4 = sshra.s32 %s129_s2, 4  ;;  %s298_s13 = scalar_lea.hbm %s442_s1, 16  ;;  %s293_s4 = int_to_ptr.hbm [resolvable:$true] %s292_s4 }
  0x1a   : > { %s294_s5 = scalar_lea.hbm %s293_s4, 8  ;;  %p299_p2 = scmp.lt.s32.totalorder %s293_s4, %s442_s1 }
  0x1b   : > { %p295_p13 = scmp.ne.s32.totalorder %s293_s4, %s294_s5  ;;  %p300_p3 = scmp.lt.s32.totalorder %s298_s13, %s294_s5 }
  0x1d   : > { %p296_p0 = pnand %p295_p13, %p395_p5  ;;  %p301_p4 = por %p300_p3, %p299_p2 }
  0x1f   : > { %p297_p1 = pneg %p296_p0 }
  0x21   : > { %p302_p7 = pnand %p301_p4, %p297_p1 }
  0x23   : > { %305 = shalt.err (!%p302_p7)
}
  0x24   : > { %202 = dma.vmem_to_hbm [thread:$0]  (%p395_p5), %s127_s30, 128, %s129_s2, %s114_s3  }
  0x25 PF: > { %p214_p8 = scmp.ge.s32.totalorder %s344_s9, 2  ;;  %s140_s19 = sand.u32 1, %s332_s6  }
  0x26   : > { %s141_s20 = scalar_lea.sflag [#allocation4], %s140_s19 }
  0x27   : > { %p209_p9 = pnand %p214_p8, %p399_p6 }
  0x29   : > { %p210_p10 = pneg %p209_p9 }
  0x2b   : > { %327 = dma.done.wait (%p210_p10), %s141_s20, 128  }
  0x2c   : > { %329 = vsyncadd (%p210_p10), %s141_s20, 4294967168  ;;  %p12_p11 = scmp.ge.s32.totalorder %s382_s12, 4   ;;  %s445_s6 = smov %s336_s7 }
  0x2d   : > { %s446_s7 = smov %s340_s8  ;;  %s447_s8 = smov %s393_s15 }
  0x2e   : > { %s448_s9 = smov %s382_s12  ;;  %14 = sbr.rel (!%p12_p11) target bundleno = 4 (0x4), region = 61 }
  0x33   :  { %147 = vsyncpa [#allocation3], 1 }
  0x34   :  { %149 = vsyncpa [#allocation3 + $0x1], 1 }
  0x35   :  { %150 = vsyncpa [#allocation4], 1 }
  0x36   :  { %152 = vsyncpa [#allocation4 + $0x1], 1 }

// kernel: discriminator_forward.5
= control target key start
LH: loop header
LB: loop body
LE: loop exit
PB: predicated region body
PF: predicated region fallthrough
CT: control target
= control target key end

     0   :  { %s1169_s12 = smov 0   ;;  %s1171_s13 = smov 0   ;;  %s1372_s0 = inlined_call_operand.vmem [shape: bf16[2,272,32], index: 0, kind: input, shape index: {}]   ;;  %s1373_s1 = inlined_call_operand.vmem [shape: bf16[2,32,64], index: 1, kind: input, shape index: {}]   ;;  %s1374_s2 = inlined_call_operand.vmem [shape: f32[1,64], index: 2, kind: input, shape index: {}]   ;;  %s1375_s3 = inlined_call_operand.vmem [shape: bf16[2,256,64], index: 3, kind: output, shape index: {}]  }
   0x1   :  { %s1173_s14 = smov 0  }
   0x2 LB: > { %s32_s15 = sadd.s32 1, %s1143_s13  ;;  %p947_p0 = scmp.ge.s32.totalorder %s1147_s14, 1  ;;  %s1147_s14 = sphi %s1173_s14, %s13_s14   ;;  %s1143_s13 = sphi %s1171_s13, %s1377_s13   ;;  %s1139_s12 = sphi %s1169_s12, %s1376_s12  }
   0x3   : > { %p34_p1 = scmp.ge.s32.totalorder %s32_s15, 2  ;;  %p177_p2 = scmp.lt.s32.totalorder %s1147_s14, 3 }
   0x5   : > { %s1379_s15 = smov (%p34_p1, %s32_s15), 0  ;;  %p178_p3 = pnand %p947_p0, %p177_p2 }
   0x6   : > { %p215_p4 = scmp.lt.s32.totalorder (!%p178_p3), %s1139_s12, 1 }
   0x7   : > { %181 = sbr.rel (%p178_p3) target bundleno = 283 (0x11b), region = 32 }
   0xc   : > { %v1094_v0 = vld [vmem:[%s1373_s1 + $0x18] sm:$0xff]  ;;  %v1091_v1 = vld [vmem:[%s1373_s1 + $0x8] sm:$0xff]  ;;  %v1093_v2 = vld [vmem:[%s1373_s1 + $0x10] sm:$0xff]  ;;  %s1381_s12 = smov (!%p215_p4, %s1139_s12), 1  ;;  %vm376_vm0 = vcmask 261120   ;;  %vm787_vm2 = vcmask 519168  }
   0xd   : > { %431 = vmatpush.bf16.msra.mxu0 %v1094_v0  ;;  %1095 = vmatpush.bf16.msra.mxu2 %v1094_v0  ;;  %v1090_v3 = vld [vmem:[%s1373_s1] sm:$0xff]  ;;  %s1099_s24 = smul.u32 136, %s1381_s12  ;;  %s1073_s30 = sshll.u32 %s1381_s12, 7 }
   0xe   : > { %540 = vmatpush.bf16.msra.mxu1 %v1091_v1  ;;  %1097 = vmatpush.bf16.msra.mxu3 %v1091_v1  ;;  %v1259_v22 = vld [vmem:[%s1374_s2] ss:$0 sm:$0xff]  ;;  %s1266_s6 = scalar_lea.vmem %s1375_s3, %s1073_s30 }
   0xf   : > { %s1205_s27 = scalar_lea.vmem %s1372_s0, %s1099_s24 }
  0x10   : > { %v1075_v4 = vld [vmem:[%s1205_s27 + $0x8] sm:$0xff]  ;;  %v1074_v6 = vld [vmem:[%s1205_s27] sm:$0xff]  ;;  %v1076_v8 = vld [vmem:[%s1205_s27 + $0x10] sm:$0xff] }
  0x11   : > { %432 = vmatpush.bf16.msra.mxu0 %v1093_v2  ;;  %1096 = vmatpush.bf16.msra.mxu2 %v1093_v2  ;;  %v1083_v5 = vld [vmem:[%s1205_s27 + $0x48] sm:$0xff]  ;;  %v1082_v7 = vld [vmem:[%s1205_s27 + $0x40] sm:$0xff]  ;;  %v1084_v9 = vld [vmem:[%s1205_s27 + $0x50] sm:$0xff] }
  0x12   : > { %541 = vmatpush.bf16.msra.mxu1 %v1090_v3  ;;  %1098 = vmatpush.bf16.msra.mxu3 %v1090_v3  ;;  %v1077_v10 = vld [vmem:[%s1205_s27 + $0x18] sm:$0xff]  ;;  %v1078_v12 = vld [vmem:[%s1205_s27 + $0x20] sm:$0xff]  ;;  %v1079_v14 = vld [vmem:[%s1205_s27 + $0x28] sm:$0xff] }
  0x13   : > { %v1085_v11 = vld [vmem:[%s1205_s27 + $0x58] sm:$0xff]  ;;  %v1086_v13 = vld [vmem:[%s1205_s27 + $0x60] sm:$0xff]  ;;  %v1087_v15 = vld [vmem:[%s1205_s27 + $0x68] sm:$0xff] }
  0x14   : > { %1027 = vmatmul.msk.bf16.vlgmr.msra.gmra.mxu0 %vm376_vm0, %v1075_v4  ;;  %1035 = vmatmul.msk.bf16.vlgmr.msra.gmra.mxu2 %vm376_vm0, %v1083_v5  ;;  %v1080_v16 = vld [vmem:[%s1205_s27 + $0x30] sm:$0xff]  ;;  %v1081_v18 = vld [vmem:[%s1205_s27 + $0x38] sm:$0xff]  ;;  %v1092_v20 = vld [vmem:[%s1205_s27 + $0x80] sm:$0xff] }
  0x15   : > { %1055 = vmatmul.msk.bf16.vlgmr.msra.gmra.mxu1 %vm376_vm0, %v1074_v6  ;;  %1063 = vmatmul.msk.bf16.vlgmr.msra.gmra.mxu3 %vm376_vm0, %v1082_v7  ;;  %v1088_v17 = vld [vmem:[%s1205_s27 + $0x70] sm:$0xff]  ;;  %v1089_v19 = vld [vmem:[%s1205_s27 + $0x78] sm:$0xff] }
  0x24   : > { %1028 = vmatmul.msk.bf16.gmra.mxu0 %vm376_vm0, %v1076_v8  ;;  %1036 = vmatmul.msk.bf16.gmra.mxu2 %vm376_vm0, %v1084_v9 }
  0x25   : > { %1056 = vmatmul.msk.bf16.gmra.mxu1 %vm376_vm0, %v1075_v4  ;;  %1064 = vmatmul.msk.bf16.gmra.mxu3 %vm376_vm0, %v1083_v5 }
  0x34   : > { %1029 = vmatmul.msk.bf16.gmra.mxu0 %vm376_vm0, %v1077_v10  ;;  %1037 = vmatmul.msk.bf16.gmra.mxu2 %vm376_vm0, %v1085_v11 }
  0x35   : > { %1057 = vmatmul.msk.bf16.gmra.mxu1 %vm376_vm0, %v1076_v8  ;;  %1065 = vmatmul.msk.bf16.gmra.mxu3 %vm376_vm0, %v1084_v9 }
  0x44   : > { %1030 = vmatmul.msk.bf16.gmra.mxu0 %vm376_vm0, %v1078_v12  ;;  %1038 = vmatmul.msk.bf16.gmra.mxu2 %vm376_vm0, %v1086_v13 }
  0x45   : > { %1058 = vmatmul.msk.bf16.gmra.mxu1 %vm376_vm0, %v1077_v10  ;;  %1066 = vmatmul.msk.bf16.gmra.mxu3 %vm376_vm0, %v1085_v11 }
  0x54   : > { %1031 = vmatmul.msk.bf16.gmra.mxu0 %vm376_vm0, %v1079_v14  ;;  %1039 = vmatmul.msk.bf16.gmra.mxu2 %vm376_vm0, %v1087_v15 }
  0x55   : > { %1059 = vmatmul.msk.bf16.gmra.mxu1 %vm376_vm0, %v1078_v12  ;;  %1067 = vmatmul.msk.bf16.gmra.mxu3 %vm376_vm0, %v1086_v13 }
  0x64   : > { %1032 = vmatmul.msk.bf16.gmra.mxu0 %vm376_vm0, %v1080_v16  ;;  %1040 = vmatmul.msk.bf16.gmra.mxu2 %vm376_vm0, %v1088_v17 }
  0x65   : > { %1060 = vmatmul.msk.bf16.gmra.mxu1 %vm376_vm0, %v1079_v14  ;;  %1068 = vmatmul.msk.bf16.gmra.mxu3 %vm376_vm0, %v1087_v15 }
  0x74   : > { %1033 = vmatmul.msk.bf16.gmra.mxu0 %vm376_vm0, %v1081_v18  ;;  %1041 = vmatmul.msk.bf16.gmra.mxu2 %vm376_vm0, %v1089_v19 }
  0x75   : > { %1061 = vmatmul.msk.bf16.gmra.mxu1 %vm376_vm0, %v1080_v16  ;;  %1069 = vmatmul.msk.bf16.gmra.mxu3 %vm376_vm0, %v1088_v17 }
  0x84   : > { %1034 = vmatmul.msk.bf16.gmra.mxu0 %vm376_vm0, %v1082_v7  ;;  %1042 = vmatmul.msk.bf16.gmra.mxu2 %vm376_vm0, %v1092_v20 }
  0x85   : > { %1062 = vmatmul.msk.bf16.gmra.mxu1 %vm376_vm0, %v1081_v18  ;;  %1070 = vmatmul.msk.bf16.gmra.mxu3 %vm376_vm0, %v1089_v19 }
  0x91   : > { %v434_v21 = vpop.f32.mrf.mxu0 }
  0x92   : > { %v543_v23 = vpop.f32.mrf.mxu1 }
  0x93   : > { %v544_v24 = vadd.f32 %v543_v23, %v434_v21 }
  0x95   : > { %v627_v25 = vadd.f32 %v1259_v22, %v544_v24 }
  0x97   : > { %vm659_vm1 = vcmp.gt.f32.partialorder %v627_v25, 0.0  ;;  %v691_v26 = vmul.f32 0.2, %v627_v25  ;;  %v474_v27 = vpop.f32.mrf.mxu2 }
  0x98   : > { %v583_v28 = vpop.f32.mrf.mxu3 }
  0x99   : > { %v723_v29 = vsel %vm659_vm1, %v627_v25, %v691_v26  ;;  %v584_v30 = vadd.f32 %v583_v28, %v474_v27  ;;  %v436_v31 = vpop.f32.mrf.mxu0 }
  0x9a   : > { %v755_v32 = vpack.c.bf16 %v723_v29, %v723_v29  ;;  %v545_v33 = vpop.f32.mrf.mxu1 }
  0x9b   : > { %v643_v34 = vadd.f32 %v1259_v22, %v584_v30  ;;  %v546_v35 = vadd.f32 %v545_v33, %v436_v31 }
  0x9c   : > { %788 = vst.msk [vmem:[%s1266_s6] sm:$0xf] %vm787_vm2, %v755_v32 }
  0x9d   : > { %vm675_vm3 = vcmp.gt.f32.partialorder %v643_v34, 0.0  ;;  %v707_v36 = vmul.f32 0.2, %v643_v34  ;;  %v628_v37 = vadd.f32 %v1259_v22, %v546_v35 }
  0x9f   : > { %v739_v38 = vsel %vm675_vm3, %v643_v34, %v707_v36  ;;  %vm660_vm4 = vcmp.gt.f32.partialorder %v628_v37, 0.0  ;;  %v692_v39 = vmul.f32 0.2, %v628_v37  ;;  %v476_v40 = vpop.f32.mrf.mxu2 }
  0xa0   : > { %v771_v41 = vpack.c.bf16 %v739_v38, %v739_v38  ;;  %v585_v42 = vpop.f32.mrf.mxu3 }
  0xa1   : > { %v724_v43 = vsel %vm660_vm4, %v628_v37, %v692_v39  ;;  %v586_v44 = vadd.f32 %v585_v42, %v476_v40  ;;  %v439_v45 = vpop.f32.mrf.mxu0 }
  0xa2   : > { %804 = vst.msk [vmem:[%s1266_s6 + $0x40] sm:$0xf] %vm787_vm2, %v771_v41  ;;  %v756_v46 = vpack.c.bf16 %v724_v43, %v724_v43  ;;  %v548_v47 = vpop.f32.mrf.mxu1 }
  0xa3   : > { %v644_v48 = vadd.f32 %v1259_v22, %v586_v44  ;;  %v549_v49 = vadd.f32 %v548_v47, %v439_v45 }
  0xa4   : > { %789 = vst.msk [vmem:[%s1266_s6 + $0x4] sm:$0xf] %vm787_vm2, %v756_v46 }
  0xa5   : > { %vm676_vm5 = vcmp.gt.f32.partialorder %v644_v48, 0.0  ;;  %v708_v50 = vmul.f32 0.2, %v644_v48  ;;  %v629_v51 = vadd.f32 %v1259_v22, %v549_v49 }
  0xa7   : > { %v740_v52 = vsel %vm676_vm5, %v644_v48, %v708_v50  ;;  %vm661_vm6 = vcmp.gt.f32.partialorder %v629_v51, 0.0  ;;  %v693_v53 = vmul.f32 0.2, %v629_v51  ;;  %v479_v54 = vpop.f32.mrf.mxu2 }
  0xa8   : > { %v772_v55 = vpack.c.bf16 %v740_v52, %v740_v52  ;;  %v588_v56 = vpop.f32.mrf.mxu3 }
  0xa9   : > { %v725_v57 = vsel %vm661_vm6, %v629_v51, %v693_v53  ;;  %v589_v58 = vadd.f32 %v588_v56, %v479_v54  ;;  %v441_v59 = vpop.f32.mrf.mxu0 }
  0xaa   : > { %805 = vst.msk [vmem:[%s1266_s6 + $0x44] sm:$0xf] %vm787_vm2, %v772_v55  ;;  %v757_v60 = vpack.c.bf16 %v725_v57, %v725_v57  ;;  %v550_v61 = vpop.f32.mrf.mxu1 }
  0xab   : > { %v645_v62 = vadd.f32 %v1259_v22, %v589_v58  ;;  %v551_v63 = vadd.f32 %v550_v61, %v441_v59 }
  0xac   : > { %790 = vst.msk [vmem:[%s1266_s6 + $0x8] sm:$0xf] %vm787_vm2, %v757_v60 }
  0xad   : > { %vm677_vm7 = vcmp.gt.f32.partialorder %v645_v62, 0.0  ;;  %v709_v0 = vmul.f32 0.2, %v645_v62  ;;  %v630_v1 = vadd.f32 %v1259_v22, %v551_v63 }
  0xaf   : > { %v741_v2 = vsel %vm677_vm7, %v645_v62, %v709_v0  ;;  %vm662_vm8 = vcmp.gt.f32.partialorder %v630_v1, 0.0  ;;  %v694_v3 = vmul.f32 0.2, %v630_v1  ;;  %v481_v4 = vpop.f32.mrf.mxu2 }
  0xb0   : > { %v773_v5 = vpack.c.bf16 %v741_v2, %v741_v2  ;;  %v590_v6 = vpop.f32.mrf.mxu3 }
  0xb1   : > { %v726_v7 = vsel %vm662_vm8, %v630_v1, %v694_v3  ;;  %v591_v8 = vadd.f32 %v590_v6, %v481_v4  ;;  %v444_v9 = vpop.f32.mrf.mxu0 }
  0xb2   : > { %806 = vst.msk [vmem:[%s1266_s6 + $0x48] sm:$0xf] %vm787_vm2, %v773_v5  ;;  %v758_v10 = vpack.c.bf16 %v726_v7, %v726_v7  ;;  %v553_v11 = vpop.f32.mrf.mxu1 }
  0xb3   : > { %v646_v12 = vadd.f32 %v1259_v22, %v591_v8  ;;  %v554_v13 = vadd.f32 %v553_v11, %v444_v9 }
  0xb4   : > { %791 = vst.msk [vmem:[%s1266_s6 + $0xc] sm:$0xf] %vm787_vm2, %v758_v10 }
  0xb5   : > { %vm678_vm9 = vcmp.gt.f32.partialorder %v646_v12, 0.0  ;;  %v710_v14 = vmul.f32 0.2, %v646_v12  ;;  %v631_v15 = vadd.f32 %v1259_v22, %v554_v13 }
  0xb7   : > { %v742_v16 = vsel %vm678_vm9, %v646_v12, %v710_v14  ;;  %vm663_vm10 = vcmp.gt.f32.partialorder %v631_v15, 0.0  ;;  %v695_v17 = vmul.f32 0.2, %v631_v15  ;;  %v484_v18 = vpop.f32.mrf.mxu2 }
  0xb8   : > { %v774_v19 = vpack.c.bf16 %v742_v16, %v742_v16  ;;  %v593_v20 = vpop.f32.mrf.mxu3 }
  0xb9   : > { %v727_v21 = vsel %vm663_vm10, %v631_v15, %v695_v17  ;;  %v594_v23 = vadd.f32 %v593_v20, %v484_v18  ;;  %v446_v24 = vpop.f32.mrf.mxu0 }
  0xba   : > { %807 = vst.msk [vmem:[%s1266_s6 + $0x4c] sm:$0xf] %vm787_vm2, %v774_v19  ;;  %v759_v25 = vpack.c.bf16 %v727_v21, %v727_v21  ;;  %v555_v26 = vpop.f32.mrf.mxu1 }
  0xbb   : > { %v647_v27 = vadd.f32 %v1259_v22, %v594_v23  ;;  %v556_v28 = vadd.f32 %v555_v26, %v446_v24 }
  0xbc   : > { %792 = vst.msk [vmem:[%s1266_s6 + $0x10] sm:$0xf] %vm787_vm2, %v759_v25 }
  0xbd   : > { %vm679_vm11 = vcmp.gt.f32.partialorder %v647_v27, 0.0  ;;  %v711_v29 = vmul.f32 0.2, %v647_v27  ;;  %v632_v30 = vadd.f32 %v1259_v22, %v556_v28 }
  0xbf   : > { %v743_v31 = vsel %vm679_vm11, %v647_v27, %v711_v29  ;;  %vm664_vm12 = vcmp.gt.f32.partialorder %v632_v30, 0.0  ;;  %v696_v32 = vmul.f32 0.2, %v632_v30  ;;  %v486_v33 = vpop.f32.mrf.mxu2 }
  0xc0   : > { %v775_v34 = vpack.c.bf16 %v743_v31, %v743_v31  ;;  %v595_v35 = vpop.f32.mrf.mxu3 }
  0xc1   : > { %v728_v36 = vsel %vm664_vm12, %v632_v30, %v696_v32  ;;  %v596_v37 = vadd.f32 %v595_v35, %v486_v33  ;;  %v449_v38 = vpop.f32.mrf.mxu0 }
  0xc2   : > { %808 = vst.msk [vmem:[%s1266_s6 + $0x50] sm:$0xf] %vm787_vm2, %v775_v34  ;;  %v760_v39 = vpack.c.bf16 %v728_v36, %v728_v36  ;;  %v558_v40 = vpop.f32.mrf.mxu1 }
  0xc3   : > { %v648_v41 = vadd.f32 %v1259_v22, %v596_v37  ;;  %v559_v42 = vadd.f32 %v558_v40, %v449_v38 }
  0xc4   : > { %793 = vst.msk [vmem:[%s1266_s6 + $0x14] sm:$0xf] %vm787_vm2, %v760_v39 }
  0xc5   : > { %vm680_vm13 = vcmp.gt.f32.partialorder %v648_v41, 0.0  ;;  %v712_v43 = vmul.f32 0.2, %v648_v41  ;;  %v633_v44 = vadd.f32 %v1259_v22, %v559_v42 }
  0xc7   : > { %v744_v45 = vsel %vm680_vm13, %v648_v41, %v712_v43  ;;  %vm665_vm14 = vcmp.gt.f32.partialorder %v633_v44, 0.0  ;;  %v697_v46 = vmul.f32 0.2, %v633_v44  ;;  %v489_v47 = vpop.f32.mrf.mxu2 }
  0xc8   : > { %v776_v48 = vpack.c.bf16 %v744_v45, %v744_v45  ;;  %v598_v49 = vpop.f32.mrf.mxu3 }
  0xc9   : > { %v729_v50 = vsel %vm665_vm14, %v633_v44, %v697_v46  ;;  %v599_v51 = vadd.f32 %v598_v49, %v489_v47  ;;  %v451_v52 = vpop.f32.mrf.mxu0 }
  0xca   : > { %809 = vst.msk [vmem:[%s1266_s6 + $0x54] sm:$0xf] %vm787_vm2, %v776_v48  ;;  %v761_v53 = vpack.c.bf16 %v729_v50, %v729_v50  ;;  %v560_v54 = vpop.f32.mrf.mxu1 }
  0xcb   : > { %v649_v55 = vadd.f32 %v1259_v22, %v599_v51  ;;  %v561_v56 = vadd.f32 %v560_v54, %v451_v52 }
  0xcc   : > { %794 = vst.msk [vmem:[%s1266_s6 + $0x18] sm:$0xf] %vm787_vm2, %v761_v53 }
  0xcd   : > { %vm681_vm15 = vcmp.gt.f32.partialorder %v649_v55, 0.0  ;;  %v713_v57 = vmul.f32 0.2, %v649_v55  ;;  %v634_v58 = vadd.f32 %v1259_v22, %v561_v56 }
  0xcf   : > { %v745_v59 = vsel %vm681_vm15, %v649_v55, %v713_v57  ;;  %vm666_vm0 = vcmp.gt.f32.partialorder %v634_v58, 0.0  ;;  %v698_v60 = vmul.f32 0.2, %v634_v58  ;;  %v491_v61 = vpop.f32.mrf.mxu2 }
  0xd0   : > { %v777_v62 = vpack.c.bf16 %v745_v59, %v745_v59  ;;  %v600_v63 = vpop.f32.mrf.mxu3 }
  0xd1   : > { %v730_v0 = vsel %vm666_vm0, %v634_v58, %v698_v60  ;;  %v601_v1 = vadd.f32 %v600_v63, %v491_v61  ;;  %v454_v2 = vpop.f32.mrf.mxu0 }
  0xd2   : > { %810 = vst.msk [vmem:[%s1266_s6 + $0x58] sm:$0xf] %vm787_vm2, %v777_v62  ;;  %v762_v3 = vpack.c.bf16 %v730_v0, %v730_v0  ;;  %v563_v4 = vpop.f32.mrf.mxu1 }
  0xd3   : > { %v650_v5 = vadd.f32 %v1259_v22, %v601_v1  ;;  %v564_v6 = vadd.f32 %v563_v4, %v454_v2 }
  0xd4   : > { %795 = vst.msk [vmem:[%s1266_s6 + $0x1c] sm:$0xf] %vm787_vm2, %v762_v3 }
  0xd5   : > { %vm682_vm1 = vcmp.gt.f32.partialorder %v650_v5, 0.0  ;;  %v714_v7 = vmul.f32 0.2, %v650_v5  ;;  %v635_v8 = vadd.f32 %v1259_v22, %v564_v6 }
  0xd7   : > { %v746_v9 = vsel %vm682_vm1, %v650_v5, %v714_v7  ;;  %vm667_vm3 = vcmp.gt.f32.partialorder %v635_v8, 0.0  ;;  %v699_v10 = vmul.f32 0.2, %v635_v8  ;;  %v494_v11 = vpop.f32.mrf.mxu2 }
  0xd8   : > { %v778_v12 = vpack.c.bf16 %v746_v9, %v746_v9  ;;  %v603_v13 = vpop.f32.mrf.mxu3 }
  0xd9   : > { %v731_v14 = vsel %vm667_vm3, %v635_v8, %v699_v10  ;;  %v604_v15 = vadd.f32 %v603_v13, %v494_v11  ;;  %v456_v16 = vpop.f32.mrf.mxu0 }
  0xda   : > { %811 = vst.msk [vmem:[%s1266_s6 + $0x5c] sm:$0xf] %vm787_vm2, %v778_v12  ;;  %v763_v17 = vpack.c.bf16 %v731_v14, %v731_v14  ;;  %v565_v18 = vpop.f32.mrf.mxu1 }
  0xdb   : > { %v651_v19 = vadd.f32 %v1259_v22, %v604_v15  ;;  %v566_v20 = vadd.f32 %v565_v18, %v456_v16 }
  0xdc   : > { %796 = vst.msk [vmem:[%s1266_s6 + $0x20] sm:$0xf] %vm787_vm2, %v763_v17 }
  0xdd   : > { %vm683_vm4 = vcmp.gt.f32.partialorder %v651_v19, 0.0  ;;  %v715_v21 = vmul.f32 0.2, %v651_v19  ;;  %v636_v23 = vadd.f32 %v1259_v22, %v566_v20 }
  0xdf   : > { %v747_v24 = vsel %vm683_vm4, %v651_v19, %v715_v21  ;;  %vm668_vm5 = vcmp.gt.f32.partialorder %v636_v23, 0.0  ;;  %v700_v25 = vmul.f32 0.2, %v636_v23  ;;  %v496_v26 = vpop.f32.mrf.mxu2 }
  0xe0   : > { %v779_v27 = vpack.c.bf16 %v747_v24, %v747_v24  ;;  %v605_v28 = vpop.f32.mrf.mxu3 }
  0xe1   : > { %v732_v29 = vsel %vm668_vm5, %v636_v23, %v700_v25  ;;  %v606_v30 = vadd.f32 %v605_v28, %v496_v26  ;;  %v459_v31 = vpop.f32.mrf.mxu0 }
  0xe2   : > { %812 = vst.msk [vmem:[%s1266_s6 + $0x60] sm:$0xf] %vm787_vm2, %v779_v27  ;;  %v764_v32 = vpack.c.bf16 %v732_v29, %v732_v29  ;;  %v568_v33 = vpop.f32.mrf.mxu1 }
  0xe3   : > { %v652_v34 = vadd.f32 %v1259_v22, %v606_v30  ;;  %v569_v35 = vadd.f32 %v568_v33, %v459_v31 }
  0xe4   : > { %797 = vst.msk [vmem:[%s1266_s6 + $0x24] sm:$0xf] %vm787_vm2, %v764_v32 }
  0xe5   : > { %vm684_vm6 = vcmp.gt.f32.partialorder %v652_v34, 0.0  ;;  %v716_v36 = vmul.f32 0.2, %v652_v34  ;;  %v637_v37 = vadd.f32 %v1259_v22, %v569_v35 }
  0xe7   : > { %v748_v38 = vsel %vm684_vm6, %v652_v34, %v716_v36  ;;  %vm669_vm7 = vcmp.gt.f32.partialorder %v637_v37, 0.0  ;;  %v701_v39 = vmul.f32 0.2, %v637_v37  ;;  %v499_v40 = vpop.f32.mrf.mxu2 }
  0xe8   : > { %v780_v41 = vpack.c.bf16 %v748_v38, %v748_v38  ;;  %v608_v42 = vpop.f32.mrf.mxu3 }
  0xe9   : > { %v733_v43 = vsel %vm669_vm7, %v637_v37, %v701_v39  ;;  %v609_v44 = vadd.f32 %v608_v42, %v499_v40  ;;  %v461_v45 = vpop.f32.mrf.mxu0 }
  0xea   : > { %813 = vst.msk [vmem:[%s1266_s6 + $0x64] sm:$0xf] %vm787_vm2, %v780_v41  ;;  %v765_v46 = vpack.c.bf16 %v733_v43, %v733_v43  ;;  %v570_v47 = vpop.f32.mrf.mxu1 }
  0xeb   : > { %v653_v48 = vadd.f32 %v1259_v22, %v609_v44  ;;  %v571_v49 = vadd.f32 %v570_v47, %v461_v45 }
  0xec   : > { %798 = vst.msk [vmem:[%s1266_s6 + $0x28] sm:$0xf] %vm787_vm2, %v765_v46 }
  0xed   : > { %vm685_vm8 = vcmp.gt.f32.partialorder %v653_v48, 0.0  ;;  %v717_v50 = vmul.f32 0.2, %v653_v48  ;;  %v638_v51 = vadd.f32 %v1259_v22, %v571_v49 }
  0xef   : > { %v749_v52 = vsel %vm685_vm8, %v653_v48, %v717_v50  ;;  %vm670_vm9 = vcmp.gt.f32.partialorder %v638_v51, 0.0  ;;  %v702_v53 = vmul.f32 0.2, %v638_v51  ;;  %v501_v54 = vpop.f32.mrf.mxu2 }
  0xf0   : > { %v781_v55 = vpack.c.bf16 %v749_v52, %v749_v52  ;;  %v610_v56 = vpop.f32.mrf.mxu3 }
  0xf1   : > { %v734_v57 = vsel %vm670_vm9, %v638_v51, %v702_v53  ;;  %v611_v58 = vadd.f32 %v610_v56, %v501_v54  ;;  %v464_v59 = vpop.f32.mrf.mxu0 }
  0xf2   : > { %814 = vst.msk [vmem:[%s1266_s6 + $0x68] sm:$0xf] %vm787_vm2, %v781_v55  ;;  %v766_v60 = vpack.c.bf16 %v734_v57, %v734_v57  ;;  %v573_v61 = vpop.f32.mrf.mxu1 }
  0xf3   : > { %v654_v62 = vadd.f32 %v1259_v22, %v611_v58  ;;  %v574_v63 = vadd.f32 %v573_v61, %v464_v59 }
  0xf4   : > { %799 = vst.msk [vmem:[%s1266_s6 + $0x2c] sm:$0xf] %vm787_vm2, %v766_v60 }
  0xf5   : > { %vm686_vm10 = vcmp.gt.f32.partialorder %v654_v62, 0.0  ;;  %v718_v0 = vmul.f32 0.2, %v654_v62  ;;  %v639_v1 = vadd.f32 %v1259_v22, %v574_v63 }
  0xf7   : > { %v750_v2 = vsel %vm686_vm10, %v654_v62, %v718_v0  ;;  %vm671_vm11 = vcmp.gt.f32.partialorder %v639_v1, 0.0  ;;  %v703_v3 = vmul.f32 0.2, %v639_v1  ;;  %v504_v4 = vpop.f32.mrf.mxu2 }
  0xf8   : > { %v782_v5 = vpack.c.bf16 %v750_v2, %v750_v2  ;;  %v613_v6 = vpop.f32.mrf.mxu3 }
  0xf9   : > { %v735_v7 = vsel %vm671_vm11, %v639_v1, %v703_v3  ;;  %v614_v8 = vadd.f32 %v613_v6, %v504_v4  ;;  %v466_v9 = vpop.f32.mrf.mxu0 }
  0xfa   : > { %815 = vst.msk [vmem:[%s1266_s6 + $0x6c] sm:$0xf] %vm787_vm2, %v782_v5  ;;  %v767_v10 = vpack.c.bf16 %v735_v7, %v735_v7  ;;  %v575_v11 = vpop.f32.mrf.mxu1 }
  0xfb   : > { %v655_v12 = vadd.f32 %v1259_v22, %v614_v8  ;;  %v576_v13 = vadd.f32 %v575_v11, %v466_v9 }
  0xfc   : > { %800 = vst.msk [vmem:[%s1266_s6 + $0x30] sm:$0xf] %vm787_vm2, %v767_v10 }
  0xfd   : > { %vm687_vm12 = vcmp.gt.f32.partialorder %v655_v12, 0.0  ;;  %v719_v14 = vmul.f32 0.2, %v655_v12  ;;  %v640_v15 = vadd.f32 %v1259_v22, %v576_v13 }
  0xff   : > { %v751_v16 = vsel %vm687_vm12, %v655_v12, %v719_v14  ;;  %vm672_vm13 = vcmp.gt.f32.partialorder %v640_v15, 0.0  ;;  %v704_v17 = vmul.f32 0.2, %v640_v15  ;;  %v506_v18 = vpop.f32.mrf.mxu2 }
 0x100   : > { %v783_v19 = vpack.c.bf16 %v751_v16, %v751_v16  ;;  %v615_v20 = vpop.f32.mrf.mxu3 }
 0x101   : > { %v736_v21 = vsel %vm672_vm13, %v640_v15, %v704_v17  ;;  %v616_v23 = vadd.f32 %v615_v20, %v506_v18  ;;  %v469_v24 = vpop.f32.mrf.mxu0 }
 0x102   : > { %816 = vst.msk [vmem:[%s1266_s6 + $0x70] sm:$0xf] %vm787_vm2, %v783_v19  ;;  %v768_v25 = vpack.c.bf16 %v736_v21, %v736_v21  ;;  %v578_v26 = vpop.f32.mrf.mxu1 }
 0x103   : > { %v656_v27 = vadd.f32 %v1259_v22, %v616_v23  ;;  %v579_v28 = vadd.f32 %v578_v26, %v469_v24 }
 0x104   : > { %801 = vst.msk [vmem:[%s1266_s6 + $0x34] sm:$0xf] %vm787_vm2, %v768_v25 }
 0x105   : > { %vm688_vm14 = vcmp.gt.f32.partialorder %v656_v27, 0.0  ;;  %v720_v29 = vmul.f32 0.2, %v656_v27  ;;  %v641_v30 = vadd.f32 %v1259_v22, %v579_v28 }
 0x107   : > { %v752_v31 = vsel %vm688_vm14, %v656_v27, %v720_v29  ;;  %vm673_vm15 = vcmp.gt.f32.partialorder %v641_v30, 0.0  ;;  %v705_v32 = vmul.f32 0.2, %v641_v30  ;;  %v509_v33 = vpop.f32.mrf.mxu2 }
 0x108   : > { %v784_v34 = vpack.c.bf16 %v752_v31, %v752_v31  ;;  %v618_v35 = vpop.f32.mrf.mxu3 }
 0x109   : > { %v737_v36 = vsel %vm673_vm15, %v641_v30, %v705_v32  ;;  %v619_v37 = vadd.f32 %v618_v35, %v509_v33  ;;  %v471_v38 = vpop.f32.mrf.mxu0 }
 0x10a   : > { %817 = vst.msk [vmem:[%s1266_s6 + $0x74] sm:$0xf] %vm787_vm2, %v784_v34  ;;  %v769_v39 = vpack.c.bf16 %v737_v36, %v737_v36  ;;  %v580_v40 = vpop.f32.mrf.mxu1 }
 0x10b   : > { %v657_v41 = vadd.f32 %v1259_v22, %v619_v37  ;;  %v581_v42 = vadd.f32 %v580_v40, %v471_v38 }
 0x10c   : > { %802 = vst.msk [vmem:[%s1266_s6 + $0x38] sm:$0xf] %vm787_vm2, %v769_v39 }
 0x10d   : > { %vm689_vm0 = vcmp.gt.f32.partialorder %v657_v41, 0.0  ;;  %v721_v43 = vmul.f32 0.2, %v657_v41  ;;  %v642_v44 = vadd.f32 %v1259_v22, %v581_v42 }
 0x10f   : > { %v753_v45 = vsel %vm689_vm0, %v657_v41, %v721_v43  ;;  %vm674_vm1 = vcmp.gt.f32.partialorder %v642_v44, 0.0  ;;  %v706_v46 = vmul.f32 0.2, %v642_v44  ;;  %v511_v47 = vpop.f32.mrf.mxu2 }
 0x110   : > { %v785_v48 = vpack.c.bf16 %v753_v45, %v753_v45  ;;  %v620_v49 = vpop.f32.mrf.mxu3 }
 0x111   : > { %v738_v50 = vsel %vm674_vm1, %v642_v44, %v706_v46  ;;  %v621_v51 = vadd.f32 %v620_v49, %v511_v47 }
 0x112   : > { %818 = vst.msk [vmem:[%s1266_s6 + $0x78] sm:$0xf] %vm787_vm2, %v785_v48  ;;  %v770_v52 = vpack.c.bf16 %v738_v50, %v738_v50 }
 0x113   : > { %v658_v53 = vadd.f32 %v1259_v22, %v621_v51 }
 0x114   : > { %803 = vst.msk [vmem:[%s1266_s6 + $0x3c] sm:$0xf] %vm787_vm2, %v770_v52 }
 0x115   : > { %vm690_vm3 = vcmp.gt.f32.partialorder %v658_v53, 0.0  ;;  %v722_v54 = vmul.f32 0.2, %v658_v53 }
 0x117   : > { %v754_v55 = vsel %vm690_vm3, %v658_v53, %v722_v54 }
 0x118   : > { %v786_v56 = vpack.c.bf16 %v754_v55, %v754_v55 }
 0x11a   : > { %819 = vst.msk [vmem:[%s1266_s6 + $0x7c] sm:$0xf] %vm787_vm2, %v786_v56 }
 0x11b PF: > { %s13_s14 = sadd.s32 1, %s1147_s14   ;;  %s1376_s12 = smov %s1143_s13 }
 0x11c   : > { %p10_p5 = scmp.ge.s32.totalorder %s13_s14, 4   ;;  %s1377_s13 = smov %s1379_s15 }
 0x11e   :  { %12 = sbr.rel (!%p10_p5) target bundleno = 2 (0x2), region = 69 }

// kernel: discriminator_forward.6
= control target key start
LH: loop header
LB: loop body
LE: loop exit
PB: predicated region body
PF: predicated region fallthrough
CT: control target
= control target key end

     0   :  { %s1977_s9 = smov 0   ;;  %s1979_s10 = smov 0   ;;  %s2299_s0 = inlined_call_operand.vmem [shape: bf16[2,72,512], index: 0, kind: input, shape index: {}]   ;;  %s2300_s1 = inlined_call_operand.vmem [shape: bf16[2,512,128], index: 1, kind: input, shape index: {}]   ;;  %s2301_s2 = inlined_call_operand.vmem [shape: bf16[2,64,128], index: 2, kind: output, shape index: {}]  }
   0x1   :  { %s1981_s11 = smov 0  }
   0x2 LB: > { %s31_s12 = sadd.s32 1, %s1955_s10  ;;  %p1333_p0 = scmp.ge.s32.totalorder %s1959_s11, 1  ;;  %s1959_s11 = sphi %s1981_s11, %s12_s11   ;;  %s1955_s10 = sphi %s1979_s10, %s2303_s10   ;;  %s1951_s9 = sphi %s1977_s9, %s2302_s9  }
   0x3   : > { %p33_p1 = scmp.ge.s32.totalorder %s31_s12, 2  ;;  %p142_p2 = scmp.lt.s32.totalorder %s1959_s11, 3 }
   0x5   : > { %s2305_s12 = smov (%p33_p1, %s31_s12), 0  ;;  %p143_p3 = pnand %p1333_p0, %p142_p2 }
   0x6   : > { %p171_p4 = scmp.lt.s32.totalorder (!%p143_p3), %s1951_s9, 1 }
   0x7   : > { %146 = sbr.rel (%p143_p3) target bundleno = 384 (0x180), region = 28 }
   0xc   : > { %v1859_v0 = vld [vmem:[%s2300_s1 + $0x138] sm:$0xff]  ;;  %v1858_v4 = vld [vmem:[%s2300_s1 + $0x130] sm:$0xff]  ;;  %v1857_v8 = vld [vmem:[%s2300_s1 + $0x128] sm:$0xff]  ;;  %s2307_s9 = smov (!%p171_p4, %s1951_s9), 1 }
   0xd   : > { %v1867_v1 = vld [vmem:[%s2300_s1 + $0x178] sm:$0xff]  ;;  %621 = vmatpush.bf16.msra.mxu0 %v1859_v0  ;;  %v1866_v5 = vld [vmem:[%s2300_s1 + $0x170] sm:$0xff]  ;;  %v1865_v9 = vld [vmem:[%s2300_s1 + $0x168] sm:$0xff]  ;;  %s1907_s5 = smul.u32 144, %s2307_s9 }
   0xe   : > { %v1875_v2 = vld [vmem:[%s2300_s1 + $0x1b8] sm:$0xff]  ;;  %650 = vmatpush.bf16.msra.mxu1 %v1867_v1  ;;  %v1874_v6 = vld [vmem:[%s2300_s1 + $0x1b0] sm:$0xff]  ;;  %v1873_v10 = vld [vmem:[%s2300_s1 + $0x1a8] sm:$0xff] }
   0xf   : > { %v1883_v3 = vld [vmem:[%s2300_s1 + $0x1f8] sm:$0xff]  ;;  %679 = vmatpush.bf16.msra.mxu2 %v1875_v2  ;;  %v1882_v7 = vld [vmem:[%s2300_s1 + $0x1f0] sm:$0xff]  ;;  %v1881_v11 = vld [vmem:[%s2300_s1 + $0x1e8] sm:$0xff]  ;;  %s2083_s20 = scalar_lea.vmem %s2299_s0, %s1907_s5 }
  0x10   : > { %708 = vmatpush.bf16.msra.mxu3 %v1883_v3  ;;  %v1856_v12 = vld [vmem:[%s2300_s1 + $0x120] sm:$0xff]  ;;  %v1855_v16 = vld [vmem:[%s2300_s1 + $0x118] sm:$0xff]  ;;  %v1854_v20 = vld [vmem:[%s2300_s1 + $0x110] sm:$0xff] }
  0x11   : > { %622 = vmatpush.bf16.msra.mxu0 %v1858_v4  ;;  %v1864_v13 = vld [vmem:[%s2300_s1 + $0x160] sm:$0xff]  ;;  %v1863_v17 = vld [vmem:[%s2300_s1 + $0x158] sm:$0xff]  ;;  %v1862_v21 = vld [vmem:[%s2300_s1 + $0x150] sm:$0xff] }
  0x12   : > { %651 = vmatpush.bf16.msra.mxu1 %v1866_v5  ;;  %v1872_v14 = vld [vmem:[%s2300_s1 + $0x1a0] sm:$0xff]  ;;  %v1871_v18 = vld [vmem:[%s2300_s1 + $0x198] sm:$0xff]  ;;  %v1870_v22 = vld [vmem:[%s2300_s1 + $0x190] sm:$0xff] }
  0x13   : > { %680 = vmatpush.bf16.msra.mxu2 %v1874_v6  ;;  %v1880_v15 = vld [vmem:[%s2300_s1 + $0x1e0] sm:$0xff]  ;;  %v1879_v19 = vld [vmem:[%s2300_s1 + $0x1d8] sm:$0xff]  ;;  %v1878_v23 = vld [vmem:[%s2300_s1 + $0x1d0] sm:$0xff] }
  0x14   : > { %709 = vmatpush.bf16.msra.mxu3 %v1882_v7  ;;  %v1853_v24 = vld [vmem:[%s2300_s1 + $0x108] sm:$0xff]  ;;  %v1852_v28 = vld [vmem:[%s2300_s1 + $0x100] sm:$0xff]  ;;  %v1403_v32 = vld [vmem:[%s2083_s20 + $0x10] sm:$0xf] }
  0x15   : > { %623 = vmatpush.bf16.msra.mxu0 %v1857_v8  ;;  %v1861_v25 = vld [vmem:[%s2300_s1 + $0x148] sm:$0xff]  ;;  %v1860_v29 = vld [vmem:[%s2300_s1 + $0x140] sm:$0xff]  ;;  %v1836_v34 = vld [vmem:[%s2083_s20 + $0x14] sm:$0xf] }
  0x16   : > { %652 = vmatpush.bf16.msra.mxu1 %v1865_v9  ;;  %v1869_v26 = vld [vmem:[%s2300_s1 + $0x188] sm:$0xff]  ;;  %v1868_v30 = vld [vmem:[%s2300_s1 + $0x180] sm:$0xff]  ;;  %v1411_v36 = vld [vmem:[%s2083_s20 + $0x18] sm:$0xf] }
  0x17   : > { %681 = vmatpush.bf16.msra.mxu2 %v1873_v10  ;;  %v1877_v27 = vld [vmem:[%s2300_s1 + $0x1c8] sm:$0xff]  ;;  %v1876_v31 = vld [vmem:[%s2300_s1 + $0x1c0] sm:$0xff]  ;;  %v1837_v38 = vld [vmem:[%s2083_s20 + $0x1c] sm:$0xf] }
  0x18   : > { %710 = vmatpush.bf16.msra.mxu3 %v1881_v11  ;;  %v1838_v33 = vld [vmem:[%s2083_s20 + $0x1c] sm:$0xf0]  ;;  %v1405_v35 = vld [vmem:[%s2083_s20 + $0x20] sm:$0xf0]  ;;  %v1839_v37 = vld [vmem:[%s2083_s20 + $0x24] sm:$0xf0] }
  0x19   : > { %624 = vmatpush.bf16.msra.mxu0 %v1856_v12  ;;  %v1413_v39 = vld [vmem:[%s2083_s20 + $0x28] sm:$0xf0]  ;;  %v1827_v40 = vld [vmem:[%s2300_s1 + $0xb8] sm:$0xff]  ;;  %v1404_v42 = vor.u32 %v1838_v33, %v1403_v32  ;;  %v1408_v43 = vor.u32 %v1836_v34, %v1405_v35  ;;  %v1412_v44 = vor.u32 %v1839_v37, %v1411_v36  ;;  %v1826_v48 = vld [vmem:[%s2300_s1 + $0xb0] sm:$0xff] }
  0x1a   : > { %653 = vmatpush.bf16.msra.mxu1 %v1864_v13  ;;  %v1811_v41 = vld [vmem:[%s2300_s1 + $0x38] sm:$0xff]  ;;  %v1416_v45 = vor.u32 %v1837_v38, %v1413_v39  ;;  %v1810_v49 = vld [vmem:[%s2300_s1 + $0x30] sm:$0xff]  ;;  %v1825_v52 = vld [vmem:[%s2300_s1 + $0xa8] sm:$0xff] }
  0x1b   : > { %682 = vmatpush.bf16.msra.mxu2 %v1872_v14  ;;  %v1835_v46 = vld [vmem:[%s2300_s1 + $0xf8] sm:$0xff]  ;;  %v1834_v50 = vld [vmem:[%s2300_s1 + $0xf0] sm:$0xff]  ;;  %v1809_v53 = vld [vmem:[%s2300_s1 + $0x28] sm:$0xff] }
  0x1c   : > { %711 = vmatpush.bf16.msra.mxu3 %v1880_v15  ;;  %v1819_v47 = vld [vmem:[%s2300_s1 + $0x78] sm:$0xff]  ;;  %v1818_v51 = vld [vmem:[%s2300_s1 + $0x70] sm:$0xff]  ;;  %v1833_v54 = vld [vmem:[%s2300_s1 + $0xe8] sm:$0xff] }
  0x1d   : > { %625 = vmatpush.bf16.msra.mxu0 %v1855_v16  ;;  %v1817_v55 = vld [vmem:[%s2300_s1 + $0x68] sm:$0xff]  ;;  %v1419_v56 = vld [vmem:[%s2083_s20 + $0x30] sm:$0xf]  ;;  %v1824_v57 = vld [vmem:[%s2300_s1 + $0xa0] sm:$0xff] }
  0x1e   : > { %654 = vmatpush.bf16.msra.mxu1 %v1863_v17  ;;  %v1808_v58 = vld [vmem:[%s2300_s1 + $0x20] sm:$0xff]  ;;  %v1840_v60 = vld [vmem:[%s2083_s20 + $0x34] sm:$0xf]  ;;  %v1427_v62 = vld [vmem:[%s2083_s20 + $0x38] sm:$0xf] }
  0x1f   : > { %683 = vmatpush.bf16.msra.mxu2 %v1871_v18  ;;  %v1842_v59 = vld [vmem:[%s2083_s20 + $0x3c] sm:$0xf0]  ;;  %v1421_v61 = vld [vmem:[%s2083_s20 + $0x40] sm:$0xf0]  ;;  %v1843_v63 = vld [vmem:[%s2083_s20 + $0x44] sm:$0xf0] }
  0x20   : > { %712 = vmatpush.bf16.msra.mxu3 %v1879_v19  ;;  %v1841_v0 = vld [vmem:[%s2083_s20 + $0x3c] sm:$0xf]  ;;  %v1429_v1 = vld [vmem:[%s2083_s20 + $0x48] sm:$0xf0]  ;;  %v1832_v2 = vld [vmem:[%s2300_s1 + $0xe0] sm:$0xff]  ;;  %v1420_v6 = vor.u32 %v1842_v59, %v1419_v56  ;;  %v1424_v7 = vor.u32 %v1840_v60, %v1421_v61  ;;  %v1428_v8 = vor.u32 %v1843_v63, %v1427_v62 }
  0x21   : > { %626 = vmatpush.bf16.msra.mxu0 %v1854_v20  ;;  %v1816_v3 = vld [vmem:[%s2300_s1 + $0x60] sm:$0xff]  ;;  %v1823_v4 = vld [vmem:[%s2300_s1 + $0x98] sm:$0xff]  ;;  %v1432_v9 = vor.u32 %v1841_v0, %v1429_v1  ;;  %v1822_v12 = vld [vmem:[%s2300_s1 + $0x90] sm:$0xff] }
  0x22   : > { %655 = vmatpush.bf16.msra.mxu1 %v1862_v21  ;;  %v1807_v5 = vld [vmem:[%s2300_s1 + $0x18] sm:$0xff]  ;;  %v1806_v13 = vld [vmem:[%s2300_s1 + $0x10] sm:$0xff]  ;;  %v1821_v16 = vld [vmem:[%s2300_s1 + $0x88] sm:$0xff] }
  0x23   : > { %684 = vmatpush.bf16.msra.mxu2 %v1870_v22  ;;  %v1831_v10 = vld [vmem:[%s2300_s1 + $0xd8] sm:$0xff]  ;;  %v1830_v14 = vld [vmem:[%s2300_s1 + $0xd0] sm:$0xff]  ;;  %v1805_v17 = vld [vmem:[%s2300_s1 + $0x8] sm:$0xff] }
  0x24   : > { %713 = vmatpush.bf16.msra.mxu3 %v1878_v23  ;;  %v1815_v11 = vld [vmem:[%s2300_s1 + $0x58] sm:$0xff]  ;;  %v1814_v15 = vld [vmem:[%s2300_s1 + $0x50] sm:$0xff]  ;;  %v1829_v18 = vld [vmem:[%s2300_s1 + $0xc8] sm:$0xff] }
  0x25   : > { %627 = vmatpush.bf16.msra.mxu0 %v1853_v24  ;;  %v1813_v19 = vld [vmem:[%s2300_s1 + $0x48] sm:$0xff]  ;;  %v1435_v20 = vld [vmem:[%s2083_s20 + $0x50] sm:$0xf]  ;;  %v1820_v21 = vld [vmem:[%s2300_s1 + $0x80] sm:$0xff] }
  0x26   : > { %656 = vmatpush.bf16.msra.mxu1 %v1861_v25  ;;  %v1804_v22 = vld [vmem:[%s2300_s1] sm:$0xff]  ;;  %v1844_v24 = vld [vmem:[%s2083_s20 + $0x54] sm:$0xf]  ;;  %v1451_v36 = vld [vmem:[%s2083_s20 + $0x70] sm:$0xf] }
  0x27   : > { %685 = vmatpush.bf16.msra.mxu2 %v1869_v26  ;;  %v1846_v23 = vld [vmem:[%s2083_s20 + $0x5c] sm:$0xf0]  ;;  %v1437_v25 = vld [vmem:[%s2083_s20 + $0x60] sm:$0xf0]  ;;  %v1443_v26 = vld [vmem:[%s2083_s20 + $0x58] sm:$0xf] }
  0x28   : > { %714 = vmatpush.bf16.msra.mxu3 %v1877_v27  ;;  %v1847_v27 = vld [vmem:[%s2083_s20 + $0x64] sm:$0xf0]  ;;  %v1436_v32 = vor.u32 %v1846_v23, %v1435_v20  ;;  %v1440_v33 = vor.u32 %v1844_v24, %v1437_v25  ;;  %v1850_v37 = vld [vmem:[%s2083_s20 + $0x7c] sm:$0xf0]  ;;  %v1848_v38 = vld [vmem:[%s2083_s20 + $0x74] sm:$0xf] }
  0x29   : > { %628 = vmatpush.bf16.msra.mxu0 %v1852_v28  ;;  %v1845_v28 = vld [vmem:[%s2083_s20 + $0x5c] sm:$0xf]  ;;  %v1444_v34 = vor.u32 %v1847_v27, %v1443_v26  ;;  %v1453_v39 = vld [vmem:[%s2083_s20 + $0x80] sm:$0xf0]  ;;  %v1611_v60 = vld [vmem:[%s2083_s20 + $0x20] sm:$0xf] }
  0x2a   : > { %657 = vmatpush.bf16.msra.mxu1 %v1860_v29  ;;  %v1445_v29 = vld [vmem:[%s2083_s20 + $0x68] sm:$0xf0]  ;;  %v1794_v61 = vld [vmem:[%s2083_s20 + $0x2c] sm:$0xf0]  ;;  %v1792_v62 = vld [vmem:[%s2083_s20 + $0x24] sm:$0xf] }
  0x2b   : > { %686 = vmatpush.bf16.msra.mxu2 %v1868_v30  ;;  %v1828_v30 = vld [vmem:[%s2300_s1 + $0xc0] sm:$0xff]  ;;  %v1448_v35 = vor.u32 %v1845_v28, %v1445_v29  ;;  %v1613_v63 = vld [vmem:[%s2083_s20 + $0x30] sm:$0xf0]  ;;  %v1619_v0 = vld [vmem:[%s2083_s20 + $0x28] sm:$0xf] }
  0x2c   : > { %715 = vmatpush.bf16.msra.mxu3 %v1876_v31  ;;  %629 = vmatmul.bf16.vlgmr.msra.gmra.mxu0 %v1404_v42  ;;  %v1812_v31 = vld [vmem:[%s2300_s1 + $0x40] sm:$0xff]  ;;  %v1849_v42 = vld [vmem:[%s2083_s20 + $0x7c] sm:$0xf]  ;;  %v1795_v1 = vld [vmem:[%s2083_s20 + $0x34] sm:$0xf0] }
  0x2d   : > { %1009 = vmatpush.bf16.msrb.mxu0 %v1811_v41  ;;  %658 = vmatmul.bf16.vlgmr.msra.gmra.mxu1 %v1408_v43  ;;  %v1851_v41 = vld [vmem:[%s2083_s20 + $0x84] sm:$0xf0]  ;;  %v1461_v43 = vld [vmem:[%s2083_s20 + $0x88] sm:$0xf0]  ;;  %v1643_v20 = vld [vmem:[%s2083_s20 + $0x60] sm:$0xf] }
  0x2e   : > { %687 = vmatmul.bf16.vlgmr.msra.gmra.mxu2 %v1412_v44  ;;  %1038 = vmatpush.bf16.msrb.mxu1 %v1819_v47  ;;  %v1452_v44 = vor.u32 %v1850_v37, %v1451_v36  ;;  %v1464_v47 = vor.u32 %v1849_v42, %v1461_v43  ;;  %v1645_v23 = vld [vmem:[%s2083_s20 + $0x70] sm:$0xf0]  ;;  %v1651_v24 = vld [vmem:[%s2083_s20 + $0x68] sm:$0xf]  ;;  %v1803_v25 = vld [vmem:[%s2083_s20 + $0x74] sm:$0xf0] }
  0x2f   : > { %1067 = vmatpush.bf16.msrb.mxu2 %v1827_v40  ;;  %716 = vmatmul.bf16.vlgmr.msra.gmra.mxu3 %v1416_v45  ;;  %v1459_v40 = vld [vmem:[%s2083_s20 + $0x78] sm:$0xf]  ;;  %v1456_v45 = vor.u32 %v1848_v38, %v1453_v39  ;;  %v1801_v26 = vld [vmem:[%s2083_s20 + $0x6c] sm:$0xf]  ;;  %v1653_v27 = vld [vmem:[%s2083_s20 + $0x78] sm:$0xf0] }
  0x30   : > { %1096 = vmatpush.bf16.msrb.mxu3 %v1835_v46  ;;  %v1460_v46 = vor.u32 %v1851_v41, %v1459_v40 }
  0x31   : > { %1010 = vmatpush.bf16.msrb.mxu0 %v1810_v49  ;;  %v1790_v49 = vld [vmem:[%s2083_s20 + $0xc] sm:$0xf0] }
  0x32   : > { %1039 = vmatpush.bf16.msrb.mxu1 %v1818_v51  ;;  %v1597_v51 = vld [vmem:[%s2083_s20 + $0x10] sm:$0xf0] }
  0x33   : > { %1068 = vmatpush.bf16.msrb.mxu2 %v1826_v48  ;;  %v1595_v48 = vld [vmem:[%s2083_s20] sm:$0xf] }
  0x34   : > { %1097 = vmatpush.bf16.msrb.mxu3 %v1834_v50  ;;  %v1788_v50 = vld [vmem:[%s2083_s20 + $0x4] sm:$0xf]  ;;  %v1596_v56 = vor.u32 %v1790_v49, %v1595_v48 }
  0x35   : > { %1011 = vmatpush.bf16.msrb.mxu0 %v1809_v53  ;;  %v1791_v53 = vld [vmem:[%s2083_s20 + $0x14] sm:$0xf0] }
  0x36   : > { %1040 = vmatpush.bf16.msrb.mxu1 %v1817_v55  ;;  %v1605_v55 = vld [vmem:[%s2083_s20 + $0x18] sm:$0xf0] }
  0x37   : > { %1069 = vmatpush.bf16.msrb.mxu2 %v1825_v52  ;;  %v1603_v52 = vld [vmem:[%s2083_s20 + $0x8] sm:$0xf] }
  0x38   : > { %1098 = vmatpush.bf16.msrb.mxu3 %v1833_v54  ;;  %v1789_v54 = vld [vmem:[%s2083_s20 + $0xc] sm:$0xf] }
  0x39   : > { %1012 = vmatpush.bf16.msrb.mxu0 %v1808_v58  ;;  %v1604_v58 = vor.u32 %v1791_v53, %v1603_v52  ;;  %v1608_v59 = vor.u32 %v1789_v54, %v1605_v55 }
  0x3a   : > { %1041 = vmatpush.bf16.msrb.mxu1 %v1816_v3  ;;  %v1621_v3 = vld [vmem:[%s2083_s20 + $0x38] sm:$0xf0] }
  0x3b   : > { %1070 = vmatpush.bf16.msrb.mxu2 %v1824_v57  ;;  %v1600_v57 = vor.u32 %v1788_v50, %v1597_v51 }
  0x3c   : > { %1099 = vmatpush.bf16.msrb.mxu3 %v1832_v2  ;;  %634 = vmatmul.bf16.gmra.mxu0 %v1420_v6  ;;  %v1793_v2 = vld [vmem:[%s2083_s20 + $0x2c] sm:$0xf]  ;;  %v1620_v6 = vor.u32 %v1795_v1, %v1619_v0 }
  0x3d   : > { %1013 = vmatpush.bf16.msrb.mxu0 %v1807_v5  ;;  %663 = vmatmul.bf16.gmra.mxu1 %v1424_v7  ;;  %v1616_v5 = vor.u32 %v1792_v62, %v1613_v63  ;;  %v1624_v7 = vor.u32 %v1793_v2, %v1621_v3 }
  0x3e   : > { %692 = vmatmul.bf16.gmra.mxu2 %v1428_v8  ;;  %1042 = vmatpush.bf16.msrb.mxu1 %v1815_v11  ;;  %v1627_v8 = vld [vmem:[%s2083_s20 + $0x40] sm:$0xf]  ;;  %v1629_v11 = vld [vmem:[%s2083_s20 + $0x50] sm:$0xf0] }
  0x3f   : > { %1071 = vmatpush.bf16.msrb.mxu2 %v1823_v4  ;;  %721 = vmatmul.bf16.gmra.mxu3 %v1432_v9  ;;  %v1612_v4 = vor.u32 %v1794_v61, %v1611_v60  ;;  %v1798_v9 = vld [vmem:[%s2083_s20 + $0x4c] sm:$0xf0] }
  0x40   : > { %1100 = vmatpush.bf16.msrb.mxu3 %v1831_v10  ;;  %v1796_v10 = vld [vmem:[%s2083_s20 + $0x44] sm:$0xf] }
  0x41   : > { %1014 = vmatpush.bf16.msrb.mxu0 %v1806_v13  ;;  %v1799_v13 = vld [vmem:[%s2083_s20 + $0x54] sm:$0xf0] }
  0x42   : > { %1043 = vmatpush.bf16.msrb.mxu1 %v1814_v15  ;;  %v1637_v15 = vld [vmem:[%s2083_s20 + $0x58] sm:$0xf0] }
  0x43   : > { %1072 = vmatpush.bf16.msrb.mxu2 %v1822_v12  ;;  %v1635_v12 = vld [vmem:[%s2083_s20 + $0x48] sm:$0xf] }
  0x44   : > { %1101 = vmatpush.bf16.msrb.mxu3 %v1830_v14  ;;  %v1797_v14 = vld [vmem:[%s2083_s20 + $0x4c] sm:$0xf] }
  0x45   : > { %1015 = vmatpush.bf16.msrb.mxu0 %v1805_v17  ;;  %v1632_v17 = vor.u32 %v1796_v10, %v1629_v11 }
  0x46   : > { %1044 = vmatpush.bf16.msrb.mxu1 %v1813_v19  ;;  %v1640_v19 = vor.u32 %v1797_v14, %v1637_v15 }
  0x47   : > { %1073 = vmatpush.bf16.msrb.mxu2 %v1821_v16  ;;  %v1628_v16 = vor.u32 %v1798_v9, %v1627_v8 }
  0x48   : > { %1102 = vmatpush.bf16.msrb.mxu3 %v1829_v18  ;;  %v1636_v18 = vor.u32 %v1799_v13, %v1635_v12 }
  0x49   : > { %1016 = vmatpush.bf16.msrb.mxu0 %v1804_v22  ;;  %v1800_v22 = vld [vmem:[%s2083_s20 + $0x64] sm:$0xf] }
  0x4a   : > { %1045 = vmatpush.bf16.msrb.mxu1 %v1812_v31  ;;  %v1648_v29 = vor.u32 %v1800_v22, %v1645_v23  ;;  %v1656_v31 = vor.u32 %v1801_v26, %v1653_v27 }
  0x4b   : > { %1074 = vmatpush.bf16.msrb.mxu2 %v1820_v21  ;;  %v1802_v21 = vld [vmem:[%s2083_s20 + $0x6c] sm:$0xf0]  ;;  %s1787_s20 = sshll.u32 %s2307_s9, 5 }
  0x4c   : > { %1103 = vmatpush.bf16.msrb.mxu3 %v1828_v30  ;;  %639 = vmatmul.bf16.gmra.mxu0 %v1436_v32  ;;  %v1644_v28 = vor.u32 %v1802_v21, %v1643_v20  ;;  %v1652_v30 = vor.u32 %v1803_v25, %v1651_v24  ;;  %s187_s9 = scalar_lea.vmem %s2301_s2, %s1787_s20 }
  0x4d   : > { %668 = vmatmul.bf16.gmra.mxu1 %v1440_v33 }
  0x4e   : > { %697 = vmatmul.bf16.gmra.mxu2 %v1444_v34 }
  0x4f   : > { %726 = vmatmul.bf16.gmra.mxu3 %v1448_v35 }
  0x5c   : > { %644 = vmatmul.bf16.gmra.mxu0 %v1452_v44 }
  0x5d   : > { %673 = vmatmul.bf16.gmra.mxu1 %v1456_v45 }
  0x5e   : > { %702 = vmatmul.bf16.gmra.mxu2 %v1460_v46 }
  0x5f   : > { %731 = vmatmul.bf16.gmra.mxu3 %v1464_v47 }
  0x6c   : > { %1017 = vmatmul.bf16.vlgmr.msrb.gmra.mxu0 %v1596_v56 }
  0x6d   : > { %1046 = vmatmul.bf16.vlgmr.msrb.gmra.mxu1 %v1600_v57 }
  0x6e   : > { %1075 = vmatmul.bf16.vlgmr.msrb.gmra.mxu2 %v1604_v58 }
  0x6f   : > { %1104 = vmatmul.bf16.vlgmr.msrb.gmra.mxu3 %v1608_v59 }
  0x7c   : > { %1022 = vmatmul.bf16.gmra.mxu0 %v1612_v4 }
  0x7d   : > { %1051 = vmatmul.bf16.gmra.mxu1 %v1616_v5 }
  0x7e   : > { %1080 = vmatmul.bf16.gmra.mxu2 %v1620_v6 }
  0x7f   : > { %1109 = vmatmul.bf16.gmra.mxu3 %v1624_v7 }
  0x8c   : > { %1027 = vmatmul.bf16.gmra.mxu0 %v1628_v16 }
  0x8d   : > { %1056 = vmatmul.bf16.gmra.mxu1 %v1632_v17 }
  0x8e   : > { %1085 = vmatmul.bf16.gmra.mxu2 %v1636_v18 }
  0x8f   : > { %1114 = vmatmul.bf16.gmra.mxu3 %v1640_v19 }
  0x9c   : > { %1032 = vmatmul.bf16.gmra.mxu0 %v1644_v28 }
  0x9d   : > { %1061 = vmatmul.bf16.gmra.mxu1 %v1648_v29 }
  0x9e   : > { %1090 = vmatmul.bf16.gmra.mxu2 %v1652_v30 }
  0x9f   : > { %1119 = vmatmul.bf16.gmra.mxu3 %v1656_v31 }
  0xa9   : > { %v630_v32 = vpop.f32.mrf.mxu0 }
  0xaa   : > { %v659_v33 = vpop.f32.mrf.mxu1 }
  0xab   : > { %v660_v34 = vadd.f32 %v659_v33, %v630_v32 }
  0xb1   : > { %v688_v35 = vpop.f32.mrf.mxu2  ;;  %v632_v38 = vpop.f32.mrf.mxu0 }
  0xb2   : > { %v717_v36 = vpop.f32.mrf.mxu3  ;;  %v689_v37 = vadd.f32 %v688_v35, %v660_v34  ;;  %v661_v39 = vpop.f32.mrf.mxu1 }
  0xb3   : > { %v662_v40 = vadd.f32 %v661_v39, %v632_v38 }
  0xb4   : > { %v718_v41 = vadd.f32 %v717_v36, %v689_v37 }
  0xb9   : > { %v690_v42 = vpop.f32.mrf.mxu2  ;;  %v635_v45 = vpop.f32.mrf.mxu0 }
  0xba   : > { %v719_v43 = vpop.f32.mrf.mxu3  ;;  %v691_v44 = vadd.f32 %v690_v42, %v662_v40  ;;  %v664_v46 = vpop.f32.mrf.mxu1 }
  0xbb   : > { %v665_v47 = vadd.f32 %v664_v46, %v635_v45 }
  0xbc   : > { %v720_v48 = vadd.f32 %v719_v43, %v691_v44 }
  0xc1   : > { %v693_v49 = vpop.f32.mrf.mxu2  ;;  %v637_v52 = vpop.f32.mrf.mxu0 }
  0xc2   : > { %v722_v50 = vpop.f32.mrf.mxu3  ;;  %v694_v51 = vadd.f32 %v693_v49, %v665_v47  ;;  %v666_v53 = vpop.f32.mrf.mxu1 }
  0xc3   : > { %v667_v54 = vadd.f32 %v666_v53, %v637_v52 }
  0xc4   : > { %v723_v55 = vadd.f32 %v722_v50, %v694_v51 }
  0xc9   : > { %v695_v56 = vpop.f32.mrf.mxu2  ;;  %v640_v59 = vpop.f32.mrf.mxu0 }
  0xca   : > { %v724_v57 = vpop.f32.mrf.mxu3  ;;  %v696_v58 = vadd.f32 %v695_v56, %v667_v54  ;;  %v669_v60 = vpop.f32.mrf.mxu1 }
  0xcb   : > { %v670_v61 = vadd.f32 %v669_v60, %v640_v59 }
  0xcc   : > { %v725_v62 = vadd.f32 %v724_v57, %v696_v58 }
  0xd1   : > { %v698_v63 = vpop.f32.mrf.mxu2  ;;  %v642_v2 = vpop.f32.mrf.mxu0 }
  0xd2   : > { %v727_v0 = vpop.f32.mrf.mxu3  ;;  %v699_v1 = vadd.f32 %v698_v63, %v670_v61  ;;  %v671_v3 = vpop.f32.mrf.mxu1 }
  0xd3   : > { %v672_v4 = vadd.f32 %v671_v3, %v642_v2 }
  0xd4   : > { %v728_v5 = vadd.f32 %v727_v0, %v699_v1 }
  0xd9   : > { %v700_v6 = vpop.f32.mrf.mxu2  ;;  %v645_v9 = vpop.f32.mrf.mxu0 }
  0xda   : > { %v729_v7 = vpop.f32.mrf.mxu3  ;;  %v701_v8 = vadd.f32 %v700_v6, %v672_v4  ;;  %v674_v10 = vpop.f32.mrf.mxu1 }
  0xdb   : > { %v675_v63 = vadd.f32 %v674_v10, %v645_v9 }
  0xdc   : > { %v730_v11 = vadd.f32 %v729_v7, %v701_v8 }
  0xe1   : > { %v703_v12 = vpop.f32.mrf.mxu2  ;;  %v647_v14 = vpop.f32.mrf.mxu0 }
  0xe2   : > { %v732_v13 = vpop.f32.mrf.mxu3  ;;  %v676_v15 = vpop.f32.mrf.mxu1  ;;  %v704_v1 = vadd.f32 %v703_v12, %v675_v63 }
  0xe4   : > { %v733_v7 = vadd.f32 %v732_v13, %v704_v1 }
  0xe9   : > { %v705_v16 = vpop.f32.mrf.mxu2  ;;  %v1018_v18 = vpop.f32.mrf.mxu0 }
  0xea   : > { %v2263_v17 = vpop.f32.mrf.mxu3  ;;  %v1047_v19 = vpop.f32.mrf.mxu1  ;;  %v1019_v22 = vadd.f32 %v1018_v18, %v718_v41 }
  0xec   : > { %v1048_v26 = vadd.f32 %v1047_v19, %v1019_v22  ;;  %v677_v19 = vadd.f32 %v676_v15, %v647_v14 }
  0xee   : > { %v706_v22 = vadd.f32 %v705_v16, %v677_v19 }
  0xf1   : > { %v1076_v20 = vpop.f32.mrf.mxu2  ;;  %v1020_v23 = vpop.f32.mrf.mxu0 }
  0xf2   : > { %v1105_v21 = vpop.f32.mrf.mxu3  ;;  %v1049_v24 = vpop.f32.mrf.mxu1  ;;  %v1021_v25 = vadd.f32 %v1020_v23, %v720_v48  ;;  %v1077_v27 = vadd.f32 %v1076_v20, %v1048_v26 }
  0xf4   : > { %v1050_v28 = vadd.f32 %v1049_v24, %v1021_v25  ;;  %v2265_v34 = vadd.f32 %v1105_v21, %v1077_v27  ;;  %v1961_v25 = vmov 64.0  }
  0xf5   : > { %1933 = vrcp.f32 %v1961_v25 }
  0xf9   : > { %v1078_v29 = vpop.f32.mrf.mxu2  ;;  %v1023_v32 = vpop.f32.mrf.mxu0 }
  0xfa   : > { %v1107_v30 = vpop.f32.mrf.mxu3  ;;  %v1079_v31 = vadd.f32 %v1078_v29, %v1050_v28  ;;  %v1052_v33 = vpop.f32.mrf.mxu1  ;;  %v1024_v36 = vadd.f32 %v1023_v32, %v723_v55 }
  0xfb   : > { %v1934_v13 = vpop.eup %1933 }
  0xfc   : > { %v2267_v35 = vadd.f32 %v1107_v30, %v1079_v31  ;;  %v1053_v38 = vadd.f32 %v1052_v33, %v1024_v36  ;;  %v1139_v31 = vmul.f32 64.0, %v1934_v13  ;;  %vm1143_vm0 = vweird.f32 %v1934_v13 }
  0xfe   : > { %v1125_v37 = vadd.f32 %v2267_v35, %v2265_v34  ;;  %v1140_v36 = vsub.f32 1.0, %v1139_v31 }
 0x101   : > { %v1081_v39 = vpop.f32.mrf.mxu2  ;;  %v1025_v42 = vpop.f32.mrf.mxu0 }
 0x102   : > { %v1110_v40 = vpop.f32.mrf.mxu3  ;;  %v1082_v41 = vadd.f32 %v1081_v39, %v1053_v38  ;;  %v1054_v43 = vpop.f32.mrf.mxu1  ;;  %v1026_v45 = vadd.f32 %v1025_v42, %v725_v62  ;;  %v1141_v39 = vmul.f32 %v1934_v13, %v1140_v36 }
 0x104   : > { %v2271_v44 = vadd.f32 %v1110_v40, %v1082_v41  ;;  %v1055_v47 = vadd.f32 %v1054_v43, %v1026_v45 }
 0x106   : > { %v1126_v46 = vadd.f32 %v1125_v37, %v2271_v44 }
 0x109   : > { %v1083_v48 = vpop.f32.mrf.mxu2  ;;  %v1028_v51 = vpop.f32.mrf.mxu0 }
 0x10a   : > { %v1112_v49 = vpop.f32.mrf.mxu3  ;;  %v1084_v50 = vadd.f32 %v1083_v48, %v1055_v47  ;;  %v1057_v52 = vpop.f32.mrf.mxu1  ;;  %v1029_v54 = vadd.f32 %v1028_v51, %v728_v5 }
 0x10c   : > { %v1113_v53 = vadd.f32 %v1112_v49, %v1084_v50  ;;  %v1058_v56 = vadd.f32 %v1057_v52, %v1029_v54 }
 0x10e   : > { %v1127_v55 = vadd.f32 %v1126_v46, %v1113_v53 }
 0x111   : > { %v1086_v57 = vpop.f32.mrf.mxu2  ;;  %v1030_v60 = vpop.f32.mrf.mxu0 }
 0x112   : > { %v1115_v58 = vpop.f32.mrf.mxu3  ;;  %v1087_v59 = vadd.f32 %v1086_v57, %v1058_v56  ;;  %v1059_v61 = vpop.f32.mrf.mxu1  ;;  %v1031_v62 = vadd.f32 %v1030_v60, %v730_v11  ;;  %v735_v11 = vadd.f32 %v2263_v17, %v706_v22  ;;  %v1142_v17 = vadd.f32 %v1934_v13, %v1141_v39 }
 0x114   : > { %v1116_v0 = vadd.f32 %v1115_v58, %v1087_v59  ;;  %v1060_v3 = vadd.f32 %v1059_v61, %v1031_v62  ;;  %v1144_v45 = vsel %vm1143_vm0, %v1934_v13, %v1142_v17 }
 0x116   : > { %v1128_v2 = vadd.f32 %v1127_v55, %v1116_v0 }
 0x119   : > { %v1088_v4 = vpop.f32.mrf.mxu2  ;;  %v1033_v18 = vpop.f32.mrf.mxu0 }
 0x11a   : > { %v1117_v6 = vpop.f32.mrf.mxu3  ;;  %v1089_v8 = vadd.f32 %v1088_v4, %v1060_v3  ;;  %v1034_v20 = vadd.f32 %v1033_v18, %v733_v7  ;;  %v1062_v21 = vpop.f32.mrf.mxu1 }
 0x11c   : > { %v1118_v5 = vadd.f32 %v1117_v6, %v1089_v8  ;;  %v1063_v24 = vadd.f32 %v1062_v21, %v1034_v20 }
 0x11e   : > { %v1129_v23 = vadd.f32 %v1128_v2, %v1118_v5 }
 0x121   : > { %v1091_v9 = vpop.f32.mrf.mxu2  ;;  %v1035_v26 = vpop.f32.mrf.mxu0 }
 0x122   : > { %v1120_v10 = vpop.f32.mrf.mxu3  ;;  %v1092_v12 = vadd.f32 %v1091_v9, %v1063_v24  ;;  %v1036_v28 = vadd.f32 %v1035_v26, %v735_v11  ;;  %v1064_v30 = vpop.f32.mrf.mxu1 }
 0x124   : > { %v1121_v27 = vadd.f32 %v1120_v10, %v1092_v12  ;;  %v1065_v14 = vadd.f32 %v1064_v30, %v1036_v28 }
 0x126   : > { %v1130_v29 = vadd.f32 %v1129_v23, %v1121_v27 }
 0x129   : > { %v1093_v15 = vpop.f32.mrf.mxu2 }
 0x12a   : > { %v1094_v32 = vadd.f32 %v1093_v15, %v1065_v14  ;;  %v1122_v16 = vpop.f32.mrf.mxu3 }
 0x12c   : > { %v1123_v33 = vadd.f32 %v1122_v16, %v1094_v32 }
 0x12e   : > { %v1131_v37 = vadd.f32 %v1130_v29, %v1123_v33 }
 0x130   : > { %v1132_v38 = vrot.slane %v1131_v37, 4 }
 0x132   : > { %v1133_v40 = vadd.f32 %v1132_v38, %v1131_v37 }
 0x134   : > { %v1134_v41 = vrot.slane %v1133_v40, 2 }
 0x136   : > { %v1135_v42 = vadd.f32 %v1134_v41, %v1133_v40 }
 0x138   : > { %v1136_v43 = vrot.slane %v1135_v42, 1 }
 0x13a   : > { %v1137_v46 = vadd.f32 %v1136_v43, %v1135_v42 }
 0x13c   : > { %v1145_v47 = vmul.f32 %v1144_v45, %v1137_v46 }
 0x13e   : > { %v1146_v48 = vsub.f32 %v2265_v34, %v1145_v47  ;;  %v1147_v49 = vsub.f32 %v2267_v35, %v1145_v47  ;;  %v1148_v50 = vsub.f32 %v2271_v44, %v1145_v47  ;;  %v1149_v51 = vsub.f32 %v1113_v53, %v1145_v47 }
 0x13f   : > { %v1150_v52 = vsub.f32 %v1116_v0, %v1145_v47  ;;  %v1151_v54 = vsub.f32 %v1118_v5, %v1145_v47  ;;  %v1152_v55 = vsub.f32 %v1121_v27, %v1145_v47  ;;  %v1153_v1 = vsub.f32 %v1123_v33, %v1145_v47 }
 0x140   : > { %v1154_v56 = vmul.f32 %v1146_v48, %v1146_v48  ;;  %v1155_v57 = vmul.f32 %v1147_v49, %v1147_v49  ;;  %v1156_v58 = vmul.f32 %v1148_v50, %v1148_v50  ;;  %v1157_v60 = vmul.f32 %v1149_v51, %v1149_v51 }
 0x141   : > { %v1158_v63 = vmul.f32 %v1150_v52, %v1150_v52  ;;  %v1159_v2 = vmul.f32 %v1151_v54, %v1151_v54  ;;  %v1160_v34 = vmul.f32 %v1152_v55, %v1152_v55  ;;  %v1161_v35 = vmul.f32 %v1153_v1, %v1153_v1 }
 0x142   : > { %v1162_v59 = vadd.f32 %v1155_v57, %v1154_v56 }
 0x144   : > { %v1163_v61 = vadd.f32 %v1162_v59, %v1156_v58 }
 0x146   : > { %v1164_v62 = vadd.f32 %v1163_v61, %v1157_v60 }
 0x148   : > { %v1165_v3 = vadd.f32 %v1164_v62, %v1158_v63 }
 0x14a   : > { %v1166_v4 = vadd.f32 %v1165_v3, %v1159_v2 }
 0x14c   : > { %v1167_v6 = vadd.f32 %v1166_v4, %v1160_v34 }
 0x14e   : > { %v1168_v44 = vadd.f32 %v1167_v6, %v1161_v35 }
 0x150   : > { %v1169_v53 = vrot.slane %v1168_v44, 4 }
 0x152   : > { %v1170_v0 = vadd.f32 %v1169_v53, %v1168_v44 }
 0x154   : > { %v1171_v7 = vrot.slane %v1170_v0, 2 }
 0x156   : > { %v1172_v8 = vadd.f32 %v1171_v7, %v1170_v0 }
 0x158   : > { %v1173_v18 = vrot.slane %v1172_v8, 1 }
 0x15a   : > { %v1174_v19 = vadd.f32 %v1173_v18, %v1172_v8 }
 0x15c   : > { %v1175_v5 = vmul.f32 %v1174_v19, %v1144_v45 }
 0x15e   : > { %v1176_v20 = vadd.f32 1e-05, %v1175_v5 }
 0x160   : > { %1935 = vrsqrt.f32 %v1176_v20  ;;  %vm1183_vm2 = vweird.f32 %v1176_v20 }
 0x166   : > { %v1936_v21 = vpop.eup %1935 }
 0x167   : > { %v1178_v22 = vmul.f32 %v1936_v21, %v1176_v20  ;;  %vm1184_vm1 = vweird.f32 %v1936_v21 }
 0x168   : > { %vm1185_vm3 = vmor %vm1183_vm2, %vm1184_vm1 }
 0x169   : > { %v1179_v23 = vmul.f32 %v1936_v21, %v1178_v22 }
 0x16b   : > { %v1180_v24 = vmul.f32 0.5, %v1179_v23 }
 0x16d   : > { %v1181_v25 = vsub.f32 1.5, %v1180_v24 }
 0x16f   : > { %v1182_v9 = vmul.f32 %v1936_v21, %v1181_v25 }
 0x171   : > { %v1186_v10 = vsel %vm1185_vm3, %v1936_v21, %v1182_v9 }
 0x172   : > { %v1187_v11 = vmul.f32 %v1186_v10, %v1146_v48  ;;  %v1188_v12 = vmul.f32 %v1186_v10, %v1147_v49  ;;  %v1189_v26 = vmul.f32 %v1186_v10, %v1148_v50  ;;  %v1190_v27 = vmul.f32 %v1186_v10, %v1149_v51 }
 0x173   : > { %v1191_v28 = vmul.f32 %v1186_v10, %v1150_v52  ;;  %v1192_v13 = vmul.f32 %v1186_v10, %v1151_v54  ;;  %v1193_v29 = vmul.f32 %v1186_v10, %v1152_v55  ;;  %v1194_v30 = vmul.f32 %v1186_v10, %v1153_v1 }
 0x174   : > { %vm1195_vm4 = vcmp.gt.f32.partialorder %v1187_v11, 0.0  ;;  %vm1196_vm5 = vcmp.gt.f32.partialorder %v1188_v12, 0.0  ;;  %vm1197_vm6 = vcmp.gt.f32.partialorder %v1189_v26, 0.0  ;;  %vm1198_vm7 = vcmp.gt.f32.partialorder %v1190_v27, 0.0 }
 0x175   : > { %vm1199_vm8 = vcmp.gt.f32.partialorder %v1191_v28, 0.0  ;;  %vm1200_vm9 = vcmp.gt.f32.partialorder %v1192_v13, 0.0  ;;  %vm1201_vm10 = vcmp.gt.f32.partialorder %v1193_v29, 0.0  ;;  %vm1202_vm11 = vcmp.gt.f32.partialorder %v1194_v30, 0.0 }
 0x176   : > { %v1203_v14 = vmul.f32 0.2, %v1187_v11  ;;  %v1204_v15 = vmul.f32 0.2, %v1188_v12  ;;  %v1205_v31 = vmul.f32 0.2, %v1189_v26 }
 0x177   : > { %v1206_v32 = vmul.f32 0.2, %v1190_v27  ;;  %v1207_v16 = vmul.f32 0.2, %v1191_v28  ;;  %v1208_v33 = vmul.f32 0.2, %v1192_v13 }
 0x178   : > { %v1209_v36 = vmul.f32 0.2, %v1193_v29  ;;  %v1210_v37 = vmul.f32 0.2, %v1194_v30  ;;  %v1211_v38 = vsel %vm1195_vm4, %v1187_v11, %v1203_v14  ;;  %v1212_v39 = vsel %vm1196_vm5, %v1188_v12, %v1204_v15 }
 0x179   : > { %v1213_v40 = vsel %vm1197_vm6, %v1189_v26, %v1205_v31  ;;  %v1214_v41 = vsel %vm1198_vm7, %v1190_v27, %v1206_v32  ;;  %v1215_v17 = vsel %vm1199_vm8, %v1191_v28, %v1207_v16  ;;  %v1216_v42 = vsel %vm1200_vm9, %v1192_v13, %v1208_v33 }
 0x17a   : > { %v1217_v43 = vsel %vm1201_vm10, %v1193_v29, %v1209_v36  ;;  %v1218_v45 = vsel %vm1202_vm11, %v1194_v30, %v1210_v37  ;;  %v1887_v46 = vpack.c.bf16 %v1212_v39, %v1211_v38  ;;  %v1892_v47 = vpack.c.bf16 %v1214_v41, %v1213_v40 }
 0x17b   : > { %v1897_v48 = vpack.c.bf16 %v1216_v42, %v1215_v17  ;;  %v1902_v49 = vpack.c.bf16 %v1218_v45, %v1217_v43 }
 0x17c   : > { %1888 = vst [vmem:[%s187_s9] sm:$0xff] %v1887_v46  }
 0x17d   : > { %1904 = vst [vmem:[%s187_s9 + $0x8] sm:$0xff] %v1892_v47  }
 0x17e   : > { %1905 = vst [vmem:[%s187_s9 + $0x10] sm:$0xff] %v1897_v48  }
 0x17f   : > { %1906 = vst [vmem:[%s187_s9 + $0x18] sm:$0xff] %v1902_v49  }
 0x180 PF: > { %s12_s11 = sadd.s32 1, %s1959_s11   ;;  %s2302_s9 = smov %s1955_s10 }
 0x181   : > { %p9_p5 = scmp.ge.s32.totalorder %s12_s11, 4   ;;  %s2303_s10 = smov %s2305_s12 }
 0x183   :  { %11 = sbr.rel (!%p9_p5) target bundleno = 2 (0x2), region = 62 }

// kernel: discriminator_forward.7
= control target key start
LH: loop header
LB: loop body
LE: loop exit
PB: predicated region body
PF: predicated region fallthrough
CT: control target
= control target key end

     0   :  { %s4820_s9 = smov 0   ;;  %s4822_s10 = smov 0   ;;  %s5663_s0 = inlined_call_operand.vmem [shape: bf16[2,20,1024], index: 0, kind: input, shape index: {}]   ;;  %s5664_s1 = inlined_call_operand.vmem [shape: bf16[2,1024,256], index: 1, kind: input, shape index: {}]   ;;  %s5665_s2 = inlined_call_operand.vmem [shape: bf16[2,16,256], index: 2, kind: output, shape index: {}]  }
   0x1   :  { %s4824_s11 = smov 0   ;;  %s4826_s12 = smov 0  }
   0x2   :  { %s4828_s13 = smov 0   ;;  %s4830_s14 = smov 0  }
   0x3   :  { %s4832_s15 = smov 0   ;;  %s4834_s16 = smov 0  }
   0x4   :  { %s4836_s17 = smov 0  }
   0x5 LB: > { %s3866_s18 = sadd.s32 4294967295, %s4802_s17   ;;  %s27_s19 = sadd.s32 1, %s4794_s15  ;;  %s4802_s17 = sphi %s4836_s17, %s12_s17   ;;  %s4798_s16 = sphi %s4834_s16, %s5674_s16   ;;  %s4794_s15 = sphi %s4832_s15, %s5673_s15   ;;  %s4790_s14 = sphi %s4830_s14, %s5672_s14   ;;  %s4786_s13 = sphi %s4828_s13, %s5671_s13   ;;  %s4782_s12 = sphi %s4826_s12, %s5670_s12   ;;  %s4778_s11 = sphi %s4824_s11, %s5669_s11   ;;  %s4774_s10 = sphi %s4822_s10, %s5668_s10   ;;  %s4770_s9 = sphi %s4820_s9, %s5667_s9  }
   0x6   : > { %p29_p0 = scmp.ge.s32.totalorder %s27_s19, 2  ;;  %s31_s20 = sadd.s32 1, %s4798_s16 }
   0x7   : > { %s64_s21 = sadd.s32 1, %s4782_s12  ;;  %p71_p1 = scmp.ne.s32.totalorder %s4782_s12, %s4778_s11 }
   0x8   : > { %s5676_s19 = smov (%p29_p0, %s27_s19), 0  ;;  %s5678_s20 = smov (!%p29_p0, %s31_s20), %s4798_s16 }
   0x9   : > { %s61_s22 = ssub.s32 %s4794_s15, %s5676_s19  ;;  %p72_p2 = scmp.eq.s32.totalorder %s4802_s17, 0 }
   0xa   : > { %p33_p3 = scmp.ge.s32.totalorder %s5678_s20, 2  ;;  %p62_p4 = scmp.eq.s32.totalorder %s61_s22, 0 }
   0xb   : > { %p73_p5 = por %p72_p2, %p71_p1  ;;  %s92_s23 = sadd.s32 1, %s4774_s10 }
   0xc   : > { %s5680_s20 = smov (%p33_p3, %s5678_s20), 0  ;;  %p102_p6 = scmp.ne.s32.totalorder %s4774_s10, %s4770_s9 }
   0xd   : > { %s4881_s24 = scalar_select %p62_p4, %s4782_s12, %s64_s21  }
   0xe   : > { %s87_s25 = ssub.s32 %s4798_s16, %s5680_s20  ;;  %p103_p7 = scmp.eq.s32.totalorder %s3866_s18, 3 }
   0xf   : > { %s89_s26 = sor.u32 %s87_s25, %s61_s22  ;;  %p3869_p10 = scmp.ge.s32.totalorder %s4802_s17, 4 }
  0x10   : > { %p90_p8 = scmp.eq.s32.totalorder %s89_s26, 0  ;;  %p4887_p9 = por %p103_p7, %p102_p6 }
  0x11   : > { %125 = sbr.rel (%p3869_p10) target bundleno = 282 (0x11a), region = 16 }
  0x12   : > { %s4892_s28 = scalar_select %p90_p8, %s4774_s10, %s92_s23  }
  0x16   : > { %136 = sbr.rel (!%p73_p5) target bundleno = 282 (0x11a), region = 24  ;;  %s138_s29 = sand.u32 (%p73_p5), 1, %s4782_s12  }
  0x17   : > { %s3871_s30 = sshll.u32 (%p73_p5), %s4794_s15, 2  ;;  %s3870_s3 = sshll.u32 (%p73_p5), %s138_s29, 10 }
  0x18   : > { %s4900_s6 = scalar_lea.vmem (%p73_p5), %s5664_s1, %s3871_s30  ;;  %s4904_s7 = scalar_lea.vmem (%p73_p5), [#allocation2], %s3870_s3 }
  0x19   : > { %v159_v0 = vld [vmem:[%s4900_s6] sm:$0xf] (%p73_p5)  ;;  %v161_v1 = vld [vmem:[%s4900_s6 + $0x8] sm:$0xf] (%p73_p5)  ;;  %v163_v2 = vld [vmem:[%s4900_s6 + $0x10] sm:$0xf] (%p73_p5) }
  0x1a   : > { %160 = vst [vmem:[%s4904_s7] sm:$0xf] (%p73_p5), %v159_v0  ;;  %v165_v3 = vld [vmem:[%s4900_s6 + $0x18] sm:$0xf] (%p73_p5)  ;;  %v167_v4 = vld [vmem:[%s4900_s6 + $0x20] sm:$0xf] (%p73_p5) }
  0x1b   : > { %162 = vst [vmem:[%s4904_s7 + $0x4] sm:$0xf] %v161_v1  ;;  %v169_v5 = vld [vmem:[%s4900_s6 + $0x28] sm:$0xf]  ;;  %v171_v6 = vld [vmem:[%s4900_s6 + $0x30] sm:$0xf] }
  0x1c   : > { %164 = vst [vmem:[%s4904_s7 + $0x8] sm:$0xf] %v163_v2  ;;  %v173_v7 = vld [vmem:[%s4900_s6 + $0x38] sm:$0xf]  ;;  %v175_v8 = vld [vmem:[%s4900_s6 + $0x40] sm:$0xf] }
  0x1d   : > { %166 = vst [vmem:[%s4904_s7 + $0xc] sm:$0xf] %v165_v3  ;;  %v177_v9 = vld [vmem:[%s4900_s6 + $0x48] sm:$0xf]  ;;  %v179_v10 = vld [vmem:[%s4900_s6 + $0x50] sm:$0xf] }
  0x1e   : > { %168 = vst [vmem:[%s4904_s7 + $0x10] sm:$0xf] %v167_v4  ;;  %v181_v11 = vld [vmem:[%s4900_s6 + $0x58] sm:$0xf]  ;;  %v183_v12 = vld [vmem:[%s4900_s6 + $0x60] sm:$0xf] }
  0x1f   : > { %170 = vst [vmem:[%s4904_s7 + $0x14] sm:$0xf] %v169_v5  ;;  %v185_v13 = vld [vmem:[%s4900_s6 + $0x68] sm:$0xf]  ;;  %v187_v14 = vld [vmem:[%s4900_s6 + $0x70] sm:$0xf] }
  0x20   : > { %172 = vst [vmem:[%s4904_s7 + $0x18] sm:$0xf] %v171_v6  ;;  %v189_v15 = vld [vmem:[%s4900_s6 + $0x78] sm:$0xf]  ;;  %v191_v16 = vld [vmem:[%s4900_s6 + $0x80] sm:$0xf] }
  0x21   : > { %174 = vst [vmem:[%s4904_s7 + $0x1c] sm:$0xf] %v173_v7  ;;  %v193_v17 = vld [vmem:[%s4900_s6 + $0x88] sm:$0xf]  ;;  %v195_v18 = vld [vmem:[%s4900_s6 + $0x90] sm:$0xf] }
  0x22   : > { %176 = vst [vmem:[%s4904_s7 + $0x20] sm:$0xf] %v175_v8  ;;  %v197_v19 = vld [vmem:[%s4900_s6 + $0x98] sm:$0xf]  ;;  %v199_v20 = vld [vmem:[%s4900_s6 + $0xa0] sm:$0xf] }
  0x23   : > { %178 = vst [vmem:[%s4904_s7 + $0x24] sm:$0xf] %v177_v9  ;;  %v201_v21 = vld [vmem:[%s4900_s6 + $0xa8] sm:$0xf]  ;;  %v203_v22 = vld [vmem:[%s4900_s6 + $0xb0] sm:$0xf] }
  0x24   : > { %180 = vst [vmem:[%s4904_s7 + $0x28] sm:$0xf] %v179_v10  ;;  %v205_v23 = vld [vmem:[%s4900_s6 + $0xb8] sm:$0xf]  ;;  %v207_v24 = vld [vmem:[%s4900_s6 + $0xc0] sm:$0xf] }
  0x25   : > { %182 = vst [vmem:[%s4904_s7 + $0x2c] sm:$0xf] %v181_v11  ;;  %v209_v25 = vld [vmem:[%s4900_s6 + $0xc8] sm:$0xf]  ;;  %v211_v26 = vld [vmem:[%s4900_s6 + $0xd0] sm:$0xf] }
  0x26   : > { %184 = vst [vmem:[%s4904_s7 + $0x30] sm:$0xf] %v183_v12  ;;  %v213_v27 = vld [vmem:[%s4900_s6 + $0xd8] sm:$0xf]  ;;  %v215_v28 = vld [vmem:[%s4900_s6 + $0xe0] sm:$0xf] }
  0x27   : > { %186 = vst [vmem:[%s4904_s7 + $0x34] sm:$0xf] %v185_v13  ;;  %v217_v29 = vld [vmem:[%s4900_s6 + $0xe8] sm:$0xf]  ;;  %v219_v30 = vld [vmem:[%s4900_s6 + $0xf0] sm:$0xf] }
  0x28   : > { %188 = vst [vmem:[%s4904_s7 + $0x38] sm:$0xf] %v187_v14  ;;  %v221_v31 = vld [vmem:[%s4900_s6 + $0xf8] sm:$0xf]  ;;  %v223_v32 = vld [vmem:[%s4900_s6 + $0x100] sm:$0xf] }
  0x29   : > { %190 = vst [vmem:[%s4904_s7 + $0x3c] sm:$0xf] %v189_v15  ;;  %v225_v33 = vld [vmem:[%s4900_s6 + $0x108] sm:$0xf]  ;;  %v227_v34 = vld [vmem:[%s4900_s6 + $0x110] sm:$0xf] }
  0x2a   : > { %192 = vst [vmem:[%s4904_s7 + $0x40] sm:$0xf] %v191_v16  ;;  %v229_v35 = vld [vmem:[%s4900_s6 + $0x118] sm:$0xf]  ;;  %v231_v36 = vld [vmem:[%s4900_s6 + $0x120] sm:$0xf] }
  0x2b   : > { %194 = vst [vmem:[%s4904_s7 + $0x44] sm:$0xf] %v193_v17  ;;  %v233_v37 = vld [vmem:[%s4900_s6 + $0x128] sm:$0xf]  ;;  %v235_v38 = vld [vmem:[%s4900_s6 + $0x130] sm:$0xf] }
  0x2c   : > { %196 = vst [vmem:[%s4904_s7 + $0x48] sm:$0xf] %v195_v18  ;;  %v237_v39 = vld [vmem:[%s4900_s6 + $0x138] sm:$0xf]  ;;  %v239_v40 = vld [vmem:[%s4900_s6 + $0x140] sm:$0xf] }
  0x2d   : > { %198 = vst [vmem:[%s4904_s7 + $0x4c] sm:$0xf] %v197_v19  ;;  %v241_v41 = vld [vmem:[%s4900_s6 + $0x148] sm:$0xf]  ;;  %v243_v42 = vld [vmem:[%s4900_s6 + $0x150] sm:$0xf] }
  0x2e   : > { %200 = vst [vmem:[%s4904_s7 + $0x50] sm:$0xf] %v199_v20  ;;  %v245_v43 = vld [vmem:[%s4900_s6 + $0x158] sm:$0xf]  ;;  %v247_v44 = vld [vmem:[%s4900_s6 + $0x160] sm:$0xf] }
  0x2f   : > { %202 = vst [vmem:[%s4904_s7 + $0x54] sm:$0xf] %v201_v21  ;;  %v249_v45 = vld [vmem:[%s4900_s6 + $0x168] sm:$0xf]  ;;  %v251_v46 = vld [vmem:[%s4900_s6 + $0x170] sm:$0xf] }
  0x30   : > { %204 = vst [vmem:[%s4904_s7 + $0x58] sm:$0xf] %v203_v22  ;;  %v253_v47 = vld [vmem:[%s4900_s6 + $0x178] sm:$0xf]  ;;  %v255_v48 = vld [vmem:[%s4900_s6 + $0x180] sm:$0xf] }
  0x31   : > { %206 = vst [vmem:[%s4904_s7 + $0x5c] sm:$0xf] %v205_v23  ;;  %v257_v49 = vld [vmem:[%s4900_s6 + $0x188] sm:$0xf]  ;;  %v259_v50 = vld [vmem:[%s4900_s6 + $0x190] sm:$0xf] }
  0x32   : > { %208 = vst [vmem:[%s4904_s7 + $0x60] sm:$0xf] %v207_v24  ;;  %v261_v51 = vld [vmem:[%s4900_s6 + $0x198] sm:$0xf]  ;;  %v263_v52 = vld [vmem:[%s4900_s6 + $0x1a0] sm:$0xf] }
  0x33   : > { %210 = vst [vmem:[%s4904_s7 + $0x64] sm:$0xf] %v209_v25  ;;  %v265_v53 = vld [vmem:[%s4900_s6 + $0x1a8] sm:$0xf]  ;;  %v267_v54 = vld [vmem:[%s4900_s6 + $0x1b0] sm:$0xf] }
  0x34   : > { %212 = vst [vmem:[%s4904_s7 + $0x68] sm:$0xf] %v211_v26  ;;  %v269_v55 = vld [vmem:[%s4900_s6 + $0x1b8] sm:$0xf]  ;;  %v271_v56 = vld [vmem:[%s4900_s6 + $0x1c0] sm:$0xf] }
  0x35   : > { %214 = vst [vmem:[%s4904_s7 + $0x6c] sm:$0xf] %v213_v27  ;;  %v273_v57 = vld [vmem:[%s4900_s6 + $0x1c8] sm:$0xf]  ;;  %v275_v58 = vld [vmem:[%s4900_s6 + $0x1d0] sm:$0xf] }
  0x36   : > { %216 = vst [vmem:[%s4904_s7 + $0x70] sm:$0xf] %v215_v28  ;;  %v277_v59 = vld [vmem:[%s4900_s6 + $0x1d8] sm:$0xf]  ;;  %v279_v60 = vld [vmem:[%s4900_s6 + $0x1e0] sm:$0xf] }
  0x37   : > { %218 = vst [vmem:[%s4904_s7 + $0x74] sm:$0xf] %v217_v29  ;;  %v281_v61 = vld [vmem:[%s4900_s6 + $0x1e8] sm:$0xf]  ;;  %v283_v62 = vld [vmem:[%s4900_s6 + $0x1f0] sm:$0xf] }
  0x38   : > { %220 = vst [vmem:[%s4904_s7 + $0x78] sm:$0xf] %v219_v30  ;;  %v285_v63 = vld [vmem:[%s4900_s6 + $0x1f8] sm:$0xf]  ;;  %v287_v0 = vld [vmem:[%s4900_s6 + $0x200] sm:$0xf] }
  0x39   : > { %222 = vst [vmem:[%s4904_s7 + $0x7c] sm:$0xf] %v221_v31  ;;  %v289_v1 = vld [vmem:[%s4900_s6 + $0x208] sm:$0xf]  ;;  %v291_v2 = vld [vmem:[%s4900_s6 + $0x210] sm:$0xf] }
  0x3a   : > { %224 = vst [vmem:[%s4904_s7 + $0x80] sm:$0xf] %v223_v32  ;;  %v293_v3 = vld [vmem:[%s4900_s6 + $0x218] sm:$0xf]  ;;  %v295_v4 = vld [vmem:[%s4900_s6 + $0x220] sm:$0xf] }
  0x3b   : > { %226 = vst [vmem:[%s4904_s7 + $0x84] sm:$0xf] %v225_v33  ;;  %v297_v5 = vld [vmem:[%s4900_s6 + $0x228] sm:$0xf]  ;;  %v299_v6 = vld [vmem:[%s4900_s6 + $0x230] sm:$0xf] }
  0x3c   : > { %228 = vst [vmem:[%s4904_s7 + $0x88] sm:$0xf] %v227_v34  ;;  %v301_v7 = vld [vmem:[%s4900_s6 + $0x238] sm:$0xf]  ;;  %v303_v8 = vld [vmem:[%s4900_s6 + $0x240] sm:$0xf] }
  0x3d   : > { %230 = vst [vmem:[%s4904_s7 + $0x8c] sm:$0xf] %v229_v35  ;;  %v305_v9 = vld [vmem:[%s4900_s6 + $0x248] sm:$0xf]  ;;  %v307_v10 = vld [vmem:[%s4900_s6 + $0x250] sm:$0xf] }
  0x3e   : > { %232 = vst [vmem:[%s4904_s7 + $0x90] sm:$0xf] %v231_v36  ;;  %v309_v11 = vld [vmem:[%s4900_s6 + $0x258] sm:$0xf]  ;;  %v311_v12 = vld [vmem:[%s4900_s6 + $0x260] sm:$0xf] }
  0x3f   : > { %234 = vst [vmem:[%s4904_s7 + $0x94] sm:$0xf] %v233_v37  ;;  %v313_v13 = vld [vmem:[%s4900_s6 + $0x268] sm:$0xf]  ;;  %v315_v14 = vld [vmem:[%s4900_s6 + $0x270] sm:$0xf] }
  0x40   : > { %236 = vst [vmem:[%s4904_s7 + $0x98] sm:$0xf] %v235_v38  ;;  %v317_v15 = vld [vmem:[%s4900_s6 + $0x278] sm:$0xf]  ;;  %v319_v16 = vld [vmem:[%s4900_s6 + $0x280] sm:$0xf] }
  0x41   : > { %238 = vst [vmem:[%s4904_s7 + $0x9c] sm:$0xf] %v237_v39  ;;  %v321_v17 = vld [vmem:[%s4900_s6 + $0x288] sm:$0xf]  ;;  %v323_v18 = vld [vmem:[%s4900_s6 + $0x290] sm:$0xf] }
  0x42   : > { %240 = vst [vmem:[%s4904_s7 + $0xa0] sm:$0xf] %v239_v40  ;;  %v325_v19 = vld [vmem:[%s4900_s6 + $0x298] sm:$0xf]  ;;  %v327_v20 = vld [vmem:[%s4900_s6 + $0x2a0] sm:$0xf] }
  0x43   : > { %242 = vst [vmem:[%s4904_s7 + $0xa4] sm:$0xf] %v241_v41  ;;  %v329_v21 = vld [vmem:[%s4900_s6 + $0x2a8] sm:$0xf]  ;;  %v331_v22 = vld [vmem:[%s4900_s6 + $0x2b0] sm:$0xf] }
  0x44   : > { %244 = vst [vmem:[%s4904_s7 + $0xa8] sm:$0xf] %v243_v42  ;;  %v333_v23 = vld [vmem:[%s4900_s6 + $0x2b8] sm:$0xf]  ;;  %v335_v24 = vld [vmem:[%s4900_s6 + $0x2c0] sm:$0xf] }
  0x45   : > { %246 = vst [vmem:[%s4904_s7 + $0xac] sm:$0xf] %v245_v43  ;;  %v337_v25 = vld [vmem:[%s4900_s6 + $0x2c8] sm:$0xf]  ;;  %v339_v26 = vld [vmem:[%s4900_s6 + $0x2d0] sm:$0xf] }
  0x46   : > { %248 = vst [vmem:[%s4904_s7 + $0xb0] sm:$0xf] %v247_v44  ;;  %v341_v27 = vld [vmem:[%s4900_s6 + $0x2d8] sm:$0xf]  ;;  %v343_v28 = vld [vmem:[%s4900_s6 + $0x2e0] sm:$0xf] }
  0x47   : > { %250 = vst [vmem:[%s4904_s7 + $0xb4] sm:$0xf] %v249_v45  ;;  %v345_v29 = vld [vmem:[%s4900_s6 + $0x2e8] sm:$0xf]  ;;  %v347_v30 = vld [vmem:[%s4900_s6 + $0x2f0] sm:$0xf] }
  0x48   : > { %252 = vst [vmem:[%s4904_s7 + $0xb8] sm:$0xf] %v251_v46  ;;  %v349_v31 = vld [vmem:[%s4900_s6 + $0x2f8] sm:$0xf]  ;;  %v351_v32 = vld [vmem:[%s4900_s6 + $0x300] sm:$0xf] }
  0x49   : > { %254 = vst [vmem:[%s4904_s7 + $0xbc] sm:$0xf] %v253_v47  ;;  %v353_v33 = vld [vmem:[%s4900_s6 + $0x308] sm:$0xf]  ;;  %v355_v34 = vld [vmem:[%s4900_s6 + $0x310] sm:$0xf] }
  0x4a   : > { %256 = vst [vmem:[%s4904_s7 + $0xc0] sm:$0xf] %v255_v48  ;;  %v357_v35 = vld [vmem:[%s4900_s6 + $0x318] sm:$0xf]  ;;  %v359_v36 = vld [vmem:[%s4900_s6 + $0x320] sm:$0xf] }
  0x4b   : > { %258 = vst [vmem:[%s4904_s7 + $0xc4] sm:$0xf] %v257_v49  ;;  %v361_v37 = vld [vmem:[%s4900_s6 + $0x328] sm:$0xf]  ;;  %v363_v38 = vld [vmem:[%s4900_s6 + $0x330] sm:$0xf] }
  0x4c   : > { %260 = vst [vmem:[%s4904_s7 + $0xc8] sm:$0xf] %v259_v50  ;;  %v365_v39 = vld [vmem:[%s4900_s6 + $0x338] sm:$0xf]  ;;  %v367_v40 = vld [vmem:[%s4900_s6 + $0x340] sm:$0xf] }
  0x4d   : > { %262 = vst [vmem:[%s4904_s7 + $0xcc] sm:$0xf] %v261_v51  ;;  %v369_v41 = vld [vmem:[%s4900_s6 + $0x348] sm:$0xf]  ;;  %v371_v42 = vld [vmem:[%s4900_s6 + $0x350] sm:$0xf] }
  0x4e   : > { %264 = vst [vmem:[%s4904_s7 + $0xd0] sm:$0xf] %v263_v52  ;;  %v373_v43 = vld [vmem:[%s4900_s6 + $0x358] sm:$0xf]  ;;  %v375_v44 = vld [vmem:[%s4900_s6 + $0x360] sm:$0xf] }
  0x4f   : > { %266 = vst [vmem:[%s4904_s7 + $0xd4] sm:$0xf] %v265_v53  ;;  %v377_v45 = vld [vmem:[%s4900_s6 + $0x368] sm:$0xf]  ;;  %v379_v46 = vld [vmem:[%s4900_s6 + $0x370] sm:$0xf] }
  0x50   : > { %268 = vst [vmem:[%s4904_s7 + $0xd8] sm:$0xf] %v267_v54  ;;  %v381_v47 = vld [vmem:[%s4900_s6 + $0x378] sm:$0xf]  ;;  %v383_v48 = vld [vmem:[%s4900_s6 + $0x380] sm:$0xf] }
  0x51   : > { %270 = vst [vmem:[%s4904_s7 + $0xdc] sm:$0xf] %v269_v55  ;;  %v385_v49 = vld [vmem:[%s4900_s6 + $0x388] sm:$0xf]  ;;  %v387_v50 = vld [vmem:[%s4900_s6 + $0x390] sm:$0xf] }
  0x52   : > { %272 = vst [vmem:[%s4904_s7 + $0xe0] sm:$0xf] %v271_v56  ;;  %v389_v51 = vld [vmem:[%s4900_s6 + $0x398] sm:$0xf]  ;;  %v391_v52 = vld [vmem:[%s4900_s6 + $0x3a0] sm:$0xf] }
  0x53   : > { %274 = vst [vmem:[%s4904_s7 + $0xe4] sm:$0xf] %v273_v57  ;;  %v393_v53 = vld [vmem:[%s4900_s6 + $0x3a8] sm:$0xf]  ;;  %v395_v54 = vld [vmem:[%s4900_s6 + $0x3b0] sm:$0xf] }
  0x54   : > { %276 = vst [vmem:[%s4904_s7 + $0xe8] sm:$0xf] %v275_v58  ;;  %v397_v55 = vld [vmem:[%s4900_s6 + $0x3b8] sm:$0xf]  ;;  %v399_v56 = vld [vmem:[%s4900_s6 + $0x3c0] sm:$0xf] }
  0x55   : > { %278 = vst [vmem:[%s4904_s7 + $0xec] sm:$0xf] %v277_v59  ;;  %v401_v57 = vld [vmem:[%s4900_s6 + $0x3c8] sm:$0xf]  ;;  %v403_v58 = vld [vmem:[%s4900_s6 + $0x3d0] sm:$0xf] }
  0x56   : > { %280 = vst [vmem:[%s4904_s7 + $0xf0] sm:$0xf] %v279_v60  ;;  %v405_v59 = vld [vmem:[%s4900_s6 + $0x3d8] sm:$0xf]  ;;  %v407_v60 = vld [vmem:[%s4900_s6 + $0x3e0] sm:$0xf] }
  0x57   : > { %282 = vst [vmem:[%s4904_s7 + $0xf4] sm:$0xf] %v281_v61  ;;  %v409_v61 = vld [vmem:[%s4900_s6 + $0x3e8] sm:$0xf] }
  0x58   : > { %284 = vst [vmem:[%s4904_s7 + $0xf8] sm:$0xf] %v283_v62  ;;  %v411_v62 = vld [vmem:[%s4900_s6 + $0x3f0] sm:$0xf] }
  0x59   : > { %286 = vst [vmem:[%s4904_s7 + $0xfc] sm:$0xf] %v285_v63  ;;  %v413_v63 = vld [vmem:[%s4900_s6 + $0x3f8] sm:$0xf] }
  0x5a   : > { %288 = vst [vmem:[%s4904_s7 + $0x100] sm:$0xf] %v287_v0  ;;  %v415_v0 = vld [vmem:[%s4900_s6 + $0x400] sm:$0xf] }
  0x5b   : > { %290 = vst [vmem:[%s4904_s7 + $0x104] sm:$0xf] %v289_v1  ;;  %v417_v1 = vld [vmem:[%s4900_s6 + $0x408] sm:$0xf] }
  0x5c   : > { %292 = vst [vmem:[%s4904_s7 + $0x108] sm:$0xf] %v291_v2  ;;  %v419_v2 = vld [vmem:[%s4900_s6 + $0x410] sm:$0xf] }
  0x5d   : > { %294 = vst [vmem:[%s4904_s7 + $0x10c] sm:$0xf] %v293_v3  ;;  %v421_v3 = vld [vmem:[%s4900_s6 + $0x418] sm:$0xf] }
  0x5e   : > { %296 = vst [vmem:[%s4904_s7 + $0x110] sm:$0xf] %v295_v4  ;;  %v423_v4 = vld [vmem:[%s4900_s6 + $0x420] sm:$0xf] }
  0x5f   : > { %298 = vst [vmem:[%s4904_s7 + $0x114] sm:$0xf] %v297_v5  ;;  %v425_v5 = vld [vmem:[%s4900_s6 + $0x428] sm:$0xf] }
  0x60   : > { %300 = vst [vmem:[%s4904_s7 + $0x118] sm:$0xf] %v299_v6  ;;  %v427_v6 = vld [vmem:[%s4900_s6 + $0x430] sm:$0xf] }
  0x61   : > { %302 = vst [vmem:[%s4904_s7 + $0x11c] sm:$0xf] %v301_v7  ;;  %v429_v7 = vld [vmem:[%s4900_s6 + $0x438] sm:$0xf] }
  0x62   : > { %304 = vst [vmem:[%s4904_s7 + $0x120] sm:$0xf] %v303_v8  ;;  %v431_v8 = vld [vmem:[%s4900_s6 + $0x440] sm:$0xf] }
  0x63   : > { %306 = vst [vmem:[%s4904_s7 + $0x124] sm:$0xf] %v305_v9  ;;  %v433_v9 = vld [vmem:[%s4900_s6 + $0x448] sm:$0xf] }
  0x64   : > { %308 = vst [vmem:[%s4904_s7 + $0x128] sm:$0xf] %v307_v10  ;;  %v435_v10 = vld [vmem:[%s4900_s6 + $0x450] sm:$0xf] }
  0x65   : > { %310 = vst [vmem:[%s4904_s7 + $0x12c] sm:$0xf] %v309_v11  ;;  %v437_v11 = vld [vmem:[%s4900_s6 + $0x458] sm:$0xf] }
  0x66   : > { %312 = vst [vmem:[%s4904_s7 + $0x130] sm:$0xf] %v311_v12  ;;  %v439_v12 = vld [vmem:[%s4900_s6 + $0x460] sm:$0xf] }
  0x67   : > { %314 = vst [vmem:[%s4904_s7 + $0x134] sm:$0xf] %v313_v13  ;;  %v441_v13 = vld [vmem:[%s4900_s6 + $0x468] sm:$0xf] }
  0x68   : > { %316 = vst [vmem:[%s4904_s7 + $0x138] sm:$0xf] %v315_v14  ;;  %v443_v14 = vld [vmem:[%s4900_s6 + $0x470] sm:$0xf] }
  0x69   : > { %318 = vst [vmem:[%s4904_s7 + $0x13c] sm:$0xf] %v317_v15  ;;  %v445_v15 = vld [vmem:[%s4900_s6 + $0x478] sm:$0xf] }
  0x6a   : > { %320 = vst [vmem:[%s4904_s7 + $0x140] sm:$0xf] %v319_v16  ;;  %v447_v16 = vld [vmem:[%s4900_s6 + $0x480] sm:$0xf] }
  0x6b   : > { %322 = vst [vmem:[%s4904_s7 + $0x144] sm:$0xf] %v321_v17  ;;  %v449_v17 = vld [vmem:[%s4900_s6 + $0x488] sm:$0xf] }
  0x6c   : > { %324 = vst [vmem:[%s4904_s7 + $0x148] sm:$0xf] %v323_v18  ;;  %v451_v18 = vld [vmem:[%s4900_s6 + $0x490] sm:$0xf] }
  0x6d   : > { %326 = vst [vmem:[%s4904_s7 + $0x14c] sm:$0xf] %v325_v19  ;;  %v453_v19 = vld [vmem:[%s4900_s6 + $0x498] sm:$0xf] }
  0x6e   : > { %328 = vst [vmem:[%s4904_s7 + $0x150] sm:$0xf] %v327_v20  ;;  %v455_v20 = vld [vmem:[%s4900_s6 + $0x4a0] sm:$0xf] }
  0x6f   : > { %330 = vst [vmem:[%s4904_s7 + $0x154] sm:$0xf] %v329_v21  ;;  %v457_v21 = vld [vmem:[%s4900_s6 + $0x4a8] sm:$0xf] }
  0x70   : > { %332 = vst [vmem:[%s4904_s7 + $0x158] sm:$0xf] %v331_v22  ;;  %v459_v22 = vld [vmem:[%s4900_s6 + $0x4b0] sm:$0xf] }
  0x71   : > { %334 = vst [vmem:[%s4904_s7 + $0x15c] sm:$0xf] %v333_v23  ;;  %v461_v23 = vld [vmem:[%s4900_s6 + $0x4b8] sm:$0xf] }
  0x72   : > { %336 = vst [vmem:[%s4904_s7 + $0x160] sm:$0xf] %v335_v24  ;;  %v463_v24 = vld [vmem:[%s4900_s6 + $0x4c0] sm:$0xf] }
  0x73   : > { %338 = vst [vmem:[%s4904_s7 + $0x164] sm:$0xf] %v337_v25  ;;  %v465_v25 = vld [vmem:[%s4900_s6 + $0x4c8] sm:$0xf] }
  0x74   : > { %340 = vst [vmem:[%s4904_s7 + $0x168] sm:$0xf] %v339_v26  ;;  %v467_v26 = vld [vmem:[%s4900_s6 + $0x4d0] sm:$0xf] }
  0x75   : > { %342 = vst [vmem:[%s4904_s7 + $0x16c] sm:$0xf] %v341_v27  ;;  %v469_v27 = vld [vmem:[%s4900_s6 + $0x4d8] sm:$0xf] }
  0x76   : > { %344 = vst [vmem:[%s4904_s7 + $0x170] sm:$0xf] %v343_v28  ;;  %v471_v28 = vld [vmem:[%s4900_s6 + $0x4e0] sm:$0xf] }
  0x77   : > { %346 = vst [vmem:[%s4904_s7 + $0x174] sm:$0xf] %v345_v29  ;;  %v473_v29 = vld [vmem:[%s4900_s6 + $0x4e8] sm:$0xf] }
  0x78   : > { %348 = vst [vmem:[%s4904_s7 + $0x178] sm:$0xf] %v347_v30  ;;  %v475_v30 = vld [vmem:[%s4900_s6 + $0x4f0] sm:$0xf] }
  0x79   : > { %350 = vst [vmem:[%s4904_s7 + $0x17c] sm:$0xf] %v349_v31  ;;  %v477_v31 = vld [vmem:[%s4900_s6 + $0x4f8] sm:$0xf] }
  0x7a   : > { %352 = vst [vmem:[%s4904_s7 + $0x180] sm:$0xf] %v351_v32  ;;  %v479_v32 = vld [vmem:[%s4900_s6 + $0x500] sm:$0xf] }
  0x7b   : > { %354 = vst [vmem:[%s4904_s7 + $0x184] sm:$0xf] %v353_v33  ;;  %v481_v33 = vld [vmem:[%s4900_s6 + $0x508] sm:$0xf] }
  0x7c   : > { %356 = vst [vmem:[%s4904_s7 + $0x188] sm:$0xf] %v355_v34  ;;  %v483_v34 = vld [vmem:[%s4900_s6 + $0x510] sm:$0xf] }
  0x7d   : > { %358 = vst [vmem:[%s4904_s7 + $0x18c] sm:$0xf] %v357_v35  ;;  %v485_v35 = vld [vmem:[%s4900_s6 + $0x518] sm:$0xf] }
  0x7e   : > { %360 = vst [vmem:[%s4904_s7 + $0x190] sm:$0xf] %v359_v36  ;;  %v487_v36 = vld [vmem:[%s4900_s6 + $0x520] sm:$0xf] }
  0x7f   : > { %362 = vst [vmem:[%s4904_s7 + $0x194] sm:$0xf] %v361_v37  ;;  %v489_v37 = vld [vmem:[%s4900_s6 + $0x528] sm:$0xf] }
  0x80   : > { %364 = vst [vmem:[%s4904_s7 + $0x198] sm:$0xf] %v363_v38  ;;  %v491_v38 = vld [vmem:[%s4900_s6 + $0x530] sm:$0xf] }
  0x81   : > { %366 = vst [vmem:[%s4904_s7 + $0x19c] sm:$0xf] %v365_v39  ;;  %v493_v39 = vld [vmem:[%s4900_s6 + $0x538] sm:$0xf] }
  0x82   : > { %368 = vst [vmem:[%s4904_s7 + $0x1a0] sm:$0xf] %v367_v40  ;;  %v495_v40 = vld [vmem:[%s4900_s6 + $0x540] sm:$0xf] }
  0x83   : > { %370 = vst [vmem:[%s4904_s7 + $0x1a4] sm:$0xf] %v369_v41  ;;  %v497_v41 = vld [vmem:[%s4900_s6 + $0x548] sm:$0xf] }
  0x84   : > { %372 = vst [vmem:[%s4904_s7 + $0x1a8] sm:$0xf] %v371_v42  ;;  %v499_v42 = vld [vmem:[%s4900_s6 + $0x550] sm:$0xf] }
  0x85   : > { %374 = vst [vmem:[%s4904_s7 + $0x1ac] sm:$0xf] %v373_v43  ;;  %v501_v43 = vld [vmem:[%s4900_s6 + $0x558] sm:$0xf] }
  0x86   : > { %376 = vst [vmem:[%s4904_s7 + $0x1b0] sm:$0xf] %v375_v44  ;;  %v503_v44 = vld [vmem:[%s4900_s6 + $0x560] sm:$0xf] }
  0x87   : > { %378 = vst [vmem:[%s4904_s7 + $0x1b4] sm:$0xf] %v377_v45  ;;  %v505_v45 = vld [vmem:[%s4900_s6 + $0x568] sm:$0xf] }
  0x88   : > { %380 = vst [vmem:[%s4904_s7 + $0x1b8] sm:$0xf] %v379_v46  ;;  %v507_v46 = vld [vmem:[%s4900_s6 + $0x570] sm:$0xf] }
  0x89   : > { %382 = vst [vmem:[%s4904_s7 + $0x1bc] sm:$0xf] %v381_v47  ;;  %v509_v47 = vld [vmem:[%s4900_s6 + $0x578] sm:$0xf] }
  0x8a   : > { %384 = vst [vmem:[%s4904_s7 + $0x1c0] sm:$0xf] %v383_v48  ;;  %v511_v48 = vld [vmem:[%s4900_s6 + $0x580] sm:$0xf] }
  0x8b   : > { %386 = vst [vmem:[%s4904_s7 + $0x1c4] sm:$0xf] %v385_v49  ;;  %v513_v49 = vld [vmem:[%s4900_s6 + $0x588] sm:$0xf] }
  0x8c   : > { %388 = vst [vmem:[%s4904_s7 + $0x1c8] sm:$0xf] %v387_v50  ;;  %v515_v50 = vld [vmem:[%s4900_s6 + $0x590] sm:$0xf] }
  0x8d   : > { %390 = vst [vmem:[%s4904_s7 + $0x1cc] sm:$0xf] %v389_v51  ;;  %v517_v51 = vld [vmem:[%s4900_s6 + $0x598] sm:$0xf] }
  0x8e   : > { %392 = vst [vmem:[%s4904_s7 + $0x1d0] sm:$0xf] %v391_v52  ;;  %v519_v52 = vld [vmem:[%s4900_s6 + $0x5a0] sm:$0xf] }
  0x8f   : > { %394 = vst [vmem:[%s4904_s7 + $0x1d4] sm:$0xf] %v393_v53  ;;  %v521_v53 = vld [vmem:[%s4900_s6 + $0x5a8] sm:$0xf] }
  0x90   : > { %396 = vst [vmem:[%s4904_s7 + $0x1d8] sm:$0xf] %v395_v54  ;;  %v523_v54 = vld [vmem:[%s4900_s6 + $0x5b0] sm:$0xf] }
  0x91   : > { %398 = vst [vmem:[%s4904_s7 + $0x1dc] sm:$0xf] %v397_v55  ;;  %v525_v55 = vld [vmem:[%s4900_s6 + $0x5b8] sm:$0xf] }
  0x92   : > { %400 = vst [vmem:[%s4904_s7 + $0x1e0] sm:$0xf] %v399_v56  ;;  %v527_v56 = vld [vmem:[%s4900_s6 + $0x5c0] sm:$0xf] }
  0x93   : > { %402 = vst [vmem:[%s4904_s7 + $0x1e4] sm:$0xf] %v401_v57  ;;  %v529_v57 = vld [vmem:[%s4900_s6 + $0x5c8] sm:$0xf] }
  0x94   : > { %404 = vst [vmem:[%s4904_s7 + $0x1e8] sm:$0xf] %v403_v58  ;;  %v531_v58 = vld [vmem:[%s4900_s6 + $0x5d0] sm:$0xf] }
  0x95   : > { %406 = vst [vmem:[%s4904_s7 + $0x1ec] sm:$0xf] %v405_v59  ;;  %v533_v59 = vld [vmem:[%s4900_s6 + $0x5d8] sm:$0xf] }
  0x96   : > { %408 = vst [vmem:[%s4904_s7 + $0x1f0] sm:$0xf] %v407_v60  ;;  %v535_v60 = vld [vmem:[%s4900_s6 + $0x5e0] sm:$0xf] }
  0x97   : > { %410 = vst [vmem:[%s4904_s7 + $0x1f4] sm:$0xf] %v409_v61  ;;  %v537_v61 = vld [vmem:[%s4900_s6 + $0x5e8] sm:$0xf] }
  0x98   : > { %412 = vst [vmem:[%s4904_s7 + $0x1f8] sm:$0xf] %v411_v62  ;;  %v539_v62 = vld [vmem:[%s4900_s6 + $0x5f0] sm:$0xf] }
  0x99   : > { %414 = vst [vmem:[%s4904_s7 + $0x1fc] sm:$0xf] %v413_v63  ;;  %v541_v63 = vld [vmem:[%s4900_s6 + $0x5f8] sm:$0xf] }
  0x9a   : > { %416 = vst [vmem:[%s4904_s7 + $0x200] sm:$0xf] %v415_v0  ;;  %v543_v0 = vld [vmem:[%s4900_s6 + $0x600] sm:$0xf] }
  0x9b   : > { %418 = vst [vmem:[%s4904_s7 + $0x204] sm:$0xf] %v417_v1  ;;  %v545_v1 = vld [vmem:[%s4900_s6 + $0x608] sm:$0xf] }
  0x9c   : > { %420 = vst [vmem:[%s4904_s7 + $0x208] sm:$0xf] %v419_v2  ;;  %v547_v2 = vld [vmem:[%s4900_s6 + $0x610] sm:$0xf] }
  0x9d   : > { %422 = vst [vmem:[%s4904_s7 + $0x20c] sm:$0xf] %v421_v3  ;;  %v549_v3 = vld [vmem:[%s4900_s6 + $0x618] sm:$0xf] }
  0x9e   : > { %424 = vst [vmem:[%s4904_s7 + $0x210] sm:$0xf] %v423_v4  ;;  %v551_v4 = vld [vmem:[%s4900_s6 + $0x620] sm:$0xf] }
  0x9f   : > { %426 = vst [vmem:[%s4904_s7 + $0x214] sm:$0xf] %v425_v5  ;;  %v553_v5 = vld [vmem:[%s4900_s6 + $0x628] sm:$0xf] }
  0xa0   : > { %428 = vst [vmem:[%s4904_s7 + $0x218] sm:$0xf] %v427_v6  ;;  %v555_v6 = vld [vmem:[%s4900_s6 + $0x630] sm:$0xf] }
  0xa1   : > { %430 = vst [vmem:[%s4904_s7 + $0x21c] sm:$0xf] %v429_v7  ;;  %v557_v7 = vld [vmem:[%s4900_s6 + $0x638] sm:$0xf] }
  0xa2   : > { %432 = vst [vmem:[%s4904_s7 + $0x220] sm:$0xf] %v431_v8  ;;  %v559_v8 = vld [vmem:[%s4900_s6 + $0x640] sm:$0xf] }
  0xa3   : > { %434 = vst [vmem:[%s4904_s7 + $0x224] sm:$0xf] %v433_v9  ;;  %v561_v9 = vld [vmem:[%s4900_s6 + $0x648] sm:$0xf] }
  0xa4   : > { %436 = vst [vmem:[%s4904_s7 + $0x228] sm:$0xf] %v435_v10  ;;  %v563_v10 = vld [vmem:[%s4900_s6 + $0x650] sm:$0xf] }
  0xa5   : > { %438 = vst [vmem:[%s4904_s7 + $0x22c] sm:$0xf] %v437_v11  ;;  %v565_v11 = vld [vmem:[%s4900_s6 + $0x658] sm:$0xf] }
  0xa6   : > { %440 = vst [vmem:[%s4904_s7 + $0x230] sm:$0xf] %v439_v12  ;;  %v567_v12 = vld [vmem:[%s4900_s6 + $0x660] sm:$0xf] }
  0xa7   : > { %442 = vst [vmem:[%s4904_s7 + $0x234] sm:$0xf] %v441_v13  ;;  %v569_v13 = vld [vmem:[%s4900_s6 + $0x668] sm:$0xf] }
  0xa8   : > { %444 = vst [vmem:[%s4904_s7 + $0x238] sm:$0xf] %v443_v14  ;;  %v571_v14 = vld [vmem:[%s4900_s6 + $0x670] sm:$0xf] }
  0xa9   : > { %446 = vst [vmem:[%s4904_s7 + $0x23c] sm:$0xf] %v445_v15  ;;  %v573_v15 = vld [vmem:[%s4900_s6 + $0x678] sm:$0xf] }
  0xaa   : > { %448 = vst [vmem:[%s4904_s7 + $0x240] sm:$0xf] %v447_v16  ;;  %v575_v16 = vld [vmem:[%s4900_s6 + $0x680] sm:$0xf] }
  0xab   : > { %450 = vst [vmem:[%s4904_s7 + $0x244] sm:$0xf] %v449_v17  ;;  %v577_v17 = vld [vmem:[%s4900_s6 + $0x688] sm:$0xf] }
  0xac   : > { %452 = vst [vmem:[%s4904_s7 + $0x248] sm:$0xf] %v451_v18  ;;  %v579_v18 = vld [vmem:[%s4900_s6 + $0x690] sm:$0xf] }
  0xad   : > { %454 = vst [vmem:[%s4904_s7 + $0x24c] sm:$0xf] %v453_v19  ;;  %v581_v19 = vld [vmem:[%s4900_s6 + $0x698] sm:$0xf] }
  0xae   : > { %456 = vst [vmem:[%s4904_s7 + $0x250] sm:$0xf] %v455_v20  ;;  %v583_v20 = vld [vmem:[%s4900_s6 + $0x6a0] sm:$0xf] }
  0xaf   : > { %458 = vst [vmem:[%s4904_s7 + $0x254] sm:$0xf] %v457_v21  ;;  %v585_v21 = vld [vmem:[%s4900_s6 + $0x6a8] sm:$0xf] }
  0xb0   : > { %460 = vst [vmem:[%s4904_s7 + $0x258] sm:$0xf] %v459_v22  ;;  %v587_v22 = vld [vmem:[%s4900_s6 + $0x6b0] sm:$0xf] }
  0xb1   : > { %462 = vst [vmem:[%s4904_s7 + $0x25c] sm:$0xf] %v461_v23  ;;  %v589_v23 = vld [vmem:[%s4900_s6 + $0x6b8] sm:$0xf] }
  0xb2   : > { %464 = vst [vmem:[%s4904_s7 + $0x260] sm:$0xf] %v463_v24  ;;  %v591_v24 = vld [vmem:[%s4900_s6 + $0x6c0] sm:$0xf] }
  0xb3   : > { %466 = vst [vmem:[%s4904_s7 + $0x264] sm:$0xf] %v465_v25  ;;  %v593_v25 = vld [vmem:[%s4900_s6 + $0x6c8] sm:$0xf] }
  0xb4   : > { %468 = vst [vmem:[%s4904_s7 + $0x268] sm:$0xf] %v467_v26  ;;  %v595_v26 = vld [vmem:[%s4900_s6 + $0x6d0] sm:$0xf] }
  0xb5   : > { %470 = vst [vmem:[%s4904_s7 + $0x26c] sm:$0xf] %v469_v27  ;;  %v597_v27 = vld [vmem:[%s4900_s6 + $0x6d8] sm:$0xf] }
  0xb6   : > { %472 = vst [vmem:[%s4904_s7 + $0x270] sm:$0xf] %v471_v28  ;;  %v599_v28 = vld [vmem:[%s4900_s6 + $0x6e0] sm:$0xf] }
  0xb7   : > { %474 = vst [vmem:[%s4904_s7 + $0x274] sm:$0xf] %v473_v29  ;;  %v601_v29 = vld [vmem:[%s4900_s6 + $0x6e8] sm:$0xf] }
  0xb8   : > { %476 = vst [vmem:[%s4904_s7 + $0x278] sm:$0xf] %v475_v30  ;;  %v603_v30 = vld [vmem:[%s4900_s6 + $0x6f0] sm:$0xf] }
  0xb9   : > { %478 = vst [vmem:[%s4904_s7 + $0x27c] sm:$0xf] %v477_v31  ;;  %v605_v31 = vld [vmem:[%s4900_s6 + $0x6f8] sm:$0xf] }
  0xba   : > { %480 = vst [vmem:[%s4904_s7 + $0x280] sm:$0xf] %v479_v32  ;;  %v607_v32 = vld [vmem:[%s4900_s6 + $0x700] sm:$0xf] }
  0xbb   : > { %482 = vst [vmem:[%s4904_s7 + $0x284] sm:$0xf] %v481_v33  ;;  %v609_v33 = vld [vmem:[%s4900_s6 + $0x708] sm:$0xf] }
  0xbc   : > { %484 = vst [vmem:[%s4904_s7 + $0x288] sm:$0xf] %v483_v34  ;;  %v611_v34 = vld [vmem:[%s4900_s6 + $0x710] sm:$0xf] }
  0xbd   : > { %486 = vst [vmem:[%s4904_s7 + $0x28c] sm:$0xf] %v485_v35  ;;  %v613_v35 = vld [vmem:[%s4900_s6 + $0x718] sm:$0xf] }
  0xbe   : > { %488 = vst [vmem:[%s4904_s7 + $0x290] sm:$0xf] %v487_v36  ;;  %v615_v36 = vld [vmem:[%s4900_s6 + $0x720] sm:$0xf] }
  0xbf   : > { %490 = vst [vmem:[%s4904_s7 + $0x294] sm:$0xf] %v489_v37  ;;  %v617_v37 = vld [vmem:[%s4900_s6 + $0x728] sm:$0xf] }
  0xc0   : > { %492 = vst [vmem:[%s4904_s7 + $0x298] sm:$0xf] %v491_v38  ;;  %v619_v38 = vld [vmem:[%s4900_s6 + $0x730] sm:$0xf] }
  0xc1   : > { %494 = vst [vmem:[%s4904_s7 + $0x29c] sm:$0xf] %v493_v39  ;;  %v621_v39 = vld [vmem:[%s4900_s6 + $0x738] sm:$0xf] }
  0xc2   : > { %496 = vst [vmem:[%s4904_s7 + $0x2a0] sm:$0xf] %v495_v40  ;;  %v623_v40 = vld [vmem:[%s4900_s6 + $0x740] sm:$0xf] }
  0xc3   : > { %498 = vst [vmem:[%s4904_s7 + $0x2a4] sm:$0xf] %v497_v41  ;;  %v625_v41 = vld [vmem:[%s4900_s6 + $0x748] sm:$0xf] }
  0xc4   : > { %500 = vst [vmem:[%s4904_s7 + $0x2a8] sm:$0xf] %v499_v42  ;;  %v627_v42 = vld [vmem:[%s4900_s6 + $0x750] sm:$0xf] }
  0xc5   : > { %502 = vst [vmem:[%s4904_s7 + $0x2ac] sm:$0xf] %v501_v43  ;;  %v629_v43 = vld [vmem:[%s4900_s6 + $0x758] sm:$0xf] }
  0xc6   : > { %504 = vst [vmem:[%s4904_s7 + $0x2b0] sm:$0xf] %v503_v44  ;;  %v631_v44 = vld [vmem:[%s4900_s6 + $0x760] sm:$0xf] }
  0xc7   : > { %506 = vst [vmem:[%s4904_s7 + $0x2b4] sm:$0xf] %v505_v45  ;;  %v633_v45 = vld [vmem:[%s4900_s6 + $0x768] sm:$0xf] }
  0xc8   : > { %508 = vst [vmem:[%s4904_s7 + $0x2b8] sm:$0xf] %v507_v46  ;;  %v635_v46 = vld [vmem:[%s4900_s6 + $0x770] sm:$0xf] }
  0xc9   : > { %510 = vst [vmem:[%s4904_s7 + $0x2bc] sm:$0xf] %v509_v47  ;;  %v637_v47 = vld [vmem:[%s4900_s6 + $0x778] sm:$0xf] }
  0xca   : > { %512 = vst [vmem:[%s4904_s7 + $0x2c0] sm:$0xf] %v511_v48  ;;  %v639_v48 = vld [vmem:[%s4900_s6 + $0x780] sm:$0xf] }
  0xcb   : > { %514 = vst [vmem:[%s4904_s7 + $0x2c4] sm:$0xf] %v513_v49  ;;  %v641_v49 = vld [vmem:[%s4900_s6 + $0x788] sm:$0xf] }
  0xcc   : > { %516 = vst [vmem:[%s4904_s7 + $0x2c8] sm:$0xf] %v515_v50  ;;  %v643_v50 = vld [vmem:[%s4900_s6 + $0x790] sm:$0xf] }
  0xcd   : > { %518 = vst [vmem:[%s4904_s7 + $0x2cc] sm:$0xf] %v517_v51  ;;  %v645_v51 = vld [vmem:[%s4900_s6 + $0x798] sm:$0xf] }
  0xce   : > { %520 = vst [vmem:[%s4904_s7 + $0x2d0] sm:$0xf] %v519_v52  ;;  %v647_v52 = vld [vmem:[%s4900_s6 + $0x7a0] sm:$0xf] }
  0xcf   : > { %522 = vst [vmem:[%s4904_s7 + $0x2d4] sm:$0xf] %v521_v53  ;;  %v649_v53 = vld [vmem:[%s4900_s6 + $0x7a8] sm:$0xf] }
  0xd0   : > { %524 = vst [vmem:[%s4904_s7 + $0x2d8] sm:$0xf] %v523_v54  ;;  %v651_v54 = vld [vmem:[%s4900_s6 + $0x7b0] sm:$0xf] }
  0xd1   : > { %526 = vst [vmem:[%s4904_s7 + $0x2dc] sm:$0xf] %v525_v55  ;;  %v653_v55 = vld [vmem:[%s4900_s6 + $0x7b8] sm:$0xf] }
  0xd2   : > { %528 = vst [vmem:[%s4904_s7 + $0x2e0] sm:$0xf] %v527_v56  ;;  %v655_v56 = vld [vmem:[%s4900_s6 + $0x7c0] sm:$0xf] }
  0xd3   : > { %530 = vst [vmem:[%s4904_s7 + $0x2e4] sm:$0xf] %v529_v57  ;;  %v657_v57 = vld [vmem:[%s4900_s6 + $0x7c8] sm:$0xf] }
  0xd4   : > { %532 = vst [vmem:[%s4904_s7 + $0x2e8] sm:$0xf] %v531_v58  ;;  %v659_v58 = vld [vmem:[%s4900_s6 + $0x7d0] sm:$0xf] }
  0xd5   : > { %534 = vst [vmem:[%s4904_s7 + $0x2ec] sm:$0xf] %v533_v59  ;;  %v661_v59 = vld [vmem:[%s4900_s6 + $0x7d8] sm:$0xf] }
  0xd6   : > { %536 = vst [vmem:[%s4904_s7 + $0x2f0] sm:$0xf] %v535_v60  ;;  %v663_v60 = vld [vmem:[%s4900_s6 + $0x7e0] sm:$0xf] }
  0xd7   : > { %538 = vst [vmem:[%s4904_s7 + $0x2f4] sm:$0xf] %v537_v61  ;;  %v665_v61 = vld [vmem:[%s4900_s6 + $0x7e8] sm:$0xf] }
  0xd8   : > { %540 = vst [vmem:[%s4904_s7 + $0x2f8] sm:$0xf] %v539_v62  ;;  %v667_v62 = vld [vmem:[%s4900_s6 + $0x7f0] sm:$0xf] }
  0xd9   : > { %542 = vst [vmem:[%s4904_s7 + $0x2fc] sm:$0xf] %v541_v63  ;;  %v669_v63 = vld [vmem:[%s4900_s6 + $0x7f8] sm:$0xf] }
  0xda   : > { %544 = vst [vmem:[%s4904_s7 + $0x300] sm:$0xf] %v543_v0 }
  0xdb   : > { %546 = vst [vmem:[%s4904_s7 + $0x304] sm:$0xf] %v545_v1 }
  0xdc   : > { %548 = vst [vmem:[%s4904_s7 + $0x308] sm:$0xf] %v547_v2 }
  0xdd   : > { %550 = vst [vmem:[%s4904_s7 + $0x30c] sm:$0xf] %v549_v3 }
  0xde   : > { %552 = vst [vmem:[%s4904_s7 + $0x310] sm:$0xf] %v551_v4 }
  0xdf   : > { %554 = vst [vmem:[%s4904_s7 + $0x314] sm:$0xf] %v553_v5 }
  0xe0   : > { %556 = vst [vmem:[%s4904_s7 + $0x318] sm:$0xf] %v555_v6 }
  0xe1   : > { %558 = vst [vmem:[%s4904_s7 + $0x31c] sm:$0xf] %v557_v7 }
  0xe2   : > { %560 = vst [vmem:[%s4904_s7 + $0x320] sm:$0xf] %v559_v8 }
  0xe3   : > { %562 = vst [vmem:[%s4904_s7 + $0x324] sm:$0xf] %v561_v9 }
  0xe4   : > { %564 = vst [vmem:[%s4904_s7 + $0x328] sm:$0xf] %v563_v10 }
  0xe5   : > { %566 = vst [vmem:[%s4904_s7 + $0x32c] sm:$0xf] %v565_v11 }
  0xe6   : > { %568 = vst [vmem:[%s4904_s7 + $0x330] sm:$0xf] %v567_v12 }
  0xe7   : > { %570 = vst [vmem:[%s4904_s7 + $0x334] sm:$0xf] %v569_v13 }
  0xe8   : > { %572 = vst [vmem:[%s4904_s7 + $0x338] sm:$0xf] %v571_v14 }
  0xe9   : > { %574 = vst [vmem:[%s4904_s7 + $0x33c] sm:$0xf] %v573_v15 }
  0xea   : > { %576 = vst [vmem:[%s4904_s7 + $0x340] sm:$0xf] %v575_v16 }
  0xeb   : > { %578 = vst [vmem:[%s4904_s7 + $0x344] sm:$0xf] %v577_v17 }
  0xec   : > { %580 = vst [vmem:[%s4904_s7 + $0x348] sm:$0xf] %v579_v18 }
  0xed   : > { %582 = vst [vmem:[%s4904_s7 + $0x34c] sm:$0xf] %v581_v19 }
  0xee   : > { %584 = vst [vmem:[%s4904_s7 + $0x350] sm:$0xf] %v583_v20 }
  0xef   : > { %586 = vst [vmem:[%s4904_s7 + $0x354] sm:$0xf] %v585_v21 }
  0xf0   : > { %588 = vst [vmem:[%s4904_s7 + $0x358] sm:$0xf] %v587_v22 }
  0xf1   : > { %590 = vst [vmem:[%s4904_s7 + $0x35c] sm:$0xf] %v589_v23 }
  0xf2   : > { %592 = vst [vmem:[%s4904_s7 + $0x360] sm:$0xf] %v591_v24 }
  0xf3   : > { %594 = vst [vmem:[%s4904_s7 + $0x364] sm:$0xf] %v593_v25 }
  0xf4   : > { %596 = vst [vmem:[%s4904_s7 + $0x368] sm:$0xf] %v595_v26 }
  0xf5   : > { %598 = vst [vmem:[%s4904_s7 + $0x36c] sm:$0xf] %v597_v27 }
  0xf6   : > { %600 = vst [vmem:[%s4904_s7 + $0x370] sm:$0xf] %v599_v28 }
  0xf7   : > { %602 = vst [vmem:[%s4904_s7 + $0x374] sm:$0xf] %v601_v29 }
  0xf8   : > { %604 = vst [vmem:[%s4904_s7 + $0x378] sm:$0xf] %v603_v30 }
  0xf9   : > { %606 = vst [vmem:[%s4904_s7 + $0x37c] sm:$0xf] %v605_v31 }
  0xfa   : > { %608 = vst [vmem:[%s4904_s7 + $0x380] sm:$0xf] %v607_v32 }
  0xfb   : > { %610 = vst [vmem:[%s4904_s7 + $0x384] sm:$0xf] %v609_v33 }
  0xfc   : > { %612 = vst [vmem:[%s4904_s7 + $0x388] sm:$0xf] %v611_v34 }
  0xfd   : > { %614 = vst [vmem:[%s4904_s7 + $0x38c] sm:$0xf] %v613_v35 }
  0xfe   : > { %616 = vst [vmem:[%s4904_s7 + $0x390] sm:$0xf] %v615_v36 }
  0xff   : > { %618 = vst [vmem:[%s4904_s7 + $0x394] sm:$0xf] %v617_v37 }
 0x100   : > { %620 = vst [vmem:[%s4904_s7 + $0x398] sm:$0xf] %v619_v38 }
 0x101   : > { %622 = vst [vmem:[%s4904_s7 + $0x39c] sm:$0xf] %v621_v39 }
 0x102   : > { %624 = vst [vmem:[%s4904_s7 + $0x3a0] sm:$0xf] %v623_v40 }
 0x103   : > { %626 = vst [vmem:[%s4904_s7 + $0x3a4] sm:$0xf] %v625_v41 }
 0x104   : > { %628 = vst [vmem:[%s4904_s7 + $0x3a8] sm:$0xf] %v627_v42 }
 0x105   : > { %630 = vst [vmem:[%s4904_s7 + $0x3ac] sm:$0xf] %v629_v43 }
 0x106   : > { %632 = vst [vmem:[%s4904_s7 + $0x3b0] sm:$0xf] %v631_v44 }
 0x107   : > { %634 = vst [vmem:[%s4904_s7 + $0x3b4] sm:$0xf] %v633_v45 }
 0x108   : > { %636 = vst [vmem:[%s4904_s7 + $0x3b8] sm:$0xf] %v635_v46 }
 0x109   : > { %638 = vst [vmem:[%s4904_s7 + $0x3bc] sm:$0xf] %v637_v47 }
 0x10a   : > { %640 = vst [vmem:[%s4904_s7 + $0x3c0] sm:$0xf] %v639_v48 }
 0x10b   : > { %642 = vst [vmem:[%s4904_s7 + $0x3c4] sm:$0xf] %v641_v49 }
 0x10c   : > { %644 = vst [vmem:[%s4904_s7 + $0x3c8] sm:$0xf] %v643_v50 }
 0x10d   : > { %646 = vst [vmem:[%s4904_s7 + $0x3cc] sm:$0xf] %v645_v51 }
 0x10e   : > { %648 = vst [vmem:[%s4904_s7 + $0x3d0] sm:$0xf] %v647_v52 }
 0x10f   : > { %650 = vst [vmem:[%s4904_s7 + $0x3d4] sm:$0xf] %v649_v53 }
 0x110   : > { %652 = vst [vmem:[%s4904_s7 + $0x3d8] sm:$0xf] %v651_v54 }
 0x111   : > { %654 = vst [vmem:[%s4904_s7 + $0x3dc] sm:$0xf] %v653_v55 }
 0x112   : > { %656 = vst [vmem:[%s4904_s7 + $0x3e0] sm:$0xf] %v655_v56 }
 0x113   : > { %658 = vst [vmem:[%s4904_s7 + $0x3e4] sm:$0xf] %v657_v57 }
 0x114   : > { %660 = vst [vmem:[%s4904_s7 + $0x3e8] sm:$0xf] %v659_v58 }
 0x115   : > { %662 = vst [vmem:[%s4904_s7 + $0x3ec] sm:$0xf] %v661_v59 }
 0x116   : > { %664 = vst [vmem:[%s4904_s7 + $0x3f0] sm:$0xf] %v663_v60 }
 0x117   : > { %666 = vst [vmem:[%s4904_s7 + $0x3f4] sm:$0xf] %v665_v61 }
 0x118   : > { %668 = vst [vmem:[%s4904_s7 + $0x3f8] sm:$0xf] %v667_v62 }
 0x119   : > { %670 = vst [vmem:[%s4904_s7 + $0x3fc] sm:$0xf] %v669_v63 }
 0x11a PF: > { %p3872_p11 = scmp.ge.s32.totalorder %s4802_s17, 1  ;;  %p2255_p12 = scmp.lt.s32.totalorder %s4802_s17, 5 }
 0x11c   : > { %p2256_p13 = pnand %p3872_p11, %p2255_p12 }
 0x11d   : > { %s2262_s8 = sand.u32 (!%p2256_p13), 1, %s4778_s11   ;;  %p2287_p0 = scmp.lt.s32.totalorder (!%p2256_p13), %s4790_s14, 1 }
 0x11e   : > { %2259 = sbr.rel (%p2256_p13) target bundleno = 638 (0x27e), region = 76  ;;  %s3873_s18 = sshll.u32 (!%p2256_p13), %s2262_s8, 10 }
 0x11f   : > { %s5419_s21 = scalar_lea.vmem (!%p2256_p13), [#allocation2], %s3873_s18  ;;  %s2284_s29 = sand.u32 (!%p2256_p13), 1, %s4770_s9  }
 0x120   : > { %s3874_s30 = sshll.u32 (!%p2256_p13), %s2284_s29, 3 }
 0x121   : > { %s2286_s3 = scalar_lea.vmem (!%p2256_p13), [#allocation3], %s3874_s30 }
 0x123   : > { %v4592_v0 = vld [vmem:[%s5419_s21 + $0x238] sm:$0xff]  ;;  %v4591_v4 = vld [vmem:[%s5419_s21 + $0x230] sm:$0xff]  ;;  %s2288_s11 = scalar_select %p2287_p0, %s4790_s14, 1  ;;  %v4590_v8 = vld [vmem:[%s5419_s21 + $0x228] sm:$0xff]  ;;  %vm2617_vm0 = vcmask 1045504  }
 0x124   : > { %v4600_v1 = vld [vmem:[%s5419_s21 + $0x278] sm:$0xff]  ;;  %3034 = vmatpush.bf16.msra.mxu0 %v4592_v0  ;;  %v4599_v5 = vld [vmem:[%s5419_s21 + $0x270] sm:$0xff]  ;;  %v4598_v9 = vld [vmem:[%s5419_s21 + $0x268] sm:$0xff]  ;;  %s4517_s9 = sshll.u32 (%p4887_p9), %s4790_s14, 2 }
 0x125   : > { %v4608_v2 = vld [vmem:[%s5419_s21 + $0x2b8] sm:$0xff]  ;;  %3048 = vmatpush.bf16.msra.mxu1 %v4600_v1  ;;  %v4607_v6 = vld [vmem:[%s5419_s21 + $0x2b0] sm:$0xff]  ;;  %v4606_v10 = vld [vmem:[%s5419_s21 + $0x2a8] sm:$0xff]  ;;  %s4654_s22 = smul.u32 96, %s2288_s11  ;;  %s3728_s4 = sadd.s32 (%p4887_p9), %s4786_s13, %s4517_s9 }
 0x126   : > { %v4616_v3 = vld [vmem:[%s5419_s21 + $0x2f8] sm:$0xff]  ;;  %3062 = vmatpush.bf16.msra.mxu2 %v4608_v2  ;;  %v4615_v7 = vld [vmem:[%s5419_s21 + $0x2f0] sm:$0xff]  ;;  %v4614_v11 = vld [vmem:[%s5419_s21 + $0x2e8] sm:$0xff]  ;;  %s4518_s5 = sshll.u32 (%p4887_p9), %s3728_s4, 2 }
 0x127   : > { %3076 = vmatpush.bf16.msra.mxu3 %v4616_v3  ;;  %v4589_v12 = vld [vmem:[%s5419_s21 + $0x220] sm:$0xff]  ;;  %s5442_s26 = scalar_lea.vmem %s5663_s0, %s4654_s22  ;;  %v4588_v16 = vld [vmem:[%s5419_s21 + $0x218] sm:$0xff]  ;;  %v4587_v26 = vld [vmem:[%s5419_s21 + $0x210] sm:$0xff]  ;;  %s3730_s8 = scalar_lea.vmem (%p4887_p9), %s5665_s2, %s4518_s5 }
 0x128   : > { %3035 = vmatpush.bf16.msra.mxu0 %v4591_v4  ;;  %v4597_v13 = vld [vmem:[%s5419_s21 + $0x260] sm:$0xff]  ;;  %v4596_v17 = vld [vmem:[%s5419_s21 + $0x258] sm:$0xff]  ;;  %v5454_v23 = vld [vmem:[%s5442_s26 + $0x28] sm:$0xff] }
 0x129   : > { %3049 = vmatpush.bf16.msra.mxu1 %v4599_v5  ;;  %v4605_v14 = vld [vmem:[%s5419_s21 + $0x2a0] sm:$0xff]  ;;  %v4604_v18 = vld [vmem:[%s5419_s21 + $0x298] sm:$0xff]  ;;  %v2429_v24 = vld [vmem:[%s5442_s26 + $0x8] sm:$0xcc]  ;;  %v2587_v34 = vunpack.c.l.b16 %v5454_v23  ;;  %v2588_v40 = vunpack.c.h.b16 %v5454_v23 }
 0x12a   : > { %3063 = vmatpush.bf16.msra.mxu2 %v4607_v6  ;;  %v4613_v15 = vld [vmem:[%s5419_s21 + $0x2e0] sm:$0xff]  ;;  %v4612_v19 = vld [vmem:[%s5419_s21 + $0x2d8] sm:$0xff]  ;;  %v2433_v25 = vld [vmem:[%s5442_s26 + $0x48] sm:$0x33]  ;;  %v2579_v33 = vunpack.c.l.b16 %v2429_v24  ;;  %v2580_v39 = vunpack.c.h.b16 %v2429_v24 }
 0x12b   : > { %3077 = vmatpush.bf16.msra.mxu3 %v4615_v7  ;;  %v5449_v20 = vld [vmem:[%s5442_s26 + $0x20] sm:$0xff]  ;;  %v4595_v27 = vld [vmem:[%s5419_s21 + $0x250] sm:$0xff]  ;;  %v2595_v35 = vunpack.c.l.b16 %v2433_v25  ;;  %v2596_v41 = vunpack.c.h.b16 %v2433_v25  ;;  %v4586_v42 = vld [vmem:[%s5419_s21 + $0x208] sm:$0xff] }
 0x12c   : > { %3036 = vmatpush.bf16.msra.mxu0 %v4590_v8  ;;  %v2428_v21 = vld [vmem:[%s5442_s26] sm:$0xcc]  ;;  %v2432_v22 = vld [vmem:[%s5442_s26 + $0x40] sm:$0x33]  ;;  %v2585_v29 = vunpack.c.l.b16 %v5449_v20  ;;  %v4603_v31 = vld [vmem:[%s5419_s21 + $0x290] sm:$0xff]  ;;  %v2586_v37 = vunpack.c.h.b16 %v5449_v20  ;;  %v2603_v48 = vpack.c.b16 %v2587_v34, %v2579_v33  ;;  %v2604_v52 = vpack.c.b16 %v2588_v40, %v2580_v39 }
 0x12d   : > { %3050 = vmatpush.bf16.msra.mxu1 %v4598_v9  ;;  %v2577_v28 = vunpack.c.l.b16 %v2428_v21  ;;  %v2593_v30 = vunpack.c.l.b16 %v2432_v22  ;;  %v4611_v32 = vld [vmem:[%s5419_s21 + $0x2d0] sm:$0xff]  ;;  %v2578_v36 = vunpack.c.h.b16 %v2428_v21  ;;  %v2594_v38 = vunpack.c.h.b16 %v2432_v22  ;;  %v4594_v43 = vld [vmem:[%s5419_s21 + $0x248] sm:$0xff]  ;;  %v4585_v54 = vld [vmem:[%s5419_s21 + $0x200] sm:$0xff] }
 0x12e   : > { %3064 = vmatpush.bf16.msra.mxu2 %v4606_v10  ;;  %v4602_v45 = vld [vmem:[%s5419_s21 + $0x288] sm:$0xff]  ;;  %v2611_v49 = vpack.c.b16 %v2595_v35, %v2595_v35  ;;  %v2612_v53 = vpack.c.b16 %v2596_v41, %v2596_v41  ;;  %v4593_v55 = vld [vmem:[%s5419_s21 + $0x240] sm:$0xff]  ;;  %v2624_v60 = vrot.slane %v2603_v48, 2  ;;  %v4624_v62 = vld [vmem:[%s5419_s21 + $0x338] sm:$0xff]  ;;  %v2627_v2 = vrot.slane %v2604_v52, 2 }
 0x12f   : > { %3078 = vmatpush.bf16.msra.mxu3 %v4614_v11  ;;  %v2601_v44 = vpack.c.b16 %v2585_v29, %v2577_v28  ;;  %v4610_v46 = vld [vmem:[%s5419_s21 + $0x2c8] sm:$0xff]  ;;  %v2609_v47 = vpack.c.b16 %v2593_v30, %v2593_v30  ;;  %v2602_v50 = vpack.c.b16 %v2586_v37, %v2578_v36  ;;  %v2610_v51 = vpack.c.b16 %v2594_v38, %v2594_v38  ;;  %v4601_v56 = vld [vmem:[%s5419_s21 + $0x280] sm:$0xff]  ;;  %v4632_v63 = vld [vmem:[%s5419_s21 + $0x378] sm:$0xff] }
 0x130   : > { %3037 = vmatpush.bf16.msra.mxu0 %v4589_v12  ;;  %v4609_v57 = vld [vmem:[%s5419_s21 + $0x2c0] sm:$0xff]  ;;  %v2625_v61 = vrot.slane %v2611_v49, 2  ;;  %v2628_v3 = vrot.slane %v2612_v53, 2  ;;  %v4640_v4 = vld [vmem:[%s5419_s21 + $0x3b8] sm:$0xff]  ;;  %v4623_v8 = vld [vmem:[%s5419_s21 + $0x330] sm:$0xff] }
 0x131   : > { %3051 = vmatpush.bf16.msra.mxu1 %v4597_v13  ;;  %v2618_v58 = vrot.slane %v2601_v44, 2  ;;  %v2619_v59 = vrot.slane %v2609_v47, 2  ;;  %v2621_v0 = vrot.slane %v2602_v50, 2  ;;  %v2622_v1 = vrot.slane %v2610_v51, 2  ;;  %v4648_v5 = vld [vmem:[%s5419_s21 + $0x3f8] sm:$0xff]  ;;  %v4631_v9 = vld [vmem:[%s5419_s21 + $0x370] sm:$0xff] }
 0x132   : > { %3065 = vmatpush.bf16.msra.mxu2 %v4605_v14  ;;  %v2626_v7 = vsel %vm2617_vm0, %v2624_v60, %v2625_v61  ;;  %v2629_v11 = vsel %vm2617_vm0, %v2627_v2, %v2628_v3  ;;  %v4639_v12 = vld [vmem:[%s5419_s21 + $0x3b0] sm:$0xff]  ;;  %v4622_v14 = vld [vmem:[%s5419_s21 + $0x328] sm:$0xff]  ;;  %v4637_v21 = vld [vmem:[%s5419_s21 + $0x3a0] sm:$0xff] }
 0x133   : > { %3079 = vmatpush.bf16.msra.mxu3 %v4613_v15  ;;  %v2620_v6 = vsel %vm2617_vm0, %v2618_v58, %v2619_v59  ;;  %v2623_v10 = vsel %vm2617_vm0, %v2621_v0, %v2622_v1  ;;  %v4647_v13 = vld [vmem:[%s5419_s21 + $0x3f0] sm:$0xff]  ;;  %v4630_v15 = vld [vmem:[%s5419_s21 + $0x368] sm:$0xff]  ;;  %v4645_v22 = vld [vmem:[%s5419_s21 + $0x3e0] sm:$0xff] }
 0x134   : > { %3038 = vmatpush.bf16.msra.mxu0 %v4588_v16  ;;  %v4638_v16 = vld [vmem:[%s5419_s21 + $0x3a8] sm:$0xff]  ;;  %v4620_v24 = vld [vmem:[%s5419_s21 + $0x318] sm:$0xff]  ;;  %v5507_v28 = vld [vmem:[%s5442_s26 + $0x30] sm:$0xff] }
 0x135   : > { %3052 = vmatpush.bf16.msra.mxu1 %v4596_v17  ;;  %v4646_v17 = vld [vmem:[%s5419_s21 + $0x3e8] sm:$0xff]  ;;  %v4628_v25 = vld [vmem:[%s5419_s21 + $0x358] sm:$0xff]  ;;  %v2430_v30 = vld [vmem:[%s5442_s26 + $0x10] sm:$0xcc]  ;;  %v2589_v41 = vunpack.c.l.b16 %v5507_v28  ;;  %v2590_v49 = vunpack.c.h.b16 %v5507_v28 }
 0x136   : > { %3066 = vmatpush.bf16.msra.mxu2 %v4604_v18  ;;  %v4621_v18 = vld [vmem:[%s5419_s21 + $0x320] sm:$0xff]  ;;  %v5513_v33 = vld [vmem:[%s5442_s26 + $0x38] sm:$0xff]  ;;  %v4619_v36 = vld [vmem:[%s5419_s21 + $0x310] sm:$0xff]  ;;  %v2581_v39 = vunpack.c.l.b16 %v2430_v30  ;;  %v2582_v48 = vunpack.c.h.b16 %v2430_v30 }
 0x137   : > { %3080 = vmatpush.bf16.msra.mxu3 %v4612_v19  ;;  %v4629_v19 = vld [vmem:[%s5419_s21 + $0x360] sm:$0xff]  ;;  %v2435_v35 = vld [vmem:[%s5442_s26 + $0x58] sm:$0x33]  ;;  %v4627_v38 = vld [vmem:[%s5419_s21 + $0x350] sm:$0xff]  ;;  %v2592_v52 = vunpack.c.h.b16 %v5513_v33 }
 0x138   : > { %3039 = vmatpush.bf16.msra.mxu0 %v4587_v26  ;;  %v4636_v26 = vld [vmem:[%s5419_s21 + $0x398] sm:$0xff]  ;;  %v4635_v44 = vld [vmem:[%s5419_s21 + $0x390] sm:$0xff]  ;;  %v2599_v47 = vunpack.c.l.b16 %v2435_v35  ;;  %v2600_v53 = vunpack.c.h.b16 %v2435_v35  ;;  %v4642_v58 = vld [vmem:[%s5419_s21 + $0x3c8] sm:$0xff] }
 0x139   : > { %3053 = vmatpush.bf16.msra.mxu1 %v4595_v27  ;;  %v4644_v27 = vld [vmem:[%s5419_s21 + $0x3d8] sm:$0xff]  ;;  %v4617_v2 = vld [vmem:[%s5419_s21 + $0x300] sm:$0xff]  ;;  %v4526_v30 = vld [vmem:[%s5419_s21 + $0x28] sm:$0xff] }
 0x13a   : > { %3067 = vmatpush.bf16.msra.mxu2 %v4603_v31  ;;  %v2434_v31 = vld [vmem:[%s5442_s26 + $0x50] sm:$0x33]  ;;  %v2615_v61 = vpack.c.b16 %v2599_v47, %v2599_v47  ;;  %v2616_v1 = vpack.c.b16 %v2600_v53, %v2600_v53  ;;  %v4625_v3 = vld [vmem:[%s5419_s21 + $0x340] sm:$0xff]  ;;  %v4550_v35 = vld [vmem:[%s5419_s21 + $0xe8] sm:$0xff] }
 0x13b   : > { %3081 = vmatpush.bf16.msra.mxu3 %v4611_v32  ;;  %v2431_v32 = vld [vmem:[%s5442_s26 + $0x18] sm:$0xcc]  ;;  %v2598_v50 = vunpack.c.h.b16 %v2434_v31  ;;  %v4547_v53 = vld [vmem:[%s5419_s21 + $0xd0] sm:$0xff]  ;;  %v4558_v20 = vld [vmem:[%s5419_s21 + $0x128] sm:$0xff] }
 0x13c   : > { %3040 = vmatpush.bf16.msra.mxu0 %v4586_v42  ;;  %v2597_v42 = vunpack.c.l.b16 %v2434_v31  ;;  %v2584_v51 = vunpack.c.h.b16 %v2431_v32  ;;  %v4534_v31 = vld [vmem:[%s5419_s21 + $0x68] sm:$0xff]  ;;  %v4548_v47 = vld [vmem:[%s5419_s21 + $0xd8] sm:$0xff] }
 0x13d   : > { %3054 = vmatpush.bf16.msra.mxu1 %v4594_v43  ;;  %v2583_v43 = vunpack.c.l.b16 %v2431_v32  ;;  %v4542_v32 = vld [vmem:[%s5419_s21 + $0xa8] sm:$0xff] }
 0x13e   : > { %3068 = vmatpush.bf16.msra.mxu2 %v4602_v45  ;;  %v4643_v45 = vld [vmem:[%s5419_s21 + $0x3d0] sm:$0xff]  ;;  %v2613_v59 = vpack.c.b16 %v2597_v42, %v2597_v42  ;;  %v2608_v0 = vpack.c.b16 %v2592_v52, %v2584_v51  ;;  %v4549_v42 = vld [vmem:[%s5419_s21 + $0xe0] sm:$0xff]  ;;  %v4566_v23 = vld [vmem:[%s5419_s21 + $0x168] sm:$0xff] }
 0x13f   : > { %3082 = vmatpush.bf16.msra.mxu3 %v4610_v46  ;;  %v2591_v46 = vunpack.c.l.b16 %v5513_v33  ;;  %v4539_v51 = vld [vmem:[%s5419_s21 + $0x90] sm:$0xff] }
 0x140   : > { %3041 = vmatpush.bf16.msra.mxu0 %v4585_v54  ;;  %v4618_v54 = vld [vmem:[%s5419_s21 + $0x308] sm:$0xff] }
 0x141   : > { %3055 = vmatpush.bf16.msra.mxu1 %v4593_v55  ;;  %v4626_v55 = vld [vmem:[%s5419_s21 + $0x348] sm:$0xff]  ;;  %v2607_v60 = vpack.c.b16 %v2591_v46, %v2583_v43  ;;  %v4524_v43 = vld [vmem:[%s5419_s21 + $0x18] sm:$0xff] }
 0x142   : > { %3069 = vmatpush.bf16.msra.mxu2 %v4601_v56  ;;  %v2605_v56 = vpack.c.b16 %v2589_v41, %v2581_v39  ;;  %v4541_v39 = vld [vmem:[%s5419_s21 + $0xa0] sm:$0xff] }
 0x143   : > { %3083 = vmatpush.bf16.msra.mxu3 %v4609_v57  ;;  %3042 = vmatmul.bf16.vlgmr.msra.gmra.mxu0 %v2620_v6  ;;  %v4634_v57 = vld [vmem:[%s5419_s21 + $0x388] sm:$0xff] }
 0x144   : > { %3090 = vmatpush.bf16.msrb.mxu0 %v4624_v62  ;;  %3056 = vmatmul.bf16.vlgmr.msra.gmra.mxu1 %v2623_v10  ;;  %v2606_v62 = vpack.c.b16 %v2590_v49, %v2582_v48  ;;  %v2630_v6 = vrot.slane %v2605_v56, 2  ;;  %v4528_v10 = vld [vmem:[%s5419_s21 + $0x38] sm:$0xff]  ;;  %v4523_v48 = vld [vmem:[%s5419_s21 + $0x10] sm:$0xff]  ;;  %v4538_v56 = vld [vmem:[%s5419_s21 + $0x88] sm:$0xff] }
 0x145   : > { %3104 = vmatpush.bf16.msrb.mxu1 %v4632_v63  ;;  %3070 = vmatmul.bf16.vlgmr.msra.gmra.mxu2 %v2626_v7  ;;  %v2614_v63 = vpack.c.b16 %v2598_v50, %v2598_v50  ;;  %v2631_v7 = vrot.slane %v2613_v59, 2  ;;  %v4531_v50 = vld [vmem:[%s5419_s21 + $0x50] sm:$0xff]  ;;  %v2293_v59 = vld [vmem:[%s5442_s26 + $0x8] sm:$0xff] }
 0x146   : > { %3118 = vmatpush.bf16.msrb.mxu2 %v4640_v4  ;;  %3084 = vmatmul.bf16.vlgmr.msra.gmra.mxu3 %v2629_v11  ;;  %v4633_v4 = vld [vmem:[%s5419_s21 + $0x380] sm:$0xff]  ;;  %v4536_v11 = vld [vmem:[%s5419_s21 + $0x78] sm:$0xff] }
 0x147   : > { %3132 = vmatpush.bf16.msrb.mxu3 %v4648_v5  ;;  %v4641_v5 = vld [vmem:[%s5419_s21 + $0x3c0] sm:$0xff] }
 0x148   : > { %3091 = vmatpush.bf16.msrb.mxu0 %v4623_v8  ;;  %v2636_v8 = vrot.slane %v2607_v60, 2  ;;  %v4521_v60 = vld [vmem:[%s5419_s21] sm:$0xff] }
 0x149   : > { %3105 = vmatpush.bf16.msrb.mxu1 %v4631_v9  ;;  %v2637_v9 = vrot.slane %v2615_v61, 2  ;;  %v4529_v61 = vld [vmem:[%s5419_s21 + $0x40] sm:$0xff] }
 0x14a   : > { %3119 = vmatpush.bf16.msrb.mxu2 %v4639_v12  ;;  %v2633_v12 = vrot.slane %v2606_v62, 2 }
 0x14b   : > { %3133 = vmatpush.bf16.msrb.mxu3 %v4647_v13  ;;  %v2634_v13 = vrot.slane %v2614_v63, 2  ;;  %v3152_v63 = vunpack.c.l.b16 %v2293_v59 }
 0x14c   : > { %3092 = vmatpush.bf16.msrb.mxu0 %v4622_v14  ;;  %v2639_v14 = vrot.slane %v2608_v0, 2  ;;  %v4537_v0 = vld [vmem:[%s5419_s21 + $0x80] sm:$0xff] }
 0x14d   : > { %3106 = vmatpush.bf16.msrb.mxu1 %v4630_v15  ;;  %v2640_v15 = vrot.slane %v2616_v1, 2  ;;  %v4545_v1 = vld [vmem:[%s5419_s21 + $0xc0] sm:$0xff] }
 0x14e   : > { %3120 = vmatpush.bf16.msrb.mxu2 %v4638_v16  ;;  %v4544_v16 = vld [vmem:[%s5419_s21 + $0xb8] sm:$0xff] }
 0x14f   : > { %3134 = vmatpush.bf16.msrb.mxu3 %v4646_v17  ;;  %v4552_v17 = vld [vmem:[%s5419_s21 + $0xf8] sm:$0xff] }
 0x150   : > { %3093 = vmatpush.bf16.msrb.mxu0 %v4621_v18  ;;  %v2632_v18 = vsel %vm2617_vm0, %v2630_v6, %v2631_v7  ;;  %v4576_v6 = vld [vmem:[%s5419_s21 + $0x1b8] sm:$0xff] }
 0x151   : > { %3107 = vmatpush.bf16.msrb.mxu1 %v4629_v19  ;;  %v2638_v19 = vsel %vm2617_vm0, %v2636_v8, %v2637_v9  ;;  %v4584_v7 = vld [vmem:[%s5419_s21 + $0x1f8] sm:$0xff]  ;;  %v3160_v9 = vpack.c.b16 %v2587_v34, %v3152_v63  ;;  %v4583_v34 = vld [vmem:[%s5419_s21 + $0x1f0] sm:$0xff] }
 0x152   : > { %3121 = vmatpush.bf16.msrb.mxu2 %v4637_v21  ;;  %v2635_v21 = vsel %vm2617_vm0, %v2633_v12, %v2634_v13  ;;  %v4559_v12 = vld [vmem:[%s5419_s21 + $0x130] sm:$0xff] }
 0x153   : > { %3135 = vmatpush.bf16.msrb.mxu3 %v4645_v22  ;;  %v2641_v22 = vsel %vm2617_vm0, %v2639_v14, %v2640_v15  ;;  %v4567_v13 = vld [vmem:[%s5419_s21 + $0x170] sm:$0xff]  ;;  %v4557_v14 = vld [vmem:[%s5419_s21 + $0x120] sm:$0xff] }
 0x154   : > { %3094 = vmatpush.bf16.msrb.mxu0 %v4620_v24  ;;  %v4527_v24 = vld [vmem:[%s5419_s21 + $0x30] sm:$0xff]  ;;  %v4565_v15 = vld [vmem:[%s5419_s21 + $0x160] sm:$0xff] }
 0x155   : > { %3108 = vmatpush.bf16.msrb.mxu1 %v4628_v25  ;;  %v4535_v25 = vld [vmem:[%s5419_s21 + $0x70] sm:$0xff] }
 0x156   : > { %3122 = vmatpush.bf16.msrb.mxu2 %v4636_v26  ;;  %v4543_v26 = vld [vmem:[%s5419_s21 + $0xb0] sm:$0xff] }
 0x157   : > { %3136 = vmatpush.bf16.msrb.mxu3 %v4644_v27  ;;  %v4551_v27 = vld [vmem:[%s5419_s21 + $0xf0] sm:$0xff] }
 0x158   : > { %3095 = vmatpush.bf16.msrb.mxu0 %v4619_v36  ;;  %v4525_v36 = vld [vmem:[%s5419_s21 + $0x20] sm:$0xff] }
 0x159   : > { %3109 = vmatpush.bf16.msrb.mxu1 %v4627_v38  ;;  %v4533_v38 = vld [vmem:[%s5419_s21 + $0x60] sm:$0xff] }
 0x15a   : > { %3123 = vmatpush.bf16.msrb.mxu2 %v4635_v44  ;;  %v4532_v44 = vld [vmem:[%s5419_s21 + $0x58] sm:$0xff] }
 0x15b   : > { %3137 = vmatpush.bf16.msrb.mxu3 %v4643_v45  ;;  %v4540_v45 = vld [vmem:[%s5419_s21 + $0x98] sm:$0xff] }
 0x15c   : > { %3096 = vmatpush.bf16.msrb.mxu0 %v4618_v54  ;;  %v4522_v54 = vld [vmem:[%s5419_s21 + $0x8] sm:$0xff] }
 0x15d   : > { %3110 = vmatpush.bf16.msrb.mxu1 %v4626_v55  ;;  %v4530_v55 = vld [vmem:[%s5419_s21 + $0x48] sm:$0xff] }
 0x15e   : > { %3124 = vmatpush.bf16.msrb.mxu2 %v4634_v57  ;;  %v4546_v57 = vld [vmem:[%s5419_s21 + $0xc8] sm:$0xff] }
 0x15f   : > { %3138 = vmatpush.bf16.msrb.mxu3 %v4642_v58  ;;  %v2292_v58 = vld [vmem:[%s5442_s26] sm:$0xff] }
 0x160   : > { %3097 = vmatpush.bf16.msrb.mxu0 %v4617_v2  ;;  %v3150_v62 = vunpack.c.l.b16 %v2292_v58  ;;  %v3151_v2 = vunpack.c.h.b16 %v2292_v58 }
 0x161   : > { %3111 = vmatpush.bf16.msrb.mxu1 %v4625_v3  ;;  %v3153_v3 = vunpack.c.h.b16 %v2293_v59 }
 0x162   : > { %3125 = vmatpush.bf16.msrb.mxu2 %v4633_v4  ;;  %v4560_v4 = vld [vmem:[%s5419_s21 + $0x138] sm:$0xff]  ;;  %v3158_v8 = vpack.c.b16 %v2585_v29, %v3150_v62  ;;  %v4575_v29 = vld [vmem:[%s5419_s21 + $0x1b0] sm:$0xff] }
 0x163   : > { %3139 = vmatpush.bf16.msrb.mxu3 %v4641_v5  ;;  %3098 = vmatmul.bf16.vlgmr.msrb.gmra.mxu0 %v2632_v18  ;;  %v4568_v5 = vld [vmem:[%s5419_s21 + $0x178] sm:$0xff] }
 0x164   : > { %3558 = vmatpush.bf16.msra.mxu0 %v4528_v10  ;;  %3112 = vmatmul.bf16.vlgmr.msrb.gmra.mxu1 %v2635_v21  ;;  %v3159_v10 = vpack.c.b16 %v2586_v37, %v3151_v2  ;;  %v4574_v37 = vld [vmem:[%s5419_s21 + $0x1a8] sm:$0xff]  ;;  %v4556_v18 = vld [vmem:[%s5419_s21 + $0x118] sm:$0xff] }
 0x165   : > { %3572 = vmatpush.bf16.msra.mxu1 %v4536_v11  ;;  %3126 = vmatmul.bf16.vlgmr.msrb.gmra.mxu2 %v2638_v19  ;;  %v3161_v11 = vpack.c.b16 %v2588_v40, %v3153_v3  ;;  %v4582_v40 = vld [vmem:[%s5419_s21 + $0x1e8] sm:$0xff]  ;;  %v4564_v19 = vld [vmem:[%s5419_s21 + $0x158] sm:$0xff] }
 0x166   : > { %3586 = vmatpush.bf16.msra.mxu2 %v4544_v16  ;;  %3140 = vmatmul.bf16.vlgmr.msrb.gmra.mxu3 %v2641_v22  ;;  %v4573_v16 = vld [vmem:[%s5419_s21 + $0x1a0] sm:$0xff]  ;;  %v4572_v21 = vld [vmem:[%s5419_s21 + $0x198] sm:$0xff] }
 0x167   : > { %3600 = vmatpush.bf16.msra.mxu3 %v4552_v17  ;;  %v4581_v17 = vld [vmem:[%s5419_s21 + $0x1e0] sm:$0xff]  ;;  %v4580_v22 = vld [vmem:[%s5419_s21 + $0x1d8] sm:$0xff] }
 0x168   : > { %3559 = vmatpush.bf16.msra.mxu0 %v4527_v24  ;;  %v4555_v24 = vld [vmem:[%s5419_s21 + $0x110] sm:$0xff] }
 0x169   : > { %3573 = vmatpush.bf16.msra.mxu1 %v4535_v25  ;;  %v4563_v25 = vld [vmem:[%s5419_s21 + $0x150] sm:$0xff] }
 0x16a   : > { %3587 = vmatpush.bf16.msra.mxu2 %v4543_v26  ;;  %v4571_v26 = vld [vmem:[%s5419_s21 + $0x190] sm:$0xff] }
 0x16b   : > { %3601 = vmatpush.bf16.msra.mxu3 %v4551_v27  ;;  %v4579_v27 = vld [vmem:[%s5419_s21 + $0x1d0] sm:$0xff] }
 0x16c   : > { %3560 = vmatpush.bf16.msra.mxu0 %v4526_v30  ;;  %v4554_v30 = vld [vmem:[%s5419_s21 + $0x108] sm:$0xff] }
 0x16d   : > { %3574 = vmatpush.bf16.msra.mxu1 %v4534_v31  ;;  %v4562_v31 = vld [vmem:[%s5419_s21 + $0x148] sm:$0xff] }
 0x16e   : > { %3588 = vmatpush.bf16.msra.mxu2 %v4542_v32  ;;  %v2294_v32 = vld [vmem:[%s5442_s26 + $0x10] sm:$0xff] }
 0x16f   : > { %3602 = vmatpush.bf16.msra.mxu3 %v4550_v35  ;;  %v4570_v35 = vld [vmem:[%s5419_s21 + $0x188] sm:$0xff] }
 0x170   : > { %3561 = vmatpush.bf16.msra.mxu0 %v4525_v36  ;;  %v4578_v36 = vld [vmem:[%s5419_s21 + $0x1c8] sm:$0xff] }
 0x171   : > { %3575 = vmatpush.bf16.msra.mxu1 %v4533_v38  ;;  %v2295_v38 = vld [vmem:[%s5442_s26 + $0x18] sm:$0xff] }
 0x172   : > { %3589 = vmatpush.bf16.msra.mxu2 %v4541_v39  ;;  %v3154_v39 = vunpack.c.l.b16 %v2294_v32 }
 0x173   : > { %3603 = vmatpush.bf16.msra.mxu3 %v4549_v42  ;;  %v3155_v42 = vunpack.c.h.b16 %v2294_v32 }
 0x174   : > { %3562 = vmatpush.bf16.msra.mxu0 %v4524_v43  ;;  %v4553_v43 = vld [vmem:[%s5419_s21 + $0x100] sm:$0xff] }
 0x175   : > { %3576 = vmatpush.bf16.msra.mxu1 %v4532_v44  ;;  %v4561_v44 = vld [vmem:[%s5419_s21 + $0x140] sm:$0xff] }
 0x176   : > { %3590 = vmatpush.bf16.msra.mxu2 %v4540_v45  ;;  %v3156_v45 = vunpack.c.l.b16 %v2295_v38 }
 0x177   : > { %3604 = vmatpush.bf16.msra.mxu3 %v4548_v47  ;;  %v3157_v47 = vunpack.c.h.b16 %v2295_v38 }
 0x178   : > { %3563 = vmatpush.bf16.msra.mxu0 %v4523_v48  ;;  %v4569_v48 = vld [vmem:[%s5419_s21 + $0x180] sm:$0xff] }
 0x179   : > { %3577 = vmatpush.bf16.msra.mxu1 %v4531_v50  ;;  %v4577_v50 = vld [vmem:[%s5419_s21 + $0x1c0] sm:$0xff] }
 0x17a   : > { %3591 = vmatpush.bf16.msra.mxu2 %v4539_v51  ;;  %v3162_v51 = vpack.c.b16 %v2589_v41, %v3154_v39 }
 0x17b   : > { %3605 = vmatpush.bf16.msra.mxu3 %v4547_v53  ;;  %v3163_v53 = vpack.c.b16 %v2590_v49, %v3155_v42 }
 0x17c   : > { %3564 = vmatpush.bf16.msra.mxu0 %v4522_v54  ;;  %v3164_v54 = vpack.c.b16 %v2591_v46, %v3156_v45 }
 0x17d   : > { %3578 = vmatpush.bf16.msra.mxu1 %v4530_v55  ;;  %v3165_v55 = vpack.c.b16 %v2592_v52, %v3157_v47 }
 0x17e   : > { %3592 = vmatpush.bf16.msra.mxu2 %v4538_v56 }
 0x17f   : > { %3606 = vmatpush.bf16.msra.mxu3 %v4546_v57 }
 0x180   : > { %3565 = vmatpush.bf16.msra.mxu0 %v4521_v60 }
 0x181   : > { %3579 = vmatpush.bf16.msra.mxu1 %v4529_v61 }
 0x182   : > { %3593 = vmatpush.bf16.msra.mxu2 %v4537_v0 }
 0x183   : > { %3607 = vmatpush.bf16.msra.mxu3 %v4545_v1  ;;  %3566 = vmatmul.bf16.vlgmr.msra.gmra.mxu0 %v3158_v8 }
 0x184   : > { %3614 = vmatpush.bf16.msrb.mxu0 %v4560_v4  ;;  %3580 = vmatmul.bf16.vlgmr.msra.gmra.mxu1 %v3159_v10 }
 0x185   : > { %3628 = vmatpush.bf16.msrb.mxu1 %v4568_v5  ;;  %3594 = vmatmul.bf16.vlgmr.msra.gmra.mxu2 %v3160_v9 }
 0x186   : > { %3642 = vmatpush.bf16.msrb.mxu2 %v4576_v6  ;;  %3608 = vmatmul.bf16.vlgmr.msra.gmra.mxu3 %v3161_v11 }
 0x187   : > { %3656 = vmatpush.bf16.msrb.mxu3 %v4584_v7 }
 0x188   : > { %3615 = vmatpush.bf16.msrb.mxu0 %v4559_v12 }
 0x189   : > { %3629 = vmatpush.bf16.msrb.mxu1 %v4567_v13 }
 0x18a   : > { %3643 = vmatpush.bf16.msrb.mxu2 %v4575_v29 }
 0x18b   : > { %3657 = vmatpush.bf16.msrb.mxu3 %v4583_v34 }
 0x18c   : > { %3616 = vmatpush.bf16.msrb.mxu0 %v4558_v20 }
 0x18d   : > { %3630 = vmatpush.bf16.msrb.mxu1 %v4566_v23 }
 0x18e   : > { %3644 = vmatpush.bf16.msrb.mxu2 %v4574_v37 }
 0x18f   : > { %3658 = vmatpush.bf16.msrb.mxu3 %v4582_v40 }
 0x190   : > { %3617 = vmatpush.bf16.msrb.mxu0 %v4557_v14 }
 0x191   : > { %3631 = vmatpush.bf16.msrb.mxu1 %v4565_v15 }
 0x192   : > { %3645 = vmatpush.bf16.msrb.mxu2 %v4573_v16 }
 0x193   : > { %3659 = vmatpush.bf16.msrb.mxu3 %v4581_v17 }
 0x194   : > { %3618 = vmatpush.bf16.msrb.mxu0 %v4556_v18 }
 0x195   : > { %3632 = vmatpush.bf16.msrb.mxu1 %v4564_v19 }
 0x196   : > { %3646 = vmatpush.bf16.msrb.mxu2 %v4572_v21 }
 0x197   : > { %3660 = vmatpush.bf16.msrb.mxu3 %v4580_v22 }
 0x198   : > { %3619 = vmatpush.bf16.msrb.mxu0 %v4555_v24 }
 0x199   : > { %3633 = vmatpush.bf16.msrb.mxu1 %v4563_v25 }
 0x19a   : > { %3647 = vmatpush.bf16.msrb.mxu2 %v4571_v26 }
 0x19b   : > { %3661 = vmatpush.bf16.msrb.mxu3 %v4579_v27 }
 0x19c   : > { %3620 = vmatpush.bf16.msrb.mxu0 %v4554_v30 }
 0x19d   : > { %3634 = vmatpush.bf16.msrb.mxu1 %v4562_v31  ;;  %v4804_v31 = vmov 16.0  }
 0x19e   : > { %3648 = vmatpush.bf16.msrb.mxu2 %v4570_v35  ;;  %4728 = vrcp.f32 %v4804_v31 }
 0x19f   : > { %3662 = vmatpush.bf16.msrb.mxu3 %v4578_v36 }
 0x1a0   : > { %3621 = vmatpush.bf16.msrb.mxu0 %v4553_v43 }
 0x1a1   : > { %3635 = vmatpush.bf16.msrb.mxu1 %v4561_v44 }
 0x1a2   : > { %3649 = vmatpush.bf16.msrb.mxu2 %v4569_v48 }
 0x1a3   : > { %3663 = vmatpush.bf16.msrb.mxu3 %v4577_v50  ;;  %3622 = vmatmul.bf16.vlgmr.msrb.gmra.mxu0 %v3162_v51 }
 0x1a4   : > { %3636 = vmatmul.bf16.vlgmr.msrb.gmra.mxu1 %v3163_v53  ;;  %v4729_v43 = vpop.eup %4728 }
 0x1a5   : > { %3650 = vmatmul.bf16.vlgmr.msrb.gmra.mxu2 %v3164_v54  ;;  %v3678_v51 = vmul.f32 16.0, %v4729_v43  ;;  %vm3682_vm1 = vweird.f32 %v4729_v43 }
 0x1a6   : > { %3664 = vmatmul.bf16.vlgmr.msrb.gmra.mxu3 %v3165_v55 }
 0x1c0   : > { %v3043_v56 = vpop.f32.mrf.mxu0 }
 0x1c1   : > { %v3057_v57 = vpop.f32.mrf.mxu1 }
 0x1c2   : > { %v3058_v46 = vadd.f32 %v3057_v57, %v3043_v56  ;;  %v3679_v57 = vsub.f32 1.0, %v3678_v51 }
 0x1c8   : > { %v3071_v41 = vpop.f32.mrf.mxu2  ;;  %v3045_v28 = vpop.f32.mrf.mxu0 }
 0x1c9   : > { %v3085_v58 = vpop.f32.mrf.mxu3  ;;  %v3059_v49 = vpop.f32.mrf.mxu1  ;;  %v3072_v52 = vadd.f32 %v3071_v41, %v3058_v46 }
 0x1ca   : > { %v3060_v1 = vadd.f32 %v3059_v49, %v3045_v28  ;;  %v3680_v28 = vmul.f32 %v4729_v43, %v3679_v57 }
 0x1cb   : > { %v3086_v3 = vadd.f32 %v3085_v58, %v3072_v52 }
 0x1d0   : > { %v3073_v59 = vpop.f32.mrf.mxu2 }
 0x1d1   : > { %v3087_v60 = vpop.f32.mrf.mxu3  ;;  %v3074_v4 = vadd.f32 %v3073_v59, %v3060_v1 }
 0x1d3   : > { %v3088_v9 = vadd.f32 %v3087_v60, %v3074_v4  ;;  %v3681_v60 = vadd.f32 %v4729_v43, %v3680_v28 }
 0x1d5   : > { %v3683_v46 = vsel %vm3682_vm1, %v4729_v43, %v3681_v60 }
 0x1e0   : > { %v3099_v61 = vpop.f32.mrf.mxu0 }
 0x1e1   : > { %v3113_v62 = vpop.f32.mrf.mxu1  ;;  %v3100_v7 = vadd.f32 %v3099_v61, %v3086_v3 }
 0x1e3   : > { %v3114_v11 = vadd.f32 %v3113_v62, %v3100_v7 }
 0x1e8   : > { %v3127_v63 = vpop.f32.mrf.mxu2  ;;  %v3101_v0 = vpop.f32.mrf.mxu0 }
 0x1e9   : > { %v3141_v33 = vpop.f32.mrf.mxu3  ;;  %v3115_v2 = vpop.f32.mrf.mxu1  ;;  %v3102_v12 = vadd.f32 %v3101_v0, %v3088_v9  ;;  %v3128_v34 = vadd.f32 %v3127_v63, %v3114_v11 }
 0x1eb   : > { %v3116_v20 = vadd.f32 %v3115_v2, %v3102_v12  ;;  %v3142_v40 = vadd.f32 %v3141_v33, %v3128_v34 }
 0x1f0   : > { %v3129_v5 = vpop.f32.mrf.mxu2 }
 0x1f1   : > { %v3143_v6 = vpop.f32.mrf.mxu3  ;;  %v3130_v23 = vadd.f32 %v3129_v5, %v3116_v20 }
 0x1f3   : > { %v3144_v15 = vadd.f32 %v3143_v6, %v3130_v23 }
 0x200   : > { %v3567_v8 = vpop.f32.mrf.mxu0 }
 0x201   : > { %v3581_v10 = vpop.f32.mrf.mxu1  ;;  %v3568_v16 = vadd.f32 %v3567_v8, %v3142_v40 }
 0x203   : > { %v3582_v21 = vadd.f32 %v3581_v10, %v3568_v16 }
 0x208   : > { %v3595_v13 = vpop.f32.mrf.mxu2  ;;  %v3569_v37 = vpop.f32.mrf.mxu0 }
 0x209   : > { %v3609_v29 = vpop.f32.mrf.mxu3  ;;  %v3583_v14 = vpop.f32.mrf.mxu1  ;;  %v3570_v17 = vadd.f32 %v3569_v37, %v3144_v15  ;;  %v3596_v24 = vadd.f32 %v3595_v13, %v3582_v21 }
 0x20b   : > { %v3584_v25 = vadd.f32 %v3583_v14, %v3570_v17  ;;  %v3610_v30 = vadd.f32 %v3609_v29, %v3596_v24 }
 0x210   : > { %v3597_v18 = vpop.f32.mrf.mxu2 }
 0x211   : > { %v3611_v19 = vpop.f32.mrf.mxu3  ;;  %v3598_v27 = vadd.f32 %v3597_v18, %v3584_v25 }
 0x213   : > { %v3612_v36 = vadd.f32 %v3611_v19, %v3598_v27 }
 0x220   : > { %v3623_v22 = vpop.f32.mrf.mxu0 }
 0x221   : > { %v3637_v26 = vpop.f32.mrf.mxu1  ;;  %v3624_v38 = vadd.f32 %v3623_v22, %v3610_v30 }
 0x223   : > { %v3638_v44 = vadd.f32 %v3637_v26, %v3624_v38 }
 0x228   : > { %v3651_v32 = vpop.f32.mrf.mxu2  ;;  %v3625_v39 = vpop.f32.mrf.mxu0 }
 0x229   : > { %v3665_v35 = vpop.f32.mrf.mxu3  ;;  %v3626_v42 = vadd.f32 %v3625_v39, %v3612_v36  ;;  %v3639_v45 = vpop.f32.mrf.mxu1  ;;  %v3652_v47 = vadd.f32 %v3651_v32, %v3638_v44 }
 0x22b   : > { %v3640_v48 = vadd.f32 %v3639_v45, %v3626_v42  ;;  %v3666_v55 = vadd.f32 %v3665_v35, %v3652_v47 }
 0x230   : > { %v3653_v50 = vpop.f32.mrf.mxu2 }
 0x231   : > { %v3654_v53 = vadd.f32 %v3653_v50, %v3640_v48  ;;  %v3667_v54 = vpop.f32.mrf.mxu3 }
 0x233   : > { %v3668_v56 = vadd.f32 %v3667_v54, %v3654_v53 }
 0x235   : > { %v3670_v41 = vadd.f32 %v3668_v56, %v3666_v55 }
 0x237   : > { %v3671_v58 = vrot.slane %v3670_v41, 4 }
 0x239   : > { %v3672_v49 = vadd.f32 %v3671_v58, %v3670_v41 }
 0x23b   : > { %v3673_v59 = vrot.slane %v3672_v49, 2 }
 0x23d   : > { %v3674_v61 = vadd.f32 %v3673_v59, %v3672_v49 }
 0x23f   : > { %v3675_v62 = vrot.slane %v3674_v61, 1 }
 0x241   : > { %v3676_v63 = vadd.f32 %v3675_v62, %v3674_v61 }
 0x243   : > { %v3684_v33 = vmul.f32 %v3683_v46, %v3676_v63 }
 0x245   : > { %v3685_v52 = vsub.f32 %v3666_v55, %v3684_v33  ;;  %v3686_v0 = vsub.f32 %v3668_v56, %v3684_v33 }
 0x247   : > { %v3687_v1 = vmul.f32 %v3685_v52, %v3685_v52  ;;  %v3688_v2 = vmul.f32 %v3686_v0, %v3686_v0 }
 0x249   : > { %v3689_v3 = vadd.f32 %v3688_v2, %v3687_v1 }
 0x24b   : > { %v3690_v4 = vrot.slane %v3689_v3, 4 }
 0x24d   : > { %v3691_v5 = vadd.f32 %v3690_v4, %v3689_v3 }
 0x24f   : > { %v3692_v6 = vrot.slane %v3691_v5, 2 }
 0x251   : > { %v3693_v7 = vadd.f32 %v3692_v6, %v3691_v5 }
 0x253   : > { %v3694_v8 = vrot.slane %v3693_v7, 1 }
 0x255   : > { %v3695_v9 = vadd.f32 %v3694_v8, %v3693_v7 }
 0x257   : > { %v3696_v10 = vmul.f32 %v3695_v9, %v3683_v46 }
 0x259   : > { %v3697_v11 = vadd.f32 1e-05, %v3696_v10 }
 0x25b   : > { %4730 = vrsqrt.f32 %v3697_v11  ;;  %vm3704_vm3 = vweird.f32 %v3697_v11 }
 0x261   : > { %v4731_v12 = vpop.eup %4730 }
 0x262   : > { %v3699_v13 = vmul.f32 %v4731_v12, %v3697_v11  ;;  %vm3705_vm2 = vweird.f32 %v4731_v12 }
 0x263   : > { %vm3706_vm4 = vmor %vm3704_vm3, %vm3705_vm2 }
 0x264   : > { %v3700_v29 = vmul.f32 %v4731_v12, %v3699_v13 }
 0x266   : > { %v3701_v34 = vmul.f32 0.5, %v3700_v29 }
 0x268   : > { %v3702_v20 = vsub.f32 1.5, %v3701_v34 }
 0x26a   : > { %v3703_v23 = vmul.f32 %v4731_v12, %v3702_v20 }
 0x26c   : > { %v3707_v37 = vsel %vm3706_vm4, %v4731_v12, %v3703_v23 }
 0x26d   : > { %v3708_v40 = vmul.f32 %v3707_v37, %v3685_v52  ;;  %v3709_v14 = vmul.f32 %v3707_v37, %v3686_v0 }
 0x26f   : > { %vm3710_vm5 = vcmp.gt.f32.partialorder %v3708_v40, 0.0  ;;  %vm3711_vm6 = vcmp.gt.f32.partialorder %v3709_v14, 0.0  ;;  %v3712_v15 = vmul.f32 0.2, %v3708_v40  ;;  %v3713_v16 = vmul.f32 0.2, %v3709_v14 }
 0x270   : > { %3726 = sbr.rel (!%p4887_p9) target bundleno = 638 (0x27e), region = 84 }
 0x271   : > { %v3714_v17 = vsel %vm3710_vm5, %v3708_v40, %v3712_v15  ;;  %v3715_v18 = vsel %vm3711_vm6, %v3709_v14, %v3713_v16 }
 0x272   : > { %v4652_v19 = vpack.c.bf16 %v3715_v18, %v3714_v17 }
 0x274   : > { %4653 = vst [vmem:[%s2286_s3] sm:$0xff] %v4652_v19  }
 0x27b   : > { %v3747_v21 = vld [vmem:[%s2286_s3] sm:$0xf]  ;;  %v3749_v22 = vld [vmem:[%s2286_s3 + $0x4] sm:$0xf] }
 0x27c   : > { %3748 = vst [vmem:[%s3730_s8] sm:$0xf] %v3747_v21 }
 0x27d   : > { %3750 = vst [vmem:[%s3730_s8 + $0x8] sm:$0xf] %v3749_v22 }
 0x27e PF: > { %s12_s17 = sadd.s32 1, %s4802_s17   ;;  %s5667_s9 = smov %s4774_s10 }
 0x27f   : > { %p9_p1 = scmp.ge.s32.totalorder %s12_s17, 6   ;;  %s5668_s10 = smov %s4892_s28 }
 0x280   : > { %s5669_s11 = smov %s4782_s12  ;;  %s5670_s12 = smov %s4881_s24 }
 0x281   : > { %s5671_s13 = smov %s4794_s15  ;;  %s5672_s14 = smov %s4798_s16 }
 0x282   : > { %s5673_s15 = smov %s5676_s19  ;;  %s5674_s16 = smov %s5680_s20 }
 0x283   :  { %11 = sbr.rel (!%p9_p1) target bundleno = 5 (0x5), region = 164 }

// kernel: discriminator_forward.8
= control target key start
LH: loop header
LB: loop body
LE: loop exit
PB: predicated region body
PF: predicated region fallthrough
CT: control target
= control target key end

     0   :  { %s9372_s9 = smov 0   ;;  %s9374_s10 = smov 0   ;;  %s10871_s0 = inlined_call_operand.vmem [shape: bf16[2,18,1024], index: 0, kind: input, shape index: {}]   ;;  %s10872_s1 = inlined_call_operand.vmem [shape: bf16[4,1024,512], index: 1, kind: input, shape index: {}]   ;;  %s10873_s2 = inlined_call_operand.vmem [shape: bf16[2,9,512], index: 2, kind: output, shape index: {}]  }
   0x1   :  { %s9376_s11 = smov 0   ;;  %s9378_s12 = smov 0  }
   0x2   :  { %s9380_s13 = smov 0   ;;  %s9382_s14 = smov 0  }
   0x3   :  { %s9384_s15 = smov 0   ;;  %s9386_s16 = smov 0  }
   0x4   :  { %s9388_s17 = smov 0  }
   0x5 LB: > { %s7367_s18 = sadd.s32 4294967295, %s9354_s17   ;;  %s27_s19 = sadd.s32 1, %s9346_s15  ;;  %s9354_s17 = sphi %s9388_s17, %s12_s17   ;;  %s9350_s16 = sphi %s9386_s16, %s10882_s16   ;;  %s9346_s15 = sphi %s9384_s15, %s10881_s15   ;;  %s9342_s14 = sphi %s9382_s14, %s10880_s14   ;;  %s9338_s13 = sphi %s9380_s13, %s10879_s13   ;;  %s9334_s12 = sphi %s9378_s12, %s10878_s12   ;;  %s9330_s11 = sphi %s9376_s11, %s10877_s11   ;;  %s9326_s10 = sphi %s9374_s10, %s10876_s10   ;;  %s9322_s9 = sphi %s9372_s9, %s10875_s9  }
   0x6   : > { %p29_p0 = scmp.ge.s32.totalorder %s27_s19, 4  ;;  %s31_s20 = sadd.s32 1, %s9350_s16 }
   0x7   : > { %s64_s21 = sadd.s32 1, %s9334_s12  ;;  %p71_p1 = scmp.ne.s32.totalorder %s9334_s12, %s9330_s11 }
   0x8   : > { %s10884_s19 = smov (%p29_p0, %s27_s19), 0  ;;  %s10886_s20 = smov (!%p29_p0, %s31_s20), %s9350_s16 }
   0x9   : > { %s61_s22 = ssub.s32 %s9346_s15, %s10884_s19  ;;  %p72_p2 = scmp.eq.s32.totalorder %s9354_s17, 0 }
   0xa   : > { %p33_p3 = scmp.ge.s32.totalorder %s10886_s20, 2  ;;  %p62_p4 = scmp.eq.s32.totalorder %s61_s22, 0 }
   0xb   : > { %p73_p5 = por %p72_p2, %p71_p1  ;;  %s92_s23 = sadd.s32 1, %s9326_s10 }
   0xc   : > { %s10888_s20 = smov (%p33_p3, %s10886_s20), 0  ;;  %p102_p6 = scmp.ne.s32.totalorder %s9326_s10, %s9322_s9 }
   0xd   : > { %s9433_s24 = scalar_select %p62_p4, %s9334_s12, %s64_s21  }
   0xe   : > { %s87_s25 = ssub.s32 %s9350_s16, %s10888_s20  ;;  %p103_p7 = scmp.eq.s32.totalorder %s7367_s18, 7 }
   0xf   : > { %s89_s26 = sor.u32 %s87_s25, %s61_s22  ;;  %p7370_p10 = scmp.ge.s32.totalorder %s9354_s17, 8 }
  0x10   : > { %p90_p8 = scmp.eq.s32.totalorder %s89_s26, 0  ;;  %p9439_p9 = por %p103_p7, %p102_p6 }
  0x11   : > { %125 = sbr.rel (%p7370_p10) target bundleno = 538 (0x21a), region = 16 }
  0x12   : > { %s9444_s28 = scalar_select %p90_p8, %s9326_s10, %s92_s23  }
  0x16   : > { %136 = sbr.rel (!%p73_p5) target bundleno = 538 (0x21a), region = 24  ;;  %s138_s29 = sand.u32 (%p73_p5), 1, %s9334_s12  }
  0x17   : > { %s7372_s30 = sshll.u32 (%p73_p5), %s9346_s15, 2  ;;  %s7371_s3 = sshll.u32 (%p73_p5), %s138_s29, 11 }
  0x18   : > { %s9452_s6 = scalar_lea.vmem (%p73_p5), %s10872_s1, %s7372_s30  ;;  %s9456_s7 = scalar_lea.vmem (%p73_p5), [#allocation2], %s7371_s3 }
  0x19   : > { %v159_v0 = vld [vmem:[%s9452_s6] sm:$0xf] (%p73_p5)  ;;  %v161_v1 = vld [vmem:[%s9452_s6 + $0x10] sm:$0xf] (%p73_p5) }
  0x1a   : > { %160 = vst [vmem:[%s9456_s7] sm:$0xf] (%p73_p5), %v159_v0  ;;  %v163_v2 = vld [vmem:[%s9452_s6 + $0x20] sm:$0xf] (%p73_p5)  ;;  %v165_v3 = vld [vmem:[%s9452_s6 + $0x30] sm:$0xf] (%p73_p5) }
  0x1b   : > { %162 = vst [vmem:[%s9456_s7 + $0x4] sm:$0xf] %v161_v1  ;;  %v167_v4 = vld [vmem:[%s9452_s6 + $0x40] sm:$0xf]  ;;  %v169_v5 = vld [vmem:[%s9452_s6 + $0x50] sm:$0xf] }
  0x1c   : > { %164 = vst [vmem:[%s9456_s7 + $0x8] sm:$0xf] %v163_v2  ;;  %v171_v6 = vld [vmem:[%s9452_s6 + $0x60] sm:$0xf]  ;;  %v173_v7 = vld [vmem:[%s9452_s6 + $0x70] sm:$0xf] }
  0x1d   : > { %166 = vst [vmem:[%s9456_s7 + $0xc] sm:$0xf] %v165_v3  ;;  %v175_v8 = vld [vmem:[%s9452_s6 + $0x80] sm:$0xf]  ;;  %v177_v9 = vld [vmem:[%s9452_s6 + $0x90] sm:$0xf] }
  0x1e   : > { %168 = vst [vmem:[%s9456_s7 + $0x10] sm:$0xf] %v167_v4  ;;  %v179_v10 = vld [vmem:[%s9452_s6 + $0xa0] sm:$0xf]  ;;  %v181_v11 = vld [vmem:[%s9452_s6 + $0xb0] sm:$0xf] }
  0x1f   : > { %170 = vst [vmem:[%s9456_s7 + $0x14] sm:$0xf] %v169_v5  ;;  %v183_v12 = vld [vmem:[%s9452_s6 + $0xc0] sm:$0xf]  ;;  %v185_v13 = vld [vmem:[%s9452_s6 + $0xd0] sm:$0xf] }
  0x20   : > { %172 = vst [vmem:[%s9456_s7 + $0x18] sm:$0xf] %v171_v6  ;;  %v187_v14 = vld [vmem:[%s9452_s6 + $0xe0] sm:$0xf]  ;;  %v189_v15 = vld [vmem:[%s9452_s6 + $0xf0] sm:$0xf] }
  0x21   : > { %174 = vst [vmem:[%s9456_s7 + $0x1c] sm:$0xf] %v173_v7  ;;  %v191_v16 = vld [vmem:[%s9452_s6 + $0x100] sm:$0xf]  ;;  %v193_v17 = vld [vmem:[%s9452_s6 + $0x110] sm:$0xf] }
  0x22   : > { %176 = vst [vmem:[%s9456_s7 + $0x20] sm:$0xf] %v175_v8  ;;  %v195_v18 = vld [vmem:[%s9452_s6 + $0x120] sm:$0xf]  ;;  %v197_v19 = vld [vmem:[%s9452_s6 + $0x130] sm:$0xf] }
  0x23   : > { %178 = vst [vmem:[%s9456_s7 + $0x24] sm:$0xf] %v177_v9  ;;  %v199_v20 = vld [vmem:[%s9452_s6 + $0x140] sm:$0xf]  ;;  %v201_v21 = vld [vmem:[%s9452_s6 + $0x150] sm:$0xf] }
  0x24   : > { %180 = vst [vmem:[%s9456_s7 + $0x28] sm:$0xf] %v179_v10  ;;  %v203_v22 = vld [vmem:[%s9452_s6 + $0x160] sm:$0xf]  ;;  %v205_v23 = vld [vmem:[%s9452_s6 + $0x170] sm:$0xf] }
  0x25   : > { %182 = vst [vmem:[%s9456_s7 + $0x2c] sm:$0xf] %v181_v11  ;;  %v207_v24 = vld [vmem:[%s9452_s6 + $0x180] sm:$0xf]  ;;  %v209_v25 = vld [vmem:[%s9452_s6 + $0x190] sm:$0xf] }
  0x26   : > { %184 = vst [vmem:[%s9456_s7 + $0x30] sm:$0xf] %v183_v12  ;;  %v211_v26 = vld [vmem:[%s9452_s6 + $0x1a0] sm:$0xf]  ;;  %v213_v27 = vld [vmem:[%s9452_s6 + $0x1b0] sm:$0xf] }
  0x27   : > { %186 = vst [vmem:[%s9456_s7 + $0x34] sm:$0xf] %v185_v13  ;;  %v215_v28 = vld [vmem:[%s9452_s6 + $0x1c0] sm:$0xf]  ;;  %v217_v29 = vld [vmem:[%s9452_s6 + $0x1d0] sm:$0xf] }
  0x28   : > { %188 = vst [vmem:[%s9456_s7 + $0x38] sm:$0xf] %v187_v14  ;;  %v219_v30 = vld [vmem:[%s9452_s6 + $0x1e0] sm:$0xf]  ;;  %v221_v31 = vld [vmem:[%s9452_s6 + $0x1f0] sm:$0xf] }
  0x29   : > { %190 = vst [vmem:[%s9456_s7 + $0x3c] sm:$0xf] %v189_v15  ;;  %v223_v32 = vld [vmem:[%s9452_s6 + $0x200] sm:$0xf]  ;;  %v225_v33 = vld [vmem:[%s9452_s6 + $0x210] sm:$0xf] }
  0x2a   : > { %192 = vst [vmem:[%s9456_s7 + $0x40] sm:$0xf] %v191_v16  ;;  %v227_v34 = vld [vmem:[%s9452_s6 + $0x220] sm:$0xf]  ;;  %v229_v35 = vld [vmem:[%s9452_s6 + $0x230] sm:$0xf] }
  0x2b   : > { %194 = vst [vmem:[%s9456_s7 + $0x44] sm:$0xf] %v193_v17  ;;  %v231_v36 = vld [vmem:[%s9452_s6 + $0x240] sm:$0xf]  ;;  %v233_v37 = vld [vmem:[%s9452_s6 + $0x250] sm:$0xf] }
  0x2c   : > { %196 = vst [vmem:[%s9456_s7 + $0x48] sm:$0xf] %v195_v18  ;;  %v235_v38 = vld [vmem:[%s9452_s6 + $0x260] sm:$0xf]  ;;  %v237_v39 = vld [vmem:[%s9452_s6 + $0x270] sm:$0xf] }
  0x2d   : > { %198 = vst [vmem:[%s9456_s7 + $0x4c] sm:$0xf] %v197_v19  ;;  %v239_v40 = vld [vmem:[%s9452_s6 + $0x280] sm:$0xf]  ;;  %v241_v41 = vld [vmem:[%s9452_s6 + $0x290] sm:$0xf] }
  0x2e   : > { %200 = vst [vmem:[%s9456_s7 + $0x50] sm:$0xf] %v199_v20  ;;  %v243_v42 = vld [vmem:[%s9452_s6 + $0x2a0] sm:$0xf]  ;;  %v245_v43 = vld [vmem:[%s9452_s6 + $0x2b0] sm:$0xf] }
  0x2f   : > { %202 = vst [vmem:[%s9456_s7 + $0x54] sm:$0xf] %v201_v21  ;;  %v247_v44 = vld [vmem:[%s9452_s6 + $0x2c0] sm:$0xf]  ;;  %v249_v45 = vld [vmem:[%s9452_s6 + $0x2d0] sm:$0xf] }
  0x30   : > { %204 = vst [vmem:[%s9456_s7 + $0x58] sm:$0xf] %v203_v22  ;;  %v251_v46 = vld [vmem:[%s9452_s6 + $0x2e0] sm:$0xf]  ;;  %v253_v47 = vld [vmem:[%s9452_s6 + $0x2f0] sm:$0xf] }
  0x31   : > { %206 = vst [vmem:[%s9456_s7 + $0x5c] sm:$0xf] %v205_v23  ;;  %v255_v48 = vld [vmem:[%s9452_s6 + $0x300] sm:$0xf]  ;;  %v257_v49 = vld [vmem:[%s9452_s6 + $0x310] sm:$0xf] }
  0x32   : > { %208 = vst [vmem:[%s9456_s7 + $0x60] sm:$0xf] %v207_v24  ;;  %v259_v50 = vld [vmem:[%s9452_s6 + $0x320] sm:$0xf]  ;;  %v261_v51 = vld [vmem:[%s9452_s6 + $0x330] sm:$0xf] }
  0x33   : > { %210 = vst [vmem:[%s9456_s7 + $0x64] sm:$0xf] %v209_v25  ;;  %v263_v52 = vld [vmem:[%s9452_s6 + $0x340] sm:$0xf]  ;;  %v265_v53 = vld [vmem:[%s9452_s6 + $0x350] sm:$0xf] }
  0x34   : > { %212 = vst [vmem:[%s9456_s7 + $0x68] sm:$0xf] %v211_v26  ;;  %v267_v54 = vld [vmem:[%s9452_s6 + $0x360] sm:$0xf]  ;;  %v269_v55 = vld [vmem:[%s9452_s6 + $0x370] sm:$0xf] }
  0x35   : > { %214 = vst [vmem:[%s9456_s7 + $0x6c] sm:$0xf] %v213_v27  ;;  %v271_v56 = vld [vmem:[%s9452_s6 + $0x380] sm:$0xf]  ;;  %v273_v57 = vld [vmem:[%s9452_s6 + $0x390] sm:$0xf] }
  0x36   : > { %216 = vst [vmem:[%s9456_s7 + $0x70] sm:$0xf] %v215_v28  ;;  %v275_v58 = vld [vmem:[%s9452_s6 + $0x3a0] sm:$0xf]  ;;  %v277_v59 = vld [vmem:[%s9452_s6 + $0x3b0] sm:$0xf] }
  0x37   : > { %218 = vst [vmem:[%s9456_s7 + $0x74] sm:$0xf] %v217_v29  ;;  %v279_v60 = vld [vmem:[%s9452_s6 + $0x3c0] sm:$0xf]  ;;  %v281_v61 = vld [vmem:[%s9452_s6 + $0x3d0] sm:$0xf] }
  0x38   : > { %220 = vst [vmem:[%s9456_s7 + $0x78] sm:$0xf] %v219_v30  ;;  %v283_v62 = vld [vmem:[%s9452_s6 + $0x3e0] sm:$0xf]  ;;  %v285_v63 = vld [vmem:[%s9452_s6 + $0x3f0] sm:$0xf] }
  0x39   : > { %222 = vst [vmem:[%s9456_s7 + $0x7c] sm:$0xf] %v221_v31  ;;  %v287_v0 = vld [vmem:[%s9452_s6 + $0x400] sm:$0xf]  ;;  %v289_v1 = vld [vmem:[%s9452_s6 + $0x410] sm:$0xf] }
  0x3a   : > { %224 = vst [vmem:[%s9456_s7 + $0x80] sm:$0xf] %v223_v32  ;;  %v291_v2 = vld [vmem:[%s9452_s6 + $0x420] sm:$0xf]  ;;  %v293_v3 = vld [vmem:[%s9452_s6 + $0x430] sm:$0xf] }
  0x3b   : > { %226 = vst [vmem:[%s9456_s7 + $0x84] sm:$0xf] %v225_v33  ;;  %v295_v4 = vld [vmem:[%s9452_s6 + $0x440] sm:$0xf]  ;;  %v297_v5 = vld [vmem:[%s9452_s6 + $0x450] sm:$0xf] }
  0x3c   : > { %228 = vst [vmem:[%s9456_s7 + $0x88] sm:$0xf] %v227_v34  ;;  %v299_v6 = vld [vmem:[%s9452_s6 + $0x460] sm:$0xf]  ;;  %v301_v7 = vld [vmem:[%s9452_s6 + $0x470] sm:$0xf] }
  0x3d   : > { %230 = vst [vmem:[%s9456_s7 + $0x8c] sm:$0xf] %v229_v35  ;;  %v303_v8 = vld [vmem:[%s9452_s6 + $0x480] sm:$0xf]  ;;  %v305_v9 = vld [vmem:[%s9452_s6 + $0x490] sm:$0xf] }
  0x3e   : > { %232 = vst [vmem:[%s9456_s7 + $0x90] sm:$0xf] %v231_v36  ;;  %v307_v10 = vld [vmem:[%s9452_s6 + $0x4a0] sm:$0xf]  ;;  %v309_v11 = vld [vmem:[%s9452_s6 + $0x4b0] sm:$0xf] }
  0x3f   : > { %234 = vst [vmem:[%s9456_s7 + $0x94] sm:$0xf] %v233_v37  ;;  %v311_v12 = vld [vmem:[%s9452_s6 + $0x4c0] sm:$0xf]  ;;  %v313_v13 = vld [vmem:[%s9452_s6 + $0x4d0] sm:$0xf] }
  0x40   : > { %236 = vst [vmem:[%s9456_s7 + $0x98] sm:$0xf] %v235_v38  ;;  %v315_v14 = vld [vmem:[%s9452_s6 + $0x4e0] sm:$0xf]  ;;  %v317_v15 = vld [vmem:[%s9452_s6 + $0x4f0] sm:$0xf] }
  0x41   : > { %238 = vst [vmem:[%s9456_s7 + $0x9c] sm:$0xf] %v237_v39  ;;  %v319_v16 = vld [vmem:[%s9452_s6 + $0x500] sm:$0xf]  ;;  %v321_v17 = vld [vmem:[%s9452_s6 + $0x510] sm:$0xf] }
  0x42   : > { %240 = vst [vmem:[%s9456_s7 + $0xa0] sm:$0xf] %v239_v40  ;;  %v323_v18 = vld [vmem:[%s9452_s6 + $0x520] sm:$0xf]  ;;  %v325_v19 = vld [vmem:[%s9452_s6 + $0x530] sm:$0xf] }
  0x43   : > { %242 = vst [vmem:[%s9456_s7 + $0xa4] sm:$0xf] %v241_v41  ;;  %v327_v20 = vld [vmem:[%s9452_s6 + $0x540] sm:$0xf]  ;;  %v329_v21 = vld [vmem:[%s9452_s6 + $0x550] sm:$0xf] }
  0x44   : > { %244 = vst [vmem:[%s9456_s7 + $0xa8] sm:$0xf] %v243_v42  ;;  %v331_v22 = vld [vmem:[%s9452_s6 + $0x560] sm:$0xf]  ;;  %v333_v23 = vld [vmem:[%s9452_s6 + $0x570] sm:$0xf] }
  0x45   : > { %246 = vst [vmem:[%s9456_s7 + $0xac] sm:$0xf] %v245_v43  ;;  %v335_v24 = vld [vmem:[%s9452_s6 + $0x580] sm:$0xf]  ;;  %v337_v25 = vld [vmem:[%s9452_s6 + $0x590] sm:$0xf] }
  0x46   : > { %248 = vst [vmem:[%s9456_s7 + $0xb0] sm:$0xf] %v247_v44  ;;  %v339_v26 = vld [vmem:[%s9452_s6 + $0x5a0] sm:$0xf]  ;;  %v341_v27 = vld [vmem:[%s9452_s6 + $0x5b0] sm:$0xf] }
  0x47   : > { %250 = vst [vmem:[%s9456_s7 + $0xb4] sm:$0xf] %v249_v45  ;;  %v343_v28 = vld [vmem:[%s9452_s6 + $0x5c0] sm:$0xf]  ;;  %v345_v29 = vld [vmem:[%s9452_s6 + $0x5d0] sm:$0xf] }
  0x48   : > { %252 = vst [vmem:[%s9456_s7 + $0xb8] sm:$0xf] %v251_v46  ;;  %v347_v30 = vld [vmem:[%s9452_s6 + $0x5e0] sm:$0xf]  ;;  %v349_v31 = vld [vmem:[%s9452_s6 + $0x5f0] sm:$0xf] }
  0x49   : > { %254 = vst [vmem:[%s9456_s7 + $0xbc] sm:$0xf] %v253_v47  ;;  %v351_v32 = vld [vmem:[%s9452_s6 + $0x600] sm:$0xf]  ;;  %v353_v33 = vld [vmem:[%s9452_s6 + $0x610] sm:$0xf] }
  0x4a   : > { %256 = vst [vmem:[%s9456_s7 + $0xc0] sm:$0xf] %v255_v48  ;;  %v355_v34 = vld [vmem:[%s9452_s6 + $0x620] sm:$0xf]  ;;  %v357_v35 = vld [vmem:[%s9452_s6 + $0x630] sm:$0xf] }
  0x4b   : > { %258 = vst [vmem:[%s9456_s7 + $0xc4] sm:$0xf] %v257_v49  ;;  %v359_v36 = vld [vmem:[%s9452_s6 + $0x640] sm:$0xf]  ;;  %v361_v37 = vld [vmem:[%s9452_s6 + $0x650] sm:$0xf] }
  0x4c   : > { %260 = vst [vmem:[%s9456_s7 + $0xc8] sm:$0xf] %v259_v50  ;;  %v363_v38 = vld [vmem:[%s9452_s6 + $0x660] sm:$0xf]  ;;  %v365_v39 = vld [vmem:[%s9452_s6 + $0x670] sm:$0xf] }
  0x4d   : > { %262 = vst [vmem:[%s9456_s7 + $0xcc] sm:$0xf] %v261_v51  ;;  %v367_v40 = vld [vmem:[%s9452_s6 + $0x680] sm:$0xf]  ;;  %v369_v41 = vld [vmem:[%s9452_s6 + $0x690] sm:$0xf] }
  0x4e   : > { %264 = vst [vmem:[%s9456_s7 + $0xd0] sm:$0xf] %v263_v52  ;;  %v371_v42 = vld [vmem:[%s9452_s6 + $0x6a0] sm:$0xf]  ;;  %v373_v43 = vld [vmem:[%s9452_s6 + $0x6b0] sm:$0xf] }
  0x4f   : > { %266 = vst [vmem:[%s9456_s7 + $0xd4] sm:$0xf] %v265_v53  ;;  %v375_v44 = vld [vmem:[%s9452_s6 + $0x6c0] sm:$0xf]  ;;  %v377_v45 = vld [vmem:[%s9452_s6 + $0x6d0] sm:$0xf] }
  0x50   : > { %268 = vst [vmem:[%s9456_s7 + $0xd8] sm:$0xf] %v267_v54  ;;  %v379_v46 = vld [vmem:[%s9452_s6 + $0x6e0] sm:$0xf]  ;;  %v381_v47 = vld [vmem:[%s9452_s6 + $0x6f0] sm:$0xf] }
  0x51   : > { %270 = vst [vmem:[%s9456_s7 + $0xdc] sm:$0xf] %v269_v55  ;;  %v383_v48 = vld [vmem:[%s9452_s6 + $0x700] sm:$0xf]  ;;  %v385_v49 = vld [vmem:[%s9452_s6 + $0x710] sm:$0xf] }
  0x52   : > { %272 = vst [vmem:[%s9456_s7 + $0xe0] sm:$0xf] %v271_v56  ;;  %v387_v50 = vld [vmem:[%s9452_s6 + $0x720] sm:$0xf]  ;;  %v389_v51 = vld [vmem:[%s9452_s6 + $0x730] sm:$0xf] }
  0x53   : > { %274 = vst [vmem:[%s9456_s7 + $0xe4] sm:$0xf] %v273_v57  ;;  %v391_v52 = vld [vmem:[%s9452_s6 + $0x740] sm:$0xf]  ;;  %v393_v53 = vld [vmem:[%s9452_s6 + $0x750] sm:$0xf] }
  0x54   : > { %276 = vst [vmem:[%s9456_s7 + $0xe8] sm:$0xf] %v275_v58  ;;  %v395_v54 = vld [vmem:[%s9452_s6 + $0x760] sm:$0xf]  ;;  %v397_v55 = vld [vmem:[%s9452_s6 + $0x770] sm:$0xf] }
  0x55   : > { %278 = vst [vmem:[%s9456_s7 + $0xec] sm:$0xf] %v277_v59  ;;  %v399_v56 = vld [vmem:[%s9452_s6 + $0x780] sm:$0xf]  ;;  %v401_v57 = vld [vmem:[%s9452_s6 + $0x790] sm:$0xf] }
  0x56   : > { %280 = vst [vmem:[%s9456_s7 + $0xf0] sm:$0xf] %v279_v60  ;;  %v403_v58 = vld [vmem:[%s9452_s6 + $0x7a0] sm:$0xf]  ;;  %v405_v59 = vld [vmem:[%s9452_s6 + $0x7b0] sm:$0xf] }
  0x57   : > { %282 = vst [vmem:[%s9456_s7 + $0xf4] sm:$0xf] %v281_v61  ;;  %v407_v60 = vld [vmem:[%s9452_s6 + $0x7c0] sm:$0xf]  ;;  %v409_v61 = vld [vmem:[%s9452_s6 + $0x7d0] sm:$0xf] }
  0x58   : > { %284 = vst [vmem:[%s9456_s7 + $0xf8] sm:$0xf] %v283_v62  ;;  %v411_v62 = vld [vmem:[%s9452_s6 + $0x7e0] sm:$0xf] }
  0x59   : > { %286 = vst [vmem:[%s9456_s7 + $0xfc] sm:$0xf] %v285_v63  ;;  %v413_v63 = vld [vmem:[%s9452_s6 + $0x7f0] sm:$0xf] }
  0x5a   : > { %288 = vst [vmem:[%s9456_s7 + $0x100] sm:$0xf] %v287_v0  ;;  %v415_v0 = vld [vmem:[%s9452_s6 + $0x800] sm:$0xf] }
  0x5b   : > { %290 = vst [vmem:[%s9456_s7 + $0x104] sm:$0xf] %v289_v1  ;;  %v417_v1 = vld [vmem:[%s9452_s6 + $0x810] sm:$0xf] }
  0x5c   : > { %292 = vst [vmem:[%s9456_s7 + $0x108] sm:$0xf] %v291_v2  ;;  %v419_v2 = vld [vmem:[%s9452_s6 + $0x820] sm:$0xf] }
  0x5d   : > { %294 = vst [vmem:[%s9456_s7 + $0x10c] sm:$0xf] %v293_v3  ;;  %v421_v3 = vld [vmem:[%s9452_s6 + $0x830] sm:$0xf] }
  0x5e   : > { %296 = vst [vmem:[%s9456_s7 + $0x110] sm:$0xf] %v295_v4  ;;  %v423_v4 = vld [vmem:[%s9452_s6 + $0x840] sm:$0xf] }
  0x5f   : > { %298 = vst [vmem:[%s9456_s7 + $0x114] sm:$0xf] %v297_v5  ;;  %v425_v5 = vld [vmem:[%s9452_s6 + $0x850] sm:$0xf] }
  0x60   : > { %300 = vst [vmem:[%s9456_s7 + $0x118] sm:$0xf] %v299_v6  ;;  %v427_v6 = vld [vmem:[%s9452_s6 + $0x860] sm:$0xf] }
  0x61   : > { %302 = vst [vmem:[%s9456_s7 + $0x11c] sm:$0xf] %v301_v7  ;;  %v429_v7 = vld [vmem:[%s9452_s6 + $0x870] sm:$0xf] }
  0x62   : > { %304 = vst [vmem:[%s9456_s7 + $0x120] sm:$0xf] %v303_v8  ;;  %v431_v8 = vld [vmem:[%s9452_s6 + $0x880] sm:$0xf] }
  0x63   : > { %306 = vst [vmem:[%s9456_s7 + $0x124] sm:$0xf] %v305_v9  ;;  %v433_v9 = vld [vmem:[%s9452_s6 + $0x890] sm:$0xf] }
  0x64   : > { %308 = vst [vmem:[%s9456_s7 + $0x128] sm:$0xf] %v307_v10  ;;  %v435_v10 = vld [vmem:[%s9452_s6 + $0x8a0] sm:$0xf] }
  0x65   : > { %310 = vst [vmem:[%s9456_s7 + $0x12c] sm:$0xf] %v309_v11  ;;  %v437_v11 = vld [vmem:[%s9452_s6 + $0x8b0] sm:$0xf] }
  0x66   : > { %312 = vst [vmem:[%s9456_s7 + $0x130] sm:$0xf] %v311_v12  ;;  %v439_v12 = vld [vmem:[%s9452_s6 + $0x8c0] sm:$0xf] }
  0x67   : > { %314 = vst [vmem:[%s9456_s7 + $0x134] sm:$0xf] %v313_v13  ;;  %v441_v13 = vld [vmem:[%s9452_s6 + $0x8d0] sm:$0xf] }
  0x68   : > { %316 = vst [vmem:[%s9456_s7 + $0x138] sm:$0xf] %v315_v14  ;;  %v443_v14 = vld [vmem:[%s9452_s6 + $0x8e0] sm:$0xf] }
  0x69   : > { %318 = vst [vmem:[%s9456_s7 + $0x13c] sm:$0xf] %v317_v15  ;;  %v445_v15 = vld [vmem:[%s9452_s6 + $0x8f0] sm:$0xf] }
  0x6a   : > { %320 = vst [vmem:[%s9456_s7 + $0x140] sm:$0xf] %v319_v16  ;;  %v447_v16 = vld [vmem:[%s9452_s6 + $0x900] sm:$0xf] }
  0x6b   : > { %322 = vst [vmem:[%s9456_s7 + $0x144] sm:$0xf] %v321_v17  ;;  %v449_v17 = vld [vmem:[%s9452_s6 + $0x910] sm:$0xf] }
  0x6c   : > { %324 = vst [vmem:[%s9456_s7 + $0x148] sm:$0xf] %v323_v18  ;;  %v451_v18 = vld [vmem:[%s9452_s6 + $0x920] sm:$0xf] }
  0x6d   : > { %326 = vst [vmem:[%s9456_s7 + $0x14c] sm:$0xf] %v325_v19  ;;  %v453_v19 = vld [vmem:[%s9452_s6 + $0x930] sm:$0xf] }
  0x6e   : > { %328 = vst [vmem:[%s9456_s7 + $0x150] sm:$0xf] %v327_v20  ;;  %v455_v20 = vld [vmem:[%s9452_s6 + $0x940] sm:$0xf] }
  0x6f   : > { %330 = vst [vmem:[%s9456_s7 + $0x154] sm:$0xf] %v329_v21  ;;  %v457_v21 = vld [vmem:[%s9452_s6 + $0x950] sm:$0xf] }
  0x70   : > { %332 = vst [vmem:[%s9456_s7 + $0x158] sm:$0xf] %v331_v22  ;;  %v459_v22 = vld [vmem:[%s9452_s6 + $0x960] sm:$0xf] }
  0x71   : > { %334 = vst [vmem:[%s9456_s7 + $0x15c] sm:$0xf] %v333_v23  ;;  %v461_v23 = vld [vmem:[%s9452_s6 + $0x970] sm:$0xf] }
  0x72   : > { %336 = vst [vmem:[%s9456_s7 + $0x160] sm:$0xf] %v335_v24  ;;  %v463_v24 = vld [vmem:[%s9452_s6 + $0x980] sm:$0xf] }
  0x73   : > { %338 = vst [vmem:[%s9456_s7 + $0x164] sm:$0xf] %v337_v25  ;;  %v465_v25 = vld [vmem:[%s9452_s6 + $0x990] sm:$0xf] }
  0x74   : > { %340 = vst [vmem:[%s9456_s7 + $0x168] sm:$0xf] %v339_v26  ;;  %v467_v26 = vld [vmem:[%s9452_s6 + $0x9a0] sm:$0xf] }
  0x75   : > { %342 = vst [vmem:[%s9456_s7 + $0x16c] sm:$0xf] %v341_v27  ;;  %v469_v27 = vld [vmem:[%s9452_s6 + $0x9b0] sm:$0xf] }
  0x76   : > { %344 = vst [vmem:[%s9456_s7 + $0x170] sm:$0xf] %v343_v28  ;;  %v471_v28 = vld [vmem:[%s9452_s6 + $0x9c0] sm:$0xf] }
  0x77   : > { %346 = vst [vmem:[%s9456_s7 + $0x174] sm:$0xf] %v345_v29  ;;  %v473_v29 = vld [vmem:[%s9452_s6 + $0x9d0] sm:$0xf] }
  0x78   : > { %348 = vst [vmem:[%s9456_s7 + $0x178] sm:$0xf] %v347_v30  ;;  %v475_v30 = vld [vmem:[%s9452_s6 + $0x9e0] sm:$0xf] }
  0x79   : > { %350 = vst [vmem:[%s9456_s7 + $0x17c] sm:$0xf] %v349_v31  ;;  %v477_v31 = vld [vmem:[%s9452_s6 + $0x9f0] sm:$0xf] }
  0x7a   : > { %352 = vst [vmem:[%s9456_s7 + $0x180] sm:$0xf] %v351_v32  ;;  %v479_v32 = vld [vmem:[%s9452_s6 + $0xa00] sm:$0xf] }
  0x7b   : > { %354 = vst [vmem:[%s9456_s7 + $0x184] sm:$0xf] %v353_v33  ;;  %v481_v33 = vld [vmem:[%s9452_s6 + $0xa10] sm:$0xf] }
  0x7c   : > { %356 = vst [vmem:[%s9456_s7 + $0x188] sm:$0xf] %v355_v34  ;;  %v483_v34 = vld [vmem:[%s9452_s6 + $0xa20] sm:$0xf] }
  0x7d   : > { %358 = vst [vmem:[%s9456_s7 + $0x18c] sm:$0xf] %v357_v35  ;;  %v485_v35 = vld [vmem:[%s9452_s6 + $0xa30] sm:$0xf] }
  0x7e   : > { %360 = vst [vmem:[%s9456_s7 + $0x190] sm:$0xf] %v359_v36  ;;  %v487_v36 = vld [vmem:[%s9452_s6 + $0xa40] sm:$0xf] }
  0x7f   : > { %362 = vst [vmem:[%s9456_s7 + $0x194] sm:$0xf] %v361_v37  ;;  %v489_v37 = vld [vmem:[%s9452_s6 + $0xa50] sm:$0xf] }
  0x80   : > { %364 = vst [vmem:[%s9456_s7 + $0x198] sm:$0xf] %v363_v38  ;;  %v491_v38 = vld [vmem:[%s9452_s6 + $0xa60] sm:$0xf] }
  0x81   : > { %366 = vst [vmem:[%s9456_s7 + $0x19c] sm:$0xf] %v365_v39  ;;  %v493_v39 = vld [vmem:[%s9452_s6 + $0xa70] sm:$0xf] }
  0x82   : > { %368 = vst [vmem:[%s9456_s7 + $0x1a0] sm:$0xf] %v367_v40  ;;  %v495_v40 = vld [vmem:[%s9452_s6 + $0xa80] sm:$0xf] }
  0x83   : > { %370 = vst [vmem:[%s9456_s7 + $0x1a4] sm:$0xf] %v369_v41  ;;  %v497_v41 = vld [vmem:[%s9452_s6 + $0xa90] sm:$0xf] }
  0x84   : > { %372 = vst [vmem:[%s9456_s7 + $0x1a8] sm:$0xf] %v371_v42  ;;  %v499_v42 = vld [vmem:[%s9452_s6 + $0xaa0] sm:$0xf] }
  0x85   : > { %374 = vst [vmem:[%s9456_s7 + $0x1ac] sm:$0xf] %v373_v43  ;;  %v501_v43 = vld [vmem:[%s9452_s6 + $0xab0] sm:$0xf] }
  0x86   : > { %376 = vst [vmem:[%s9456_s7 + $0x1b0] sm:$0xf] %v375_v44  ;;  %v503_v44 = vld [vmem:[%s9452_s6 + $0xac0] sm:$0xf] }
  0x87   : > { %378 = vst [vmem:[%s9456_s7 + $0x1b4] sm:$0xf] %v377_v45  ;;  %v505_v45 = vld [vmem:[%s9452_s6 + $0xad0] sm:$0xf] }
  0x88   : > { %380 = vst [vmem:[%s9456_s7 + $0x1b8] sm:$0xf] %v379_v46  ;;  %v507_v46 = vld [vmem:[%s9452_s6 + $0xae0] sm:$0xf] }
  0x89   : > { %382 = vst [vmem:[%s9456_s7 + $0x1bc] sm:$0xf] %v381_v47  ;;  %v509_v47 = vld [vmem:[%s9452_s6 + $0xaf0] sm:$0xf] }
  0x8a   : > { %384 = vst [vmem:[%s9456_s7 + $0x1c0] sm:$0xf] %v383_v48  ;;  %v511_v48 = vld [vmem:[%s9452_s6 + $0xb00] sm:$0xf] }
  0x8b   : > { %386 = vst [vmem:[%s9456_s7 + $0x1c4] sm:$0xf] %v385_v49  ;;  %v513_v49 = vld [vmem:[%s9452_s6 + $0xb10] sm:$0xf] }
  0x8c   : > { %388 = vst [vmem:[%s9456_s7 + $0x1c8] sm:$0xf] %v387_v50  ;;  %v515_v50 = vld [vmem:[%s9452_s6 + $0xb20] sm:$0xf] }
  0x8d   : > { %390 = vst [vmem:[%s9456_s7 + $0x1cc] sm:$0xf] %v389_v51  ;;  %v517_v51 = vld [vmem:[%s9452_s6 + $0xb30] sm:$0xf] }
  0x8e   : > { %392 = vst [vmem:[%s9456_s7 + $0x1d0] sm:$0xf] %v391_v52  ;;  %v519_v52 = vld [vmem:[%s9452_s6 + $0xb40] sm:$0xf] }
  0x8f   : > { %394 = vst [vmem:[%s9456_s7 + $0x1d4] sm:$0xf] %v393_v53  ;;  %v521_v53 = vld [vmem:[%s9452_s6 + $0xb50] sm:$0xf] }
  0x90   : > { %396 = vst [vmem:[%s9456_s7 + $0x1d8] sm:$0xf] %v395_v54  ;;  %v523_v54 = vld [vmem:[%s9452_s6 + $0xb60] sm:$0xf] }
  0x91   : > { %398 = vst [vmem:[%s9456_s7 + $0x1dc] sm:$0xf] %v397_v55  ;;  %v525_v55 = vld [vmem:[%s9452_s6 + $0xb70] sm:$0xf] }
  0x92   : > { %400 = vst [vmem:[%s9456_s7 + $0x1e0] sm:$0xf] %v399_v56  ;;  %v527_v56 = vld [vmem:[%s9452_s6 + $0xb80] sm:$0xf] }
  0x93   : > { %402 = vst [vmem:[%s9456_s7 + $0x1e4] sm:$0xf] %v401_v57  ;;  %v529_v57 = vld [vmem:[%s9452_s6 + $0xb90] sm:$0xf] }
  0x94   : > { %404 = vst [vmem:[%s9456_s7 + $0x1e8] sm:$0xf] %v403_v58  ;;  %v531_v58 = vld [vmem:[%s9452_s6 + $0xba0] sm:$0xf] }
  0x95   : > { %406 = vst [vmem:[%s9456_s7 + $0x1ec] sm:$0xf] %v405_v59  ;;  %v533_v59 = vld [vmem:[%s9452_s6 + $0xbb0] sm:$0xf] }
  0x96   : > { %408 = vst [vmem:[%s9456_s7 + $0x1f0] sm:$0xf] %v407_v60  ;;  %v535_v60 = vld [vmem:[%s9452_s6 + $0xbc0] sm:$0xf] }
  0x97   : > { %410 = vst [vmem:[%s9456_s7 + $0x1f4] sm:$0xf] %v409_v61  ;;  %v537_v61 = vld [vmem:[%s9452_s6 + $0xbd0] sm:$0xf] }
  0x98   : > { %412 = vst [vmem:[%s9456_s7 + $0x1f8] sm:$0xf] %v411_v62  ;;  %v539_v62 = vld [vmem:[%s9452_s6 + $0xbe0] sm:$0xf] }
  0x99   : > { %414 = vst [vmem:[%s9456_s7 + $0x1fc] sm:$0xf] %v413_v63  ;;  %v541_v63 = vld [vmem:[%s9452_s6 + $0xbf0] sm:$0xf] }
  0x9a   : > { %416 = vst [vmem:[%s9456_s7 + $0x200] sm:$0xf] %v415_v0  ;;  %v543_v0 = vld [vmem:[%s9452_s6 + $0xc00] sm:$0xf] }
  0x9b   : > { %418 = vst [vmem:[%s9456_s7 + $0x204] sm:$0xf] %v417_v1  ;;  %v545_v1 = vld [vmem:[%s9452_s6 + $0xc10] sm:$0xf] }
  0x9c   : > { %420 = vst [vmem:[%s9456_s7 + $0x208] sm:$0xf] %v419_v2  ;;  %v547_v2 = vld [vmem:[%s9452_s6 + $0xc20] sm:$0xf] }
  0x9d   : > { %422 = vst [vmem:[%s9456_s7 + $0x20c] sm:$0xf] %v421_v3  ;;  %v549_v3 = vld [vmem:[%s9452_s6 + $0xc30] sm:$0xf] }
  0x9e   : > { %424 = vst [vmem:[%s9456_s7 + $0x210] sm:$0xf] %v423_v4  ;;  %v551_v4 = vld [vmem:[%s9452_s6 + $0xc40] sm:$0xf] }
  0x9f   : > { %426 = vst [vmem:[%s9456_s7 + $0x214] sm:$0xf] %v425_v5  ;;  %v553_v5 = vld [vmem:[%s9452_s6 + $0xc50] sm:$0xf] }
  0xa0   : > { %428 = vst [vmem:[%s9456_s7 + $0x218] sm:$0xf] %v427_v6  ;;  %v555_v6 = vld [vmem:[%s9452_s6 + $0xc60] sm:$0xf] }
  0xa1   : > { %430 = vst [vmem:[%s9456_s7 + $0x21c] sm:$0xf] %v429_v7  ;;  %v557_v7 = vld [vmem:[%s9452_s6 + $0xc70] sm:$0xf] }
  0xa2   : > { %432 = vst [vmem:[%s9456_s7 + $0x220] sm:$0xf] %v431_v8  ;;  %v559_v8 = vld [vmem:[%s9452_s6 + $0xc80] sm:$0xf] }
  0xa3   : > { %434 = vst [vmem:[%s9456_s7 + $0x224] sm:$0xf] %v433_v9  ;;  %v561_v9 = vld [vmem:[%s9452_s6 + $0xc90] sm:$0xf] }
  0xa4   : > { %436 = vst [vmem:[%s9456_s7 + $0x228] sm:$0xf] %v435_v10  ;;  %v563_v10 = vld [vmem:[%s9452_s6 + $0xca0] sm:$0xf] }
  0xa5   : > { %438 = vst [vmem:[%s9456_s7 + $0x22c] sm:$0xf] %v437_v11  ;;  %v565_v11 = vld [vmem:[%s9452_s6 + $0xcb0] sm:$0xf] }
  0xa6   : > { %440 = vst [vmem:[%s9456_s7 + $0x230] sm:$0xf] %v439_v12  ;;  %v567_v12 = vld [vmem:[%s9452_s6 + $0xcc0] sm:$0xf] }
  0xa7   : > { %442 = vst [vmem:[%s9456_s7 + $0x234] sm:$0xf] %v441_v13  ;;  %v569_v13 = vld [vmem:[%s9452_s6 + $0xcd0] sm:$0xf] }
  0xa8   : > { %444 = vst [vmem:[%s9456_s7 + $0x238] sm:$0xf] %v443_v14  ;;  %v571_v14 = vld [vmem:[%s9452_s6 + $0xce0] sm:$0xf] }
  0xa9   : > { %446 = vst [vmem:[%s9456_s7 + $0x23c] sm:$0xf] %v445_v15  ;;  %v573_v15 = vld [vmem:[%s9452_s6 + $0xcf0] sm:$0xf] }
  0xaa   : > { %448 = vst [vmem:[%s9456_s7 + $0x240] sm:$0xf] %v447_v16  ;;  %v575_v16 = vld [vmem:[%s9452_s6 + $0xd00] sm:$0xf] }
  0xab   : > { %450 = vst [vmem:[%s9456_s7 + $0x244] sm:$0xf] %v449_v17  ;;  %v577_v17 = vld [vmem:[%s9452_s6 + $0xd10] sm:$0xf] }
  0xac   : > { %452 = vst [vmem:[%s9456_s7 + $0x248] sm:$0xf] %v451_v18  ;;  %v579_v18 = vld [vmem:[%s9452_s6 + $0xd20] sm:$0xf] }
  0xad   : > { %454 = vst [vmem:[%s9456_s7 + $0x24c] sm:$0xf] %v453_v19  ;;  %v581_v19 = vld [vmem:[%s9452_s6 + $0xd30] sm:$0xf] }
  0xae   : > { %456 = vst [vmem:[%s9456_s7 + $0x250] sm:$0xf] %v455_v20  ;;  %v583_v20 = vld [vmem:[%s9452_s6 + $0xd40] sm:$0xf] }
  0xaf   : > { %458 = vst [vmem:[%s9456_s7 + $0x254] sm:$0xf] %v457_v21  ;;  %v585_v21 = vld [vmem:[%s9452_s6 + $0xd50] sm:$0xf] }
  0xb0   : > { %460 = vst [vmem:[%s9456_s7 + $0x258] sm:$0xf] %v459_v22  ;;  %v587_v22 = vld [vmem:[%s9452_s6 + $0xd60] sm:$0xf] }
  0xb1   : > { %462 = vst [vmem:[%s9456_s7 + $0x25c] sm:$0xf] %v461_v23  ;;  %v589_v23 = vld [vmem:[%s9452_s6 + $0xd70] sm:$0xf] }
  0xb2   : > { %464 = vst [vmem:[%s9456_s7 + $0x260] sm:$0xf] %v463_v24  ;;  %v591_v24 = vld [vmem:[%s9452_s6 + $0xd80] sm:$0xf] }
  0xb3   : > { %466 = vst [vmem:[%s9456_s7 + $0x264] sm:$0xf] %v465_v25  ;;  %v593_v25 = vld [vmem:[%s9452_s6 + $0xd90] sm:$0xf] }
  0xb4   : > { %468 = vst [vmem:[%s9456_s7 + $0x268] sm:$0xf] %v467_v26  ;;  %v595_v26 = vld [vmem:[%s9452_s6 + $0xda0] sm:$0xf] }
  0xb5   : > { %470 = vst [vmem:[%s9456_s7 + $0x26c] sm:$0xf] %v469_v27  ;;  %v597_v27 = vld [vmem:[%s9452_s6 + $0xdb0] sm:$0xf] }
  0xb6   : > { %472 = vst [vmem:[%s9456_s7 + $0x270] sm:$0xf] %v471_v28  ;;  %v599_v28 = vld [vmem:[%s9452_s6 + $0xdc0] sm:$0xf] }
  0xb7   : > { %474 = vst [vmem:[%s9456_s7 + $0x274] sm:$0xf] %v473_v29  ;;  %v601_v29 = vld [vmem:[%s9452_s6 + $0xdd0] sm:$0xf] }
  0xb8   : > { %476 = vst [vmem:[%s9456_s7 + $0x278] sm:$0xf] %v475_v30  ;;  %v603_v30 = vld [vmem:[%s9452_s6 + $0xde0] sm:$0xf] }
  0xb9   : > { %478 = vst [vmem:[%s9456_s7 + $0x27c] sm:$0xf] %v477_v31  ;;  %v605_v31 = vld [vmem:[%s9452_s6 + $0xdf0] sm:$0xf] }
  0xba   : > { %480 = vst [vmem:[%s9456_s7 + $0x280] sm:$0xf] %v479_v32  ;;  %v607_v32 = vld [vmem:[%s9452_s6 + $0xe00] sm:$0xf] }
  0xbb   : > { %482 = vst [vmem:[%s9456_s7 + $0x284] sm:$0xf] %v481_v33  ;;  %v609_v33 = vld [vmem:[%s9452_s6 + $0xe10] sm:$0xf] }
  0xbc   : > { %484 = vst [vmem:[%s9456_s7 + $0x288] sm:$0xf] %v483_v34  ;;  %v611_v34 = vld [vmem:[%s9452_s6 + $0xe20] sm:$0xf] }
  0xbd   : > { %486 = vst [vmem:[%s9456_s7 + $0x28c] sm:$0xf] %v485_v35  ;;  %v613_v35 = vld [vmem:[%s9452_s6 + $0xe30] sm:$0xf] }
  0xbe   : > { %488 = vst [vmem:[%s9456_s7 + $0x290] sm:$0xf] %v487_v36  ;;  %v615_v36 = vld [vmem:[%s9452_s6 + $0xe40] sm:$0xf] }
  0xbf   : > { %490 = vst [vmem:[%s9456_s7 + $0x294] sm:$0xf] %v489_v37  ;;  %v617_v37 = vld [vmem:[%s9452_s6 + $0xe50] sm:$0xf] }
  0xc0   : > { %492 = vst [vmem:[%s9456_s7 + $0x298] sm:$0xf] %v491_v38  ;;  %v619_v38 = vld [vmem:[%s9452_s6 + $0xe60] sm:$0xf] }
  0xc1   : > { %494 = vst [vmem:[%s9456_s7 + $0x29c] sm:$0xf] %v493_v39  ;;  %v621_v39 = vld [vmem:[%s9452_s6 + $0xe70] sm:$0xf] }
  0xc2   : > { %496 = vst [vmem:[%s9456_s7 + $0x2a0] sm:$0xf] %v495_v40  ;;  %v623_v40 = vld [vmem:[%s9452_s6 + $0xe80] sm:$0xf] }
  0xc3   : > { %498 = vst [vmem:[%s9456_s7 + $0x2a4] sm:$0xf] %v497_v41  ;;  %v625_v41 = vld [vmem:[%s9452_s6 + $0xe90] sm:$0xf] }
  0xc4   : > { %500 = vst [vmem:[%s9456_s7 + $0x2a8] sm:$0xf] %v499_v42  ;;  %v627_v42 = vld [vmem:[%s9452_s6 + $0xea0] sm:$0xf] }
  0xc5   : > { %502 = vst [vmem:[%s9456_s7 + $0x2ac] sm:$0xf] %v501_v43  ;;  %v629_v43 = vld [vmem:[%s9452_s6 + $0xeb0] sm:$0xf] }
  0xc6   : > { %504 = vst [vmem:[%s9456_s7 + $0x2b0] sm:$0xf] %v503_v44  ;;  %v631_v44 = vld [vmem:[%s9452_s6 + $0xec0] sm:$0xf] }
  0xc7   : > { %506 = vst [vmem:[%s9456_s7 + $0x2b4] sm:$0xf] %v505_v45  ;;  %v633_v45 = vld [vmem:[%s9452_s6 + $0xed0] sm:$0xf] }
  0xc8   : > { %508 = vst [vmem:[%s9456_s7 + $0x2b8] sm:$0xf] %v507_v46  ;;  %v635_v46 = vld [vmem:[%s9452_s6 + $0xee0] sm:$0xf] }
  0xc9   : > { %510 = vst [vmem:[%s9456_s7 + $0x2bc] sm:$0xf] %v509_v47  ;;  %v637_v47 = vld [vmem:[%s9452_s6 + $0xef0] sm:$0xf] }
  0xca   : > { %512 = vst [vmem:[%s9456_s7 + $0x2c0] sm:$0xf] %v511_v48  ;;  %v639_v48 = vld [vmem:[%s9452_s6 + $0xf00] sm:$0xf] }
  0xcb   : > { %514 = vst [vmem:[%s9456_s7 + $0x2c4] sm:$0xf] %v513_v49  ;;  %v641_v49 = vld [vmem:[%s9452_s6 + $0xf10] sm:$0xf] }
  0xcc   : > { %516 = vst [vmem:[%s9456_s7 + $0x2c8] sm:$0xf] %v515_v50  ;;  %v643_v50 = vld [vmem:[%s9452_s6 + $0xf20] sm:$0xf] }
  0xcd   : > { %518 = vst [vmem:[%s9456_s7 + $0x2cc] sm:$0xf] %v517_v51  ;;  %v645_v51 = vld [vmem:[%s9452_s6 + $0xf30] sm:$0xf] }
  0xce   : > { %520 = vst [vmem:[%s9456_s7 + $0x2d0] sm:$0xf] %v519_v52  ;;  %v647_v52 = vld [vmem:[%s9452_s6 + $0xf40] sm:$0xf] }
  0xcf   : > { %522 = vst [vmem:[%s9456_s7 + $0x2d4] sm:$0xf] %v521_v53  ;;  %v649_v53 = vld [vmem:[%s9452_s6 + $0xf50] sm:$0xf] }
  0xd0   : > { %524 = vst [vmem:[%s9456_s7 + $0x2d8] sm:$0xf] %v523_v54  ;;  %v651_v54 = vld [vmem:[%s9452_s6 + $0xf60] sm:$0xf] }
  0xd1   : > { %526 = vst [vmem:[%s9456_s7 + $0x2dc] sm:$0xf] %v525_v55  ;;  %v653_v55 = vld [vmem:[%s9452_s6 + $0xf70] sm:$0xf] }
  0xd2   : > { %528 = vst [vmem:[%s9456_s7 + $0x2e0] sm:$0xf] %v527_v56  ;;  %v655_v56 = vld [vmem:[%s9452_s6 + $0xf80] sm:$0xf] }
  0xd3   : > { %530 = vst [vmem:[%s9456_s7 + $0x2e4] sm:$0xf] %v529_v57  ;;  %v657_v57 = vld [vmem:[%s9452_s6 + $0xf90] sm:$0xf] }
  0xd4   : > { %532 = vst [vmem:[%s9456_s7 + $0x2e8] sm:$0xf] %v531_v58  ;;  %v659_v58 = vld [vmem:[%s9452_s6 + $0xfa0] sm:$0xf] }
  0xd5   : > { %534 = vst [vmem:[%s9456_s7 + $0x2ec] sm:$0xf] %v533_v59  ;;  %v661_v59 = vld [vmem:[%s9452_s6 + $0xfb0] sm:$0xf] }
  0xd6   : > { %536 = vst [vmem:[%s9456_s7 + $0x2f0] sm:$0xf] %v535_v60  ;;  %v663_v60 = vld [vmem:[%s9452_s6 + $0xfc0] sm:$0xf] }
  0xd7   : > { %538 = vst [vmem:[%s9456_s7 + $0x2f4] sm:$0xf] %v537_v61  ;;  %v665_v61 = vld [vmem:[%s9452_s6 + $0xfd0] sm:$0xf] }
  0xd8   : > { %540 = vst [vmem:[%s9456_s7 + $0x2f8] sm:$0xf] %v539_v62  ;;  %v667_v62 = vld [vmem:[%s9452_s6 + $0xfe0] sm:$0xf] }
  0xd9   : > { %542 = vst [vmem:[%s9456_s7 + $0x2fc] sm:$0xf] %v541_v63  ;;  %v669_v63 = vld [vmem:[%s9452_s6 + $0xff0] sm:$0xf] }
  0xda   : > { %544 = vst [vmem:[%s9456_s7 + $0x300] sm:$0xf] %v543_v0  ;;  %v671_v0 = vld [vmem:[%s9452_s6 + $0x1000] sm:$0xf] }
  0xdb   : > { %546 = vst [vmem:[%s9456_s7 + $0x304] sm:$0xf] %v545_v1  ;;  %v673_v1 = vld [vmem:[%s9452_s6 + $0x1010] sm:$0xf] }
  0xdc   : > { %548 = vst [vmem:[%s9456_s7 + $0x308] sm:$0xf] %v547_v2  ;;  %v675_v2 = vld [vmem:[%s9452_s6 + $0x1020] sm:$0xf] }
  0xdd   : > { %550 = vst [vmem:[%s9456_s7 + $0x30c] sm:$0xf] %v549_v3  ;;  %v677_v3 = vld [vmem:[%s9452_s6 + $0x1030] sm:$0xf] }
  0xde   : > { %552 = vst [vmem:[%s9456_s7 + $0x310] sm:$0xf] %v551_v4  ;;  %v679_v4 = vld [vmem:[%s9452_s6 + $0x1040] sm:$0xf] }
  0xdf   : > { %554 = vst [vmem:[%s9456_s7 + $0x314] sm:$0xf] %v553_v5  ;;  %v681_v5 = vld [vmem:[%s9452_s6 + $0x1050] sm:$0xf] }
  0xe0   : > { %556 = vst [vmem:[%s9456_s7 + $0x318] sm:$0xf] %v555_v6  ;;  %v683_v6 = vld [vmem:[%s9452_s6 + $0x1060] sm:$0xf] }
  0xe1   : > { %558 = vst [vmem:[%s9456_s7 + $0x31c] sm:$0xf] %v557_v7  ;;  %v685_v7 = vld [vmem:[%s9452_s6 + $0x1070] sm:$0xf] }
  0xe2   : > { %560 = vst [vmem:[%s9456_s7 + $0x320] sm:$0xf] %v559_v8  ;;  %v687_v8 = vld [vmem:[%s9452_s6 + $0x1080] sm:$0xf] }
  0xe3   : > { %562 = vst [vmem:[%s9456_s7 + $0x324] sm:$0xf] %v561_v9  ;;  %v689_v9 = vld [vmem:[%s9452_s6 + $0x1090] sm:$0xf] }
  0xe4   : > { %564 = vst [vmem:[%s9456_s7 + $0x328] sm:$0xf] %v563_v10  ;;  %v691_v10 = vld [vmem:[%s9452_s6 + $0x10a0] sm:$0xf] }
  0xe5   : > { %566 = vst [vmem:[%s9456_s7 + $0x32c] sm:$0xf] %v565_v11  ;;  %v693_v11 = vld [vmem:[%s9452_s6 + $0x10b0] sm:$0xf] }
  0xe6   : > { %568 = vst [vmem:[%s9456_s7 + $0x330] sm:$0xf] %v567_v12  ;;  %v695_v12 = vld [vmem:[%s9452_s6 + $0x10c0] sm:$0xf] }
  0xe7   : > { %570 = vst [vmem:[%s9456_s7 + $0x334] sm:$0xf] %v569_v13  ;;  %v697_v13 = vld [vmem:[%s9452_s6 + $0x10d0] sm:$0xf] }
  0xe8   : > { %572 = vst [vmem:[%s9456_s7 + $0x338] sm:$0xf] %v571_v14  ;;  %v699_v14 = vld [vmem:[%s9452_s6 + $0x10e0] sm:$0xf] }
  0xe9   : > { %574 = vst [vmem:[%s9456_s7 + $0x33c] sm:$0xf] %v573_v15  ;;  %v701_v15 = vld [vmem:[%s9452_s6 + $0x10f0] sm:$0xf] }
  0xea   : > { %576 = vst [vmem:[%s9456_s7 + $0x340] sm:$0xf] %v575_v16  ;;  %v703_v16 = vld [vmem:[%s9452_s6 + $0x1100] sm:$0xf] }
  0xeb   : > { %578 = vst [vmem:[%s9456_s7 + $0x344] sm:$0xf] %v577_v17  ;;  %v705_v17 = vld [vmem:[%s9452_s6 + $0x1110] sm:$0xf] }
  0xec   : > { %580 = vst [vmem:[%s9456_s7 + $0x348] sm:$0xf] %v579_v18  ;;  %v707_v18 = vld [vmem:[%s9452_s6 + $0x1120] sm:$0xf] }
  0xed   : > { %582 = vst [vmem:[%s9456_s7 + $0x34c] sm:$0xf] %v581_v19  ;;  %v709_v19 = vld [vmem:[%s9452_s6 + $0x1130] sm:$0xf] }
  0xee   : > { %584 = vst [vmem:[%s9456_s7 + $0x350] sm:$0xf] %v583_v20  ;;  %v711_v20 = vld [vmem:[%s9452_s6 + $0x1140] sm:$0xf] }
  0xef   : > { %586 = vst [vmem:[%s9456_s7 + $0x354] sm:$0xf] %v585_v21  ;;  %v713_v21 = vld [vmem:[%s9452_s6 + $0x1150] sm:$0xf] }
  0xf0   : > { %588 = vst [vmem:[%s9456_s7 + $0x358] sm:$0xf] %v587_v22  ;;  %v715_v22 = vld [vmem:[%s9452_s6 + $0x1160] sm:$0xf] }
  0xf1   : > { %590 = vst [vmem:[%s9456_s7 + $0x35c] sm:$0xf] %v589_v23  ;;  %v717_v23 = vld [vmem:[%s9452_s6 + $0x1170] sm:$0xf] }
  0xf2   : > { %592 = vst [vmem:[%s9456_s7 + $0x360] sm:$0xf] %v591_v24  ;;  %v719_v24 = vld [vmem:[%s9452_s6 + $0x1180] sm:$0xf] }
  0xf3   : > { %594 = vst [vmem:[%s9456_s7 + $0x364] sm:$0xf] %v593_v25  ;;  %v721_v25 = vld [vmem:[%s9452_s6 + $0x1190] sm:$0xf] }
  0xf4   : > { %596 = vst [vmem:[%s9456_s7 + $0x368] sm:$0xf] %v595_v26  ;;  %v723_v26 = vld [vmem:[%s9452_s6 + $0x11a0] sm:$0xf] }
  0xf5   : > { %598 = vst [vmem:[%s9456_s7 + $0x36c] sm:$0xf] %v597_v27  ;;  %v725_v27 = vld [vmem:[%s9452_s6 + $0x11b0] sm:$0xf] }
  0xf6   : > { %600 = vst [vmem:[%s9456_s7 + $0x370] sm:$0xf] %v599_v28  ;;  %v727_v28 = vld [vmem:[%s9452_s6 + $0x11c0] sm:$0xf] }
  0xf7   : > { %602 = vst [vmem:[%s9456_s7 + $0x374] sm:$0xf] %v601_v29  ;;  %v729_v29 = vld [vmem:[%s9452_s6 + $0x11d0] sm:$0xf] }
  0xf8   : > { %604 = vst [vmem:[%s9456_s7 + $0x378] sm:$0xf] %v603_v30  ;;  %v731_v30 = vld [vmem:[%s9452_s6 + $0x11e0] sm:$0xf] }
  0xf9   : > { %606 = vst [vmem:[%s9456_s7 + $0x37c] sm:$0xf] %v605_v31  ;;  %v733_v31 = vld [vmem:[%s9452_s6 + $0x11f0] sm:$0xf] }
  0xfa   : > { %608 = vst [vmem:[%s9456_s7 + $0x380] sm:$0xf] %v607_v32  ;;  %v735_v32 = vld [vmem:[%s9452_s6 + $0x1200] sm:$0xf] }
  0xfb   : > { %610 = vst [vmem:[%s9456_s7 + $0x384] sm:$0xf] %v609_v33  ;;  %v737_v33 = vld [vmem:[%s9452_s6 + $0x1210] sm:$0xf] }
  0xfc   : > { %612 = vst [vmem:[%s9456_s7 + $0x388] sm:$0xf] %v611_v34  ;;  %v739_v34 = vld [vmem:[%s9452_s6 + $0x1220] sm:$0xf] }
  0xfd   : > { %614 = vst [vmem:[%s9456_s7 + $0x38c] sm:$0xf] %v613_v35  ;;  %v741_v35 = vld [vmem:[%s9452_s6 + $0x1230] sm:$0xf] }
  0xfe   : > { %616 = vst [vmem:[%s9456_s7 + $0x390] sm:$0xf] %v615_v36  ;;  %v743_v36 = vld [vmem:[%s9452_s6 + $0x1240] sm:$0xf] }
  0xff   : > { %618 = vst [vmem:[%s9456_s7 + $0x394] sm:$0xf] %v617_v37  ;;  %v745_v37 = vld [vmem:[%s9452_s6 + $0x1250] sm:$0xf] }
 0x100   : > { %620 = vst [vmem:[%s9456_s7 + $0x398] sm:$0xf] %v619_v38  ;;  %v747_v38 = vld [vmem:[%s9452_s6 + $0x1260] sm:$0xf] }
 0x101   : > { %622 = vst [vmem:[%s9456_s7 + $0x39c] sm:$0xf] %v621_v39  ;;  %v749_v39 = vld [vmem:[%s9452_s6 + $0x1270] sm:$0xf] }
 0x102   : > { %624 = vst [vmem:[%s9456_s7 + $0x3a0] sm:$0xf] %v623_v40  ;;  %v751_v40 = vld [vmem:[%s9452_s6 + $0x1280] sm:$0xf] }
 0x103   : > { %626 = vst [vmem:[%s9456_s7 + $0x3a4] sm:$0xf] %v625_v41  ;;  %v753_v41 = vld [vmem:[%s9452_s6 + $0x1290] sm:$0xf] }
 0x104   : > { %628 = vst [vmem:[%s9456_s7 + $0x3a8] sm:$0xf] %v627_v42  ;;  %v755_v42 = vld [vmem:[%s9452_s6 + $0x12a0] sm:$0xf] }
 0x105   : > { %630 = vst [vmem:[%s9456_s7 + $0x3ac] sm:$0xf] %v629_v43  ;;  %v757_v43 = vld [vmem:[%s9452_s6 + $0x12b0] sm:$0xf] }
 0x106   : > { %632 = vst [vmem:[%s9456_s7 + $0x3b0] sm:$0xf] %v631_v44  ;;  %v759_v44 = vld [vmem:[%s9452_s6 + $0x12c0] sm:$0xf] }
 0x107   : > { %634 = vst [vmem:[%s9456_s7 + $0x3b4] sm:$0xf] %v633_v45  ;;  %v761_v45 = vld [vmem:[%s9452_s6 + $0x12d0] sm:$0xf] }
 0x108   : > { %636 = vst [vmem:[%s9456_s7 + $0x3b8] sm:$0xf] %v635_v46  ;;  %v763_v46 = vld [vmem:[%s9452_s6 + $0x12e0] sm:$0xf] }
 0x109   : > { %638 = vst [vmem:[%s9456_s7 + $0x3bc] sm:$0xf] %v637_v47  ;;  %v765_v47 = vld [vmem:[%s9452_s6 + $0x12f0] sm:$0xf] }
 0x10a   : > { %640 = vst [vmem:[%s9456_s7 + $0x3c0] sm:$0xf] %v639_v48  ;;  %v767_v48 = vld [vmem:[%s9452_s6 + $0x1300] sm:$0xf] }
 0x10b   : > { %642 = vst [vmem:[%s9456_s7 + $0x3c4] sm:$0xf] %v641_v49  ;;  %v769_v49 = vld [vmem:[%s9452_s6 + $0x1310] sm:$0xf] }
 0x10c   : > { %644 = vst [vmem:[%s9456_s7 + $0x3c8] sm:$0xf] %v643_v50  ;;  %v771_v50 = vld [vmem:[%s9452_s6 + $0x1320] sm:$0xf] }
 0x10d   : > { %646 = vst [vmem:[%s9456_s7 + $0x3cc] sm:$0xf] %v645_v51  ;;  %v773_v51 = vld [vmem:[%s9452_s6 + $0x1330] sm:$0xf] }
 0x10e   : > { %648 = vst [vmem:[%s9456_s7 + $0x3d0] sm:$0xf] %v647_v52  ;;  %v775_v52 = vld [vmem:[%s9452_s6 + $0x1340] sm:$0xf] }
 0x10f   : > { %650 = vst [vmem:[%s9456_s7 + $0x3d4] sm:$0xf] %v649_v53  ;;  %v777_v53 = vld [vmem:[%s9452_s6 + $0x1350] sm:$0xf] }
 0x110   : > { %652 = vst [vmem:[%s9456_s7 + $0x3d8] sm:$0xf] %v651_v54  ;;  %v779_v54 = vld [vmem:[%s9452_s6 + $0x1360] sm:$0xf] }
 0x111   : > { %654 = vst [vmem:[%s9456_s7 + $0x3dc] sm:$0xf] %v653_v55  ;;  %v781_v55 = vld [vmem:[%s9452_s6 + $0x1370] sm:$0xf] }
 0x112   : > { %656 = vst [vmem:[%s9456_s7 + $0x3e0] sm:$0xf] %v655_v56  ;;  %v783_v56 = vld [vmem:[%s9452_s6 + $0x1380] sm:$0xf] }
 0x113   : > { %658 = vst [vmem:[%s9456_s7 + $0x3e4] sm:$0xf] %v657_v57  ;;  %v785_v57 = vld [vmem:[%s9452_s6 + $0x1390] sm:$0xf] }
 0x114   : > { %660 = vst [vmem:[%s9456_s7 + $0x3e8] sm:$0xf] %v659_v58  ;;  %v787_v58 = vld [vmem:[%s9452_s6 + $0x13a0] sm:$0xf] }
 0x115   : > { %662 = vst [vmem:[%s9456_s7 + $0x3ec] sm:$0xf] %v661_v59  ;;  %v789_v59 = vld [vmem:[%s9452_s6 + $0x13b0] sm:$0xf] }
 0x116   : > { %664 = vst [vmem:[%s9456_s7 + $0x3f0] sm:$0xf] %v663_v60  ;;  %v791_v60 = vld [vmem:[%s9452_s6 + $0x13c0] sm:$0xf] }
 0x117   : > { %666 = vst [vmem:[%s9456_s7 + $0x3f4] sm:$0xf] %v665_v61  ;;  %v793_v61 = vld [vmem:[%s9452_s6 + $0x13d0] sm:$0xf] }
 0x118   : > { %668 = vst [vmem:[%s9456_s7 + $0x3f8] sm:$0xf] %v667_v62  ;;  %v795_v62 = vld [vmem:[%s9452_s6 + $0x13e0] sm:$0xf] }
 0x119   : > { %670 = vst [vmem:[%s9456_s7 + $0x3fc] sm:$0xf] %v669_v63  ;;  %v797_v63 = vld [vmem:[%s9452_s6 + $0x13f0] sm:$0xf] }
 0x11a   : > { %672 = vst [vmem:[%s9456_s7 + $0x400] sm:$0xf] %v671_v0  ;;  %v799_v0 = vld [vmem:[%s9452_s6 + $0x1400] sm:$0xf] }
 0x11b   : > { %674 = vst [vmem:[%s9456_s7 + $0x404] sm:$0xf] %v673_v1  ;;  %v801_v1 = vld [vmem:[%s9452_s6 + $0x1410] sm:$0xf] }
 0x11c   : > { %676 = vst [vmem:[%s9456_s7 + $0x408] sm:$0xf] %v675_v2  ;;  %v803_v2 = vld [vmem:[%s9452_s6 + $0x1420] sm:$0xf] }
 0x11d   : > { %678 = vst [vmem:[%s9456_s7 + $0x40c] sm:$0xf] %v677_v3  ;;  %v805_v3 = vld [vmem:[%s9452_s6 + $0x1430] sm:$0xf] }
 0x11e   : > { %680 = vst [vmem:[%s9456_s7 + $0x410] sm:$0xf] %v679_v4  ;;  %v807_v4 = vld [vmem:[%s9452_s6 + $0x1440] sm:$0xf] }
 0x11f   : > { %682 = vst [vmem:[%s9456_s7 + $0x414] sm:$0xf] %v681_v5  ;;  %v809_v5 = vld [vmem:[%s9452_s6 + $0x1450] sm:$0xf] }
 0x120   : > { %684 = vst [vmem:[%s9456_s7 + $0x418] sm:$0xf] %v683_v6  ;;  %v811_v6 = vld [vmem:[%s9452_s6 + $0x1460] sm:$0xf] }
 0x121   : > { %686 = vst [vmem:[%s9456_s7 + $0x41c] sm:$0xf] %v685_v7  ;;  %v813_v7 = vld [vmem:[%s9452_s6 + $0x1470] sm:$0xf] }
 0x122   : > { %688 = vst [vmem:[%s9456_s7 + $0x420] sm:$0xf] %v687_v8  ;;  %v815_v8 = vld [vmem:[%s9452_s6 + $0x1480] sm:$0xf] }
 0x123   : > { %690 = vst [vmem:[%s9456_s7 + $0x424] sm:$0xf] %v689_v9  ;;  %v817_v9 = vld [vmem:[%s9452_s6 + $0x1490] sm:$0xf] }
 0x124   : > { %692 = vst [vmem:[%s9456_s7 + $0x428] sm:$0xf] %v691_v10  ;;  %v819_v10 = vld [vmem:[%s9452_s6 + $0x14a0] sm:$0xf] }
 0x125   : > { %694 = vst [vmem:[%s9456_s7 + $0x42c] sm:$0xf] %v693_v11  ;;  %v821_v11 = vld [vmem:[%s9452_s6 + $0x14b0] sm:$0xf] }
 0x126   : > { %696 = vst [vmem:[%s9456_s7 + $0x430] sm:$0xf] %v695_v12  ;;  %v823_v12 = vld [vmem:[%s9452_s6 + $0x14c0] sm:$0xf] }
 0x127   : > { %698 = vst [vmem:[%s9456_s7 + $0x434] sm:$0xf] %v697_v13  ;;  %v825_v13 = vld [vmem:[%s9452_s6 + $0x14d0] sm:$0xf] }
 0x128   : > { %700 = vst [vmem:[%s9456_s7 + $0x438] sm:$0xf] %v699_v14  ;;  %v827_v14 = vld [vmem:[%s9452_s6 + $0x14e0] sm:$0xf] }
 0x129   : > { %702 = vst [vmem:[%s9456_s7 + $0x43c] sm:$0xf] %v701_v15  ;;  %v829_v15 = vld [vmem:[%s9452_s6 + $0x14f0] sm:$0xf] }
 0x12a   : > { %704 = vst [vmem:[%s9456_s7 + $0x440] sm:$0xf] %v703_v16  ;;  %v831_v16 = vld [vmem:[%s9452_s6 + $0x1500] sm:$0xf] }
 0x12b   : > { %706 = vst [vmem:[%s9456_s7 + $0x444] sm:$0xf] %v705_v17  ;;  %v833_v17 = vld [vmem:[%s9452_s6 + $0x1510] sm:$0xf] }
 0x12c   : > { %708 = vst [vmem:[%s9456_s7 + $0x448] sm:$0xf] %v707_v18  ;;  %v835_v18 = vld [vmem:[%s9452_s6 + $0x1520] sm:$0xf] }
 0x12d   : > { %710 = vst [vmem:[%s9456_s7 + $0x44c] sm:$0xf] %v709_v19  ;;  %v837_v19 = vld [vmem:[%s9452_s6 + $0x1530] sm:$0xf] }
 0x12e   : > { %712 = vst [vmem:[%s9456_s7 + $0x450] sm:$0xf] %v711_v20  ;;  %v839_v20 = vld [vmem:[%s9452_s6 + $0x1540] sm:$0xf] }
 0x12f   : > { %714 = vst [vmem:[%s9456_s7 + $0x454] sm:$0xf] %v713_v21  ;;  %v841_v21 = vld [vmem:[%s9452_s6 + $0x1550] sm:$0xf] }
 0x130   : > { %716 = vst [vmem:[%s9456_s7 + $0x458] sm:$0xf] %v715_v22  ;;  %v843_v22 = vld [vmem:[%s9452_s6 + $0x1560] sm:$0xf] }
 0x131   : > { %718 = vst [vmem:[%s9456_s7 + $0x45c] sm:$0xf] %v717_v23  ;;  %v845_v23 = vld [vmem:[%s9452_s6 + $0x1570] sm:$0xf] }
 0x132   : > { %720 = vst [vmem:[%s9456_s7 + $0x460] sm:$0xf] %v719_v24  ;;  %v847_v24 = vld [vmem:[%s9452_s6 + $0x1580] sm:$0xf] }
 0x133   : > { %722 = vst [vmem:[%s9456_s7 + $0x464] sm:$0xf] %v721_v25  ;;  %v849_v25 = vld [vmem:[%s9452_s6 + $0x1590] sm:$0xf] }
 0x134   : > { %724 = vst [vmem:[%s9456_s7 + $0x468] sm:$0xf] %v723_v26  ;;  %v851_v26 = vld [vmem:[%s9452_s6 + $0x15a0] sm:$0xf] }
 0x135   : > { %726 = vst [vmem:[%s9456_s7 + $0x46c] sm:$0xf] %v725_v27  ;;  %v853_v27 = vld [vmem:[%s9452_s6 + $0x15b0] sm:$0xf] }
 0x136   : > { %728 = vst [vmem:[%s9456_s7 + $0x470] sm:$0xf] %v727_v28  ;;  %v855_v28 = vld [vmem:[%s9452_s6 + $0x15c0] sm:$0xf] }
 0x137   : > { %730 = vst [vmem:[%s9456_s7 + $0x474] sm:$0xf] %v729_v29  ;;  %v857_v29 = vld [vmem:[%s9452_s6 + $0x15d0] sm:$0xf] }
 0x138   : > { %732 = vst [vmem:[%s9456_s7 + $0x478] sm:$0xf] %v731_v30  ;;  %v859_v30 = vld [vmem:[%s9452_s6 + $0x15e0] sm:$0xf] }
 0x139   : > { %734 = vst [vmem:[%s9456_s7 + $0x47c] sm:$0xf] %v733_v31  ;;  %v861_v31 = vld [vmem:[%s9452_s6 + $0x15f0] sm:$0xf] }
 0x13a   : > { %736 = vst [vmem:[%s9456_s7 + $0x480] sm:$0xf] %v735_v32  ;;  %v863_v32 = vld [vmem:[%s9452_s6 + $0x1600] sm:$0xf] }
 0x13b   : > { %738 = vst [vmem:[%s9456_s7 + $0x484] sm:$0xf] %v737_v33  ;;  %v865_v33 = vld [vmem:[%s9452_s6 + $0x1610] sm:$0xf] }
 0x13c   : > { %740 = vst [vmem:[%s9456_s7 + $0x488] sm:$0xf] %v739_v34  ;;  %v867_v34 = vld [vmem:[%s9452_s6 + $0x1620] sm:$0xf] }
 0x13d   : > { %742 = vst [vmem:[%s9456_s7 + $0x48c] sm:$0xf] %v741_v35  ;;  %v869_v35 = vld [vmem:[%s9452_s6 + $0x1630] sm:$0xf] }
 0x13e   : > { %744 = vst [vmem:[%s9456_s7 + $0x490] sm:$0xf] %v743_v36  ;;  %v871_v36 = vld [vmem:[%s9452_s6 + $0x1640] sm:$0xf] }
 0x13f   : > { %746 = vst [vmem:[%s9456_s7 + $0x494] sm:$0xf] %v745_v37  ;;  %v873_v37 = vld [vmem:[%s9452_s6 + $0x1650] sm:$0xf] }
 0x140   : > { %748 = vst [vmem:[%s9456_s7 + $0x498] sm:$0xf] %v747_v38  ;;  %v875_v38 = vld [vmem:[%s9452_s6 + $0x1660] sm:$0xf] }
 0x141   : > { %750 = vst [vmem:[%s9456_s7 + $0x49c] sm:$0xf] %v749_v39  ;;  %v877_v39 = vld [vmem:[%s9452_s6 + $0x1670] sm:$0xf] }
 0x142   : > { %752 = vst [vmem:[%s9456_s7 + $0x4a0] sm:$0xf] %v751_v40  ;;  %v879_v40 = vld [vmem:[%s9452_s6 + $0x1680] sm:$0xf] }
 0x143   : > { %754 = vst [vmem:[%s9456_s7 + $0x4a4] sm:$0xf] %v753_v41  ;;  %v881_v41 = vld [vmem:[%s9452_s6 + $0x1690] sm:$0xf] }
 0x144   : > { %756 = vst [vmem:[%s9456_s7 + $0x4a8] sm:$0xf] %v755_v42  ;;  %v883_v42 = vld [vmem:[%s9452_s6 + $0x16a0] sm:$0xf] }
 0x145   : > { %758 = vst [vmem:[%s9456_s7 + $0x4ac] sm:$0xf] %v757_v43  ;;  %v885_v43 = vld [vmem:[%s9452_s6 + $0x16b0] sm:$0xf] }
 0x146   : > { %760 = vst [vmem:[%s9456_s7 + $0x4b0] sm:$0xf] %v759_v44  ;;  %v887_v44 = vld [vmem:[%s9452_s6 + $0x16c0] sm:$0xf] }
 0x147   : > { %762 = vst [vmem:[%s9456_s7 + $0x4b4] sm:$0xf] %v761_v45  ;;  %v889_v45 = vld [vmem:[%s9452_s6 + $0x16d0] sm:$0xf] }
 0x148   : > { %764 = vst [vmem:[%s9456_s7 + $0x4b8] sm:$0xf] %v763_v46  ;;  %v891_v46 = vld [vmem:[%s9452_s6 + $0x16e0] sm:$0xf] }
 0x149   : > { %766 = vst [vmem:[%s9456_s7 + $0x4bc] sm:$0xf] %v765_v47  ;;  %v893_v47 = vld [vmem:[%s9452_s6 + $0x16f0] sm:$0xf] }
 0x14a   : > { %768 = vst [vmem:[%s9456_s7 + $0x4c0] sm:$0xf] %v767_v48  ;;  %v895_v48 = vld [vmem:[%s9452_s6 + $0x1700] sm:$0xf] }
 0x14b   : > { %770 = vst [vmem:[%s9456_s7 + $0x4c4] sm:$0xf] %v769_v49  ;;  %v897_v49 = vld [vmem:[%s9452_s6 + $0x1710] sm:$0xf] }
 0x14c   : > { %772 = vst [vmem:[%s9456_s7 + $0x4c8] sm:$0xf] %v771_v50  ;;  %v899_v50 = vld [vmem:[%s9452_s6 + $0x1720] sm:$0xf] }
 0x14d   : > { %774 = vst [vmem:[%s9456_s7 + $0x4cc] sm:$0xf] %v773_v51  ;;  %v901_v51 = vld [vmem:[%s9452_s6 + $0x1730] sm:$0xf] }
 0x14e   : > { %776 = vst [vmem:[%s9456_s7 + $0x4d0] sm:$0xf] %v775_v52  ;;  %v903_v52 = vld [vmem:[%s9452_s6 + $0x1740] sm:$0xf] }
 0x14f   : > { %778 = vst [vmem:[%s9456_s7 + $0x4d4] sm:$0xf] %v777_v53  ;;  %v905_v53 = vld [vmem:[%s9452_s6 + $0x1750] sm:$0xf] }
 0x150   : > { %780 = vst [vmem:[%s9456_s7 + $0x4d8] sm:$0xf] %v779_v54  ;;  %v907_v54 = vld [vmem:[%s9452_s6 + $0x1760] sm:$0xf] }
 0x151   : > { %782 = vst [vmem:[%s9456_s7 + $0x4dc] sm:$0xf] %v781_v55  ;;  %v909_v55 = vld [vmem:[%s9452_s6 + $0x1770] sm:$0xf] }
 0x152   : > { %784 = vst [vmem:[%s9456_s7 + $0x4e0] sm:$0xf] %v783_v56  ;;  %v911_v56 = vld [vmem:[%s9452_s6 + $0x1780] sm:$0xf] }
 0x153   : > { %786 = vst [vmem:[%s9456_s7 + $0x4e4] sm:$0xf] %v785_v57  ;;  %v913_v57 = vld [vmem:[%s9452_s6 + $0x1790] sm:$0xf] }
 0x154   : > { %788 = vst [vmem:[%s9456_s7 + $0x4e8] sm:$0xf] %v787_v58  ;;  %v915_v58 = vld [vmem:[%s9452_s6 + $0x17a0] sm:$0xf] }
 0x155   : > { %790 = vst [vmem:[%s9456_s7 + $0x4ec] sm:$0xf] %v789_v59  ;;  %v917_v59 = vld [vmem:[%s9452_s6 + $0x17b0] sm:$0xf] }
 0x156   : > { %792 = vst [vmem:[%s9456_s7 + $0x4f0] sm:$0xf] %v791_v60  ;;  %v919_v60 = vld [vmem:[%s9452_s6 + $0x17c0] sm:$0xf] }
 0x157   : > { %794 = vst [vmem:[%s9456_s7 + $0x4f4] sm:$0xf] %v793_v61  ;;  %v921_v61 = vld [vmem:[%s9452_s6 + $0x17d0] sm:$0xf] }
 0x158   : > { %796 = vst [vmem:[%s9456_s7 + $0x4f8] sm:$0xf] %v795_v62  ;;  %v923_v62 = vld [vmem:[%s9452_s6 + $0x17e0] sm:$0xf] }
 0x159   : > { %798 = vst [vmem:[%s9456_s7 + $0x4fc] sm:$0xf] %v797_v63  ;;  %v925_v63 = vld [vmem:[%s9452_s6 + $0x17f0] sm:$0xf] }
 0x15a   : > { %800 = vst [vmem:[%s9456_s7 + $0x500] sm:$0xf] %v799_v0  ;;  %v927_v0 = vld [vmem:[%s9452_s6 + $0x1800] sm:$0xf] }
 0x15b   : > { %802 = vst [vmem:[%s9456_s7 + $0x504] sm:$0xf] %v801_v1  ;;  %v929_v1 = vld [vmem:[%s9452_s6 + $0x1810] sm:$0xf] }
 0x15c   : > { %804 = vst [vmem:[%s9456_s7 + $0x508] sm:$0xf] %v803_v2  ;;  %v931_v2 = vld [vmem:[%s9452_s6 + $0x1820] sm:$0xf] }
 0x15d   : > { %806 = vst [vmem:[%s9456_s7 + $0x50c] sm:$0xf] %v805_v3  ;;  %v933_v3 = vld [vmem:[%s9452_s6 + $0x1830] sm:$0xf] }
 0x15e   : > { %808 = vst [vmem:[%s9456_s7 + $0x510] sm:$0xf] %v807_v4  ;;  %v935_v4 = vld [vmem:[%s9452_s6 + $0x1840] sm:$0xf] }
 0x15f   : > { %810 = vst [vmem:[%s9456_s7 + $0x514] sm:$0xf] %v809_v5  ;;  %v937_v5 = vld [vmem:[%s9452_s6 + $0x1850] sm:$0xf] }
 0x160   : > { %812 = vst [vmem:[%s9456_s7 + $0x518] sm:$0xf] %v811_v6  ;;  %v939_v6 = vld [vmem:[%s9452_s6 + $0x1860] sm:$0xf] }
 0x161   : > { %814 = vst [vmem:[%s9456_s7 + $0x51c] sm:$0xf] %v813_v7  ;;  %v941_v7 = vld [vmem:[%s9452_s6 + $0x1870] sm:$0xf] }
 0x162   : > { %816 = vst [vmem:[%s9456_s7 + $0x520] sm:$0xf] %v815_v8  ;;  %v943_v8 = vld [vmem:[%s9452_s6 + $0x1880] sm:$0xf] }
 0x163   : > { %818 = vst [vmem:[%s9456_s7 + $0x524] sm:$0xf] %v817_v9  ;;  %v945_v9 = vld [vmem:[%s9452_s6 + $0x1890] sm:$0xf] }
 0x164   : > { %820 = vst [vmem:[%s9456_s7 + $0x528] sm:$0xf] %v819_v10  ;;  %v947_v10 = vld [vmem:[%s9452_s6 + $0x18a0] sm:$0xf] }
 0x165   : > { %822 = vst [vmem:[%s9456_s7 + $0x52c] sm:$0xf] %v821_v11  ;;  %v949_v11 = vld [vmem:[%s9452_s6 + $0x18b0] sm:$0xf] }
 0x166   : > { %824 = vst [vmem:[%s9456_s7 + $0x530] sm:$0xf] %v823_v12  ;;  %v951_v12 = vld [vmem:[%s9452_s6 + $0x18c0] sm:$0xf] }
 0x167   : > { %826 = vst [vmem:[%s9456_s7 + $0x534] sm:$0xf] %v825_v13  ;;  %v953_v13 = vld [vmem:[%s9452_s6 + $0x18d0] sm:$0xf] }
 0x168   : > { %828 = vst [vmem:[%s9456_s7 + $0x538] sm:$0xf] %v827_v14  ;;  %v955_v14 = vld [vmem:[%s9452_s6 + $0x18e0] sm:$0xf] }
 0x169   : > { %830 = vst [vmem:[%s9456_s7 + $0x53c] sm:$0xf] %v829_v15  ;;  %v957_v15 = vld [vmem:[%s9452_s6 + $0x18f0] sm:$0xf] }
 0x16a   : > { %832 = vst [vmem:[%s9456_s7 + $0x540] sm:$0xf] %v831_v16  ;;  %v959_v16 = vld [vmem:[%s9452_s6 + $0x1900] sm:$0xf] }
 0x16b   : > { %834 = vst [vmem:[%s9456_s7 + $0x544] sm:$0xf] %v833_v17  ;;  %v961_v17 = vld [vmem:[%s9452_s6 + $0x1910] sm:$0xf] }
 0x16c   : > { %836 = vst [vmem:[%s9456_s7 + $0x548] sm:$0xf] %v835_v18  ;;  %v963_v18 = vld [vmem:[%s9452_s6 + $0x1920] sm:$0xf] }
 0x16d   : > { %838 = vst [vmem:[%s9456_s7 + $0x54c] sm:$0xf] %v837_v19  ;;  %v965_v19 = vld [vmem:[%s9452_s6 + $0x1930] sm:$0xf] }
 0x16e   : > { %840 = vst [vmem:[%s9456_s7 + $0x550] sm:$0xf] %v839_v20  ;;  %v967_v20 = vld [vmem:[%s9452_s6 + $0x1940] sm:$0xf] }
 0x16f   : > { %842 = vst [vmem:[%s9456_s7 + $0x554] sm:$0xf] %v841_v21  ;;  %v969_v21 = vld [vmem:[%s9452_s6 + $0x1950] sm:$0xf] }
 0x170   : > { %844 = vst [vmem:[%s9456_s7 + $0x558] sm:$0xf] %v843_v22  ;;  %v971_v22 = vld [vmem:[%s9452_s6 + $0x1960] sm:$0xf] }
 0x171   : > { %846 = vst [vmem:[%s9456_s7 + $0x55c] sm:$0xf] %v845_v23  ;;  %v973_v23 = vld [vmem:[%s9452_s6 + $0x1970] sm:$0xf] }
 0x172   : > { %848 = vst [vmem:[%s9456_s7 + $0x560] sm:$0xf] %v847_v24  ;;  %v975_v24 = vld [vmem:[%s9452_s6 + $0x1980] sm:$0xf] }
 0x173   : > { %850 = vst [vmem:[%s9456_s7 + $0x564] sm:$0xf] %v849_v25  ;;  %v977_v25 = vld [vmem:[%s9452_s6 + $0x1990] sm:$0xf] }
 0x174   : > { %852 = vst [vmem:[%s9456_s7 + $0x568] sm:$0xf] %v851_v26  ;;  %v979_v26 = vld [vmem:[%s9452_s6 + $0x19a0] sm:$0xf] }
 0x175   : > { %854 = vst [vmem:[%s9456_s7 + $0x56c] sm:$0xf] %v853_v27  ;;  %v981_v27 = vld [vmem:[%s9452_s6 + $0x19b0] sm:$0xf] }
 0x176   : > { %856 = vst [vmem:[%s9456_s7 + $0x570] sm:$0xf] %v855_v28  ;;  %v983_v28 = vld [vmem:[%s9452_s6 + $0x19c0] sm:$0xf] }
 0x177   : > { %858 = vst [vmem:[%s9456_s7 + $0x574] sm:$0xf] %v857_v29  ;;  %v985_v29 = vld [vmem:[%s9452_s6 + $0x19d0] sm:$0xf] }
 0x178   : > { %860 = vst [vmem:[%s9456_s7 + $0x578] sm:$0xf] %v859_v30  ;;  %v987_v30 = vld [vmem:[%s9452_s6 + $0x19e0] sm:$0xf] }
 0x179   : > { %862 = vst [vmem:[%s9456_s7 + $0x57c] sm:$0xf] %v861_v31  ;;  %v989_v31 = vld [vmem:[%s9452_s6 + $0x19f0] sm:$0xf] }
 0x17a   : > { %864 = vst [vmem:[%s9456_s7 + $0x580] sm:$0xf] %v863_v32  ;;  %v991_v32 = vld [vmem:[%s9452_s6 + $0x1a00] sm:$0xf] }
 0x17b   : > { %866 = vst [vmem:[%s9456_s7 + $0x584] sm:$0xf] %v865_v33  ;;  %v993_v33 = vld [vmem:[%s9452_s6 + $0x1a10] sm:$0xf] }
 0x17c   : > { %868 = vst [vmem:[%s9456_s7 + $0x588] sm:$0xf] %v867_v34  ;;  %v995_v34 = vld [vmem:[%s9452_s6 + $0x1a20] sm:$0xf] }
 0x17d   : > { %870 = vst [vmem:[%s9456_s7 + $0x58c] sm:$0xf] %v869_v35  ;;  %v997_v35 = vld [vmem:[%s9452_s6 + $0x1a30] sm:$0xf] }
 0x17e   : > { %872 = vst [vmem:[%s9456_s7 + $0x590] sm:$0xf] %v871_v36  ;;  %v999_v36 = vld [vmem:[%s9452_s6 + $0x1a40] sm:$0xf] }
 0x17f   : > { %874 = vst [vmem:[%s9456_s7 + $0x594] sm:$0xf] %v873_v37  ;;  %v1001_v37 = vld [vmem:[%s9452_s6 + $0x1a50] sm:$0xf] }
 0x180   : > { %876 = vst [vmem:[%s9456_s7 + $0x598] sm:$0xf] %v875_v38  ;;  %v1003_v38 = vld [vmem:[%s9452_s6 + $0x1a60] sm:$0xf] }
 0x181   : > { %878 = vst [vmem:[%s9456_s7 + $0x59c] sm:$0xf] %v877_v39  ;;  %v1005_v39 = vld [vmem:[%s9452_s6 + $0x1a70] sm:$0xf] }
 0x182   : > { %880 = vst [vmem:[%s9456_s7 + $0x5a0] sm:$0xf] %v879_v40  ;;  %v1007_v40 = vld [vmem:[%s9452_s6 + $0x1a80] sm:$0xf] }
 0x183   : > { %882 = vst [vmem:[%s9456_s7 + $0x5a4] sm:$0xf] %v881_v41  ;;  %v1009_v41 = vld [vmem:[%s9452_s6 + $0x1a90] sm:$0xf] }
 0x184   : > { %884 = vst [vmem:[%s9456_s7 + $0x5a8] sm:$0xf] %v883_v42  ;;  %v1011_v42 = vld [vmem:[%s9452_s6 + $0x1aa0] sm:$0xf] }
 0x185   : > { %886 = vst [vmem:[%s9456_s7 + $0x5ac] sm:$0xf] %v885_v43  ;;  %v1013_v43 = vld [vmem:[%s9452_s6 + $0x1ab0] sm:$0xf] }
 0x186   : > { %888 = vst [vmem:[%s9456_s7 + $0x5b0] sm:$0xf] %v887_v44  ;;  %v1015_v44 = vld [vmem:[%s9452_s6 + $0x1ac0] sm:$0xf] }
 0x187   : > { %890 = vst [vmem:[%s9456_s7 + $0x5b4] sm:$0xf] %v889_v45  ;;  %v1017_v45 = vld [vmem:[%s9452_s6 + $0x1ad0] sm:$0xf] }
 0x188   : > { %892 = vst [vmem:[%s9456_s7 + $0x5b8] sm:$0xf] %v891_v46  ;;  %v1019_v46 = vld [vmem:[%s9452_s6 + $0x1ae0] sm:$0xf] }
 0x189   : > { %894 = vst [vmem:[%s9456_s7 + $0x5bc] sm:$0xf] %v893_v47  ;;  %v1021_v47 = vld [vmem:[%s9452_s6 + $0x1af0] sm:$0xf] }
 0x18a   : > { %896 = vst [vmem:[%s9456_s7 + $0x5c0] sm:$0xf] %v895_v48  ;;  %v1023_v48 = vld [vmem:[%s9452_s6 + $0x1b00] sm:$0xf] }
 0x18b   : > { %898 = vst [vmem:[%s9456_s7 + $0x5c4] sm:$0xf] %v897_v49  ;;  %v1025_v49 = vld [vmem:[%s9452_s6 + $0x1b10] sm:$0xf] }
 0x18c   : > { %900 = vst [vmem:[%s9456_s7 + $0x5c8] sm:$0xf] %v899_v50  ;;  %v1027_v50 = vld [vmem:[%s9452_s6 + $0x1b20] sm:$0xf] }
 0x18d   : > { %902 = vst [vmem:[%s9456_s7 + $0x5cc] sm:$0xf] %v901_v51  ;;  %v1029_v51 = vld [vmem:[%s9452_s6 + $0x1b30] sm:$0xf] }
 0x18e   : > { %904 = vst [vmem:[%s9456_s7 + $0x5d0] sm:$0xf] %v903_v52  ;;  %v1031_v52 = vld [vmem:[%s9452_s6 + $0x1b40] sm:$0xf] }
 0x18f   : > { %906 = vst [vmem:[%s9456_s7 + $0x5d4] sm:$0xf] %v905_v53  ;;  %v1033_v53 = vld [vmem:[%s9452_s6 + $0x1b50] sm:$0xf] }
 0x190   : > { %908 = vst [vmem:[%s9456_s7 + $0x5d8] sm:$0xf] %v907_v54  ;;  %v1035_v54 = vld [vmem:[%s9452_s6 + $0x1b60] sm:$0xf] }
 0x191   : > { %910 = vst [vmem:[%s9456_s7 + $0x5dc] sm:$0xf] %v909_v55  ;;  %v1037_v55 = vld [vmem:[%s9452_s6 + $0x1b70] sm:$0xf] }
 0x192   : > { %912 = vst [vmem:[%s9456_s7 + $0x5e0] sm:$0xf] %v911_v56  ;;  %v1039_v56 = vld [vmem:[%s9452_s6 + $0x1b80] sm:$0xf] }
 0x193   : > { %914 = vst [vmem:[%s9456_s7 + $0x5e4] sm:$0xf] %v913_v57  ;;  %v1041_v57 = vld [vmem:[%s9452_s6 + $0x1b90] sm:$0xf] }
 0x194   : > { %916 = vst [vmem:[%s9456_s7 + $0x5e8] sm:$0xf] %v915_v58  ;;  %v1043_v58 = vld [vmem:[%s9452_s6 + $0x1ba0] sm:$0xf] }
 0x195   : > { %918 = vst [vmem:[%s9456_s7 + $0x5ec] sm:$0xf] %v917_v59  ;;  %v1045_v59 = vld [vmem:[%s9452_s6 + $0x1bb0] sm:$0xf] }
 0x196   : > { %920 = vst [vmem:[%s9456_s7 + $0x5f0] sm:$0xf] %v919_v60  ;;  %v1047_v60 = vld [vmem:[%s9452_s6 + $0x1bc0] sm:$0xf] }
 0x197   : > { %922 = vst [vmem:[%s9456_s7 + $0x5f4] sm:$0xf] %v921_v61  ;;  %v1049_v61 = vld [vmem:[%s9452_s6 + $0x1bd0] sm:$0xf] }
 0x198   : > { %924 = vst [vmem:[%s9456_s7 + $0x5f8] sm:$0xf] %v923_v62  ;;  %v1051_v62 = vld [vmem:[%s9452_s6 + $0x1be0] sm:$0xf] }
 0x199   : > { %926 = vst [vmem:[%s9456_s7 + $0x5fc] sm:$0xf] %v925_v63  ;;  %v1053_v63 = vld [vmem:[%s9452_s6 + $0x1bf0] sm:$0xf] }
 0x19a   : > { %928 = vst [vmem:[%s9456_s7 + $0x600] sm:$0xf] %v927_v0  ;;  %v1055_v0 = vld [vmem:[%s9452_s6 + $0x1c00] sm:$0xf] }
 0x19b   : > { %930 = vst [vmem:[%s9456_s7 + $0x604] sm:$0xf] %v929_v1  ;;  %v1057_v1 = vld [vmem:[%s9452_s6 + $0x1c10] sm:$0xf] }
 0x19c   : > { %932 = vst [vmem:[%s9456_s7 + $0x608] sm:$0xf] %v931_v2  ;;  %v1059_v2 = vld [vmem:[%s9452_s6 + $0x1c20] sm:$0xf] }
 0x19d   : > { %934 = vst [vmem:[%s9456_s7 + $0x60c] sm:$0xf] %v933_v3  ;;  %v1061_v3 = vld [vmem:[%s9452_s6 + $0x1c30] sm:$0xf] }
 0x19e   : > { %936 = vst [vmem:[%s9456_s7 + $0x610] sm:$0xf] %v935_v4  ;;  %v1063_v4 = vld [vmem:[%s9452_s6 + $0x1c40] sm:$0xf] }
 0x19f   : > { %938 = vst [vmem:[%s9456_s7 + $0x614] sm:$0xf] %v937_v5  ;;  %v1065_v5 = vld [vmem:[%s9452_s6 + $0x1c50] sm:$0xf] }
 0x1a0   : > { %940 = vst [vmem:[%s9456_s7 + $0x618] sm:$0xf] %v939_v6  ;;  %v1067_v6 = vld [vmem:[%s9452_s6 + $0x1c60] sm:$0xf] }
 0x1a1   : > { %942 = vst [vmem:[%s9456_s7 + $0x61c] sm:$0xf] %v941_v7  ;;  %v1069_v7 = vld [vmem:[%s9452_s6 + $0x1c70] sm:$0xf] }
 0x1a2   : > { %944 = vst [vmem:[%s9456_s7 + $0x620] sm:$0xf] %v943_v8  ;;  %v1071_v8 = vld [vmem:[%s9452_s6 + $0x1c80] sm:$0xf] }
 0x1a3   : > { %946 = vst [vmem:[%s9456_s7 + $0x624] sm:$0xf] %v945_v9  ;;  %v1073_v9 = vld [vmem:[%s9452_s6 + $0x1c90] sm:$0xf] }
 0x1a4   : > { %948 = vst [vmem:[%s9456_s7 + $0x628] sm:$0xf] %v947_v10  ;;  %v1075_v10 = vld [vmem:[%s9452_s6 + $0x1ca0] sm:$0xf] }
 0x1a5   : > { %950 = vst [vmem:[%s9456_s7 + $0x62c] sm:$0xf] %v949_v11  ;;  %v1077_v11 = vld [vmem:[%s9452_s6 + $0x1cb0] sm:$0xf] }
 0x1a6   : > { %952 = vst [vmem:[%s9456_s7 + $0x630] sm:$0xf] %v951_v12  ;;  %v1079_v12 = vld [vmem:[%s9452_s6 + $0x1cc0] sm:$0xf] }
 0x1a7   : > { %954 = vst [vmem:[%s9456_s7 + $0x634] sm:$0xf] %v953_v13  ;;  %v1081_v13 = vld [vmem:[%s9452_s6 + $0x1cd0] sm:$0xf] }
 0x1a8   : > { %956 = vst [vmem:[%s9456_s7 + $0x638] sm:$0xf] %v955_v14  ;;  %v1083_v14 = vld [vmem:[%s9452_s6 + $0x1ce0] sm:$0xf] }
 0x1a9   : > { %958 = vst [vmem:[%s9456_s7 + $0x63c] sm:$0xf] %v957_v15  ;;  %v1085_v15 = vld [vmem:[%s9452_s6 + $0x1cf0] sm:$0xf] }
 0x1aa   : > { %960 = vst [vmem:[%s9456_s7 + $0x640] sm:$0xf] %v959_v16  ;;  %v1087_v16 = vld [vmem:[%s9452_s6 + $0x1d00] sm:$0xf] }
 0x1ab   : > { %962 = vst [vmem:[%s9456_s7 + $0x644] sm:$0xf] %v961_v17  ;;  %v1089_v17 = vld [vmem:[%s9452_s6 + $0x1d10] sm:$0xf] }
 0x1ac   : > { %964 = vst [vmem:[%s9456_s7 + $0x648] sm:$0xf] %v963_v18  ;;  %v1091_v18 = vld [vmem:[%s9452_s6 + $0x1d20] sm:$0xf] }
 0x1ad   : > { %966 = vst [vmem:[%s9456_s7 + $0x64c] sm:$0xf] %v965_v19  ;;  %v1093_v19 = vld [vmem:[%s9452_s6 + $0x1d30] sm:$0xf] }
 0x1ae   : > { %968 = vst [vmem:[%s9456_s7 + $0x650] sm:$0xf] %v967_v20  ;;  %v1095_v20 = vld [vmem:[%s9452_s6 + $0x1d40] sm:$0xf] }
 0x1af   : > { %970 = vst [vmem:[%s9456_s7 + $0x654] sm:$0xf] %v969_v21  ;;  %v1097_v21 = vld [vmem:[%s9452_s6 + $0x1d50] sm:$0xf] }
 0x1b0   : > { %972 = vst [vmem:[%s9456_s7 + $0x658] sm:$0xf] %v971_v22  ;;  %v1099_v22 = vld [vmem:[%s9452_s6 + $0x1d60] sm:$0xf] }
 0x1b1   : > { %974 = vst [vmem:[%s9456_s7 + $0x65c] sm:$0xf] %v973_v23  ;;  %v1101_v23 = vld [vmem:[%s9452_s6 + $0x1d70] sm:$0xf] }
 0x1b2   : > { %976 = vst [vmem:[%s9456_s7 + $0x660] sm:$0xf] %v975_v24  ;;  %v1103_v24 = vld [vmem:[%s9452_s6 + $0x1d80] sm:$0xf] }
 0x1b3   : > { %978 = vst [vmem:[%s9456_s7 + $0x664] sm:$0xf] %v977_v25  ;;  %v1105_v25 = vld [vmem:[%s9452_s6 + $0x1d90] sm:$0xf] }
 0x1b4   : > { %980 = vst [vmem:[%s9456_s7 + $0x668] sm:$0xf] %v979_v26  ;;  %v1107_v26 = vld [vmem:[%s9452_s6 + $0x1da0] sm:$0xf] }
 0x1b5   : > { %982 = vst [vmem:[%s9456_s7 + $0x66c] sm:$0xf] %v981_v27  ;;  %v1109_v27 = vld [vmem:[%s9452_s6 + $0x1db0] sm:$0xf] }
 0x1b6   : > { %984 = vst [vmem:[%s9456_s7 + $0x670] sm:$0xf] %v983_v28  ;;  %v1111_v28 = vld [vmem:[%s9452_s6 + $0x1dc0] sm:$0xf] }
 0x1b7   : > { %986 = vst [vmem:[%s9456_s7 + $0x674] sm:$0xf] %v985_v29  ;;  %v1113_v29 = vld [vmem:[%s9452_s6 + $0x1dd0] sm:$0xf] }
 0x1b8   : > { %988 = vst [vmem:[%s9456_s7 + $0x678] sm:$0xf] %v987_v30  ;;  %v1115_v30 = vld [vmem:[%s9452_s6 + $0x1de0] sm:$0xf] }
 0x1b9   : > { %990 = vst [vmem:[%s9456_s7 + $0x67c] sm:$0xf] %v989_v31  ;;  %v1117_v31 = vld [vmem:[%s9452_s6 + $0x1df0] sm:$0xf] }
 0x1ba   : > { %992 = vst [vmem:[%s9456_s7 + $0x680] sm:$0xf] %v991_v32  ;;  %v1119_v32 = vld [vmem:[%s9452_s6 + $0x1e00] sm:$0xf] }
 0x1bb   : > { %994 = vst [vmem:[%s9456_s7 + $0x684] sm:$0xf] %v993_v33  ;;  %v1121_v33 = vld [vmem:[%s9452_s6 + $0x1e10] sm:$0xf] }
 0x1bc   : > { %996 = vst [vmem:[%s9456_s7 + $0x688] sm:$0xf] %v995_v34  ;;  %v1123_v34 = vld [vmem:[%s9452_s6 + $0x1e20] sm:$0xf] }
 0x1bd   : > { %998 = vst [vmem:[%s9456_s7 + $0x68c] sm:$0xf] %v997_v35  ;;  %v1125_v35 = vld [vmem:[%s9452_s6 + $0x1e30] sm:$0xf] }
 0x1be   : > { %1000 = vst [vmem:[%s9456_s7 + $0x690] sm:$0xf] %v999_v36  ;;  %v1127_v36 = vld [vmem:[%s9452_s6 + $0x1e40] sm:$0xf] }
 0x1bf   : > { %1002 = vst [vmem:[%s9456_s7 + $0x694] sm:$0xf] %v1001_v37  ;;  %v1129_v37 = vld [vmem:[%s9452_s6 + $0x1e50] sm:$0xf] }
 0x1c0   : > { %1004 = vst [vmem:[%s9456_s7 + $0x698] sm:$0xf] %v1003_v38  ;;  %v1131_v38 = vld [vmem:[%s9452_s6 + $0x1e60] sm:$0xf] }
 0x1c1   : > { %1006 = vst [vmem:[%s9456_s7 + $0x69c] sm:$0xf] %v1005_v39  ;;  %v1133_v39 = vld [vmem:[%s9452_s6 + $0x1e70] sm:$0xf] }
 0x1c2   : > { %1008 = vst [vmem:[%s9456_s7 + $0x6a0] sm:$0xf] %v1007_v40  ;;  %v1135_v40 = vld [vmem:[%s9452_s6 + $0x1e80] sm:$0xf] }
 0x1c3   : > { %1010 = vst [vmem:[%s9456_s7 + $0x6a4] sm:$0xf] %v1009_v41  ;;  %v1137_v41 = vld [vmem:[%s9452_s6 + $0x1e90] sm:$0xf] }
 0x1c4   : > { %1012 = vst [vmem:[%s9456_s7 + $0x6a8] sm:$0xf] %v1011_v42  ;;  %v1139_v42 = vld [vmem:[%s9452_s6 + $0x1ea0] sm:$0xf] }
 0x1c5   : > { %1014 = vst [vmem:[%s9456_s7 + $0x6ac] sm:$0xf] %v1013_v43  ;;  %v1141_v43 = vld [vmem:[%s9452_s6 + $0x1eb0] sm:$0xf] }
 0x1c6   : > { %1016 = vst [vmem:[%s9456_s7 + $0x6b0] sm:$0xf] %v1015_v44  ;;  %v1143_v44 = vld [vmem:[%s9452_s6 + $0x1ec0] sm:$0xf] }
 0x1c7   : > { %1018 = vst [vmem:[%s9456_s7 + $0x6b4] sm:$0xf] %v1017_v45  ;;  %v1145_v45 = vld [vmem:[%s9452_s6 + $0x1ed0] sm:$0xf] }
 0x1c8   : > { %1020 = vst [vmem:[%s9456_s7 + $0x6b8] sm:$0xf] %v1019_v46  ;;  %v1147_v46 = vld [vmem:[%s9452_s6 + $0x1ee0] sm:$0xf] }
 0x1c9   : > { %1022 = vst [vmem:[%s9456_s7 + $0x6bc] sm:$0xf] %v1021_v47  ;;  %v1149_v47 = vld [vmem:[%s9452_s6 + $0x1ef0] sm:$0xf] }
 0x1ca   : > { %1024 = vst [vmem:[%s9456_s7 + $0x6c0] sm:$0xf] %v1023_v48  ;;  %v1151_v48 = vld [vmem:[%s9452_s6 + $0x1f00] sm:$0xf] }
 0x1cb   : > { %1026 = vst [vmem:[%s9456_s7 + $0x6c4] sm:$0xf] %v1025_v49  ;;  %v1153_v49 = vld [vmem:[%s9452_s6 + $0x1f10] sm:$0xf] }
 0x1cc   : > { %1028 = vst [vmem:[%s9456_s7 + $0x6c8] sm:$0xf] %v1027_v50  ;;  %v1155_v50 = vld [vmem:[%s9452_s6 + $0x1f20] sm:$0xf] }
 0x1cd   : > { %1030 = vst [vmem:[%s9456_s7 + $0x6cc] sm:$0xf] %v1029_v51  ;;  %v1157_v51 = vld [vmem:[%s9452_s6 + $0x1f30] sm:$0xf] }
 0x1ce   : > { %1032 = vst [vmem:[%s9456_s7 + $0x6d0] sm:$0xf] %v1031_v52  ;;  %v1159_v52 = vld [vmem:[%s9452_s6 + $0x1f40] sm:$0xf] }
 0x1cf   : > { %1034 = vst [vmem:[%s9456_s7 + $0x6d4] sm:$0xf] %v1033_v53  ;;  %v1161_v53 = vld [vmem:[%s9452_s6 + $0x1f50] sm:$0xf] }
 0x1d0   : > { %1036 = vst [vmem:[%s9456_s7 + $0x6d8] sm:$0xf] %v1035_v54  ;;  %v1163_v54 = vld [vmem:[%s9452_s6 + $0x1f60] sm:$0xf] }
 0x1d1   : > { %1038 = vst [vmem:[%s9456_s7 + $0x6dc] sm:$0xf] %v1037_v55  ;;  %v1165_v55 = vld [vmem:[%s9452_s6 + $0x1f70] sm:$0xf] }
 0x1d2   : > { %1040 = vst [vmem:[%s9456_s7 + $0x6e0] sm:$0xf] %v1039_v56  ;;  %v1167_v56 = vld [vmem:[%s9452_s6 + $0x1f80] sm:$0xf] }
 0x1d3   : > { %1042 = vst [vmem:[%s9456_s7 + $0x6e4] sm:$0xf] %v1041_v57  ;;  %v1169_v57 = vld [vmem:[%s9452_s6 + $0x1f90] sm:$0xf] }
 0x1d4   : > { %1044 = vst [vmem:[%s9456_s7 + $0x6e8] sm:$0xf] %v1043_v58  ;;  %v1171_v58 = vld [vmem:[%s9452_s6 + $0x1fa0] sm:$0xf] }
 0x1d5   : > { %1046 = vst [vmem:[%s9456_s7 + $0x6ec] sm:$0xf] %v1045_v59  ;;  %v1173_v59 = vld [vmem:[%s9452_s6 + $0x1fb0] sm:$0xf] }
 0x1d6   : > { %1048 = vst [vmem:[%s9456_s7 + $0x6f0] sm:$0xf] %v1047_v60  ;;  %v1175_v60 = vld [vmem:[%s9452_s6 + $0x1fc0] sm:$0xf] }
 0x1d7   : > { %1050 = vst [vmem:[%s9456_s7 + $0x6f4] sm:$0xf] %v1049_v61  ;;  %v1177_v61 = vld [vmem:[%s9452_s6 + $0x1fd0] sm:$0xf] }
 0x1d8   : > { %1052 = vst [vmem:[%s9456_s7 + $0x6f8] sm:$0xf] %v1051_v62  ;;  %v1179_v62 = vld [vmem:[%s9452_s6 + $0x1fe0] sm:$0xf] }
 0x1d9   : > { %1054 = vst [vmem:[%s9456_s7 + $0x6fc] sm:$0xf] %v1053_v63  ;;  %v1181_v63 = vld [vmem:[%s9452_s6 + $0x1ff0] sm:$0xf] }
 0x1da   : > { %1056 = vst [vmem:[%s9456_s7 + $0x700] sm:$0xf] %v1055_v0 }
 0x1db   : > { %1058 = vst [vmem:[%s9456_s7 + $0x704] sm:$0xf] %v1057_v1 }
 0x1dc   : > { %1060 = vst [vmem:[%s9456_s7 + $0x708] sm:$0xf] %v1059_v2 }
 0x1dd   : > { %1062 = vst [vmem:[%s9456_s7 + $0x70c] sm:$0xf] %v1061_v3 }
 0x1de   : > { %1064 = vst [vmem:[%s9456_s7 + $0x710] sm:$0xf] %v1063_v4 }
 0x1df   : > { %1066 = vst [vmem:[%s9456_s7 + $0x714] sm:$0xf] %v1065_v5 }
 0x1e0   : > { %1068 = vst [vmem:[%s9456_s7 + $0x718] sm:$0xf] %v1067_v6 }
 0x1e1   : > { %1070 = vst [vmem:[%s9456_s7 + $0x71c] sm:$0xf] %v1069_v7 }
 0x1e2   : > { %1072 = vst [vmem:[%s9456_s7 + $0x720] sm:$0xf] %v1071_v8 }
 0x1e3   : > { %1074 = vst [vmem:[%s9456_s7 + $0x724] sm:$0xf] %v1073_v9 }
 0x1e4   : > { %1076 = vst [vmem:[%s9456_s7 + $0x728] sm:$0xf] %v1075_v10 }
 0x1e5   : > { %1078 = vst [vmem:[%s9456_s7 + $0x72c] sm:$0xf] %v1077_v11 }
 0x1e6   : > { %1080 = vst [vmem:[%s9456_s7 + $0x730] sm:$0xf] %v1079_v12 }
 0x1e7   : > { %1082 = vst [vmem:[%s9456_s7 + $0x734] sm:$0xf] %v1081_v13 }
 0x1e8   : > { %1084 = vst [vmem:[%s9456_s7 + $0x738] sm:$0xf] %v1083_v14 }
 0x1e9   : > { %1086 = vst [vmem:[%s9456_s7 + $0x73c] sm:$0xf] %v1085_v15 }
 0x1ea   : > { %1088 = vst [vmem:[%s9456_s7 + $0x740] sm:$0xf] %v1087_v16 }
 0x1eb   : > { %1090 = vst [vmem:[%s9456_s7 + $0x744] sm:$0xf] %v1089_v17 }
 0x1ec   : > { %1092 = vst [vmem:[%s9456_s7 + $0x748] sm:$0xf] %v1091_v18 }
 0x1ed   : > { %1094 = vst [vmem:[%s9456_s7 + $0x74c] sm:$0xf] %v1093_v19 }
 0x1ee   : > { %1096 = vst [vmem:[%s9456_s7 + $0x750] sm:$0xf] %v1095_v20 }
 0x1ef   : > { %1098 = vst [vmem:[%s9456_s7 + $0x754] sm:$0xf] %v1097_v21 }
 0x1f0   : > { %1100 = vst [vmem:[%s9456_s7 + $0x758] sm:$0xf] %v1099_v22 }
 0x1f1   : > { %1102 = vst [vmem:[%s9456_s7 + $0x75c] sm:$0xf] %v1101_v23 }
 0x1f2   : > { %1104 = vst [vmem:[%s9456_s7 + $0x760] sm:$0xf] %v1103_v24 }
 0x1f3   : > { %1106 = vst [vmem:[%s9456_s7 + $0x764] sm:$0xf] %v1105_v25 }
 0x1f4   : > { %1108 = vst [vmem:[%s9456_s7 + $0x768] sm:$0xf] %v1107_v26 }
 0x1f5   : > { %1110 = vst [vmem:[%s9456_s7 + $0x76c] sm:$0xf] %v1109_v27 }
 0x1f6   : > { %1112 = vst [vmem:[%s9456_s7 + $0x770] sm:$0xf] %v1111_v28 }
 0x1f7   : > { %1114 = vst [vmem:[%s9456_s7 + $0x774] sm:$0xf] %v1113_v29 }
 0x1f8   : > { %1116 = vst [vmem:[%s9456_s7 + $0x778] sm:$0xf] %v1115_v30 }
 0x1f9   : > { %1118 = vst [vmem:[%s9456_s7 + $0x77c] sm:$0xf] %v1117_v31 }
 0x1fa   : > { %1120 = vst [vmem:[%s9456_s7 + $0x780] sm:$0xf] %v1119_v32 }
 0x1fb   : > { %1122 = vst [vmem:[%s9456_s7 + $0x784] sm:$0xf] %v1121_v33 }
 0x1fc   : > { %1124 = vst [vmem:[%s9456_s7 + $0x788] sm:$0xf] %v1123_v34 }
 0x1fd   : > { %1126 = vst [vmem:[%s9456_s7 + $0x78c] sm:$0xf] %v1125_v35 }
 0x1fe   : > { %1128 = vst [vmem:[%s9456_s7 + $0x790] sm:$0xf] %v1127_v36 }
 0x1ff   : > { %1130 = vst [vmem:[%s9456_s7 + $0x794] sm:$0xf] %v1129_v37 }
 0x200   : > { %1132 = vst [vmem:[%s9456_s7 + $0x798] sm:$0xf] %v1131_v38 }
 0x201   : > { %1134 = vst [vmem:[%s9456_s7 + $0x79c] sm:$0xf] %v1133_v39 }
 0x202   : > { %1136 = vst [vmem:[%s9456_s7 + $0x7a0] sm:$0xf] %v1135_v40 }
 0x203   : > { %1138 = vst [vmem:[%s9456_s7 + $0x7a4] sm:$0xf] %v1137_v41 }
 0x204   : > { %1140 = vst [vmem:[%s9456_s7 + $0x7a8] sm:$0xf] %v1139_v42 }
 0x205   : > { %1142 = vst [vmem:[%s9456_s7 + $0x7ac] sm:$0xf] %v1141_v43 }
 0x206   : > { %1144 = vst [vmem:[%s9456_s7 + $0x7b0] sm:$0xf] %v1143_v44 }
 0x207   : > { %1146 = vst [vmem:[%s9456_s7 + $0x7b4] sm:$0xf] %v1145_v45 }
 0x208   : > { %1148 = vst [vmem:[%s9456_s7 + $0x7b8] sm:$0xf] %v1147_v46 }
 0x209   : > { %1150 = vst [vmem:[%s9456_s7 + $0x7bc] sm:$0xf] %v1149_v47 }
 0x20a   : > { %1152 = vst [vmem:[%s9456_s7 + $0x7c0] sm:$0xf] %v1151_v48 }
 0x20b   : > { %1154 = vst [vmem:[%s9456_s7 + $0x7c4] sm:$0xf] %v1153_v49 }
 0x20c   : > { %1156 = vst [vmem:[%s9456_s7 + $0x7c8] sm:$0xf] %v1155_v50 }
 0x20d   : > { %1158 = vst [vmem:[%s9456_s7 + $0x7cc] sm:$0xf] %v1157_v51 }
 0x20e   : > { %1160 = vst [vmem:[%s9456_s7 + $0x7d0] sm:$0xf] %v1159_v52 }
 0x20f   : > { %1162 = vst [vmem:[%s9456_s7 + $0x7d4] sm:$0xf] %v1161_v53 }
 0x210   : > { %1164 = vst [vmem:[%s9456_s7 + $0x7d8] sm:$0xf] %v1163_v54 }
 0x211   : > { %1166 = vst [vmem:[%s9456_s7 + $0x7dc] sm:$0xf] %v1165_v55 }
 0x212   : > { %1168 = vst [vmem:[%s9456_s7 + $0x7e0] sm:$0xf] %v1167_v56 }
 0x213   : > { %1170 = vst [vmem:[%s9456_s7 + $0x7e4] sm:$0xf] %v1169_v57 }
 0x214   : > { %1172 = vst [vmem:[%s9456_s7 + $0x7e8] sm:$0xf] %v1171_v58 }
 0x215   : > { %1174 = vst [vmem:[%s9456_s7 + $0x7ec] sm:$0xf] %v1173_v59 }
 0x216   : > { %1176 = vst [vmem:[%s9456_s7 + $0x7f0] sm:$0xf] %v1175_v60 }
 0x217   : > { %1178 = vst [vmem:[%s9456_s7 + $0x7f4] sm:$0xf] %v1177_v61 }
 0x218   : > { %1180 = vst [vmem:[%s9456_s7 + $0x7f8] sm:$0xf] %v1179_v62 }
 0x219   : > { %1182 = vst [vmem:[%s9456_s7 + $0x7fc] sm:$0xf] %v1181_v63 }
 0x21a PF: > { %p7373_p11 = scmp.ge.s32.totalorder %s9354_s17, 1  ;;  %p4303_p12 = scmp.lt.s32.totalorder %s9354_s17, 9 }
 0x21c   : > { %p4304_p13 = pnand %p7373_p11, %p4303_p12 }
 0x21d   : > { %s4310_s8 = sand.u32 (!%p4304_p13), 1, %s9330_s11   ;;  %p4335_p0 = scmp.lt.s32.totalorder (!%p4304_p13), %s9342_s14, 1 }
 0x21e   : > { %4307 = sbr.rel (%p4304_p13) target bundleno = 1026 (0x402), region = 76  ;;  %s7374_s18 = sshll.u32 (!%p4304_p13), %s4310_s8, 11 }
 0x21f   : > { %s10483_s21 = scalar_lea.vmem (!%p4304_p13), [#allocation2], %s7374_s18  ;;  %s4332_s29 = sand.u32 (!%p4304_p13), 1, %s9322_s9  }
 0x220   : > { %s7375_s30 = sshll.u32 (!%p4304_p13), %s4332_s29, 3 }
 0x221   : > { %s4334_s3 = scalar_lea.vmem (!%p4304_p13), [#allocation3], %s7375_s30 }
 0x223   : > { %v9005_v0 = vld [vmem:[%s10483_s21 + $0x238] sm:$0xff]  ;;  %v9004_v4 = vld [vmem:[%s10483_s21 + $0x230] sm:$0xff]  ;;  %s4336_s11 = scalar_select %p4335_p0, %s9342_s14, 1  ;;  %v9003_v8 = vld [vmem:[%s10483_s21 + $0x228] sm:$0xff]  ;;  %vm7163_vm0 = vcmask 1040384  }
 0x224   : > { %v9013_v1 = vld [vmem:[%s10483_s21 + $0x278] sm:$0xff]  ;;  %5101 = vmatpush.bf16.msra.mxu0 %v9005_v0  ;;  %v9012_v5 = vld [vmem:[%s10483_s21 + $0x270] sm:$0xff]  ;;  %v9011_v9 = vld [vmem:[%s10483_s21 + $0x268] sm:$0xff]  ;;  %vm7216_vm5 = vsmask.f32 256  ;;  %s8914_s9 = sshll.u32 (%p9439_p9), %s9342_s14, 3 }
 0x225   : > { %v9021_v2 = vld [vmem:[%s10483_s21 + $0x2b8] sm:$0xff]  ;;  %5115 = vmatpush.bf16.msra.mxu1 %v9013_v1  ;;  %v9020_v6 = vld [vmem:[%s10483_s21 + $0x2b0] sm:$0xff]  ;;  %v9019_v10 = vld [vmem:[%s10483_s21 + $0x2a8] sm:$0xff]  ;;  %s9206_s22 = smul.u32 96, %s4336_s11  ;;  %s7229_s4 = sadd.s32 (%p9439_p9), %s9338_s13, %s8914_s9 }
 0x226   : > { %v9029_v3 = vld [vmem:[%s10483_s21 + $0x2f8] sm:$0xff]  ;;  %5129 = vmatpush.bf16.msra.mxu2 %v9021_v2  ;;  %v9028_v7 = vld [vmem:[%s10483_s21 + $0x2f0] sm:$0xff]  ;;  %v9027_v11 = vld [vmem:[%s10483_s21 + $0x2e8] sm:$0xff]  ;;  %s8915_s5 = sshll.u32 (%p9439_p9), %s7229_s4, 2 }
 0x227   : > { %5143 = vmatpush.bf16.msra.mxu3 %v9029_v3  ;;  %v9002_v12 = vld [vmem:[%s10483_s21 + $0x220] sm:$0xff]  ;;  %s10506_s26 = scalar_lea.vmem %s10871_s0, %s9206_s22  ;;  %v9001_v16 = vld [vmem:[%s10483_s21 + $0x218] sm:$0xff]  ;;  %v9000_v23 = vld [vmem:[%s10483_s21 + $0x210] sm:$0xff]  ;;  %s7231_s8 = scalar_lea.vmem (%p9439_p9), %s10873_s2, %s8915_s5 }
 0x228   : > { %5102 = vmatpush.bf16.msra.mxu0 %v9004_v4  ;;  %v9010_v13 = vld [vmem:[%s10483_s21 + $0x260] sm:$0xff]  ;;  %v9009_v17 = vld [vmem:[%s10483_s21 + $0x258] sm:$0xff]  ;;  %v7515_v22 = vld [vmem:[%s10506_s26 + $0x8] sm:$0xe] }
 0x229   : > { %5116 = vmatpush.bf16.msra.mxu1 %v9012_v5  ;;  %v9018_v14 = vld [vmem:[%s10483_s21 + $0x2a0] sm:$0xff]  ;;  %v9017_v18 = vld [vmem:[%s10483_s21 + $0x298] sm:$0xff]  ;;  %v8995_v24 = vld [vmem:[%s10506_s26 + $0x24] sm:$0x30] }
 0x22a   : > { %5130 = vmatpush.bf16.msra.mxu2 %v9020_v6  ;;  %v9026_v15 = vld [vmem:[%s10483_s21 + $0x2e0] sm:$0xff]  ;;  %v9025_v19 = vld [vmem:[%s10483_s21 + $0x2d8] sm:$0xff]  ;;  %v9008_v25 = vld [vmem:[%s10483_s21 + $0x250] sm:$0xff]  ;;  %v7516_v28 = vor.u32 %v8995_v24, %v7515_v22 }
 0x22b   : > { %5144 = vmatpush.bf16.msra.mxu3 %v9028_v7  ;;  %v7507_v20 = vld [vmem:[%s10506_s26] sm:$0xe]  ;;  %v9016_v26 = vld [vmem:[%s10483_s21 + $0x290] sm:$0xff]  ;;  %v8990_v29 = vld [vmem:[%s10506_s26 + $0x4] sm:$0xe] }
 0x22c   : > { %5103 = vmatpush.bf16.msra.mxu0 %v9003_v8  ;;  %v8994_v21 = vld [vmem:[%s10506_s26 + $0x1c] sm:$0x30]  ;;  %v9024_v30 = vld [vmem:[%s10483_s21 + $0x2d0] sm:$0xff]  ;;  %v7509_v31 = vld [vmem:[%s10506_s26 + $0x20] sm:$0x30]  ;;  %v4662_v40 = vshrl.u32 %v7516_v28, 16 }
 0x22d   : > { %5117 = vmatpush.bf16.msra.mxu1 %v9011_v9  ;;  %v7508_v27 = vor.u32 %v8994_v21, %v7507_v20  ;;  %v8991_v32 = vld [vmem:[%s10506_s26 + $0xc] sm:$0xe]  ;;  %v7512_v33 = vor.u32 %v8990_v29, %v7509_v31  ;;  %v4665_v41 = vshll.u32 %v7516_v28, 16  ;;  %v8998_v48 = vld [vmem:[%s10483_s21 + $0x200] sm:$0xff]  ;;  %v9037_v60 = vld [vmem:[%s10483_s21 + $0x338] sm:$0xff] }
 0x22e   : > { %5131 = vmatpush.bf16.msra.mxu2 %v9019_v10  ;;  %v7517_v34 = vld [vmem:[%s10506_s26 + $0x28] sm:$0x30]  ;;  %v9006_v49 = vld [vmem:[%s10483_s21 + $0x240] sm:$0xff]  ;;  %v4664_v52 = vrot.slane %v4662_v40, 1  ;;  %v9045_v61 = vld [vmem:[%s10483_s21 + $0x378] sm:$0xff] }
 0x22f   : > { %5145 = vmatpush.bf16.msra.mxu3 %v9027_v11  ;;  %v7520_v35 = vor.u32 %v8991_v32, %v7517_v34  ;;  %v8999_v36 = vld [vmem:[%s10483_s21 + $0x208] sm:$0xff]  ;;  %v4646_v38 = vshrl.u32 %v7508_v27, 16  ;;  %v4649_v39 = vshll.u32 %v7508_v27, 16  ;;  %v4654_v44 = vshrl.u32 %v7512_v33, 16  ;;  %v9014_v54 = vld [vmem:[%s10483_s21 + $0x280] sm:$0xff]  ;;  %v9053_v62 = vld [vmem:[%s10483_s21 + $0x3b8] sm:$0xff] }
 0x230   : > { %5104 = vmatpush.bf16.msra.mxu0 %v9002_v12  ;;  %v9007_v37 = vld [vmem:[%s10483_s21 + $0x248] sm:$0xff]  ;;  %v4657_v45 = vshll.u32 %v7512_v33, 16  ;;  %v4667_v53 = vrot.slane %v4665_v41, 2  ;;  %v9022_v55 = vld [vmem:[%s10483_s21 + $0x2c0] sm:$0xff]  ;;  %v9061_v63 = vld [vmem:[%s10483_s21 + $0x3f8] sm:$0xff] }
 0x231   : > { %5118 = vmatpush.bf16.msra.mxu1 %v9010_v13  ;;  %v9015_v42 = vld [vmem:[%s10483_s21 + $0x288] sm:$0xff]  ;;  %v4670_v46 = vshrl.u32 %v7520_v35, 16  ;;  %v4673_v47 = vshll.u32 %v7520_v35, 16  ;;  %v4648_v50 = vrot.slane %v4646_v38, 1  ;;  %v4651_v51 = vrot.slane %v4649_v39, 2  ;;  %v9036_v4 = vld [vmem:[%s10483_s21 + $0x330] sm:$0xff]  ;;  %vm7217_vm8 = vmand %vm7163_vm0, %vm7216_vm5 }
 0x232   : > { %5132 = vmatpush.bf16.msra.mxu2 %v9018_v14  ;;  %v9023_v43 = vld [vmem:[%s10483_s21 + $0x2c8] sm:$0xff]  ;;  %v4656_v56 = vrot.slane %v4654_v44, 1  ;;  %v4659_v57 = vrot.slane %v4657_v45, 2  ;;  %v4668_v1 = vor.u32 %v4667_v53, %v4664_v52  ;;  %v9044_v5 = vld [vmem:[%s10483_s21 + $0x370] sm:$0xff]  ;;  %v9034_v12 = vld [vmem:[%s10483_s21 + $0x320] sm:$0xff] }
 0x233   : > { %5146 = vmatpush.bf16.msra.mxu3 %v9026_v15  ;;  %v4672_v58 = vrot.slane %v4670_v46, 1  ;;  %v4675_v59 = vrot.slane %v4673_v47, 2  ;;  %v4652_v0 = vor.u32 %v4651_v51, %v4648_v50  ;;  %v9052_v6 = vld [vmem:[%s10483_s21 + $0x3b0] sm:$0xff]  ;;  %v9035_v8 = vld [vmem:[%s10483_s21 + $0x328] sm:$0xff]  ;;  %v9042_v13 = vld [vmem:[%s10483_s21 + $0x360] sm:$0xff] }
 0x234   : > { %5105 = vmatpush.bf16.msra.mxu0 %v9001_v16  ;;  %v4660_v2 = vor.u32 %v4659_v57, %v4656_v56  ;;  %v9060_v7 = vld [vmem:[%s10483_s21 + $0x3f0] sm:$0xff]  ;;  %v9043_v9 = vld [vmem:[%s10483_s21 + $0x368] sm:$0xff]  ;;  %v9050_v14 = vld [vmem:[%s10483_s21 + $0x3a0] sm:$0xff] }
 0x235   : > { %5119 = vmatpush.bf16.msra.mxu1 %v9009_v17  ;;  %v4676_v3 = vor.u32 %v4675_v59, %v4672_v58  ;;  %v9051_v10 = vld [vmem:[%s10483_s21 + $0x3a8] sm:$0xff]  ;;  %v9058_v15 = vld [vmem:[%s10483_s21 + $0x3e0] sm:$0xff]  ;;  %v9033_v16 = vld [vmem:[%s10483_s21 + $0x318] sm:$0xff] }
 0x236   : > { %5133 = vmatpush.bf16.msra.mxu2 %v9017_v18  ;;  %v9059_v11 = vld [vmem:[%s10483_s21 + $0x3e8] sm:$0xff]  ;;  %v9041_v17 = vld [vmem:[%s10483_s21 + $0x358] sm:$0xff]  ;;  %v7523_v20 = vld [vmem:[%s10506_s26 + $0x10] sm:$0xe] }
 0x237   : > { %5147 = vmatpush.bf16.msra.mxu3 %v9025_v19  ;;  %v9049_v18 = vld [vmem:[%s10483_s21 + $0x398] sm:$0xff]  ;;  %v8996_v21 = vld [vmem:[%s10506_s26 + $0x2c] sm:$0x30]  ;;  %v8992_v24 = vld [vmem:[%s10506_s26 + $0x14] sm:$0xe] }
 0x238   : > { %5106 = vmatpush.bf16.msra.mxu0 %v9000_v23  ;;  %v9057_v19 = vld [vmem:[%s10483_s21 + $0x3d8] sm:$0xff]  ;;  %v9032_v28 = vld [vmem:[%s10483_s21 + $0x310] sm:$0xff] }
 0x239   : > { %5120 = vmatpush.bf16.msra.mxu1 %v9008_v25  ;;  %v7531_v22 = vld [vmem:[%s10506_s26 + $0x18] sm:$0xe]  ;;  %v7525_v25 = vld [vmem:[%s10506_s26 + $0x30] sm:$0x30]  ;;  %v7533_v27 = vld [vmem:[%s10506_s26 + $0x38] sm:$0x30] }
 0x23a   : > { %5134 = vmatpush.bf16.msra.mxu2 %v9016_v26  ;;  %v8997_v23 = vld [vmem:[%s10506_s26 + $0x34] sm:$0x30]  ;;  %v8993_v26 = vld [vmem:[%s10506_s26 + $0x1c] sm:$0xe]  ;;  %v9040_v29 = vld [vmem:[%s10483_s21 + $0x350] sm:$0xff]  ;;  %v7528_v34 = vor.u32 %v8992_v24, %v7525_v25 }
 0x23b   : > { %5148 = vmatpush.bf16.msra.mxu3 %v9024_v30  ;;  %v7524_v30 = vor.u32 %v8996_v21, %v7523_v20  ;;  %v7532_v31 = vor.u32 %v8997_v23, %v7531_v22  ;;  %v9048_v32 = vld [vmem:[%s10483_s21 + $0x390] sm:$0xff]  ;;  %v7536_v35 = vor.u32 %v8993_v26, %v7533_v27  ;;  %v8927_v24 = vld [vmem:[%s10483_s21 + $0x8] sm:$0xff] }
 0x23c   : > { %5107 = vmatpush.bf16.msra.mxu0 %v8999_v36  ;;  %v9056_v33 = vld [vmem:[%s10483_s21 + $0x3d0] sm:$0xff]  ;;  %v9031_v36 = vld [vmem:[%s10483_s21 + $0x308] sm:$0xff]  ;;  %v4686_v44 = vshrl.u32 %v7528_v34, 16  ;;  %v4689_v45 = vshll.u32 %v7528_v34, 16  ;;  %v7795_v34 = vld [vmem:[%s10506_s26] sm:$0xf] }
 0x23d   : > { %5121 = vmatpush.bf16.msra.mxu1 %v9007_v37  ;;  %v9039_v37 = vld [vmem:[%s10483_s21 + $0x348] sm:$0xff]  ;;  %v4678_v38 = vshrl.u32 %v7524_v30, 16  ;;  %v4681_v39 = vshll.u32 %v7524_v30, 16  ;;  %v4694_v40 = vshrl.u32 %v7532_v31, 16  ;;  %v4697_v41 = vshll.u32 %v7532_v31, 16  ;;  %v8928_v20 = vld [vmem:[%s10483_s21 + $0x10] sm:$0xff] }
 0x23e   : > { %5135 = vmatpush.bf16.msra.mxu2 %v9015_v42  ;;  %v9047_v42 = vld [vmem:[%s10483_s21 + $0x388] sm:$0xff]  ;;  %v4702_v46 = vshrl.u32 %v7536_v35, 16  ;;  %v4705_v47 = vshll.u32 %v7536_v35, 16  ;;  %v4688_v56 = vrot.slane %v4686_v44, 1  ;;  %v4691_v57 = vrot.slane %v4689_v45, 2  ;;  %v8936_v21 = vld [vmem:[%s10483_s21 + $0x50] sm:$0xff] }
 0x23f   : > { %5149 = vmatpush.bf16.msra.mxu3 %v9023_v43  ;;  %v9055_v43 = vld [vmem:[%s10483_s21 + $0x3c8] sm:$0xff]  ;;  %v4680_v50 = vrot.slane %v4678_v38, 1  ;;  %v4683_v51 = vrot.slane %v4681_v39, 2  ;;  %v4696_v52 = vrot.slane %v4694_v40, 1  ;;  %v4699_v53 = vrot.slane %v4697_v41, 2  ;;  %v8944_v22 = vld [vmem:[%s10483_s21 + $0x90] sm:$0xff] }
 0x240   : > { %5108 = vmatpush.bf16.msra.mxu0 %v8998_v48  ;;  %v9030_v48 = vld [vmem:[%s10483_s21 + $0x300] sm:$0xff]  ;;  %v4704_v58 = vrot.slane %v4702_v46, 1  ;;  %v4707_v59 = vrot.slane %v4705_v47, 2  ;;  %v8952_v23 = vld [vmem:[%s10483_s21 + $0xd0] sm:$0xff]  ;;  %v8935_v25 = vld [vmem:[%s10483_s21 + $0x48] sm:$0xff] }
 0x241   : > { %5122 = vmatpush.bf16.msra.mxu1 %v9006_v49  ;;  %v9038_v49 = vld [vmem:[%s10483_s21 + $0x340] sm:$0xff]  ;;  %v8943_v26 = vld [vmem:[%s10483_s21 + $0x88] sm:$0xff] }
 0x242   : > { %5136 = vmatpush.bf16.msra.mxu2 %v9014_v54  ;;  %v9046_v54 = vld [vmem:[%s10483_s21 + $0x380] sm:$0xff]  ;;  %v8951_v27 = vld [vmem:[%s10483_s21 + $0xc8] sm:$0xff] }
 0x243   : > { %5150 = vmatpush.bf16.msra.mxu3 %v9022_v55  ;;  %5109 = vmatmul.bf16.vlgmr.msra.gmra.mxu0 %v4652_v0  ;;  %v9054_v55 = vld [vmem:[%s10483_s21 + $0x3c0] sm:$0xff]  ;;  %v4684_v0 = vor.u32 %v4683_v51, %v4680_v50  ;;  %v8919_v40 = vld [vmem:[%s10506_s26 + $0xc] sm:$0xf]  ;;  %v8980_v50 = vld [vmem:[%s10483_s21 + $0x1b0] sm:$0xff] }
 0x244   : > { %5157 = vmatpush.bf16.msrb.mxu0 %v9037_v60  ;;  %5123 = vmatmul.bf16.vlgmr.msra.gmra.mxu1 %v4660_v2  ;;  %v8933_v60 = vld [vmem:[%s10483_s21 + $0x38] sm:$0xff]  ;;  %v4692_v2 = vor.u32 %v4691_v57, %v4688_v56  ;;  %v8942_v30 = vld [vmem:[%s10483_s21 + $0x80] sm:$0xff]  ;;  %v7805_v41 = vld [vmem:[%s10506_s26 + $0x28] sm:$0x10] }
 0x245   : > { %5171 = vmatpush.bf16.msrb.mxu1 %v9045_v61  ;;  %5137 = vmatmul.bf16.vlgmr.msra.gmra.mxu2 %v4668_v1  ;;  %v8941_v61 = vld [vmem:[%s10483_s21 + $0x78] sm:$0xff]  ;;  %v4700_v1 = vor.u32 %v4699_v53, %v4696_v52  ;;  %v8950_v31 = vld [vmem:[%s10483_s21 + $0xc0] sm:$0xff]  ;;  %v7808_v47 = vor.u32 %v8919_v40, %v7805_v41  ;;  %v8988_v51 = vld [vmem:[%s10483_s21 + $0x1f0] sm:$0xff] }
 0x246   : > { %5185 = vmatpush.bf16.msrb.mxu2 %v9053_v62  ;;  %5151 = vmatmul.bf16.vlgmr.msra.gmra.mxu3 %v4676_v3  ;;  %v8949_v62 = vld [vmem:[%s10483_s21 + $0xb8] sm:$0xff]  ;;  %v4708_v3 = vor.u32 %v4707_v59, %v4704_v58  ;;  %v8922_v35 = vld [vmem:[%s10506_s26 + $0x1c] sm:$0x10]  ;;  %v8918_v38 = vld [vmem:[%s10506_s26 + $0x4] sm:$0xf] }
 0x247   : > { %5199 = vmatpush.bf16.msrb.mxu3 %v9061_v63  ;;  %v8957_v63 = vld [vmem:[%s10483_s21 + $0xf8] sm:$0xff]  ;;  %v7797_v39 = vld [vmem:[%s10506_s26 + $0x20] sm:$0x10]  ;;  %v7796_v44 = vor.u32 %v8922_v35, %v7795_v34  ;;  %v8963_v52 = vld [vmem:[%s10483_s21 + $0x128] sm:$0xff] }
 0x248   : > { %5158 = vmatpush.bf16.msrb.mxu0 %v9036_v4  ;;  %v8932_v4 = vld [vmem:[%s10483_s21 + $0x30] sm:$0xff]  ;;  %v7800_v46 = vor.u32 %v8918_v38, %v7797_v39  ;;  %v8971_v53 = vld [vmem:[%s10483_s21 + $0x168] sm:$0xff]  ;;  %v8962_v56 = vld [vmem:[%s10483_s21 + $0x120] sm:$0xff] }
 0x249   : > { %5172 = vmatpush.bf16.msrb.mxu1 %v9044_v5  ;;  %v8940_v5 = vld [vmem:[%s10483_s21 + $0x70] sm:$0xff]  ;;  %v8970_v57 = vld [vmem:[%s10483_s21 + $0x160] sm:$0xff]  ;;  %v9091_v34 = vld [vmem:[%s10483_s21 + $0x4a8] sm:$0xff] }
 0x24a   : > { %5186 = vmatpush.bf16.msrb.mxu2 %v9052_v6  ;;  %v8948_v6 = vld [vmem:[%s10483_s21 + $0xb0] sm:$0xff]  ;;  %v8978_v58 = vld [vmem:[%s10483_s21 + $0x1a0] sm:$0xff]  ;;  %v9099_v35 = vld [vmem:[%s10483_s21 + $0x4e8] sm:$0xff] }
 0x24b   : > { %5200 = vmatpush.bf16.msrb.mxu3 %v9060_v7  ;;  %v8956_v7 = vld [vmem:[%s10483_s21 + $0xf0] sm:$0xff]  ;;  %v8986_v59 = vld [vmem:[%s10483_s21 + $0x1e0] sm:$0xff]  ;;  %v9073_v40 = vld [vmem:[%s10483_s21 + $0x418] sm:$0xff] }
 0x24c   : > { %5159 = vmatpush.bf16.msrb.mxu0 %v9035_v8  ;;  %v8931_v8 = vld [vmem:[%s10483_s21 + $0x28] sm:$0xff]  ;;  %v9090_v38 = vld [vmem:[%s10483_s21 + $0x4a0] sm:$0xff]  ;;  %v9081_v41 = vld [vmem:[%s10483_s21 + $0x458] sm:$0xff] }
 0x24d   : > { %5173 = vmatpush.bf16.msrb.mxu1 %v9043_v9  ;;  %v8939_v9 = vld [vmem:[%s10483_s21 + $0x68] sm:$0xff]  ;;  %v9098_v39 = vld [vmem:[%s10483_s21 + $0x4e0] sm:$0xff] }
 0x24e   : > { %5187 = vmatpush.bf16.msrb.mxu2 %v9051_v10  ;;  %v8947_v10 = vld [vmem:[%s10483_s21 + $0xa8] sm:$0xff] }
 0x24f   : > { %5201 = vmatpush.bf16.msrb.mxu3 %v9059_v11  ;;  %v8955_v11 = vld [vmem:[%s10483_s21 + $0xe8] sm:$0xff] }
 0x250   : > { %5160 = vmatpush.bf16.msrb.mxu0 %v9034_v12  ;;  %v8930_v12 = vld [vmem:[%s10483_s21 + $0x20] sm:$0xff] }
 0x251   : > { %5174 = vmatpush.bf16.msrb.mxu1 %v9042_v13  ;;  %v8938_v13 = vld [vmem:[%s10483_s21 + $0x60] sm:$0xff] }
 0x252   : > { %5188 = vmatpush.bf16.msrb.mxu2 %v9050_v14  ;;  %v8946_v14 = vld [vmem:[%s10483_s21 + $0xa0] sm:$0xff] }
 0x253   : > { %5202 = vmatpush.bf16.msrb.mxu3 %v9058_v15  ;;  %v8954_v15 = vld [vmem:[%s10483_s21 + $0xe0] sm:$0xff] }
 0x254   : > { %5161 = vmatpush.bf16.msrb.mxu0 %v9033_v16  ;;  %v8929_v16 = vld [vmem:[%s10483_s21 + $0x18] sm:$0xff] }
 0x255   : > { %5175 = vmatpush.bf16.msrb.mxu1 %v9041_v17  ;;  %v8937_v17 = vld [vmem:[%s10483_s21 + $0x58] sm:$0xff] }
 0x256   : > { %5189 = vmatpush.bf16.msrb.mxu2 %v9049_v18  ;;  %v8945_v18 = vld [vmem:[%s10483_s21 + $0x98] sm:$0xff] }
 0x257   : > { %5203 = vmatpush.bf16.msrb.mxu3 %v9057_v19  ;;  %v8953_v19 = vld [vmem:[%s10483_s21 + $0xd8] sm:$0xff] }
 0x258   : > { %5162 = vmatpush.bf16.msrb.mxu0 %v9032_v28  ;;  %v8926_v28 = vld [vmem:[%s10483_s21] sm:$0xff] }
 0x259   : > { %5176 = vmatpush.bf16.msrb.mxu1 %v9040_v29  ;;  %v8934_v29 = vld [vmem:[%s10483_s21 + $0x40] sm:$0xff] }
 0x25a   : > { %5190 = vmatpush.bf16.msrb.mxu2 %v9048_v32  ;;  %v8965_v32 = vld [vmem:[%s10483_s21 + $0x138] sm:$0xff] }
 0x25b   : > { %5204 = vmatpush.bf16.msrb.mxu3 %v9056_v33  ;;  %v8973_v33 = vld [vmem:[%s10483_s21 + $0x178] sm:$0xff] }
 0x25c   : > { %5163 = vmatpush.bf16.msrb.mxu0 %v9031_v36  ;;  %v7803_v36 = vld [vmem:[%s10506_s26 + $0x8] sm:$0xf] }
 0x25d   : > { %5177 = vmatpush.bf16.msrb.mxu1 %v9039_v37  ;;  %v8923_v37 = vld [vmem:[%s10506_s26 + $0x24] sm:$0x10] }
 0x25e   : > { %5191 = vmatpush.bf16.msrb.mxu2 %v9047_v42  ;;  %v8981_v42 = vld [vmem:[%s10483_s21 + $0x1b8] sm:$0xff]  ;;  %v7804_v45 = vor.u32 %v8923_v37, %v7803_v36  ;;  %v9074_v36 = vld [vmem:[%s10483_s21 + $0x420] sm:$0xff] }
 0x25f   : > { %5205 = vmatpush.bf16.msrb.mxu3 %v9055_v43  ;;  %v8989_v43 = vld [vmem:[%s10483_s21 + $0x1f8] sm:$0xff]  ;;  %v9082_v37 = vld [vmem:[%s10483_s21 + $0x460] sm:$0xff] }
 0x260   : > { %5164 = vmatpush.bf16.msrb.mxu0 %v9030_v48  ;;  %v8964_v48 = vld [vmem:[%s10483_s21 + $0x130] sm:$0xff] }
 0x261   : > { %5178 = vmatpush.bf16.msrb.mxu1 %v9038_v49  ;;  %v8972_v49 = vld [vmem:[%s10483_s21 + $0x170] sm:$0xff] }
 0x262   : > { %5192 = vmatpush.bf16.msrb.mxu2 %v9046_v54  ;;  %v8979_v54 = vld [vmem:[%s10483_s21 + $0x1a8] sm:$0xff] }
 0x263   : > { %5206 = vmatpush.bf16.msrb.mxu3 %v9054_v55  ;;  %5165 = vmatmul.bf16.vlgmr.msrb.gmra.mxu0 %v4684_v0  ;;  %v8987_v55 = vld [vmem:[%s10483_s21 + $0x1e8] sm:$0xff]  ;;  %v8960_v0 = vld [vmem:[%s10483_s21 + $0x110] sm:$0xff] }
 0x264   : > { %5637 = vmatpush.bf16.msra.mxu0 %v8933_v60  ;;  %5179 = vmatmul.bf16.vlgmr.msrb.gmra.mxu1 %v4692_v2  ;;  %v8961_v60 = vld [vmem:[%s10483_s21 + $0x118] sm:$0xff]  ;;  %v8976_v2 = vld [vmem:[%s10483_s21 + $0x190] sm:$0xff] }
 0x265   : > { %5651 = vmatpush.bf16.msra.mxu1 %v8941_v61  ;;  %5193 = vmatmul.bf16.vlgmr.msrb.gmra.mxu2 %v4700_v1  ;;  %v8969_v61 = vld [vmem:[%s10483_s21 + $0x158] sm:$0xff]  ;;  %v8968_v1 = vld [vmem:[%s10483_s21 + $0x150] sm:$0xff] }
 0x266   : > { %5665 = vmatpush.bf16.msra.mxu2 %v8949_v62  ;;  %5207 = vmatmul.bf16.vlgmr.msrb.gmra.mxu3 %v4708_v3  ;;  %v8977_v62 = vld [vmem:[%s10483_s21 + $0x198] sm:$0xff]  ;;  %v8984_v3 = vld [vmem:[%s10483_s21 + $0x1d0] sm:$0xff] }
 0x267   : > { %5679 = vmatpush.bf16.msra.mxu3 %v8957_v63  ;;  %v8985_v63 = vld [vmem:[%s10483_s21 + $0x1d8] sm:$0xff] }
 0x268   : > { %5638 = vmatpush.bf16.msra.mxu0 %v8932_v4  ;;  %v8959_v4 = vld [vmem:[%s10483_s21 + $0x108] sm:$0xff] }
 0x269   : > { %5652 = vmatpush.bf16.msra.mxu1 %v8940_v5  ;;  %v8967_v5 = vld [vmem:[%s10483_s21 + $0x148] sm:$0xff] }
 0x26a   : > { %5666 = vmatpush.bf16.msra.mxu2 %v8948_v6  ;;  %v8975_v6 = vld [vmem:[%s10483_s21 + $0x188] sm:$0xff] }
 0x26b   : > { %5680 = vmatpush.bf16.msra.mxu3 %v8956_v7  ;;  %v8983_v7 = vld [vmem:[%s10483_s21 + $0x1c8] sm:$0xff] }
 0x26c   : > { %5639 = vmatpush.bf16.msra.mxu0 %v8931_v8  ;;  %v8958_v8 = vld [vmem:[%s10483_s21 + $0x100] sm:$0xff] }
 0x26d   : > { %5653 = vmatpush.bf16.msra.mxu1 %v8939_v9  ;;  %v8966_v9 = vld [vmem:[%s10483_s21 + $0x140] sm:$0xff] }
 0x26e   : > { %5667 = vmatpush.bf16.msra.mxu2 %v8947_v10  ;;  %v8974_v10 = vld [vmem:[%s10483_s21 + $0x180] sm:$0xff] }
 0x26f   : > { %5681 = vmatpush.bf16.msra.mxu3 %v8955_v11  ;;  %v8982_v11 = vld [vmem:[%s10483_s21 + $0x1c0] sm:$0xff] }
 0x270   : > { %5640 = vmatpush.bf16.msra.mxu0 %v8930_v12  ;;  %v9077_v12 = vld [vmem:[%s10483_s21 + $0x438] sm:$0xff] }
 0x271   : > { %5654 = vmatpush.bf16.msra.mxu1 %v8938_v13  ;;  %v9085_v13 = vld [vmem:[%s10483_s21 + $0x478] sm:$0xff] }
 0x272   : > { %5668 = vmatpush.bf16.msra.mxu2 %v8946_v14  ;;  %v7811_v14 = vld [vmem:[%s10506_s26 + $0x10] sm:$0xf] }
 0x273   : > { %5682 = vmatpush.bf16.msra.mxu3 %v8954_v15  ;;  %v8924_v15 = vld [vmem:[%s10506_s26 + $0x2c] sm:$0x10] }
 0x274   : > { %5641 = vmatpush.bf16.msra.mxu0 %v8929_v16  ;;  %v7819_v16 = vld [vmem:[%s10506_s26 + $0x18] sm:$0xf] }
 0x275   : > { %5655 = vmatpush.bf16.msra.mxu1 %v8937_v17  ;;  %v8925_v17 = vld [vmem:[%s10506_s26 + $0x34] sm:$0x10] }
 0x276   : > { %5669 = vmatpush.bf16.msra.mxu2 %v8945_v18  ;;  %v8920_v18 = vld [vmem:[%s10506_s26 + $0x14] sm:$0xf] }
 0x277   : > { %5683 = vmatpush.bf16.msra.mxu3 %v8953_v19  ;;  %v7813_v19 = vld [vmem:[%s10506_s26 + $0x30] sm:$0x10] }
 0x278   : > { %5642 = vmatpush.bf16.msra.mxu0 %v8928_v20  ;;  %v8921_v20 = vld [vmem:[%s10506_s26 + $0x1c] sm:$0xf] }
 0x279   : > { %5656 = vmatpush.bf16.msra.mxu1 %v8936_v21  ;;  %v7821_v21 = vld [vmem:[%s10506_s26 + $0x38] sm:$0x10] }
 0x27a   : > { %5670 = vmatpush.bf16.msra.mxu2 %v8944_v22  ;;  %v9093_v22 = vld [vmem:[%s10483_s21 + $0x4b8] sm:$0xff] }
 0x27b   : > { %5684 = vmatpush.bf16.msra.mxu3 %v8952_v23  ;;  %v9101_v23 = vld [vmem:[%s10483_s21 + $0x4f8] sm:$0xff] }
 0x27c   : > { %5643 = vmatpush.bf16.msra.mxu0 %v8927_v24  ;;  %v7812_v24 = vor.u32 %v8924_v15, %v7811_v14  ;;  %v9124_v14 = vld [vmem:[%s10483_s21 + $0x5b0] sm:$0xff] }
 0x27d   : > { %5657 = vmatpush.bf16.msra.mxu1 %v8935_v25  ;;  %v7820_v25 = vor.u32 %v8925_v17, %v7819_v16  ;;  %v9132_v15 = vld [vmem:[%s10483_s21 + $0x5f0] sm:$0xff]  ;;  %v9107_v16 = vld [vmem:[%s10483_s21 + $0x528] sm:$0xff] }
 0x27e   : > { %5671 = vmatpush.bf16.msra.mxu2 %v8943_v26  ;;  %v7816_v26 = vor.u32 %v8920_v18, %v7813_v19  ;;  %v9115_v17 = vld [vmem:[%s10483_s21 + $0x568] sm:$0xff] }
 0x27f   : > { %5685 = vmatpush.bf16.msra.mxu3 %v8951_v27  ;;  %v7824_v27 = vor.u32 %v8921_v20, %v7821_v21  ;;  %v9123_v18 = vld [vmem:[%s10483_s21 + $0x5a8] sm:$0xff]  ;;  %v9106_v21 = vld [vmem:[%s10483_s21 + $0x520] sm:$0xff] }
 0x280   : > { %5644 = vmatpush.bf16.msra.mxu0 %v8926_v28  ;;  %v9076_v28 = vld [vmem:[%s10483_s21 + $0x430] sm:$0xff]  ;;  %v9131_v19 = vld [vmem:[%s10483_s21 + $0x5e8] sm:$0xff] }
 0x281   : > { %5658 = vmatpush.bf16.msra.mxu1 %v8934_v29  ;;  %v9084_v29 = vld [vmem:[%s10483_s21 + $0x470] sm:$0xff] }
 0x282   : > { %5672 = vmatpush.bf16.msra.mxu2 %v8942_v30  ;;  %v9092_v30 = vld [vmem:[%s10483_s21 + $0x4b0] sm:$0xff] }
 0x283   : > { %5686 = vmatpush.bf16.msra.mxu3 %v8950_v31  ;;  %5645 = vmatmul.bf16.vlgmr.msra.gmra.mxu0 %v7796_v44  ;;  %v9100_v31 = vld [vmem:[%s10483_s21 + $0x4f0] sm:$0xff] }
 0x284   : > { %5693 = vmatpush.bf16.msrb.mxu0 %v8965_v32  ;;  %5659 = vmatmul.bf16.vlgmr.msra.gmra.mxu1 %v7800_v46  ;;  %v9075_v32 = vld [vmem:[%s10483_s21 + $0x428] sm:$0xff]  ;;  %v9072_v44 = vld [vmem:[%s10483_s21 + $0x410] sm:$0xff] }
 0x285   : > { %5707 = vmatpush.bf16.msrb.mxu1 %v8973_v33  ;;  %5673 = vmatmul.bf16.vlgmr.msra.gmra.mxu2 %v7804_v45  ;;  %v9083_v33 = vld [vmem:[%s10483_s21 + $0x468] sm:$0xff]  ;;  %v9080_v45 = vld [vmem:[%s10483_s21 + $0x450] sm:$0xff] }
 0x286   : > { %5721 = vmatpush.bf16.msrb.mxu2 %v8981_v42  ;;  %5687 = vmatmul.bf16.vlgmr.msra.gmra.mxu3 %v7808_v47  ;;  %v9089_v42 = vld [vmem:[%s10483_s21 + $0x498] sm:$0xff]  ;;  %v9088_v46 = vld [vmem:[%s10483_s21 + $0x490] sm:$0xff] }
 0x287   : > { %5735 = vmatpush.bf16.msrb.mxu3 %v8989_v43  ;;  %v9097_v43 = vld [vmem:[%s10483_s21 + $0x4d8] sm:$0xff]  ;;  %v9096_v47 = vld [vmem:[%s10483_s21 + $0x4d0] sm:$0xff] }
 0x288   : > { %5694 = vmatpush.bf16.msrb.mxu0 %v8964_v48  ;;  %v9071_v48 = vld [vmem:[%s10483_s21 + $0x408] sm:$0xff] }
 0x289   : > { %5708 = vmatpush.bf16.msrb.mxu1 %v8972_v49  ;;  %v9079_v49 = vld [vmem:[%s10483_s21 + $0x448] sm:$0xff] }
 0x28a   : > { %5722 = vmatpush.bf16.msrb.mxu2 %v8980_v50  ;;  %v9087_v50 = vld [vmem:[%s10483_s21 + $0x488] sm:$0xff] }
 0x28b   : > { %5736 = vmatpush.bf16.msrb.mxu3 %v8988_v51  ;;  %v9095_v51 = vld [vmem:[%s10483_s21 + $0x4c8] sm:$0xff] }
 0x28c   : > { %5695 = vmatpush.bf16.msrb.mxu0 %v8963_v52  ;;  %v8211_v52 = vld [vmem:[%s10506_s26] sm:$0x8] }
 0x28d   : > { %5709 = vmatpush.bf16.msrb.mxu1 %v8971_v53  ;;  %v9066_v53 = vld [vmem:[%s10506_s26 + $0x1c] sm:$0xf0] }
 0x28e   : > { %5723 = vmatpush.bf16.msrb.mxu2 %v8979_v54  ;;  %v8219_v54 = vld [vmem:[%s10506_s26 + $0x8] sm:$0x8] }
 0x28f   : > { %5737 = vmatpush.bf16.msrb.mxu3 %v8987_v55  ;;  %v9067_v55 = vld [vmem:[%s10506_s26 + $0x24] sm:$0xf0] }
 0x290   : > { %5696 = vmatpush.bf16.msrb.mxu0 %v8962_v56  ;;  %v9062_v56 = vld [vmem:[%s10506_s26 + $0x4] sm:$0x8] }
 0x291   : > { %5710 = vmatpush.bf16.msrb.mxu1 %v8970_v57  ;;  %v8213_v57 = vld [vmem:[%s10506_s26 + $0x20] sm:$0xf0] }
 0x292   : > { %5724 = vmatpush.bf16.msrb.mxu2 %v8978_v58  ;;  %v9063_v58 = vld [vmem:[%s10506_s26 + $0xc] sm:$0x8] }
 0x293   : > { %5738 = vmatpush.bf16.msrb.mxu3 %v8986_v59  ;;  %v8221_v59 = vld [vmem:[%s10506_s26 + $0x28] sm:$0xf0] }
 0x294   : > { %5697 = vmatpush.bf16.msrb.mxu0 %v8961_v60  ;;  %v9070_v60 = vld [vmem:[%s10483_s21 + $0x400] sm:$0xff] }
 0x295   : > { %5711 = vmatpush.bf16.msrb.mxu1 %v8969_v61  ;;  %v9078_v61 = vld [vmem:[%s10483_s21 + $0x440] sm:$0xff] }
 0x296   : > { %5725 = vmatpush.bf16.msrb.mxu2 %v8977_v62  ;;  %v8212_v62 = vor.u32 %v9066_v53, %v8211_v52  ;;  %v8229_v52 = vld [vmem:[%s10506_s26 + $0x30] sm:$0xf0]  ;;  %v9065_v53 = vld [vmem:[%s10506_s26 + $0x1c] sm:$0x8] }
 0x297   : > { %5739 = vmatpush.bf16.msrb.mxu3 %v8985_v63  ;;  %v8220_v63 = vor.u32 %v9067_v55, %v8219_v54  ;;  %v8237_v54 = vld [vmem:[%s10506_s26 + $0x38] sm:$0xf0] }
 0x298   : > { %5698 = vmatpush.bf16.msrb.mxu0 %v8960_v0  ;;  %v9086_v0 = vld [vmem:[%s10483_s21 + $0x480] sm:$0xff] }
 0x299   : > { %5712 = vmatpush.bf16.msrb.mxu1 %v8968_v1  ;;  %v9094_v1 = vld [vmem:[%s10483_s21 + $0x4c0] sm:$0xff] }
 0x29a   : > { %5726 = vmatpush.bf16.msrb.mxu2 %v8976_v2  ;;  %v8216_v2 = vor.u32 %v9062_v56, %v8213_v57  ;;  %v9102_v57 = vld [vmem:[%s10483_s21 + $0x500] sm:$0xff] }
 0x29b   : > { %5740 = vmatpush.bf16.msrb.mxu3 %v8984_v3  ;;  %v8224_v3 = vor.u32 %v9063_v58, %v8221_v59  ;;  %v9110_v58 = vld [vmem:[%s10483_s21 + $0x540] sm:$0xff] }
 0x29c   : > { %5699 = vmatpush.bf16.msrb.mxu0 %v8959_v4  ;;  %v9109_v4 = vld [vmem:[%s10483_s21 + $0x538] sm:$0xff] }
 0x29d   : > { %5713 = vmatpush.bf16.msrb.mxu1 %v8967_v5  ;;  %v9117_v5 = vld [vmem:[%s10483_s21 + $0x578] sm:$0xff] }
 0x29e   : > { %5727 = vmatpush.bf16.msrb.mxu2 %v8975_v6  ;;  %v9125_v6 = vld [vmem:[%s10483_s21 + $0x5b8] sm:$0xff] }
 0x29f   : > { %5741 = vmatpush.bf16.msrb.mxu3 %v8983_v7  ;;  %v9133_v7 = vld [vmem:[%s10483_s21 + $0x5f8] sm:$0xff] }
 0x2a0   : > { %5700 = vmatpush.bf16.msrb.mxu0 %v8958_v8  ;;  %v5918_v8 = vrot.slane %v8212_v62, 3  ;;  %v9118_v62 = vld [vmem:[%s10483_s21 + $0x580] sm:$0xff] }
 0x2a1   : > { %5714 = vmatpush.bf16.msrb.mxu1 %v8966_v9  ;;  %v5920_v9 = vrot.slane %v8220_v63, 3  ;;  %v9126_v63 = vld [vmem:[%s10483_s21 + $0x5c0] sm:$0xff] }
 0x2a2   : > { %5728 = vmatpush.bf16.msrb.mxu2 %v8974_v10  ;;  %v5919_v10 = vrot.slane %v8216_v2, 3  ;;  %v9149_v2 = vld [vmem:[%s10483_s21 + $0x638] sm:$0xff] }
 0x2a3   : > { %5742 = vmatpush.bf16.msrb.mxu3 %v8982_v11  ;;  %5701 = vmatmul.bf16.vlgmr.msrb.gmra.mxu0 %v7812_v24  ;;  %v5921_v11 = vrot.slane %v8224_v3, 3  ;;  %v9122_v24 = vld [vmem:[%s10483_s21 + $0x5a0] sm:$0xff]  ;;  %v9157_v3 = vld [vmem:[%s10483_s21 + $0x678] sm:$0xff] }
 0x2a4   : > { %6318 = vmatpush.bf16.msra.mxu0 %v9077_v12  ;;  %5715 = vmatmul.bf16.vlgmr.msrb.gmra.mxu1 %v7816_v26  ;;  %v9108_v12 = vld [vmem:[%s10483_s21 + $0x530] sm:$0xff] }
 0x2a5   : > { %6332 = vmatpush.bf16.msra.mxu1 %v9085_v13  ;;  %5729 = vmatmul.bf16.vlgmr.msrb.gmra.mxu2 %v7820_v25  ;;  %v9116_v13 = vld [vmem:[%s10483_s21 + $0x570] sm:$0xff]  ;;  %v9130_v25 = vld [vmem:[%s10483_s21 + $0x5e0] sm:$0xff] }
 0x2a6   : > { %6346 = vmatpush.bf16.msra.mxu2 %v9093_v22  ;;  %5743 = vmatmul.bf16.vlgmr.msrb.gmra.mxu3 %v7824_v27  ;;  %v9114_v22 = vld [vmem:[%s10483_s21 + $0x560] sm:$0xff]  ;;  %v9105_v27 = vld [vmem:[%s10483_s21 + $0x518] sm:$0xff] }
 0x2a7   : > { %6360 = vmatpush.bf16.msra.mxu3 %v9101_v23 }
 0x2a8   : > { %6319 = vmatpush.bf16.msra.mxu0 %v9076_v28  ;;  %v9113_v28 = vld [vmem:[%s10483_s21 + $0x558] sm:$0xff] }
 0x2a9   : > { %6333 = vmatpush.bf16.msra.mxu1 %v9084_v29  ;;  %v9121_v29 = vld [vmem:[%s10483_s21 + $0x598] sm:$0xff] }
 0x2aa   : > { %6347 = vmatpush.bf16.msra.mxu2 %v9092_v30  ;;  %v9129_v30 = vld [vmem:[%s10483_s21 + $0x5d8] sm:$0xff] }
 0x2ab   : > { %6361 = vmatpush.bf16.msra.mxu3 %v9100_v31 }
 0x2ac   : > { %6320 = vmatpush.bf16.msra.mxu0 %v9075_v32 }
 0x2ad   : > { %6334 = vmatpush.bf16.msra.mxu1 %v9083_v33 }
 0x2ae   : > { %6348 = vmatpush.bf16.msra.mxu2 %v9091_v34  ;;  %v9104_v34 = vld [vmem:[%s10483_s21 + $0x510] sm:$0xff] }
 0x2af   : > { %6362 = vmatpush.bf16.msra.mxu3 %v9099_v35  ;;  %v9112_v35 = vld [vmem:[%s10483_s21 + $0x550] sm:$0xff] }
 0x2b0   : > { %6321 = vmatpush.bf16.msra.mxu0 %v9074_v36 }
 0x2b1   : > { %6335 = vmatpush.bf16.msra.mxu1 %v9082_v37 }
 0x2b2   : > { %6349 = vmatpush.bf16.msra.mxu2 %v9090_v38 }
 0x2b3   : > { %6363 = vmatpush.bf16.msra.mxu3 %v9098_v39  ;;  %v9120_v39 = vld [vmem:[%s10483_s21 + $0x590] sm:$0xff] }
 0x2b4   : > { %6322 = vmatpush.bf16.msra.mxu0 %v9073_v40  ;;  %v9128_v40 = vld [vmem:[%s10483_s21 + $0x5d0] sm:$0xff] }
 0x2b5   : > { %6336 = vmatpush.bf16.msra.mxu1 %v9081_v41 }
 0x2b6   : > { %6350 = vmatpush.bf16.msra.mxu2 %v9089_v42  ;;  %v9103_v42 = vld [vmem:[%s10483_s21 + $0x508] sm:$0xff] }
 0x2b7   : > { %6364 = vmatpush.bf16.msra.mxu3 %v9097_v43  ;;  %v9111_v43 = vld [vmem:[%s10483_s21 + $0x548] sm:$0xff] }
 0x2b8   : > { %6323 = vmatpush.bf16.msra.mxu0 %v9072_v44  ;;  %v9119_v44 = vld [vmem:[%s10483_s21 + $0x588] sm:$0xff] }
 0x2b9   : > { %6337 = vmatpush.bf16.msra.mxu1 %v9080_v45  ;;  %v9127_v45 = vld [vmem:[%s10483_s21 + $0x5c8] sm:$0xff] }
 0x2ba   : > { %6351 = vmatpush.bf16.msra.mxu2 %v9088_v46  ;;  %v8227_v46 = vld [vmem:[%s10506_s26 + $0x10] sm:$0x8] }
 0x2bb   : > { %6365 = vmatpush.bf16.msra.mxu3 %v9096_v47  ;;  %v9068_v47 = vld [vmem:[%s10506_s26 + $0x2c] sm:$0xf0] }
 0x2bc   : > { %6324 = vmatpush.bf16.msra.mxu0 %v9071_v48  ;;  %v8235_v48 = vld [vmem:[%s10506_s26 + $0x18] sm:$0x8]  ;;  %v8228_v59 = vor.u32 %v9068_v47, %v8227_v46  ;;  %v9152_v46 = vld [vmem:[%s10483_s21 + $0x650] sm:$0xff] }
 0x2bd   : > { %6338 = vmatpush.bf16.msra.mxu1 %v9079_v49  ;;  %v9069_v49 = vld [vmem:[%s10506_s26 + $0x34] sm:$0xf0] }
 0x2be   : > { %6352 = vmatpush.bf16.msra.mxu2 %v9087_v50  ;;  %v9064_v50 = vld [vmem:[%s10506_s26 + $0x14] sm:$0x8] }
 0x2bf   : > { %6366 = vmatpush.bf16.msra.mxu3 %v9095_v51 }
 0x2c0   : > { %6325 = vmatpush.bf16.msra.mxu0 %v9070_v60  ;;  %v5110_v20 = vpop.f32.mrf.mxu0  ;;  %v8236_v60 = vor.u32 %v9069_v49, %v8235_v48  ;;  %v9160_v49 = vld [vmem:[%s10483_s21 + $0x690] sm:$0xff] }
 0x2c1   : > { %6339 = vmatpush.bf16.msra.mxu1 %v9078_v61  ;;  %v5124_v23 = vpop.f32.mrf.mxu1 }
 0x2c2   : > { %6353 = vmatpush.bf16.msra.mxu2 %v9086_v0  ;;  %v5125_v26 = vadd.f32 %v5124_v23, %v5110_v20  ;;  %v8232_v0 = vor.u32 %v9064_v50, %v8229_v52  ;;  %v9146_v20 = vld [vmem:[%s10483_s21 + $0x620] sm:$0xff]  ;;  %v9168_v50 = vld [vmem:[%s10483_s21 + $0x6d0] sm:$0xff] }
 0x2c3   : > { %6367 = vmatpush.bf16.msra.mxu3 %v9094_v1  ;;  %6326 = vmatmul.bf16.vlgmr.msra.gmra.mxu0 %v5918_v8  ;;  %v8240_v1 = vor.u32 %v9065_v53, %v8237_v54  ;;  %v9162_v23 = vld [vmem:[%s10483_s21 + $0x6a0] sm:$0xff]  ;;  %v9143_v54 = vld [vmem:[%s10483_s21 + $0x608] sm:$0xff] }
 0x2c4   : > { %6374 = vmatpush.bf16.msrb.mxu0 %v9109_v4  ;;  %6340 = vmatmul.bf16.vlgmr.msra.gmra.mxu1 %v5919_v10  ;;  %v9165_v4 = vld [vmem:[%s10483_s21 + $0x6b8] sm:$0xff]  ;;  %v5923_v8 = vrot.slane %v8232_v0, 3  ;;  %v9148_v10 = vld [vmem:[%s10483_s21 + $0x630] sm:$0xff] }
 0x2c5   : > { %6388 = vmatpush.bf16.msrb.mxu1 %v9117_v5  ;;  %6354 = vmatmul.bf16.vlgmr.msra.gmra.mxu2 %v5920_v9  ;;  %v9173_v5 = vld [vmem:[%s10483_s21 + $0x6f8] sm:$0xff]  ;;  %v5925_v9 = vrot.slane %v8240_v1, 3 }
 0x2c6   : > { %6402 = vmatpush.bf16.msrb.mxu2 %v9125_v6  ;;  %6368 = vmatmul.bf16.vlgmr.msra.gmra.mxu3 %v5921_v11  ;;  %v5922_v6 = vrot.slane %v8228_v59, 3  ;;  %v9156_v11 = vld [vmem:[%s10483_s21 + $0x670] sm:$0xff]  ;;  %v9167_v59 = vld [vmem:[%s10483_s21 + $0x6c8] sm:$0xff] }
 0x2c7   : > { %6416 = vmatpush.bf16.msrb.mxu3 %v9133_v7  ;;  %v5924_v7 = vrot.slane %v8236_v60, 3 }
 0x2c8   : > { %6375 = vmatpush.bf16.msrb.mxu0 %v9108_v12  ;;  %v5138_v31 = vpop.f32.mrf.mxu2  ;;  %v5112_v36 = vpop.f32.mrf.mxu0  ;;  %v9164_v12 = vld [vmem:[%s10483_s21 + $0x6b0] sm:$0xff] }
 0x2c9   : > { %6389 = vmatpush.bf16.msrb.mxu1 %v9116_v13  ;;  %v5139_v32 = vadd.f32 %v5138_v31, %v5125_v26  ;;  %v5152_v33 = vpop.f32.mrf.mxu3  ;;  %v5126_v38 = vpop.f32.mrf.mxu1  ;;  %v9172_v13 = vld [vmem:[%s10483_s21 + $0x6f0] sm:$0xff]  ;;  %v9145_v26 = vld [vmem:[%s10483_s21 + $0x618] sm:$0xff]  ;;  %v9139_v31 = vld [vmem:[%s10506_s26 + $0x44] sm:$0x10] }
 0x2ca   : > { %6403 = vmatpush.bf16.msrb.mxu2 %v9124_v14  ;;  %v5127_v41 = vadd.f32 %v5126_v38, %v5112_v36  ;;  %v9147_v14 = vld [vmem:[%s10483_s21 + $0x628] sm:$0xff]  ;;  %v9138_v38 = vld [vmem:[%s10506_s26 + $0x3c] sm:$0x10] }
 0x2cb   : > { %6417 = vmatpush.bf16.msrb.mxu3 %v9132_v15  ;;  %v10714_v37 = vadd.f32 %v5152_v33, %v5139_v32  ;;  %v9155_v15 = vld [vmem:[%s10483_s21 + $0x668] sm:$0xff] }
 0x2cc   : > { %6376 = vmatpush.bf16.msrb.mxu0 %v9107_v16  ;;  %v9163_v16 = vld [vmem:[%s10483_s21 + $0x6a8] sm:$0xff] }
 0x2cd   : > { %6390 = vmatpush.bf16.msrb.mxu1 %v9115_v17  ;;  %v9171_v17 = vld [vmem:[%s10483_s21 + $0x6e8] sm:$0xff] }
 0x2ce   : > { %6404 = vmatpush.bf16.msrb.mxu2 %v9123_v18  ;;  %v9135_v33 = vld [vmem:[%s10506_s26 + $0x2c] sm:$0xf] }
 0x2cf   : > { %6418 = vmatpush.bf16.msrb.mxu3 %v9131_v19 }
 0x2d0   : > { %6377 = vmatpush.bf16.msrb.mxu0 %v9106_v21  ;;  %v5140_v51 = vpop.f32.mrf.mxu2  ;;  %v9154_v21 = vld [vmem:[%s10483_s21 + $0x660] sm:$0xff] }
 0x2d1   : > { %6391 = vmatpush.bf16.msrb.mxu1 %v9114_v22  ;;  %v5141_v55 = vadd.f32 %v5140_v51, %v5127_v41  ;;  %v5154_v56 = vpop.f32.mrf.mxu3 }
 0x2d2   : > { %6405 = vmatpush.bf16.msrb.mxu2 %v9122_v24  ;;  %v9170_v24 = vld [vmem:[%s10483_s21 + $0x6e0] sm:$0xff] }
 0x2d3   : > { %6419 = vmatpush.bf16.msrb.mxu3 %v9130_v25  ;;  %v10732_v61 = vadd.f32 %v5154_v56, %v5141_v55  ;;  %v9151_v55 = vld [vmem:[%s10483_s21 + $0x648] sm:$0xff] }
 0x2d4   : > { %6378 = vmatpush.bf16.msrb.mxu0 %v9105_v27  ;;  %v9153_v27 = vld [vmem:[%s10483_s21 + $0x658] sm:$0xff] }
 0x2d5   : > { %6392 = vmatpush.bf16.msrb.mxu1 %v9113_v28  ;;  %v9161_v28 = vld [vmem:[%s10483_s21 + $0x698] sm:$0xff] }
 0x2d6   : > { %6406 = vmatpush.bf16.msrb.mxu2 %v9121_v29  ;;  %v9169_v29 = vld [vmem:[%s10483_s21 + $0x6d8] sm:$0xff] }
 0x2d7   : > { %6420 = vmatpush.bf16.msrb.mxu3 %v9129_v30  ;;  %v8635_v30 = vld [vmem:[%s10506_s26 + $0x28] sm:$0xf] }
 0x2d8   : > { %6379 = vmatpush.bf16.msrb.mxu0 %v9104_v34  ;;  %v8637_v34 = vld [vmem:[%s10506_s26 + $0x48] sm:$0x10] }
 0x2d9   : > { %6393 = vmatpush.bf16.msrb.mxu1 %v9112_v35  ;;  %v8627_v35 = vld [vmem:[%s10506_s26 + $0x20] sm:$0xf]  ;;  %v8640_v48 = vor.u32 %v9135_v33, %v8637_v34 }
 0x2da   : > { %6407 = vmatpush.bf16.msrb.mxu2 %v9120_v39  ;;  %v9134_v39 = vld [vmem:[%s10506_s26 + $0x24] sm:$0xf]  ;;  %v8628_v51 = vor.u32 %v9138_v38, %v8627_v35  ;;  %v9177_v38 = vld [vmem:[%s10483_s21 + $0x718] sm:$0xff] }
 0x2db   : > { %6421 = vmatpush.bf16.msrb.mxu3 %v9128_v40  ;;  %v8629_v40 = vld [vmem:[%s10506_s26 + $0x40] sm:$0x10] }
 0x2dc   : > { %6380 = vmatpush.bf16.msrb.mxu0 %v9103_v42  ;;  %v8636_v42 = vor.u32 %v9139_v31, %v8635_v30  ;;  %v8632_v52 = vor.u32 %v9134_v39, %v8629_v40  ;;  %v9186_v33 = vld [vmem:[%s10483_s21 + $0x760] sm:$0xff]  ;;  %v9185_v39 = vld [vmem:[%s10483_s21 + $0x758] sm:$0xff] }
 0x2dd   : > { %6394 = vmatpush.bf16.msrb.mxu1 %v9111_v43  ;;  %v9194_v35 = vld [vmem:[%s10483_s21 + $0x7a0] sm:$0xff]  ;;  %v9193_v40 = vld [vmem:[%s10483_s21 + $0x798] sm:$0xff] }
 0x2de   : > { %6408 = vmatpush.bf16.msrb.mxu2 %v9119_v44  ;;  %v6618_v56 = vshll.u32 %v8636_v42, 16  ;;  %v6616_v1 = vshrl.u32 %v8636_v42, 16  ;;  %v9140_v42 = vld [vmem:[%s10506_s26 + $0x4c] sm:$0x10] }
 0x2df   : > { %6422 = vmatpush.bf16.msrb.mxu3 %v9127_v45  ;;  %v9144_v45 = vld [vmem:[%s10483_s21 + $0x610] sm:$0xff] }
 0x2e0   : > { %6381 = vmatpush.bf16.msrb.mxu0 %v9102_v57  ;;  %v5166_v18 = vpop.f32.mrf.mxu0  ;;  %v6625_v57 = vshll.u32 %v8640_v48, 16 }
 0x2e1   : > { %6395 = vmatpush.bf16.msrb.mxu1 %v9110_v58  ;;  %v5167_v19 = vadd.f32 %v5166_v18, %v10714_v37  ;;  %v5180_v22 = vpop.f32.mrf.mxu1  ;;  %v9159_v58 = vld [vmem:[%s10483_s21 + $0x688] sm:$0xff] }
 0x2e2   : > { %6409 = vmatpush.bf16.msrb.mxu2 %v9118_v62  ;;  %v6611_v62 = vshll.u32 %v8632_v52, 16 }
 0x2e3   : > { %6423 = vmatpush.bf16.msrb.mxu3 %v9126_v63  ;;  %6382 = vmatmul.bf16.vlgmr.msrb.gmra.mxu0 %v5922_v6  ;;  %v5181_v25 = vadd.f32 %v5180_v22, %v5167_v19  ;;  %v6623_v6 = vshrl.u32 %v8640_v48, 16  ;;  %v9180_v22 = vld [vmem:[%s10483_s21 + $0x730] sm:$0xff] }
 0x2e4   : > { %7049 = vmatpush.bf16.msra.mxu0 %v9149_v2  ;;  %6396 = vmatmul.bf16.vlgmr.msrb.gmra.mxu1 %v5923_v8  ;;  %v9158_v8 = vld [vmem:[%s10483_s21 + $0x680] sm:$0xff] }
 0x2e5   : > { %7063 = vmatpush.bf16.msra.mxu1 %v9157_v3  ;;  %6410 = vmatmul.bf16.vlgmr.msrb.gmra.mxu2 %v5924_v7  ;;  %v9142_v3 = vld [vmem:[%s10483_s21 + $0x600] sm:$0xff]  ;;  %v6627_v7 = vrot.slane %v6625_v57, 1 }
 0x2e6   : > { %7077 = vmatpush.bf16.msra.mxu2 %v9165_v4  ;;  %6424 = vmatmul.bf16.vlgmr.msrb.gmra.mxu3 %v5925_v9  ;;  %v9150_v4 = vld [vmem:[%s10483_s21 + $0x640] sm:$0xff] }
 0x2e7   : > { %7091 = vmatpush.bf16.msra.mxu3 %v9173_v5  ;;  %v6620_v5 = vrot.slane %v6618_v56, 1  ;;  %v9166_v9 = vld [vmem:[%s10483_s21 + $0x6c0] sm:$0xff]  ;;  %v6628_v19 = vor.u32 %v6627_v7, %v6623_v6  ;;  %v9183_v6 = vld [vmem:[%s10483_s21 + $0x748] sm:$0xff] }
 0x2e8   : > { %7050 = vmatpush.bf16.msra.mxu0 %v9148_v10  ;;  %v5194_v32 = vpop.f32.mrf.mxu2  ;;  %v5168_v41 = vpop.f32.mrf.mxu0  ;;  %v6602_v10 = vshrl.u32 %v8628_v51, 16 }
 0x2e9   : > { %7064 = vmatpush.bf16.msra.mxu1 %v9156_v11  ;;  %v5195_v36 = vadd.f32 %v5194_v32, %v5181_v25  ;;  %v5208_v37 = vpop.f32.mrf.mxu3  ;;  %v5169_v43 = vadd.f32 %v5168_v41, %v10732_v61  ;;  %v5182_v47 = vpop.f32.mrf.mxu1  ;;  %v6604_v61 = vshll.u32 %v8628_v51, 16  ;;  %v6621_v18 = vor.u32 %v6620_v5, %v6616_v1  ;;  %v9204_v25 = vld [vmem:[%s10483_s21 + $0x7f0] sm:$0xff]  ;;  %v9178_v32 = vld [vmem:[%s10483_s21 + $0x720] sm:$0xff]  ;;  %v9175_v5 = vld [vmem:[%s10483_s21 + $0x708] sm:$0xff] }
 0x2ea   : > { %7078 = vmatpush.bf16.msra.mxu2 %v9164_v12  ;;  %v6609_v12 = vshrl.u32 %v8632_v52, 16  ;;  %v8643_v41 = vld [vmem:[%s10506_s26 + $0x30] sm:$0xf] }
 0x2eb   : > { %7092 = vmatpush.bf16.msra.mxu3 %v9172_v13  ;;  %v10766_v44 = vadd.f32 %v5208_v37, %v5195_v36  ;;  %v5183_v53 = vadd.f32 %v5182_v47, %v5169_v43  ;;  %v6606_v11 = vrot.slane %v6604_v61, 1  ;;  %v6613_v13 = vrot.slane %v6611_v62, 1  ;;  %v9202_v36 = vld [vmem:[%s10483_s21 + $0x7e0] sm:$0xff]  ;;  %v9136_v43 = vld [vmem:[%s10506_s26 + $0x34] sm:$0xf]  ;;  %v9201_v47 = vld [vmem:[%s10483_s21 + $0x7d8] sm:$0xff] }
 0x2ec   : > { %7051 = vmatpush.bf16.msra.mxu0 %v9147_v14  ;;  %v9181_v14 = vld [vmem:[%s10483_s21 + $0x738] sm:$0xff] }
 0x2ed   : > { %7065 = vmatpush.bf16.msra.mxu1 %v9155_v15  ;;  %v9189_v15 = vld [vmem:[%s10483_s21 + $0x778] sm:$0xff] }
 0x2ee   : > { %7079 = vmatpush.bf16.msra.mxu2 %v9163_v16  ;;  %v9197_v16 = vld [vmem:[%s10483_s21 + $0x7b8] sm:$0xff] }
 0x2ef   : > { %7093 = vmatpush.bf16.msra.mxu3 %v9171_v17  ;;  %v9205_v17 = vld [vmem:[%s10483_s21 + $0x7f8] sm:$0xff] }
 0x2f0   : > { %7052 = vmatpush.bf16.msra.mxu0 %v9146_v20  ;;  %v5196_v60 = vpop.f32.mrf.mxu2  ;;  %v6607_v20 = vor.u32 %v6606_v11, %v6602_v10 }
 0x2f1   : > { %7066 = vmatpush.bf16.msra.mxu1 %v9154_v21  ;;  %v5197_v63 = vadd.f32 %v5196_v60, %v5183_v53  ;;  %v5210_v0 = vpop.f32.mrf.mxu3  ;;  %v6614_v21 = vor.u32 %v6613_v13, %v6609_v12  ;;  %v9184_v60 = vld [vmem:[%s10483_s21 + $0x750] sm:$0xff] }
 0x2f2   : > { %7080 = vmatpush.bf16.msra.mxu2 %v9162_v23  ;;  %v9188_v23 = vld [vmem:[%s10483_s21 + $0x770] sm:$0xff] }
 0x2f3   : > { %7094 = vmatpush.bf16.msra.mxu3 %v9170_v24  ;;  %v10776_v2 = vadd.f32 %v5210_v0, %v5197_v63  ;;  %v9196_v24 = vld [vmem:[%s10483_s21 + $0x7b0] sm:$0xff] }
 0x2f4   : > { %7053 = vmatpush.bf16.msra.mxu0 %v9145_v26  ;;  %v9179_v26 = vld [vmem:[%s10483_s21 + $0x728] sm:$0xff]  ;;  %v9192_v63 = vld [vmem:[%s10483_s21 + $0x790] sm:$0xff] }
 0x2f5   : > { %7067 = vmatpush.bf16.msra.mxu1 %v9153_v27  ;;  %v9187_v27 = vld [vmem:[%s10483_s21 + $0x768] sm:$0xff]  ;;  %v9200_v0 = vld [vmem:[%s10483_s21 + $0x7d0] sm:$0xff] }
 0x2f6   : > { %7081 = vmatpush.bf16.msra.mxu2 %v9161_v28  ;;  %v9195_v28 = vld [vmem:[%s10483_s21 + $0x7a8] sm:$0xff] }
 0x2f7   : > { %7095 = vmatpush.bf16.msra.mxu3 %v9169_v29  ;;  %v9203_v29 = vld [vmem:[%s10483_s21 + $0x7e8] sm:$0xff] }
 0x2f8   : > { %7054 = vmatpush.bf16.msra.mxu0 %v9144_v45  ;;  %v8651_v45 = vld [vmem:[%s10506_s26 + $0x38] sm:$0xf] }
 0x2f9   : > { %7068 = vmatpush.bf16.msra.mxu1 %v9152_v46  ;;  %v9141_v46 = vld [vmem:[%s10506_s26 + $0x54] sm:$0x10] }
 0x2fa   : > { %7082 = vmatpush.bf16.msra.mxu2 %v9160_v49  ;;  %v9137_v49 = vld [vmem:[%s10506_s26 + $0x3c] sm:$0xf]  ;;  %v8652_v56 = vor.u32 %v9141_v46, %v8651_v45 }
 0x2fb   : > { %7096 = vmatpush.bf16.msra.mxu3 %v9168_v50  ;;  %v8653_v50 = vld [vmem:[%s10506_s26 + $0x58] sm:$0x10] }
 0x2fc   : > { %7055 = vmatpush.bf16.msra.mxu0 %v9143_v54  ;;  %v8644_v54 = vor.u32 %v9140_v42, %v8643_v41  ;;  %v8656_v62 = vor.u32 %v9137_v49, %v8653_v50 }
 0x2fd   : > { %7069 = vmatpush.bf16.msra.mxu1 %v9151_v55 }
 0x2fe   : > { %7083 = vmatpush.bf16.msra.mxu2 %v9159_v58  ;;  %v6653_v7 = vshll.u32 %v8656_v62, 16  ;;  %v6630_v13 = vshrl.u32 %v8644_v54, 16 }
 0x2ff   : > { %7097 = vmatpush.bf16.msra.mxu3 %v9167_v59  ;;  %v9176_v59 = vld [vmem:[%s10483_s21 + $0x710] sm:$0xff] }
 0x300   : > { %7056 = vmatpush.bf16.msra.mxu0 %v9142_v3  ;;  %v5646_v30 = vpop.f32.mrf.mxu0  ;;  %v6632_v3 = vshll.u32 %v8644_v54, 16 }
 0x301   : > { %7070 = vmatpush.bf16.msra.mxu1 %v9150_v4  ;;  %v5647_v31 = vadd.f32 %v5646_v30, %v10766_v44  ;;  %v5660_v34 = vpop.f32.mrf.mxu1  ;;  %v8645_v44 = vld [vmem:[%s10506_s26 + $0x50] sm:$0x10] }
 0x302   : > { %7084 = vmatpush.bf16.msra.mxu2 %v9158_v8  ;;  %v8648_v55 = vor.u32 %v9136_v43, %v8645_v44  ;;  %v9191_v8 = vld [vmem:[%s10483_s21 + $0x788] sm:$0xff] }
 0x303   : > { %7098 = vmatpush.bf16.msra.mxu3 %v9166_v9  ;;  %7057 = vmatmul.bf16.vlgmr.msra.gmra.mxu0 %v6607_v20  ;;  %v5661_v37 = vadd.f32 %v5660_v34, %v5647_v31  ;;  %v9199_v9 = vld [vmem:[%s10483_s21 + $0x7c8] sm:$0xff]  ;;  %v9182_v20 = vld [vmem:[%s10483_s21 + $0x740] sm:$0xff] }
 0x304   : > { %7105 = vmatpush.bf16.msrb.mxu0 %v9181_v14  ;;  %7071 = vmatmul.bf16.vlgmr.msra.gmra.mxu1 %v6614_v21  ;;  %v6639_v4 = vshll.u32 %v8648_v55, 16  ;;  %v6634_v14 = vrot.slane %v6632_v3, 1 }
 0x305   : > { %7119 = vmatpush.bf16.msrb.mxu1 %v9189_v15  ;;  %7085 = vmatmul.bf16.vlgmr.msra.gmra.mxu2 %v6621_v18  ;;  %v6637_v15 = vshrl.u32 %v8648_v55, 16 }
 0x306   : > { %7133 = vmatpush.bf16.msrb.mxu2 %v9197_v16  ;;  %7099 = vmatmul.bf16.vlgmr.msra.gmra.mxu3 %v6628_v19  ;;  %v6641_v16 = vrot.slane %v6639_v4, 1  ;;  %v9174_v19 = vld [vmem:[%s10483_s21 + $0x700] sm:$0xff] }
 0x307   : > { %7147 = vmatpush.bf16.msrb.mxu3 %v9205_v17  ;;  %v6644_v17 = vshrl.u32 %v8652_v56, 16 }
 0x308   : > { %7106 = vmatpush.bf16.msrb.mxu0 %v9180_v22  ;;  %v5674_v48 = vpop.f32.mrf.mxu2  ;;  %v5648_v53 = vpop.f32.mrf.mxu0  ;;  %v6651_v22 = vshrl.u32 %v8656_v62, 16 }
 0x309   : > { %7120 = vmatpush.bf16.msrb.mxu1 %v9188_v23  ;;  %v5675_v51 = vadd.f32 %v5674_v48, %v5661_v37  ;;  %v5688_v52 = vpop.f32.mrf.mxu3  ;;  %v5649_v57 = vadd.f32 %v5648_v53, %v10776_v2  ;;  %v5662_v61 = vpop.f32.mrf.mxu1  ;;  %v6646_v2 = vshll.u32 %v8652_v56, 16  ;;  %v6655_v23 = vrot.slane %v6653_v7, 1 }
 0x30a   : > { %7134 = vmatpush.bf16.msrb.mxu2 %v9196_v24  ;;  %v9190_v24 = vld [vmem:[%s10483_s21 + $0x780] sm:$0xff] }
 0x30b   : > { %7148 = vmatpush.bf16.msrb.mxu3 %v9204_v25  ;;  %v5689_v58 = vadd.f32 %v5688_v52, %v5675_v51  ;;  %v5663_v1 = vadd.f32 %v5662_v61, %v5649_v57  ;;  %v6648_v21 = vrot.slane %v6646_v2, 1  ;;  %v9198_v25 = vld [vmem:[%s10483_s21 + $0x7c0] sm:$0xff] }
 0x30c   : > { %7107 = vmatpush.bf16.msrb.mxu0 %v9179_v26  ;;  %v6635_v26 = vor.u32 %v6634_v14, %v6630_v13 }
 0x30d   : > { %7121 = vmatpush.bf16.msrb.mxu1 %v9187_v27  ;;  %v6642_v27 = vor.u32 %v6641_v16, %v6637_v15 }
 0x30e   : > { %7135 = vmatpush.bf16.msrb.mxu2 %v9195_v28  ;;  %v6649_v28 = vor.u32 %v6648_v21, %v6644_v17 }
 0x30f   : > { %7149 = vmatpush.bf16.msrb.mxu3 %v9203_v29  ;;  %v6656_v29 = vor.u32 %v6655_v23, %v6651_v22 }
 0x310   : > { %7108 = vmatpush.bf16.msrb.mxu0 %v9178_v32  ;;  %v5676_v10 = vpop.f32.mrf.mxu2 }
 0x311   : > { %7122 = vmatpush.bf16.msrb.mxu1 %v9186_v33  ;;  %v5677_v11 = vadd.f32 %v5676_v10, %v5663_v1  ;;  %v5690_v12 = vpop.f32.mrf.mxu3 }
 0x312   : > { %7136 = vmatpush.bf16.msrb.mxu2 %v9194_v35 }
 0x313   : > { %7150 = vmatpush.bf16.msrb.mxu3 %v9202_v36  ;;  %v10820_v18 = vadd.f32 %v5690_v12, %v5677_v11 }
 0x314   : > { %7109 = vmatpush.bf16.msrb.mxu0 %v9177_v38 }
 0x315   : > { %7123 = vmatpush.bf16.msrb.mxu1 %v9185_v39 }
 0x316   : > { %7137 = vmatpush.bf16.msrb.mxu2 %v9193_v40 }
 0x317   : > { %7151 = vmatpush.bf16.msrb.mxu3 %v9201_v47 }
 0x318   : > { %7110 = vmatpush.bf16.msrb.mxu0 %v9176_v59 }
 0x319   : > { %7124 = vmatpush.bf16.msrb.mxu1 %v9184_v60 }
 0x31a   : > { %7138 = vmatpush.bf16.msrb.mxu2 %v9192_v63 }
 0x31b   : > { %7152 = vmatpush.bf16.msrb.mxu3 %v9200_v0 }
 0x31c   : > { %7111 = vmatpush.bf16.msrb.mxu0 %v9175_v5 }
 0x31d   : > { %7125 = vmatpush.bf16.msrb.mxu1 %v9183_v6 }
 0x31e   : > { %7139 = vmatpush.bf16.msrb.mxu2 %v9191_v8 }
 0x31f   : > { %7153 = vmatpush.bf16.msrb.mxu3 %v9199_v9 }
 0x320   : > { %7112 = vmatpush.bf16.msrb.mxu0 %v9174_v19  ;;  %v5702_v30 = vpop.f32.mrf.mxu0 }
 0x321   : > { %7126 = vmatpush.bf16.msrb.mxu1 %v9182_v20  ;;  %v5703_v31 = vadd.f32 %v5702_v30, %v5689_v58  ;;  %v5716_v32 = vpop.f32.mrf.mxu1 }
 0x322   : > { %7140 = vmatpush.bf16.msrb.mxu2 %v9190_v24 }
 0x323   : > { %7154 = vmatpush.bf16.msrb.mxu3 %v9198_v25  ;;  %7113 = vmatmul.bf16.vlgmr.msrb.gmra.mxu0 %v6635_v26  ;;  %v5717_v33 = vadd.f32 %v5716_v32, %v5703_v31  ;;  %v9356_v26 = vmov 9.0  }
 0x324   : > { %7127 = vmatmul.bf16.vlgmr.msrb.gmra.mxu1 %v6642_v27  ;;  %9280 = vrcp.f32 %v9356_v26  ;;  %v7218_v26 = vld [vmem:[%s4334_s3 + $0x4] sm:$0x1] }
 0x325   : > { %7141 = vmatmul.bf16.vlgmr.msrb.gmra.mxu2 %v6649_v28 }
 0x326   : > { %7155 = vmatmul.bf16.vlgmr.msrb.gmra.mxu3 %v6656_v29 }
 0x328   : > { %v5730_v34 = vpop.f32.mrf.mxu2  ;;  %v5704_v38 = vpop.f32.mrf.mxu0 }
 0x329   : > { %v5731_v35 = vadd.f32 %v5730_v34, %v5717_v33  ;;  %v5744_v36 = vpop.f32.mrf.mxu3  ;;  %v5718_v39 = vpop.f32.mrf.mxu1  ;;  %v5705_v17 = vadd.f32 %v5704_v38, %v10820_v18 }
 0x32a   : > { %v9281_v18 = vpop.eup %9280 }
 0x32b   : > { %v10826_v37 = vadd.f32 %v5744_v36, %v5731_v35  ;;  %v5719_v27 = vadd.f32 %v5718_v39, %v5705_v17  ;;  %v7173_v39 = vmul.f32 9.0, %v9281_v18  ;;  %vm7177_vm1 = vweird.f32 %v9281_v18 }
 0x330   : > { %v5732_v40 = vpop.f32.mrf.mxu2 }
 0x331   : > { %v10828_v41 = vpop.f32.mrf.mxu3  ;;  %v5733_v32 = vadd.f32 %v5732_v40, %v5719_v27 }
 0x340   : > { %v6327_v42 = vpop.f32.mrf.mxu0 }
 0x341   : > { %v6341_v43 = vpop.f32.mrf.mxu1 }
 0x342   : > { %v6342_v62 = vadd.f32 %v6341_v43, %v6327_v42  ;;  %v5747_v43 = vadd.f32 %v10828_v41, %v5733_v32 }
 0x348   : > { %v6355_v44 = vpop.f32.mrf.mxu2  ;;  %v6329_v46 = vpop.f32.mrf.mxu0 }
 0x349   : > { %v6369_v45 = vpop.f32.mrf.mxu3  ;;  %v6343_v47 = vpop.f32.mrf.mxu1  ;;  %v6356_v1 = vadd.f32 %v6355_v44, %v6342_v62 }
 0x34a   : > { %v6344_v0 = vadd.f32 %v6343_v47, %v6329_v46 }
 0x34b   : > { %v6370_v6 = vadd.f32 %v6369_v45, %v6356_v1 }
 0x350   : > { %v6357_v48 = vpop.f32.mrf.mxu2 }
 0x351   : > { %v6371_v49 = vpop.f32.mrf.mxu3  ;;  %v6358_v5 = vadd.f32 %v6357_v48, %v6344_v0 }
 0x353   : > { %v6372_v11 = vadd.f32 %v6371_v49, %v6358_v5 }
 0x360   : > { %v6383_v50 = vpop.f32.mrf.mxu0 }
 0x361   : > { %v6397_v51 = vpop.f32.mrf.mxu1  ;;  %v6384_v12 = vadd.f32 %v6383_v50, %v6370_v6 }
 0x363   : > { %v6398_v19 = vadd.f32 %v6397_v51, %v6384_v12 }
 0x368   : > { %v6411_v52 = vpop.f32.mrf.mxu2  ;;  %v6385_v54 = vpop.f32.mrf.mxu0 }
 0x369   : > { %v6425_v53 = vpop.f32.mrf.mxu3  ;;  %v6399_v55 = vpop.f32.mrf.mxu1  ;;  %v6386_v14 = vadd.f32 %v6385_v54, %v6372_v11  ;;  %v6412_v30 = vadd.f32 %v6411_v52, %v6398_v19  ;;  %v7174_v52 = vsub.f32 1.0, %v7173_v39 }
 0x36b   : > { %v6400_v23 = vadd.f32 %v6399_v55, %v6386_v14  ;;  %v6426_v38 = vadd.f32 %v6425_v53, %v6412_v30  ;;  %v7175_v53 = vmul.f32 %v9281_v18, %v7174_v52 }
 0x36d   : > { %v6430_v49 = vadd.f32 %v6426_v38, %v10826_v37  ;;  %v7176_v41 = vadd.f32 %v9281_v18, %v7175_v53 }
 0x370   : > { %v6413_v56 = vpop.f32.mrf.mxu2 }
 0x371   : > { %v6427_v57 = vpop.f32.mrf.mxu3  ;;  %v6414_v28 = vadd.f32 %v6413_v56, %v6400_v23 }
 0x373   : > { %v6428_v35 = vadd.f32 %v6427_v57, %v6414_v28 }
 0x375   : > { %v6431_v47 = vadd.f32 %v6428_v35, %v5747_v43 }
 0x380   : > { %v7058_v58 = vpop.f32.mrf.mxu0 }
 0x381   : > { %v7072_v59 = vpop.f32.mrf.mxu1 }
 0x382   : > { %v7073_v4 = vadd.f32 %v7072_v59, %v7058_v58 }
 0x388   : > { %v7086_v60 = vpop.f32.mrf.mxu2  ;;  %v7060_v63 = vpop.f32.mrf.mxu0 }
 0x389   : > { %v7100_v61 = vpop.f32.mrf.mxu3  ;;  %v7074_v3 = vpop.f32.mrf.mxu1  ;;  %v7087_v10 = vadd.f32 %v7086_v60, %v7073_v4  ;;  %v7178_v60 = vsel %vm7177_vm1, %v9281_v18, %v7176_v41 }
 0x38a   : > { %v7075_v8 = vadd.f32 %v7074_v3, %v7060_v63 }
 0x38b   : > { %v7101_v16 = vadd.f32 %v7100_v61, %v7087_v10 }
 0x390   : > { %v7088_v2 = vpop.f32.mrf.mxu2 }
 0x391   : > { %v7102_v7 = vpop.f32.mrf.mxu3  ;;  %v7089_v15 = vadd.f32 %v7088_v2, %v7075_v8 }
 0x393   : > { %v7103_v24 = vadd.f32 %v7102_v7, %v7089_v15 }
 0x3a0   : > { %v7114_v9 = vpop.f32.mrf.mxu0 }
 0x3a1   : > { %v7128_v13 = vpop.f32.mrf.mxu1  ;;  %v7115_v20 = vadd.f32 %v7114_v9, %v7101_v16 }
 0x3a3   : > { %v7129_v31 = vadd.f32 %v7128_v13, %v7115_v20 }
 0x3a8   : > { %v7142_v21 = vpop.f32.mrf.mxu2  ;;  %v7116_v25 = vpop.f32.mrf.mxu0 }
 0x3a9   : > { %v7156_v22 = vpop.f32.mrf.mxu3  ;;  %v7117_v29 = vadd.f32 %v7116_v25, %v7103_v24  ;;  %v7143_v33 = vadd.f32 %v7142_v21, %v7129_v31  ;;  %v7130_v34 = vpop.f32.mrf.mxu1 }
 0x3ab   : > { %v7131_v36 = vadd.f32 %v7130_v34, %v7117_v29  ;;  %v7157_v45 = vadd.f32 %v7156_v22, %v7143_v33 }
 0x3ad   : > { %v7161_v40 = vadd.f32 %v7157_v45, %v6430_v49 }
 0x3b0   : > { %v7144_v42 = vpop.f32.mrf.mxu2 }
 0x3b1   : > { %v7145_v44 = vadd.f32 %v7144_v42, %v7131_v36  ;;  %v7158_v46 = vpop.f32.mrf.mxu3 }
 0x3b3   : > { %v7159_v48 = vadd.f32 %v7158_v46, %v7145_v44 }
 0x3b5   : > { %v7162_v50 = vadd.f32 %v7159_v48, %v6431_v47 }
 0x3b7   : > { %v7164_v51 = vsel %vm7163_vm0, %v7162_v50, 0.0 }
 0x3b8   : > { %v7165_v54 = vadd.f32 %v7164_v51, %v7161_v40 }
 0x3ba   : > { %v7166_v55 = vrot.slane %v7165_v54, 4 }
 0x3bc   : > { %v7167_v56 = vadd.f32 %v7166_v55, %v7165_v54 }
 0x3be   : > { %v7168_v57 = vrot.slane %v7167_v56, 2 }
 0x3c0   : > { %v7169_v58 = vadd.f32 %v7168_v57, %v7167_v56 }
 0x3c2   : > { %v7170_v59 = vrot.slane %v7169_v58, 1 }
 0x3c4   : > { %v7171_v61 = vadd.f32 %v7170_v59, %v7169_v58 }
 0x3c6   : > { %v7179_v62 = vmul.f32 %v7178_v60, %v7171_v61 }
 0x3c8   : > { %v7180_v63 = vsub.f32 %v7161_v40, %v7179_v62  ;;  %v7181_v37 = vsub.f32 %v7162_v50, %v7179_v62 }
 0x3ca   : > { %v7182_v0 = vmul.f32 %v7180_v63, %v7180_v63  ;;  %v7183_v1 = vmul.f32 %v7181_v37, %v7181_v37 }
 0x3cc   : > { %v7184_v3 = vsel %vm7163_vm0, %v7183_v1, 0.0 }
 0x3cd   : > { %v7185_v4 = vadd.f32 %v7184_v3, %v7182_v0 }
 0x3cf   : > { %v7186_v5 = vrot.slane %v7185_v4, 4 }
 0x3d1   : > { %v7187_v6 = vadd.f32 %v7186_v5, %v7185_v4 }
 0x3d3   : > { %v7188_v2 = vrot.slane %v7187_v6, 2 }
 0x3d5   : > { %v7189_v7 = vadd.f32 %v7188_v2, %v7187_v6 }
 0x3d7   : > { %v7190_v8 = vrot.slane %v7189_v7, 1 }
 0x3d9   : > { %v7191_v9 = vadd.f32 %v7190_v8, %v7189_v7 }
 0x3db   : > { %v7192_v10 = vmul.f32 %v7191_v9, %v7178_v60 }
 0x3dd   : > { %v7193_v11 = vadd.f32 1e-05, %v7192_v10 }
 0x3df   : > { %9282 = vrsqrt.f32 %v7193_v11  ;;  %vm7200_vm3 = vweird.f32 %v7193_v11 }
 0x3e5   : > { %v9283_v12 = vpop.eup %9282 }
 0x3e6   : > { %v7195_v13 = vmul.f32 %v9283_v12, %v7193_v11  ;;  %vm7201_vm2 = vweird.f32 %v9283_v12 }
 0x3e7   : > { %vm7202_vm4 = vmor %vm7200_vm3, %vm7201_vm2 }
 0x3e8   : > { %v7196_v14 = vmul.f32 %v9283_v12, %v7195_v13 }
 0x3ea   : > { %v7197_v15 = vmul.f32 0.5, %v7196_v14 }
 0x3ec   : > { %v7198_v16 = vsub.f32 1.5, %v7197_v15 }
 0x3ee   : > { %v7199_v17 = vmul.f32 %v9283_v12, %v7198_v16 }
 0x3f0   : > { %v7203_v19 = vsel %vm7202_vm4, %v9283_v12, %v7199_v17 }
 0x3f1   : > { %v7204_v20 = vmul.f32 %v7203_v19, %v7180_v63  ;;  %v7205_v21 = vmul.f32 %v7203_v19, %v7181_v37 }
 0x3f3   : > { %vm7206_vm6 = vcmp.gt.f32.partialorder %v7204_v20, 0.0  ;;  %vm7207_vm7 = vcmp.gt.f32.partialorder %v7205_v21, 0.0  ;;  %v7208_v22 = vmul.f32 0.2, %v7204_v20  ;;  %v7209_v23 = vmul.f32 0.2, %v7205_v21 }
 0x3f5   : > { %v7210_v24 = vsel %vm7206_vm6, %v7204_v20, %v7208_v22  ;;  %v7211_v25 = vsel %vm7207_vm7, %v7205_v21, %v7209_v23  ;;  %7227 = sbr.rel (!%p9439_p9) target bundleno = 1026 (0x402), region = 84 }
 0x3f6   : > { %v7212_v27 = vpack.c.bf16 %v7210_v24, %v7210_v24  ;;  %v7213_v28 = vpack.c.bf16 %v7211_v25, %v7211_v25 }
 0x3f8   : > { %7214 = vst [vmem:[%s4334_s3] sm:$0xf] %v7212_v27  ;;  %v7219_v29 = vsel %vm7217_vm8, %v7213_v28, %v7218_v26 }
 0x3f9   : > { %7220 = vst [vmem:[%s4334_s3 + $0x4] sm:$0x1] %v7219_v29 }
 0x3ff   : > { %v7248_v30 = vld [vmem:[%s4334_s3] sm:$0xf] }
 0x400   : > { %v7250_v31 = vld [vmem:[%s4334_s3 + $0x4] sm:$0xf]  ;;  %7249 = vst [vmem:[%s7231_s8] sm:$0xf] %v7248_v30 }
 0x401   : > { %7251 = vst [vmem:[%s7231_s8 + $0x10] sm:$0xf] %v7250_v31 }
 0x402 PF: > { %s12_s17 = sadd.s32 1, %s9354_s17   ;;  %s10875_s9 = smov %s9326_s10 }
 0x403   : > { %p9_p1 = scmp.ge.s32.totalorder %s12_s17, 10   ;;  %s10876_s10 = smov %s9444_s28 }
 0x404   : > { %s10877_s11 = smov %s9334_s12  ;;  %s10878_s12 = smov %s9433_s24 }
 0x405   : > { %s10879_s13 = smov %s9346_s15  ;;  %s10880_s14 = smov %s9350_s16 }
 0x406   : > { %s10881_s15 = smov %s10884_s19  ;;  %s10882_s16 = smov %s10888_s20 }
 0x407   :  { %11 = sbr.rel (!%p9_p1) target bundleno = 5 (0x5), region = 166 }

// kernel: discriminator_forward.9
= control target key start
LH: loop header
LB: loop body
LE: loop exit
PB: predicated region body
PF: predicated region fallthrough
CT: control target
= control target key end

     0   :  { %s9113_s12 = smov 0   ;;  %s9115_s13 = smov 0   ;;  %s10781_s0 = inlined_call_operand.vmem [shape: bf16[2,10,2048], index: 0, kind: input, shape index: {}]   ;;  %s10782_s1 = inlined_call_operand.vmem [shape: bf16[4,2048,128], index: 1, kind: input, shape index: {}]   ;;  %s10783_s2 = inlined_call_operand.vmem [shape: f32[1,128], index: 2, kind: input, shape index: {}]   ;;  %s10784_s3 = inlined_call_operand.vmem [shape: bf16[2,4,128], index: 3, kind: output, shape index: {}]  }
   0x1   :  { %s9117_s14 = smov 0  }
   0x2 LB: > { %s32_s15 = sadd.s32 1, %s9087_s13  ;;  %p5629_p0 = scmp.ge.s32.totalorder %s9091_s14, 1  ;;  %s9091_s14 = sphi %s9117_s14, %s13_s14   ;;  %s9087_s13 = sphi %s9115_s13, %s10786_s13   ;;  %s9083_s12 = sphi %s9113_s12, %s10785_s12  }
   0x3   : > { %p34_p1 = scmp.ge.s32.totalorder %s32_s15, 2  ;;  %p177_p2 = scmp.lt.s32.totalorder %s9091_s14, 3 }
   0x5   : > { %s10788_s15 = smov (%p34_p1, %s32_s15), 0  ;;  %p178_p3 = pnand %p5629_p0, %p177_p2 }
   0x6   : > { %p213_p4 = scmp.lt.s32.totalorder (!%p178_p3), %s9083_s12, 1 }
   0x7   : > { %181 = sbr.rel (%p178_p3) target bundleno = 669 (0x29d), region = 32 }
   0xc   : > { %v8651_v0 = vld [vmem:[%s10782_s1 + $0x438] sm:$0xff]  ;;  %v8650_v4 = vld [vmem:[%s10782_s1 + $0x430] sm:$0xff]  ;;  %v8649_v8 = vld [vmem:[%s10782_s1 + $0x428] sm:$0xff]  ;;  %s10790_s12 = smov (!%p213_p4, %s9083_s12), 1 }
   0xd   : > { %v8659_v1 = vld [vmem:[%s10782_s1 + $0x478] sm:$0xff]  ;;  %1604 = vmatpush.bf16.msra.mxu0 %v8651_v0  ;;  %v8658_v5 = vld [vmem:[%s10782_s1 + $0x470] sm:$0xff]  ;;  %v8657_v9 = vld [vmem:[%s10782_s1 + $0x468] sm:$0xff]  ;;  %s8515_s25 = sshll.u32 %s10790_s12, 7  ;;  %s5632_s4 = sshll.u32 %s10790_s12, 1 }
   0xe   : > { %v8667_v2 = vld [vmem:[%s10782_s1 + $0x4b8] sm:$0xff]  ;;  %1617 = vmatpush.bf16.msra.mxu1 %v8659_v1  ;;  %v8666_v6 = vld [vmem:[%s10782_s1 + $0x4b0] sm:$0xff]  ;;  %v8665_v10 = vld [vmem:[%s10782_s1 + $0x4a8] sm:$0xff]  ;;  %s9201_s9 = scalar_lea.vmem %s10781_s0, %s8515_s25  ;;  %s234_s7 = scalar_lea.vmem %s10784_s3, %s5632_s4 }
   0xf   : > { %v8675_v3 = vld [vmem:[%s10782_s1 + $0x4f8] sm:$0xff]  ;;  %1630 = vmatpush.bf16.msra.mxu2 %v8667_v2  ;;  %v8674_v7 = vld [vmem:[%s10782_s1 + $0x4f0] sm:$0xff]  ;;  %v8673_v11 = vld [vmem:[%s10782_s1 + $0x4e8] sm:$0xff] }
  0x10   : > { %1643 = vmatpush.bf16.msra.mxu3 %v8675_v3  ;;  %v8648_v12 = vld [vmem:[%s10782_s1 + $0x420] sm:$0xff]  ;;  %v8647_v16 = vld [vmem:[%s10782_s1 + $0x418] sm:$0xff]  ;;  %v8646_v20 = vld [vmem:[%s10782_s1 + $0x410] sm:$0xff] }
  0x11   : > { %1605 = vmatpush.bf16.msra.mxu0 %v8650_v4  ;;  %v8656_v13 = vld [vmem:[%s10782_s1 + $0x460] sm:$0xff]  ;;  %v8655_v17 = vld [vmem:[%s10782_s1 + $0x458] sm:$0xff]  ;;  %v8654_v21 = vld [vmem:[%s10782_s1 + $0x450] sm:$0xff] }
  0x12   : > { %1618 = vmatpush.bf16.msra.mxu1 %v8658_v5  ;;  %v8664_v14 = vld [vmem:[%s10782_s1 + $0x4a0] sm:$0xff]  ;;  %v8663_v18 = vld [vmem:[%s10782_s1 + $0x498] sm:$0xff]  ;;  %v8662_v22 = vld [vmem:[%s10782_s1 + $0x490] sm:$0xff] }
  0x13   : > { %1631 = vmatpush.bf16.msra.mxu2 %v8666_v6  ;;  %v8672_v15 = vld [vmem:[%s10782_s1 + $0x4e0] sm:$0xff]  ;;  %v8671_v19 = vld [vmem:[%s10782_s1 + $0x4d8] sm:$0xff]  ;;  %v8670_v23 = vld [vmem:[%s10782_s1 + $0x4d0] sm:$0xff] }
  0x14   : > { %1644 = vmatpush.bf16.msra.mxu3 %v8674_v7  ;;  %v500_v24 = vld [vmem:[%s9201_s9 + $0x8] sm:$0x66]  ;;  %v499_v25 = vld [vmem:[%s9201_s9] sm:$0x66]  ;;  %v8683_v42 = vld [vmem:[%s10782_s1 + $0x538] sm:$0xff] }
  0x15   : > { %1606 = vmatpush.bf16.msra.mxu0 %v8649_v8  ;;  %v8645_v26 = vld [vmem:[%s10782_s1 + $0x408] sm:$0xff]  ;;  %v774_v28 = vunpack.c.l.b16 %v500_v24  ;;  %v772_v29 = vunpack.c.l.b16 %v499_v25  ;;  %v775_v32 = vunpack.c.h.b16 %v500_v24  ;;  %v773_v33 = vunpack.c.h.b16 %v499_v25  ;;  %v8644_v34 = vld [vmem:[%s10782_s1 + $0x400] sm:$0xff]  ;;  %v8691_v43 = vld [vmem:[%s10782_s1 + $0x578] sm:$0xff] }
  0x16   : > { %1619 = vmatpush.bf16.msra.mxu1 %v8657_v9  ;;  %v8653_v27 = vld [vmem:[%s10782_s1 + $0x448] sm:$0xff]  ;;  %v8652_v35 = vld [vmem:[%s10782_s1 + $0x440] sm:$0xff]  ;;  %v8699_v44 = vld [vmem:[%s10782_s1 + $0x5b8] sm:$0xff] }
  0x17   : > { %1632 = vmatpush.bf16.msra.mxu2 %v8665_v10  ;;  %v8661_v30 = vld [vmem:[%s10782_s1 + $0x488] sm:$0xff]  ;;  %v790_v36 = vpack.c.b16 %v774_v28, %v774_v28  ;;  %v788_v37 = vpack.c.b16 %v772_v29, %v772_v29  ;;  %v8660_v38 = vld [vmem:[%s10782_s1 + $0x480] sm:$0xff]  ;;  %v791_v40 = vpack.c.b16 %v775_v32, %v775_v32  ;;  %v789_v41 = vpack.c.b16 %v773_v33, %v773_v33  ;;  %v8707_v45 = vld [vmem:[%s10782_s1 + $0x5f8] sm:$0xff] }
  0x18   : > { %1645 = vmatpush.bf16.msra.mxu3 %v8673_v11  ;;  %v8669_v31 = vld [vmem:[%s10782_s1 + $0x4c8] sm:$0xff]  ;;  %v8668_v39 = vld [vmem:[%s10782_s1 + $0x4c0] sm:$0xff]  ;;  %v8682_v50 = vld [vmem:[%s10782_s1 + $0x530] sm:$0xff] }
  0x19   : > { %1607 = vmatpush.bf16.msra.mxu0 %v8648_v12  ;;  %v806_v46 = vrot.slane %v790_v36, 1  ;;  %v804_v47 = vrot.slane %v788_v37, 1  ;;  %v807_v48 = vrot.slane %v791_v40, 1  ;;  %v805_v49 = vrot.slane %v789_v41, 1  ;;  %v8690_v51 = vld [vmem:[%s10782_s1 + $0x570] sm:$0xff]  ;;  %v8681_v54 = vld [vmem:[%s10782_s1 + $0x528] sm:$0xff] }
  0x1a   : > { %1620 = vmatpush.bf16.msra.mxu1 %v8656_v13  ;;  %v8698_v52 = vld [vmem:[%s10782_s1 + $0x5b0] sm:$0xff]  ;;  %v8689_v55 = vld [vmem:[%s10782_s1 + $0x568] sm:$0xff]  ;;  %v8680_v58 = vld [vmem:[%s10782_s1 + $0x520] sm:$0xff] }
  0x1b   : > { %1633 = vmatpush.bf16.msra.mxu2 %v8664_v14  ;;  %v8706_v53 = vld [vmem:[%s10782_s1 + $0x5f0] sm:$0xff]  ;;  %v8697_v56 = vld [vmem:[%s10782_s1 + $0x5a8] sm:$0xff]  ;;  %v8688_v59 = vld [vmem:[%s10782_s1 + $0x560] sm:$0xff] }
  0x1c   : > { %1646 = vmatpush.bf16.msra.mxu3 %v8672_v15  ;;  %v8705_v57 = vld [vmem:[%s10782_s1 + $0x5e8] sm:$0xff]  ;;  %v8696_v60 = vld [vmem:[%s10782_s1 + $0x5a0] sm:$0xff]  ;;  %v8679_v62 = vld [vmem:[%s10782_s1 + $0x518] sm:$0xff] }
  0x1d   : > { %1608 = vmatpush.bf16.msra.mxu0 %v8647_v16  ;;  %v8704_v61 = vld [vmem:[%s10782_s1 + $0x5e0] sm:$0xff]  ;;  %v8687_v63 = vld [vmem:[%s10782_s1 + $0x558] sm:$0xff]  ;;  %v8678_v2 = vld [vmem:[%s10782_s1 + $0x510] sm:$0xff] }
  0x1e   : > { %1621 = vmatpush.bf16.msra.mxu1 %v8655_v17  ;;  %v8695_v0 = vld [vmem:[%s10782_s1 + $0x598] sm:$0xff]  ;;  %v8686_v3 = vld [vmem:[%s10782_s1 + $0x550] sm:$0xff]  ;;  %v8677_v8 = vld [vmem:[%s10782_s1 + $0x508] sm:$0xff] }
  0x1f   : > { %1634 = vmatpush.bf16.msra.mxu2 %v8663_v18  ;;  %v8703_v1 = vld [vmem:[%s10782_s1 + $0x5d8] sm:$0xff]  ;;  %v8694_v4 = vld [vmem:[%s10782_s1 + $0x590] sm:$0xff]  ;;  %v8685_v9 = vld [vmem:[%s10782_s1 + $0x548] sm:$0xff] }
  0x20   : > { %1647 = vmatpush.bf16.msra.mxu3 %v8671_v19  ;;  %v8702_v5 = vld [vmem:[%s10782_s1 + $0x5d0] sm:$0xff]  ;;  %v502_v6 = vld [vmem:[%s9201_s9 + $0x18] sm:$0x66]  ;;  %v8693_v12 = vld [vmem:[%s10782_s1 + $0x588] sm:$0xff] }
  0x21   : > { %1609 = vmatpush.bf16.msra.mxu0 %v8646_v20  ;;  %v501_v7 = vld [vmem:[%s9201_s9 + $0x10] sm:$0x66]  ;;  %v778_v10 = vunpack.c.l.b16 %v502_v6  ;;  %v8701_v13 = vld [vmem:[%s10782_s1 + $0x5c8] sm:$0xff]  ;;  %v779_v14 = vunpack.c.h.b16 %v502_v6  ;;  %v8676_v16 = vld [vmem:[%s10782_s1 + $0x500] sm:$0xff] }
  0x22   : > { %1622 = vmatpush.bf16.msra.mxu1 %v8654_v21  ;;  %v776_v11 = vunpack.c.l.b16 %v501_v7  ;;  %v777_v15 = vunpack.c.h.b16 %v501_v7  ;;  %v8684_v17 = vld [vmem:[%s10782_s1 + $0x540] sm:$0xff]  ;;  %v8715_v24 = vld [vmem:[%s10782_s1 + $0x638] sm:$0xff]  ;;  %v8714_v32 = vld [vmem:[%s10782_s1 + $0x630] sm:$0xff] }
  0x23   : > { %1635 = vmatpush.bf16.msra.mxu2 %v8662_v22  ;;  %v794_v18 = vpack.c.b16 %v778_v10, %v778_v10  ;;  %v8692_v20 = vld [vmem:[%s10782_s1 + $0x580] sm:$0xff]  ;;  %v795_v22 = vpack.c.b16 %v779_v14, %v779_v14  ;;  %v8723_v25 = vld [vmem:[%s10782_s1 + $0x678] sm:$0xff]  ;;  %v8722_v33 = vld [vmem:[%s10782_s1 + $0x670] sm:$0xff] }
  0x24   : > { %1648 = vmatpush.bf16.msra.mxu3 %v8670_v23  ;;  %v792_v19 = vpack.c.b16 %v776_v11, %v776_v11  ;;  %v8700_v21 = vld [vmem:[%s10782_s1 + $0x5c0] sm:$0xff]  ;;  %v793_v23 = vpack.c.b16 %v777_v15, %v777_v15  ;;  %v8713_v36 = vld [vmem:[%s10782_s1 + $0x628] sm:$0xff]  ;;  %v8747_v6 = vld [vmem:[%s10782_s1 + $0x738] sm:$0xff] }
  0x25   : > { %1610 = vmatpush.bf16.msra.mxu0 %v8645_v26  ;;  %v8731_v26 = vld [vmem:[%s10782_s1 + $0x6b8] sm:$0xff]  ;;  %v810_v28 = vrot.slane %v794_v18, 1  ;;  %v8721_v37 = vld [vmem:[%s10782_s1 + $0x668] sm:$0xff]  ;;  %v8712_v40 = vld [vmem:[%s10782_s1 + $0x620] sm:$0xff] }
  0x26   : > { %1623 = vmatpush.bf16.msra.mxu1 %v8653_v27  ;;  %v8739_v27 = vld [vmem:[%s10782_s1 + $0x6f8] sm:$0xff]  ;;  %v808_v29 = vrot.slane %v792_v19, 1  ;;  %v8720_v41 = vld [vmem:[%s10782_s1 + $0x660] sm:$0xff]  ;;  %v8746_v14 = vld [vmem:[%s10782_s1 + $0x730] sm:$0xff] }
  0x27   : > { %1636 = vmatpush.bf16.msra.mxu2 %v8661_v30  ;;  %v811_v30 = vrot.slane %v795_v22, 1  ;;  %v8755_v7 = vld [vmem:[%s10782_s1 + $0x778] sm:$0xff]  ;;  %v8754_v15 = vld [vmem:[%s10782_s1 + $0x770] sm:$0xff]  ;;  %v8745_v18 = vld [vmem:[%s10782_s1 + $0x728] sm:$0xff] }
  0x28   : > { %1649 = vmatpush.bf16.msra.mxu3 %v8669_v31  ;;  %v809_v31 = vrot.slane %v793_v23, 1  ;;  %v8753_v19 = vld [vmem:[%s10782_s1 + $0x768] sm:$0xff]  ;;  %v8744_v22 = vld [vmem:[%s10782_s1 + $0x720] sm:$0xff] }
  0x29   : > { %1611 = vmatpush.bf16.msra.mxu0 %v8644_v34  ;;  %v8730_v34 = vld [vmem:[%s10782_s1 + $0x6b0] sm:$0xff]  ;;  %v8752_v23 = vld [vmem:[%s10782_s1 + $0x760] sm:$0xff] }
  0x2a   : > { %1624 = vmatpush.bf16.msra.mxu1 %v8652_v35  ;;  %v8738_v35 = vld [vmem:[%s10782_s1 + $0x6f0] sm:$0xff] }
  0x2b   : > { %1637 = vmatpush.bf16.msra.mxu2 %v8660_v38  ;;  %v8729_v38 = vld [vmem:[%s10782_s1 + $0x6a8] sm:$0xff] }
  0x2c   : > { %1650 = vmatpush.bf16.msra.mxu3 %v8668_v39  ;;  %1612 = vmatmul.bf16.vlgmr.msra.gmra.mxu0 %v804_v47  ;;  %v8737_v39 = vld [vmem:[%s10782_s1 + $0x6e8] sm:$0xff]  ;;  %v8735_v47 = vld [vmem:[%s10782_s1 + $0x6d8] sm:$0xff] }
  0x2d   : > { %1656 = vmatpush.bf16.msrb.mxu0 %v8683_v42  ;;  %1625 = vmatmul.bf16.vlgmr.msra.gmra.mxu1 %v805_v49  ;;  %v8728_v42 = vld [vmem:[%s10782_s1 + $0x6a0] sm:$0xff]  ;;  %v8718_v49 = vld [vmem:[%s10782_s1 + $0x650] sm:$0xff] }
  0x2e   : > { %1669 = vmatpush.bf16.msrb.mxu1 %v8691_v43  ;;  %1638 = vmatmul.bf16.vlgmr.msra.gmra.mxu2 %v806_v46  ;;  %v8736_v43 = vld [vmem:[%s10782_s1 + $0x6e0] sm:$0xff]  ;;  %v8727_v46 = vld [vmem:[%s10782_s1 + $0x698] sm:$0xff] }
  0x2f   : > { %1682 = vmatpush.bf16.msrb.mxu2 %v8699_v44  ;;  %1651 = vmatmul.bf16.vlgmr.msra.gmra.mxu3 %v807_v48  ;;  %v8711_v44 = vld [vmem:[%s10782_s1 + $0x618] sm:$0xff]  ;;  %v8710_v48 = vld [vmem:[%s10782_s1 + $0x610] sm:$0xff] }
  0x30   : > { %1695 = vmatpush.bf16.msrb.mxu3 %v8707_v45  ;;  %v8719_v45 = vld [vmem:[%s10782_s1 + $0x658] sm:$0xff] }
  0x31   : > { %1657 = vmatpush.bf16.msrb.mxu0 %v8682_v50  ;;  %v8726_v50 = vld [vmem:[%s10782_s1 + $0x690] sm:$0xff] }
  0x32   : > { %1670 = vmatpush.bf16.msrb.mxu1 %v8690_v51  ;;  %v8734_v51 = vld [vmem:[%s10782_s1 + $0x6d0] sm:$0xff] }
  0x33   : > { %1683 = vmatpush.bf16.msrb.mxu2 %v8698_v52  ;;  %v503_v52 = vld [vmem:[%s9201_s9 + $0x20] sm:$0x66] }
  0x34   : > { %1696 = vmatpush.bf16.msrb.mxu3 %v8706_v53  ;;  %v504_v53 = vld [vmem:[%s9201_s9 + $0x28] sm:$0x66] }
  0x35   : > { %1658 = vmatpush.bf16.msrb.mxu0 %v8681_v54  ;;  %v8709_v54 = vld [vmem:[%s10782_s1 + $0x608] sm:$0xff] }
  0x36   : > { %1671 = vmatpush.bf16.msrb.mxu1 %v8689_v55  ;;  %v8717_v55 = vld [vmem:[%s10782_s1 + $0x648] sm:$0xff] }
  0x37   : > { %1684 = vmatpush.bf16.msrb.mxu2 %v8697_v56  ;;  %v780_v56 = vunpack.c.l.b16 %v503_v52 }
  0x38   : > { %1697 = vmatpush.bf16.msrb.mxu3 %v8705_v57  ;;  %v782_v57 = vunpack.c.l.b16 %v504_v53 }
  0x39   : > { %1659 = vmatpush.bf16.msrb.mxu0 %v8680_v58  ;;  %v8725_v58 = vld [vmem:[%s10782_s1 + $0x688] sm:$0xff] }
  0x3a   : > { %1672 = vmatpush.bf16.msrb.mxu1 %v8688_v59  ;;  %v8733_v59 = vld [vmem:[%s10782_s1 + $0x6c8] sm:$0xff] }
  0x3b   : > { %1685 = vmatpush.bf16.msrb.mxu2 %v8696_v60  ;;  %v781_v60 = vunpack.c.h.b16 %v503_v52  ;;  %v8523_v52 = vld [vmem:[%s10782_s1 + $0x38] sm:$0xff] }
  0x3c   : > { %1698 = vmatpush.bf16.msrb.mxu3 %v8704_v61  ;;  %v783_v61 = vunpack.c.h.b16 %v504_v53  ;;  %v8531_v53 = vld [vmem:[%s10782_s1 + $0x78] sm:$0xff] }
  0x3d   : > { %1660 = vmatpush.bf16.msrb.mxu0 %v8679_v62  ;;  %v8708_v62 = vld [vmem:[%s10782_s1 + $0x600] sm:$0xff] }
  0x3e   : > { %1673 = vmatpush.bf16.msrb.mxu1 %v8687_v63  ;;  %v8716_v63 = vld [vmem:[%s10782_s1 + $0x640] sm:$0xff] }
  0x3f   : > { %1686 = vmatpush.bf16.msrb.mxu2 %v8695_v0  ;;  %v796_v0 = vpack.c.b16 %v780_v56, %v780_v56 }
  0x40   : > { %1699 = vmatpush.bf16.msrb.mxu3 %v8703_v1  ;;  %v798_v1 = vpack.c.b16 %v782_v57, %v782_v57 }
  0x41   : > { %1661 = vmatpush.bf16.msrb.mxu0 %v8678_v2  ;;  %v8724_v2 = vld [vmem:[%s10782_s1 + $0x680] sm:$0xff]  ;;  %v812_v10 = vrot.slane %v796_v0, 1  ;;  %v8521_v0 = vld [vmem:[%s10782_s1 + $0x28] sm:$0xff] }
  0x42   : > { %1674 = vmatpush.bf16.msrb.mxu1 %v8686_v3  ;;  %v8732_v3 = vld [vmem:[%s10782_s1 + $0x6c0] sm:$0xff]  ;;  %v814_v11 = vrot.slane %v798_v1, 1  ;;  %v8529_v1 = vld [vmem:[%s10782_s1 + $0x68] sm:$0xff] }
  0x43   : > { %1687 = vmatpush.bf16.msrb.mxu2 %v8694_v4  ;;  %v797_v4 = vpack.c.b16 %v781_v60, %v781_v60  ;;  %v8522_v60 = vld [vmem:[%s10782_s1 + $0x30] sm:$0xff] }
  0x44   : > { %1700 = vmatpush.bf16.msrb.mxu3 %v8702_v5  ;;  %v799_v5 = vpack.c.b16 %v783_v61, %v783_v61  ;;  %v8530_v61 = vld [vmem:[%s10782_s1 + $0x70] sm:$0xff] }
  0x45   : > { %1662 = vmatpush.bf16.msrb.mxu0 %v8677_v8  ;;  %v8763_v8 = vld [vmem:[%s10782_s1 + $0x7b8] sm:$0xff] }
  0x46   : > { %1675 = vmatpush.bf16.msrb.mxu1 %v8685_v9  ;;  %v8771_v9 = vld [vmem:[%s10782_s1 + $0x7f8] sm:$0xff] }
  0x47   : > { %1688 = vmatpush.bf16.msrb.mxu2 %v8693_v12  ;;  %v813_v12 = vrot.slane %v797_v4, 1  ;;  %v8520_v4 = vld [vmem:[%s10782_s1 + $0x20] sm:$0xff] }
  0x48   : > { %1701 = vmatpush.bf16.msrb.mxu3 %v8701_v13  ;;  %v815_v13 = vrot.slane %v799_v5, 1  ;;  %v8528_v5 = vld [vmem:[%s10782_s1 + $0x60] sm:$0xff] }
  0x49   : > { %1663 = vmatpush.bf16.msrb.mxu0 %v8676_v16  ;;  %v8762_v16 = vld [vmem:[%s10782_s1 + $0x7b0] sm:$0xff] }
  0x4a   : > { %1676 = vmatpush.bf16.msrb.mxu1 %v8684_v17  ;;  %v8770_v17 = vld [vmem:[%s10782_s1 + $0x7f0] sm:$0xff] }
  0x4b   : > { %1689 = vmatpush.bf16.msrb.mxu2 %v8692_v20  ;;  %v8761_v20 = vld [vmem:[%s10782_s1 + $0x7a8] sm:$0xff] }
  0x4c   : > { %1702 = vmatpush.bf16.msrb.mxu3 %v8700_v21  ;;  %1664 = vmatmul.bf16.vlgmr.msrb.gmra.mxu0 %v808_v29  ;;  %v8769_v21 = vld [vmem:[%s10782_s1 + $0x7e8] sm:$0xff]  ;;  %v8767_v29 = vld [vmem:[%s10782_s1 + $0x7d8] sm:$0xff] }
  0x4d   : > { %1708 = vmatpush.bf16.msra.mxu0 %v8715_v24  ;;  %1677 = vmatmul.bf16.vlgmr.msrb.gmra.mxu1 %v809_v31  ;;  %v8760_v24 = vld [vmem:[%s10782_s1 + $0x7a0] sm:$0xff]  ;;  %v8750_v31 = vld [vmem:[%s10782_s1 + $0x750] sm:$0xff] }
  0x4e   : > { %1721 = vmatpush.bf16.msra.mxu1 %v8723_v25  ;;  %1690 = vmatmul.bf16.vlgmr.msrb.gmra.mxu2 %v810_v28  ;;  %v8768_v25 = vld [vmem:[%s10782_s1 + $0x7e0] sm:$0xff]  ;;  %v8759_v28 = vld [vmem:[%s10782_s1 + $0x798] sm:$0xff] }
  0x4f   : > { %1734 = vmatpush.bf16.msra.mxu2 %v8731_v26  ;;  %1703 = vmatmul.bf16.vlgmr.msrb.gmra.mxu3 %v811_v30  ;;  %v8743_v26 = vld [vmem:[%s10782_s1 + $0x718] sm:$0xff]  ;;  %v8742_v30 = vld [vmem:[%s10782_s1 + $0x710] sm:$0xff] }
  0x50   : > { %1747 = vmatpush.bf16.msra.mxu3 %v8739_v27  ;;  %v8751_v27 = vld [vmem:[%s10782_s1 + $0x758] sm:$0xff] }
  0x51   : > { %1709 = vmatpush.bf16.msra.mxu0 %v8714_v32  ;;  %v8758_v32 = vld [vmem:[%s10782_s1 + $0x790] sm:$0xff] }
  0x52   : > { %1722 = vmatpush.bf16.msra.mxu1 %v8722_v33  ;;  %v8766_v33 = vld [vmem:[%s10782_s1 + $0x7d0] sm:$0xff] }
  0x53   : > { %1735 = vmatpush.bf16.msra.mxu2 %v8730_v34  ;;  %v505_v34 = vld [vmem:[%s9201_s9 + $0x30] sm:$0x66] }
  0x54   : > { %1748 = vmatpush.bf16.msra.mxu3 %v8738_v35  ;;  %v506_v35 = vld [vmem:[%s9201_s9 + $0x38] sm:$0x66] }
  0x55   : > { %1710 = vmatpush.bf16.msra.mxu0 %v8713_v36  ;;  %v8741_v36 = vld [vmem:[%s10782_s1 + $0x708] sm:$0xff] }
  0x56   : > { %1723 = vmatpush.bf16.msra.mxu1 %v8721_v37  ;;  %v8749_v37 = vld [vmem:[%s10782_s1 + $0x748] sm:$0xff] }
  0x57   : > { %1736 = vmatpush.bf16.msra.mxu2 %v8729_v38  ;;  %v784_v38 = vunpack.c.l.b16 %v505_v34 }
  0x58   : > { %1749 = vmatpush.bf16.msra.mxu3 %v8737_v39  ;;  %v786_v39 = vunpack.c.l.b16 %v506_v35 }
  0x59   : > { %1711 = vmatpush.bf16.msra.mxu0 %v8712_v40  ;;  %v8757_v40 = vld [vmem:[%s10782_s1 + $0x788] sm:$0xff] }
  0x5a   : > { %1724 = vmatpush.bf16.msra.mxu1 %v8720_v41  ;;  %v8765_v41 = vld [vmem:[%s10782_s1 + $0x7c8] sm:$0xff] }
  0x5b   : > { %1737 = vmatpush.bf16.msra.mxu2 %v8728_v42  ;;  %v785_v42 = vunpack.c.h.b16 %v505_v34 }
  0x5c   : > { %1750 = vmatpush.bf16.msra.mxu3 %v8736_v43  ;;  %v787_v43 = vunpack.c.h.b16 %v506_v35 }
  0x5d   : > { %1712 = vmatpush.bf16.msra.mxu0 %v8711_v44  ;;  %v8740_v44 = vld [vmem:[%s10782_s1 + $0x700] sm:$0xff] }
  0x5e   : > { %1725 = vmatpush.bf16.msra.mxu1 %v8719_v45  ;;  %v8748_v45 = vld [vmem:[%s10782_s1 + $0x740] sm:$0xff] }
  0x5f   : > { %1738 = vmatpush.bf16.msra.mxu2 %v8727_v46  ;;  %v800_v46 = vpack.c.b16 %v784_v38, %v784_v38  ;;  %v8554_v38 = vld [vmem:[%s10782_s1 + $0x130] sm:$0xff] }
  0x60   : > { %1751 = vmatpush.bf16.msra.mxu3 %v8735_v47  ;;  %v802_v47 = vpack.c.b16 %v786_v39, %v786_v39  ;;  %v8562_v39 = vld [vmem:[%s10782_s1 + $0x170] sm:$0xff] }
  0x61   : > { %1713 = vmatpush.bf16.msra.mxu0 %v8710_v48  ;;  %v8756_v48 = vld [vmem:[%s10782_s1 + $0x780] sm:$0xff]  ;;  %v816_v56 = vrot.slane %v800_v46, 1 }
  0x62   : > { %1726 = vmatpush.bf16.msra.mxu1 %v8718_v49  ;;  %v8764_v49 = vld [vmem:[%s10782_s1 + $0x7c0] sm:$0xff]  ;;  %v818_v57 = vrot.slane %v802_v47, 1 }
  0x63   : > { %1739 = vmatpush.bf16.msra.mxu2 %v8726_v50  ;;  %v801_v50 = vpack.c.b16 %v785_v42, %v785_v42  ;;  %v8553_v42 = vld [vmem:[%s10782_s1 + $0x128] sm:$0xff]  ;;  %v8552_v47 = vld [vmem:[%s10782_s1 + $0x120] sm:$0xff] }
  0x64   : > { %1752 = vmatpush.bf16.msra.mxu3 %v8734_v51  ;;  %v803_v51 = vpack.c.b16 %v787_v43, %v787_v43  ;;  %v8561_v43 = vld [vmem:[%s10782_s1 + $0x168] sm:$0xff] }
  0x65   : > { %1714 = vmatpush.bf16.msra.mxu0 %v8709_v54  ;;  %v8539_v54 = vld [vmem:[%s10782_s1 + $0xb8] sm:$0xff] }
  0x66   : > { %1727 = vmatpush.bf16.msra.mxu1 %v8717_v55  ;;  %v8547_v55 = vld [vmem:[%s10782_s1 + $0xf8] sm:$0xff] }
  0x67   : > { %1740 = vmatpush.bf16.msra.mxu2 %v8725_v58  ;;  %v817_v58 = vrot.slane %v801_v50, 1  ;;  %v8568_v50 = vld [vmem:[%s10782_s1 + $0x1a0] sm:$0xff] }
  0x68   : > { %1753 = vmatpush.bf16.msra.mxu3 %v8733_v59  ;;  %v819_v59 = vrot.slane %v803_v51, 1  ;;  %v8576_v51 = vld [vmem:[%s10782_s1 + $0x1e0] sm:$0xff] }
  0x69   : > { %1715 = vmatpush.bf16.msra.mxu0 %v8708_v62  ;;  %v8538_v62 = vld [vmem:[%s10782_s1 + $0xb0] sm:$0xff] }
  0x6a   : > { %1728 = vmatpush.bf16.msra.mxu1 %v8716_v63  ;;  %v8546_v63 = vld [vmem:[%s10782_s1 + $0xf0] sm:$0xff] }
  0x6b   : > { %1741 = vmatpush.bf16.msra.mxu2 %v8724_v2  ;;  %v8537_v2 = vld [vmem:[%s10782_s1 + $0xa8] sm:$0xff] }
  0x6c   : > { %1754 = vmatpush.bf16.msra.mxu3 %v8732_v3  ;;  %1716 = vmatmul.bf16.vlgmr.msra.gmra.mxu0 %v812_v10  ;;  %v8545_v3 = vld [vmem:[%s10782_s1 + $0xe8] sm:$0xff]  ;;  %v8535_v10 = vld [vmem:[%s10782_s1 + $0x98] sm:$0xff] }
  0x6d   : > { %1760 = vmatpush.bf16.msrb.mxu0 %v8747_v6  ;;  %1729 = vmatmul.bf16.vlgmr.msra.gmra.mxu1 %v813_v12  ;;  %v8536_v6 = vld [vmem:[%s10782_s1 + $0xa0] sm:$0xff]  ;;  %v8518_v12 = vld [vmem:[%s10782_s1 + $0x10] sm:$0xff] }
  0x6e   : > { %1773 = vmatpush.bf16.msrb.mxu1 %v8755_v7  ;;  %1742 = vmatmul.bf16.vlgmr.msra.gmra.mxu2 %v814_v11  ;;  %v8544_v7 = vld [vmem:[%s10782_s1 + $0xe0] sm:$0xff]  ;;  %v8543_v11 = vld [vmem:[%s10782_s1 + $0xd8] sm:$0xff] }
  0x6f   : > { %1786 = vmatpush.bf16.msrb.mxu2 %v8763_v8  ;;  %1755 = vmatmul.bf16.vlgmr.msra.gmra.mxu3 %v815_v13  ;;  %v8519_v8 = vld [vmem:[%s10782_s1 + $0x18] sm:$0xff]  ;;  %v8526_v13 = vld [vmem:[%s10782_s1 + $0x50] sm:$0xff] }
  0x70   : > { %1799 = vmatpush.bf16.msrb.mxu3 %v8771_v9  ;;  %v8527_v9 = vld [vmem:[%s10782_s1 + $0x58] sm:$0xff] }
  0x71   : > { %1761 = vmatpush.bf16.msrb.mxu0 %v8746_v14  ;;  %v8534_v14 = vld [vmem:[%s10782_s1 + $0x90] sm:$0xff] }
  0x72   : > { %1774 = vmatpush.bf16.msrb.mxu1 %v8754_v15  ;;  %v8542_v15 = vld [vmem:[%s10782_s1 + $0xd0] sm:$0xff] }
  0x73   : > { %1787 = vmatpush.bf16.msrb.mxu2 %v8762_v16  ;;  %v8517_v16 = vld [vmem:[%s10782_s1 + $0x8] sm:$0xff] }
  0x74   : > { %1800 = vmatpush.bf16.msrb.mxu3 %v8770_v17  ;;  %v8525_v17 = vld [vmem:[%s10782_s1 + $0x48] sm:$0xff] }
  0x75   : > { %1762 = vmatpush.bf16.msrb.mxu0 %v8745_v18  ;;  %v8533_v18 = vld [vmem:[%s10782_s1 + $0x88] sm:$0xff] }
  0x76   : > { %1775 = vmatpush.bf16.msrb.mxu1 %v8753_v19  ;;  %v8541_v19 = vld [vmem:[%s10782_s1 + $0xc8] sm:$0xff] }
  0x77   : > { %1788 = vmatpush.bf16.msrb.mxu2 %v8761_v20  ;;  %v235_v20 = vld [vmem:[%s9201_s9] sm:$0x33] }
  0x78   : > { %1801 = vmatpush.bf16.msrb.mxu3 %v8769_v21  ;;  %v236_v21 = vld [vmem:[%s9201_s9 + $0x8] sm:$0x33] }
  0x79   : > { %1763 = vmatpush.bf16.msrb.mxu0 %v8744_v22  ;;  %v8516_v22 = vld [vmem:[%s10782_s1] sm:$0xff] }
  0x7a   : > { %1776 = vmatpush.bf16.msrb.mxu1 %v8752_v23  ;;  %v8524_v23 = vld [vmem:[%s10782_s1 + $0x40] sm:$0xff] }
  0x7b   : > { %1789 = vmatpush.bf16.msrb.mxu2 %v8760_v24  ;;  %v1820_v24 = vunpack.c.l.b16 %v235_v20 }
  0x7c   : > { %1802 = vmatpush.bf16.msrb.mxu3 %v8768_v25  ;;  %v1822_v25 = vunpack.c.l.b16 %v236_v21 }
  0x7d   : > { %1764 = vmatpush.bf16.msrb.mxu0 %v8743_v26  ;;  %v8532_v26 = vld [vmem:[%s10782_s1 + $0x80] sm:$0xff]  ;;  %v1836_v34 = vpack.c.b16 %v1820_v24, %v1820_v24 }
  0x7e   : > { %1777 = vmatpush.bf16.msrb.mxu1 %v8751_v27  ;;  %v8540_v27 = vld [vmem:[%s10782_s1 + $0xc0] sm:$0xff]  ;;  %v1838_v35 = vpack.c.b16 %v1822_v25, %v1822_v25 }
  0x7f   : > { %1790 = vmatpush.bf16.msrb.mxu2 %v8759_v28  ;;  %v1821_v28 = vunpack.c.h.b16 %v235_v20  ;;  %v8595_v20 = vld [vmem:[%s10782_s1 + $0x278] sm:$0xff] }
  0x80   : > { %1803 = vmatpush.bf16.msrb.mxu3 %v8767_v29  ;;  %v1823_v29 = vunpack.c.h.b16 %v236_v21  ;;  %v8603_v21 = vld [vmem:[%s10782_s1 + $0x2b8] sm:$0xff] }
  0x81   : > { %1765 = vmatpush.bf16.msrb.mxu0 %v8742_v30  ;;  %v8555_v30 = vld [vmem:[%s10782_s1 + $0x138] sm:$0xff] }
  0x82   : > { %1778 = vmatpush.bf16.msrb.mxu1 %v8750_v31  ;;  %v8563_v31 = vld [vmem:[%s10782_s1 + $0x178] sm:$0xff] }
  0x83   : > { %1791 = vmatpush.bf16.msrb.mxu2 %v8758_v32  ;;  %v8571_v32 = vld [vmem:[%s10782_s1 + $0x1b8] sm:$0xff] }
  0x84   : > { %1804 = vmatpush.bf16.msrb.mxu3 %v8766_v33  ;;  %v8579_v33 = vld [vmem:[%s10782_s1 + $0x1f8] sm:$0xff] }
  0x85   : > { %1766 = vmatpush.bf16.msrb.mxu0 %v8741_v36  ;;  %v1837_v36 = vpack.c.b16 %v1821_v28, %v1821_v28  ;;  %v8594_v28 = vld [vmem:[%s10782_s1 + $0x270] sm:$0xff] }
  0x86   : > { %1779 = vmatpush.bf16.msrb.mxu1 %v8749_v37  ;;  %v1839_v37 = vpack.c.b16 %v1823_v29, %v1823_v29  ;;  %v8602_v29 = vld [vmem:[%s10782_s1 + $0x2b0] sm:$0xff] }
  0x87   : > { %1792 = vmatpush.bf16.msrb.mxu2 %v8757_v40  ;;  %v8570_v40 = vld [vmem:[%s10782_s1 + $0x1b0] sm:$0xff] }
  0x88   : > { %1805 = vmatpush.bf16.msrb.mxu3 %v8765_v41  ;;  %v8578_v41 = vld [vmem:[%s10782_s1 + $0x1f0] sm:$0xff] }
  0x89   : > { %1767 = vmatpush.bf16.msrb.mxu0 %v8740_v44  ;;  %v8569_v44 = vld [vmem:[%s10782_s1 + $0x1a8] sm:$0xff] }
  0x8a   : > { %1780 = vmatpush.bf16.msrb.mxu1 %v8748_v45  ;;  %v8577_v45 = vld [vmem:[%s10782_s1 + $0x1e8] sm:$0xff] }
  0x8b   : > { %1793 = vmatpush.bf16.msrb.mxu2 %v8756_v48  ;;  %v8560_v48 = vld [vmem:[%s10782_s1 + $0x160] sm:$0xff] }
  0x8c   : > { %1806 = vmatpush.bf16.msrb.mxu3 %v8764_v49  ;;  %1768 = vmatmul.bf16.vlgmr.msrb.gmra.mxu0 %v816_v56  ;;  %v8575_v56 = vld [vmem:[%s10782_s1 + $0x1d8] sm:$0xff] }
  0x8d   : > { %2636 = vmatpush.bf16.msra.mxu0 %v8523_v52  ;;  %1781 = vmatmul.bf16.vlgmr.msrb.gmra.mxu1 %v817_v58 }
  0x8e   : > { %2649 = vmatpush.bf16.msra.mxu1 %v8531_v53  ;;  %1794 = vmatmul.bf16.vlgmr.msrb.gmra.mxu2 %v818_v57  ;;  %v8551_v53 = vld [vmem:[%s10782_s1 + $0x118] sm:$0xff] }
  0x8f   : > { %2662 = vmatpush.bf16.msra.mxu2 %v8539_v54  ;;  %1807 = vmatmul.bf16.vlgmr.msrb.gmra.mxu3 %v819_v59  ;;  %v8559_v54 = vld [vmem:[%s10782_s1 + $0x158] sm:$0xff] }
  0x90   : > { %2675 = vmatpush.bf16.msra.mxu3 %v8547_v55  ;;  %v8567_v55 = vld [vmem:[%s10782_s1 + $0x198] sm:$0xff] }
  0x91   : > { %2637 = vmatpush.bf16.msra.mxu0 %v8522_v60 }
  0x92   : > { %2650 = vmatpush.bf16.msra.mxu1 %v8530_v61  ;;  %v8550_v61 = vld [vmem:[%s10782_s1 + $0x110] sm:$0xff] }
  0x93   : > { %2663 = vmatpush.bf16.msra.mxu2 %v8538_v62  ;;  %v8558_v62 = vld [vmem:[%s10782_s1 + $0x150] sm:$0xff] }
  0x94   : > { %2676 = vmatpush.bf16.msra.mxu3 %v8546_v63 }
  0x95   : > { %2638 = vmatpush.bf16.msra.mxu0 %v8521_v0 }
  0x96   : > { %2651 = vmatpush.bf16.msra.mxu1 %v8529_v1  ;;  %v8566_v1 = vld [vmem:[%s10782_s1 + $0x190] sm:$0xff] }
  0x97   : > { %2664 = vmatpush.bf16.msra.mxu2 %v8537_v2  ;;  %v8574_v2 = vld [vmem:[%s10782_s1 + $0x1d0] sm:$0xff] }
  0x98   : > { %2677 = vmatpush.bf16.msra.mxu3 %v8545_v3  ;;  %v8549_v3 = vld [vmem:[%s10782_s1 + $0x108] sm:$0xff] }
  0x99   : > { %2639 = vmatpush.bf16.msra.mxu0 %v8520_v4  ;;  %v8557_v4 = vld [vmem:[%s10782_s1 + $0x148] sm:$0xff] }
  0x9a   : > { %2652 = vmatpush.bf16.msra.mxu1 %v8528_v5  ;;  %v8565_v5 = vld [vmem:[%s10782_s1 + $0x188] sm:$0xff] }
  0x9b   : > { %2665 = vmatpush.bf16.msra.mxu2 %v8536_v6  ;;  %v8573_v6 = vld [vmem:[%s10782_s1 + $0x1c8] sm:$0xff] }
  0x9c   : > { %2678 = vmatpush.bf16.msra.mxu3 %v8544_v7  ;;  %v237_v7 = vld [vmem:[%s9201_s9 + $0x10] sm:$0x33] }
  0x9d   : > { %2640 = vmatpush.bf16.msra.mxu0 %v8519_v8  ;;  %v238_v8 = vld [vmem:[%s9201_s9 + $0x18] sm:$0x33] }
  0x9e   : > { %2653 = vmatpush.bf16.msra.mxu1 %v8527_v9 }
  0x9f   : > { %2666 = vmatpush.bf16.msra.mxu2 %v8535_v10 }
  0xa0   : > { %2679 = vmatpush.bf16.msra.mxu3 %v8543_v11  ;;  %v8548_v11 = vld [vmem:[%s10782_s1 + $0x100] sm:$0xff] }
  0xa1   : > { %2641 = vmatpush.bf16.msra.mxu0 %v8518_v12  ;;  %v8556_v12 = vld [vmem:[%s10782_s1 + $0x140] sm:$0xff] }
  0xa2   : > { %2654 = vmatpush.bf16.msra.mxu1 %v8526_v13  ;;  %v1824_v13 = vunpack.c.l.b16 %v237_v7 }
  0xa3   : > { %2667 = vmatpush.bf16.msra.mxu2 %v8534_v14  ;;  %v1826_v14 = vunpack.c.l.b16 %v238_v8 }
  0xa4   : > { %2680 = vmatpush.bf16.msra.mxu3 %v8542_v15  ;;  %v8564_v15 = vld [vmem:[%s10782_s1 + $0x180] sm:$0xff] }
  0xa5   : > { %2642 = vmatpush.bf16.msra.mxu0 %v8517_v16  ;;  %v8572_v16 = vld [vmem:[%s10782_s1 + $0x1c0] sm:$0xff]  ;;  %v1842_v24 = vpack.c.b16 %v1826_v14, %v1826_v14 }
  0xa6   : > { %2655 = vmatpush.bf16.msra.mxu1 %v8525_v17  ;;  %v1825_v17 = vunpack.c.h.b16 %v237_v7 }
  0xa7   : > { %2668 = vmatpush.bf16.msra.mxu2 %v8533_v18  ;;  %v1827_v18 = vunpack.c.h.b16 %v238_v8 }
  0xa8   : > { %2681 = vmatpush.bf16.msra.mxu3 %v8541_v19  ;;  %v8587_v19 = vld [vmem:[%s10782_s1 + $0x238] sm:$0xff]  ;;  %v1841_v25 = vpack.c.b16 %v1825_v17, %v1825_v17  ;;  %v8618_v17 = vld [vmem:[%s10782_s1 + $0x330] sm:$0xff] }
  0xa9   : > { %2643 = vmatpush.bf16.msra.mxu0 %v8516_v22  ;;  %v1613_v46 = vpop.f32.mrf.mxu0  ;;  %v8611_v22 = vld [vmem:[%s10782_s1 + $0x2f8] sm:$0xff] }
  0xaa   : > { %2656 = vmatpush.bf16.msra.mxu1 %v8524_v23  ;;  %v1626_v49 = vpop.f32.mrf.mxu1  ;;  %v1840_v23 = vpack.c.b16 %v1824_v13, %v1824_v13 }
  0xab   : > { %2669 = vmatpush.bf16.msra.mxu2 %v8532_v26  ;;  %v1627_v52 = vadd.f32 %v1626_v49, %v1613_v46  ;;  %v1843_v26 = vpack.c.b16 %v1827_v18, %v1827_v18  ;;  %v8607_v46 = vld [vmem:[%s10782_s1 + $0x2d8] sm:$0xff]  ;;  %v8626_v18 = vld [vmem:[%s10782_s1 + $0x370] sm:$0xff] }
  0xac   : > { %2682 = vmatpush.bf16.msra.mxu3 %v8540_v27  ;;  %2644 = vmatmul.bf16.vlgmr.msra.gmra.mxu0 %v1836_v34  ;;  %v8586_v27 = vld [vmem:[%s10782_s1 + $0x230] sm:$0xff]  ;;  %v8609_v34 = vld [vmem:[%s10782_s1 + $0x2e8] sm:$0xff] }
  0xad   : > { %2688 = vmatpush.bf16.msrb.mxu0 %v8555_v30  ;;  %2657 = vmatmul.bf16.vlgmr.msra.gmra.mxu1 %v1837_v36  ;;  %v8610_v30 = vld [vmem:[%s10782_s1 + $0x2f0] sm:$0xff]  ;;  %v8584_v36 = vld [vmem:[%s10782_s1 + $0x220] sm:$0xff] }
  0xae   : > { %2701 = vmatpush.bf16.msrb.mxu1 %v8563_v31  ;;  %2670 = vmatmul.bf16.vlgmr.msra.gmra.mxu2 %v1838_v35  ;;  %v8585_v31 = vld [vmem:[%s10782_s1 + $0x228] sm:$0xff] }
  0xaf   : > { %2714 = vmatpush.bf16.msrb.mxu2 %v8571_v32  ;;  %2683 = vmatmul.bf16.vlgmr.msra.gmra.mxu3 %v1839_v37  ;;  %v8593_v32 = vld [vmem:[%s10782_s1 + $0x268] sm:$0xff]  ;;  %v8592_v37 = vld [vmem:[%s10782_s1 + $0x260] sm:$0xff] }
  0xb0   : > { %2727 = vmatpush.bf16.msrb.mxu3 %v8579_v33  ;;  %v8601_v33 = vld [vmem:[%s10782_s1 + $0x2a8] sm:$0xff] }
  0xb1   : > { %2689 = vmatpush.bf16.msrb.mxu0 %v8554_v38  ;;  %v1639_v57 = vpop.f32.mrf.mxu2  ;;  %v1615_v60 = vpop.f32.mrf.mxu0 }
  0xb2   : > { %2702 = vmatpush.bf16.msrb.mxu1 %v8562_v39  ;;  %v1640_v58 = vadd.f32 %v1639_v57, %v1627_v52  ;;  %v1652_v59 = vpop.f32.mrf.mxu3  ;;  %v1628_v0 = vpop.f32.mrf.mxu1  ;;  %v8590_v52 = vld [vmem:[%s10782_s1 + $0x250] sm:$0xff]  ;;  %v8581_v57 = vld [vmem:[%s10782_s1 + $0x208] sm:$0xff] }
  0xb3   : > { %2715 = vmatpush.bf16.msrb.mxu2 %v8570_v40  ;;  %v8600_v40 = vld [vmem:[%s10782_s1 + $0x2a0] sm:$0xff]  ;;  %v8605_v60 = vld [vmem:[%s10782_s1 + $0x2c8] sm:$0xff] }
  0xb4   : > { %2728 = vmatpush.bf16.msrb.mxu3 %v8578_v41  ;;  %v9699_v63 = vadd.f32 %v1652_v59, %v1640_v58  ;;  %v8608_v41 = vld [vmem:[%s10782_s1 + $0x2e0] sm:$0xff]  ;;  %v8589_v58 = vld [vmem:[%s10782_s1 + $0x248] sm:$0xff] }
  0xb5   : > { %2690 = vmatpush.bf16.msrb.mxu0 %v8553_v42  ;;  %v8597_v59 = vld [vmem:[%s10782_s1 + $0x288] sm:$0xff] }
  0xb6   : > { %2703 = vmatpush.bf16.msrb.mxu1 %v8561_v43  ;;  %v8583_v43 = vld [vmem:[%s10782_s1 + $0x218] sm:$0xff] }
  0xb7   : > { %2716 = vmatpush.bf16.msrb.mxu2 %v8569_v44  ;;  %v8591_v44 = vld [vmem:[%s10782_s1 + $0x258] sm:$0xff] }
  0xb8   : > { %2729 = vmatpush.bf16.msrb.mxu3 %v8577_v45  ;;  %v8599_v45 = vld [vmem:[%s10782_s1 + $0x298] sm:$0xff] }
  0xb9   : > { %2691 = vmatpush.bf16.msrb.mxu0 %v8552_v47  ;;  %v1641_v9 = vpop.f32.mrf.mxu2 }
  0xba   : > { %2704 = vmatpush.bf16.msrb.mxu1 %v8560_v48  ;;  %v1654_v10 = vpop.f32.mrf.mxu3  ;;  %v8619_v9 = vld [vmem:[%s10782_s1 + $0x338] sm:$0xff] }
  0xbb   : > { %2717 = vmatpush.bf16.msrb.mxu2 %v8568_v50  ;;  %v8627_v10 = vld [vmem:[%s10782_s1 + $0x378] sm:$0xff] }
  0xbc   : > { %2730 = vmatpush.bf16.msrb.mxu3 %v8576_v51  ;;  %v8582_v51 = vld [vmem:[%s10782_s1 + $0x210] sm:$0xff] }
  0xbd   : > { %2692 = vmatpush.bf16.msrb.mxu0 %v8551_v53 }
  0xbe   : > { %2705 = vmatpush.bf16.msrb.mxu1 %v8559_v54 }
  0xbf   : > { %2718 = vmatpush.bf16.msrb.mxu2 %v8567_v55  ;;  %v8598_v55 = vld [vmem:[%s10782_s1 + $0x290] sm:$0xff] }
  0xc0   : > { %2731 = vmatpush.bf16.msrb.mxu3 %v8575_v56  ;;  %v8606_v56 = vld [vmem:[%s10782_s1 + $0x2d0] sm:$0xff] }
  0xc1   : > { %2693 = vmatpush.bf16.msrb.mxu0 %v8550_v61  ;;  %v239_v61 = vld [vmem:[%s9201_s9 + $0x20] sm:$0x33] }
  0xc2   : > { %2706 = vmatpush.bf16.msrb.mxu1 %v8558_v62  ;;  %v240_v62 = vld [vmem:[%s9201_s9 + $0x28] sm:$0x33]  ;;  %v1829_v7 = vunpack.c.h.b16 %v239_v61 }
  0xc3   : > { %2719 = vmatpush.bf16.msrb.mxu2 %v8566_v1  ;;  %v8580_v1 = vld [vmem:[%s10782_s1 + $0x200] sm:$0xff]  ;;  %v1831_v8 = vunpack.c.h.b16 %v240_v62 }
  0xc4   : > { %2732 = vmatpush.bf16.msrb.mxu3 %v8574_v2  ;;  %v8588_v2 = vld [vmem:[%s10782_s1 + $0x240] sm:$0xff] }
  0xc5   : > { %2694 = vmatpush.bf16.msrb.mxu0 %v8549_v3  ;;  %v1828_v3 = vunpack.c.l.b16 %v239_v61 }
  0xc6   : > { %2707 = vmatpush.bf16.msrb.mxu1 %v8557_v4  ;;  %v1830_v4 = vunpack.c.l.b16 %v240_v62 }
  0xc7   : > { %2720 = vmatpush.bf16.msrb.mxu2 %v8565_v5  ;;  %v8596_v5 = vld [vmem:[%s10782_s1 + $0x280] sm:$0xff]  ;;  %v1844_v13 = vpack.c.b16 %v1828_v3, %v1828_v3 }
  0xc8   : > { %2733 = vmatpush.bf16.msrb.mxu3 %v8573_v6  ;;  %v8604_v6 = vld [vmem:[%s10782_s1 + $0x2c0] sm:$0xff]  ;;  %v1846_v14 = vpack.c.b16 %v1830_v4, %v1830_v4 }
  0xc9   : > { %2695 = vmatpush.bf16.msrb.mxu0 %v8548_v11  ;;  %v1665_v35 = vpop.f32.mrf.mxu0  ;;  %v8635_v11 = vld [vmem:[%s10782_s1 + $0x3b8] sm:$0xff] }
  0xca   : > { %2708 = vmatpush.bf16.msrb.mxu1 %v8556_v12  ;;  %v1666_v38 = vadd.f32 %v1665_v35, %v9699_v63  ;;  %v1678_v39 = vpop.f32.mrf.mxu1  ;;  %v8643_v12 = vld [vmem:[%s10782_s1 + $0x3f8] sm:$0xff] }
  0xcb   : > { %2721 = vmatpush.bf16.msrb.mxu2 %v8564_v15  ;;  %v1845_v15 = vpack.c.b16 %v1829_v7, %v1829_v7  ;;  %v8631_v35 = vld [vmem:[%s10782_s1 + $0x398] sm:$0xff]  ;;  %v8778_v7 = vld [vmem:[%s10782_s1 + $0x830] sm:$0xff] }
  0xcc   : > { %2734 = vmatpush.bf16.msrb.mxu3 %v8572_v16  ;;  %2696 = vmatmul.bf16.vlgmr.msrb.gmra.mxu0 %v1840_v23  ;;  %v1679_v42 = vadd.f32 %v1678_v39, %v1666_v38  ;;  %v1847_v16 = vpack.c.b16 %v1831_v8, %v1831_v8  ;;  %v8633_v23 = vld [vmem:[%s10782_s1 + $0x3a8] sm:$0xff]  ;;  %v8786_v8 = vld [vmem:[%s10782_s1 + $0x870] sm:$0xff] }
  0xcd   : > { %2740 = vmatpush.bf16.msra.mxu0 %v8587_v19  ;;  %2709 = vmatmul.bf16.vlgmr.msrb.gmra.mxu1 %v1841_v25  ;;  %v8634_v19 = vld [vmem:[%s10782_s1 + $0x3b0] sm:$0xff] }
  0xce   : > { %2753 = vmatpush.bf16.msra.mxu1 %v8595_v20  ;;  %2722 = vmatmul.bf16.vlgmr.msrb.gmra.mxu2 %v1842_v24  ;;  %v8642_v20 = vld [vmem:[%s10782_s1 + $0x3f0] sm:$0xff]  ;;  %v8641_v24 = vld [vmem:[%s10782_s1 + $0x3e8] sm:$0xff] }
  0xcf   : > { %2766 = vmatpush.bf16.msra.mxu2 %v8603_v21  ;;  %2735 = vmatmul.bf16.vlgmr.msrb.gmra.mxu3 %v1843_v26  ;;  %v8617_v21 = vld [vmem:[%s10782_s1 + $0x328] sm:$0xff] }
  0xd0   : > { %2779 = vmatpush.bf16.msra.mxu3 %v8611_v22  ;;  %v8625_v22 = vld [vmem:[%s10782_s1 + $0x368] sm:$0xff] }
  0xd1   : > { %2741 = vmatpush.bf16.msra.mxu0 %v8586_v27  ;;  %v1691_v47 = vpop.f32.mrf.mxu2  ;;  %v1667_v50 = vpop.f32.mrf.mxu0  ;;  %v8616_v27 = vld [vmem:[%s10782_s1 + $0x320] sm:$0xff] }
  0xd2   : > { %2754 = vmatpush.bf16.msra.mxu1 %v8594_v28  ;;  %v1692_v48 = vadd.f32 %v1691_v47, %v1679_v42  ;;  %v1704_v49 = vpop.f32.mrf.mxu3  ;;  %v1680_v54 = vpop.f32.mrf.mxu1  ;;  %v8624_v28 = vld [vmem:[%s10782_s1 + $0x360] sm:$0xff]  ;;  %v8614_v42 = vld [vmem:[%s10782_s1 + $0x310] sm:$0xff]  ;;  %v8613_v47 = vld [vmem:[%s10782_s1 + $0x308] sm:$0xff] }
  0xd3   : > { %2767 = vmatpush.bf16.msra.mxu2 %v8602_v29  ;;  %v8637_v50 = vld [vmem:[%s10782_s1 + $0x3c8] sm:$0xff] }
  0xd4   : > { %2780 = vmatpush.bf16.msra.mxu3 %v8610_v30  ;;  %v9800_v53 = vadd.f32 %v1704_v49, %v1692_v48  ;;  %v8632_v30 = vld [vmem:[%s10782_s1 + $0x3a0] sm:$0xff]  ;;  %v8621_v48 = vld [vmem:[%s10782_s1 + $0x348] sm:$0xff] }
  0xd5   : > { %2742 = vmatpush.bf16.msra.mxu0 %v8585_v31  ;;  %v8640_v31 = vld [vmem:[%s10782_s1 + $0x3e0] sm:$0xff]  ;;  %v8629_v49 = vld [vmem:[%s10782_s1 + $0x388] sm:$0xff] }
  0xd6   : > { %2755 = vmatpush.bf16.msra.mxu1 %v8593_v32 }
  0xd7   : > { %2768 = vmatpush.bf16.msra.mxu2 %v8601_v33  ;;  %v8615_v33 = vld [vmem:[%s10782_s1 + $0x318] sm:$0xff] }
  0xd8   : > { %2781 = vmatpush.bf16.msra.mxu3 %v8609_v34  ;;  %v8623_v34 = vld [vmem:[%s10782_s1 + $0x358] sm:$0xff] }
  0xd9   : > { %2743 = vmatpush.bf16.msra.mxu0 %v8584_v36  ;;  %v1693_v63 = vpop.f32.mrf.mxu2  ;;  %v8639_v36 = vld [vmem:[%s10782_s1 + $0x3d8] sm:$0xff] }
  0xda   : > { %2756 = vmatpush.bf16.msra.mxu1 %v8592_v37  ;;  %v1706_v0 = vpop.f32.mrf.mxu3  ;;  %v8779_v63 = vld [vmem:[%s10782_s1 + $0x838] sm:$0xff] }
  0xdb   : > { %2769 = vmatpush.bf16.msra.mxu2 %v8600_v40  ;;  %v8787_v0 = vld [vmem:[%s10782_s1 + $0x878] sm:$0xff] }
  0xdc   : > { %2782 = vmatpush.bf16.msra.mxu3 %v8608_v41 }
  0xdd   : > { %2744 = vmatpush.bf16.msra.mxu0 %v8583_v43  ;;  %v8622_v43 = vld [vmem:[%s10782_s1 + $0x350] sm:$0xff] }
  0xde   : > { %2757 = vmatpush.bf16.msra.mxu1 %v8591_v44 }
  0xdf   : > { %2770 = vmatpush.bf16.msra.mxu2 %v8599_v45  ;;  %v8630_v45 = vld [vmem:[%s10782_s1 + $0x390] sm:$0xff] }
  0xe0   : > { %2783 = vmatpush.bf16.msra.mxu3 %v8607_v46  ;;  %v8638_v46 = vld [vmem:[%s10782_s1 + $0x3d0] sm:$0xff] }
  0xe1   : > { %2745 = vmatpush.bf16.msra.mxu0 %v8582_v51  ;;  %v241_v51 = vld [vmem:[%s9201_s9 + $0x30] sm:$0x33] }
  0xe2   : > { %2758 = vmatpush.bf16.msra.mxu1 %v8590_v52  ;;  %v242_v52 = vld [vmem:[%s9201_s9 + $0x38] sm:$0x33]  ;;  %v1833_v61 = vunpack.c.h.b16 %v241_v51 }
  0xe3   : > { %2771 = vmatpush.bf16.msra.mxu2 %v8598_v55  ;;  %v8612_v55 = vld [vmem:[%s10782_s1 + $0x300] sm:$0xff]  ;;  %v1835_v62 = vunpack.c.h.b16 %v242_v52 }
  0xe4   : > { %2784 = vmatpush.bf16.msra.mxu3 %v8606_v56  ;;  %v8620_v56 = vld [vmem:[%s10782_s1 + $0x340] sm:$0xff] }
  0xe5   : > { %2746 = vmatpush.bf16.msra.mxu0 %v8581_v57  ;;  %v1832_v57 = vunpack.c.l.b16 %v241_v51 }
  0xe6   : > { %2759 = vmatpush.bf16.msra.mxu1 %v8589_v58  ;;  %v1834_v58 = vunpack.c.l.b16 %v242_v52 }
  0xe7   : > { %2772 = vmatpush.bf16.msra.mxu2 %v8597_v59  ;;  %v8628_v59 = vld [vmem:[%s10782_s1 + $0x380] sm:$0xff]  ;;  %v1848_v3 = vpack.c.b16 %v1832_v57, %v1832_v57  ;;  %v8811_v57 = vld [vmem:[%s10782_s1 + $0x938] sm:$0xff] }
  0xe8   : > { %2785 = vmatpush.bf16.msra.mxu3 %v8605_v60  ;;  %v8636_v60 = vld [vmem:[%s10782_s1 + $0x3c0] sm:$0xff]  ;;  %v1850_v4 = vpack.c.b16 %v1834_v58, %v1834_v58  ;;  %v8819_v58 = vld [vmem:[%s10782_s1 + $0x978] sm:$0xff] }
  0xe9   : > { %2747 = vmatpush.bf16.msra.mxu0 %v8580_v1  ;;  %v1717_v25 = vpop.f32.mrf.mxu0  ;;  %v8795_v1 = vld [vmem:[%s10782_s1 + $0x8b8] sm:$0xff] }
  0xea   : > { %2760 = vmatpush.bf16.msra.mxu1 %v8588_v2  ;;  %v1718_v26 = vadd.f32 %v1717_v25, %v9800_v53  ;;  %v1730_v29 = vpop.f32.mrf.mxu1  ;;  %v8803_v2 = vld [vmem:[%s10782_s1 + $0x8f8] sm:$0xff] }
  0xeb   : > { %2773 = vmatpush.bf16.msra.mxu2 %v8596_v5  ;;  %v1849_v5 = vpack.c.b16 %v1833_v61, %v1833_v61  ;;  %v8791_v25 = vld [vmem:[%s10782_s1 + $0x898] sm:$0xff] }
  0xec   : > { %2786 = vmatpush.bf16.msra.mxu3 %v8604_v6  ;;  %2748 = vmatmul.bf16.vlgmr.msra.gmra.mxu0 %v1844_v13  ;;  %v1731_v32 = vadd.f32 %v1730_v29, %v1718_v26  ;;  %v1851_v6 = vpack.c.b16 %v1835_v62, %v1835_v62  ;;  %v8793_v13 = vld [vmem:[%s10782_s1 + $0x8a8] sm:$0xff]  ;;  %v8799_v26 = vld [vmem:[%s10782_s1 + $0x8d8] sm:$0xff] }
  0xed   : > { %2792 = vmatpush.bf16.msrb.mxu0 %v8619_v9  ;;  %2761 = vmatmul.bf16.vlgmr.msra.gmra.mxu1 %v1845_v15  ;;  %v8794_v9 = vld [vmem:[%s10782_s1 + $0x8b0] sm:$0xff] }
  0xee   : > { %2805 = vmatpush.bf16.msrb.mxu1 %v8627_v10  ;;  %2774 = vmatmul.bf16.vlgmr.msra.gmra.mxu2 %v1846_v14  ;;  %v8802_v10 = vld [vmem:[%s10782_s1 + $0x8f0] sm:$0xff]  ;;  %v8801_v14 = vld [vmem:[%s10782_s1 + $0x8e8] sm:$0xff] }
  0xef   : > { %2818 = vmatpush.bf16.msrb.mxu2 %v8635_v11  ;;  %2787 = vmatmul.bf16.vlgmr.msra.gmra.mxu3 %v1847_v16  ;;  %v8777_v11 = vld [vmem:[%s10782_s1 + $0x828] sm:$0xff] }
  0xf0   : > { %2831 = vmatpush.bf16.msrb.mxu3 %v8643_v12  ;;  %v8785_v12 = vld [vmem:[%s10782_s1 + $0x868] sm:$0xff] }
  0xf1   : > { %2793 = vmatpush.bf16.msrb.mxu0 %v8618_v17  ;;  %v1743_v37 = vpop.f32.mrf.mxu2  ;;  %v1719_v40 = vpop.f32.mrf.mxu0  ;;  %v8776_v17 = vld [vmem:[%s10782_s1 + $0x820] sm:$0xff] }
  0xf2   : > { %2806 = vmatpush.bf16.msrb.mxu1 %v8626_v18  ;;  %v1744_v38 = vadd.f32 %v1743_v37, %v1731_v32  ;;  %v1756_v39 = vpop.f32.mrf.mxu3  ;;  %v1732_v44 = vpop.f32.mrf.mxu1  ;;  %v8784_v18 = vld [vmem:[%s10782_s1 + $0x860] sm:$0xff]  ;;  %v8774_v32 = vld [vmem:[%s10782_s1 + $0x810] sm:$0xff]  ;;  %v2845_v37 = vld [vmem:[%s9201_s9 + $0x8] sm:$0xcc] }
  0xf3   : > { %2819 = vmatpush.bf16.msrb.mxu2 %v8634_v19  ;;  %v8781_v40 = vld [vmem:[%s10782_s1 + $0x848] sm:$0xff] }
  0xf4   : > { %2832 = vmatpush.bf16.msrb.mxu3 %v8642_v20  ;;  %v9895_v41 = vadd.f32 %v1756_v39, %v1744_v38  ;;  %v8792_v20 = vld [vmem:[%s10782_s1 + $0x8a0] sm:$0xff]  ;;  %v8773_v39 = vld [vmem:[%s10782_s1 + $0x808] sm:$0xff] }
  0xf5   : > { %2794 = vmatpush.bf16.msrb.mxu0 %v8617_v21  ;;  %v8800_v21 = vld [vmem:[%s10782_s1 + $0x8e0] sm:$0xff]  ;;  %v8797_v44 = vld [vmem:[%s10782_s1 + $0x8c8] sm:$0xff] }
  0xf6   : > { %2807 = vmatpush.bf16.msrb.mxu1 %v8625_v22  ;;  %v2844_v38 = vld [vmem:[%s9201_s9] sm:$0xcc] }
  0xf7   : > { %2820 = vmatpush.bf16.msrb.mxu2 %v8633_v23  ;;  %v8775_v23 = vld [vmem:[%s10782_s1 + $0x818] sm:$0xff] }
  0xf8   : > { %2833 = vmatpush.bf16.msrb.mxu3 %v8641_v24  ;;  %v8783_v24 = vld [vmem:[%s10782_s1 + $0x858] sm:$0xff] }
  0xf9   : > { %2795 = vmatpush.bf16.msrb.mxu0 %v8616_v27  ;;  %v1745_v53 = vpop.f32.mrf.mxu2 }
  0xfa   : > { %2808 = vmatpush.bf16.msrb.mxu1 %v8624_v28  ;;  %v1758_v54 = vpop.f32.mrf.mxu3  ;;  %v8788_v53 = vld [vmem:[%s10782_s1 + $0x880] sm:$0xff] }
  0xfb   : > { %2821 = vmatpush.bf16.msrb.mxu2 %v8632_v30  ;;  %v8796_v54 = vld [vmem:[%s10782_s1 + $0x8c0] sm:$0xff] }
  0xfc   : > { %2834 = vmatpush.bf16.msrb.mxu3 %v8640_v31 }
  0xfd   : > { %2796 = vmatpush.bf16.msrb.mxu0 %v8615_v33  ;;  %v8782_v33 = vld [vmem:[%s10782_s1 + $0x850] sm:$0xff] }
  0xfe   : > { %2809 = vmatpush.bf16.msrb.mxu1 %v8623_v34  ;;  %v8790_v34 = vld [vmem:[%s10782_s1 + $0x890] sm:$0xff] }
  0xff   : > { %2822 = vmatpush.bf16.msrb.mxu2 %v8631_v35 }
 0x100   : > { %2835 = vmatpush.bf16.msrb.mxu3 %v8639_v36  ;;  %v8798_v36 = vld [vmem:[%s10782_s1 + $0x8d0] sm:$0xff] }
 0x101   : > { %2797 = vmatpush.bf16.msrb.mxu0 %v8614_v42  ;;  %v3117_v42 = vunpack.c.l.b16 %v2844_v38 }
 0x102   : > { %2810 = vmatpush.bf16.msrb.mxu1 %v8622_v43  ;;  %v8789_v43 = vld [vmem:[%s10782_s1 + $0x888] sm:$0xff] }
 0x103   : > { %2823 = vmatpush.bf16.msrb.mxu2 %v8630_v45  ;;  %v3133_v52 = vpack.c.b16 %v3117_v42, %v3117_v42 }
 0x104   : > { %2836 = vmatpush.bf16.msrb.mxu3 %v8638_v46  ;;  %v3120_v46 = vunpack.c.h.b16 %v2845_v37 }
 0x105   : > { %2798 = vmatpush.bf16.msrb.mxu0 %v8613_v47  ;;  %v3118_v47 = vunpack.c.h.b16 %v2844_v38  ;;  %v3149_v62 = vrot.slane %v3133_v52, 2  ;;  %v8829_v38 = vld [vmem:[%s10782_s1 + $0x9c8] sm:$0xff]  ;;  %v8851_v52 = vld [vmem:[%s10782_s1 + $0xa78] sm:$0xff] }
 0x106   : > { %2811 = vmatpush.bf16.msrb.mxu1 %v8621_v48 }
 0x107   : > { %2824 = vmatpush.bf16.msrb.mxu2 %v8629_v49  ;;  %v8772_v49 = vld [vmem:[%s10782_s1 + $0x800] sm:$0xff] }
 0x108   : > { %2837 = vmatpush.bf16.msrb.mxu3 %v8637_v50  ;;  %v8780_v50 = vld [vmem:[%s10782_s1 + $0x840] sm:$0xff] }
 0x109   : > { %2799 = vmatpush.bf16.msrb.mxu0 %v8612_v55  ;;  %v1769_v15 = vpop.f32.mrf.mxu0  ;;  %v3136_v55 = vpack.c.b16 %v3120_v46, %v3120_v46 }
 0x10a   : > { %2812 = vmatpush.bf16.msrb.mxu1 %v8620_v56  ;;  %v1770_v16 = vadd.f32 %v1769_v15, %v9895_v41  ;;  %v1782_v19 = vpop.f32.mrf.mxu1  ;;  %v3119_v41 = vunpack.c.l.b16 %v2845_v37  ;;  %v3134_v56 = vpack.c.b16 %v3118_v47, %v3118_v47  ;;  %v8832_v15 = vld [vmem:[%s10782_s1 + $0x9e0] sm:$0xff]  ;;  %v8821_v37 = vld [vmem:[%s10782_s1 + $0x988] sm:$0xff] }
 0x10b   : > { %2825 = vmatpush.bf16.msrb.mxu2 %v8628_v59  ;;  %v8827_v59 = vld [vmem:[%s10782_s1 + $0x9b8] sm:$0xff]  ;;  %v8820_v47 = vld [vmem:[%s10782_s1 + $0x980] sm:$0xff] }
 0x10c   : > { %2838 = vmatpush.bf16.msrb.mxu3 %v8636_v60  ;;  %2800 = vmatmul.bf16.vlgmr.msrb.gmra.mxu0 %v1848_v3  ;;  %v1783_v22 = vadd.f32 %v1782_v19, %v1770_v16  ;;  %v3135_v51 = vpack.c.b16 %v3119_v41, %v3119_v41  ;;  %v8835_v60 = vld [vmem:[%s10782_s1 + $0x9f8] sm:$0xff]  ;;  %v8826_v3 = vld [vmem:[%s10782_s1 + $0x9b0] sm:$0xff] }
 0x10d   : > { %3949 = vmatpush.bf16.msra.mxu0 %v8779_v63  ;;  %2813 = vmatmul.bf16.vlgmr.msrb.gmra.mxu1 %v1849_v5  ;;  %v3152_v63 = vrot.slane %v3136_v55, 2  ;;  %v8809_v5 = vld [vmem:[%s10782_s1 + $0x928] sm:$0xff]  ;;  %v8823_v19 = vld [vmem:[%s10782_s1 + $0x998] sm:$0xff] }
 0x10e   : > { %3962 = vmatpush.bf16.msra.mxu1 %v8787_v0  ;;  %2826 = vmatmul.bf16.vlgmr.msrb.gmra.mxu2 %v1850_v4  ;;  %v3151_v61 = vrot.slane %v3135_v51, 2  ;;  %v3150_v0 = vrot.slane %v3134_v56, 2  ;;  %v8834_v4 = vld [vmem:[%s10782_s1 + $0x9f0] sm:$0xff]  ;;  %v8843_v51 = vld [vmem:[%s10782_s1 + $0xa38] sm:$0xff] }
 0x10f   : > { %3975 = vmatpush.bf16.msra.mxu2 %v8795_v1  ;;  %2839 = vmatmul.bf16.vlgmr.msrb.gmra.mxu3 %v1851_v6  ;;  %v8810_v1 = vld [vmem:[%s10782_s1 + $0x930] sm:$0xff]  ;;  %v8817_v6 = vld [vmem:[%s10782_s1 + $0x968] sm:$0xff] }
 0x110   : > { %3988 = vmatpush.bf16.msra.mxu3 %v8803_v2  ;;  %v8818_v2 = vld [vmem:[%s10782_s1 + $0x970] sm:$0xff] }
 0x111   : > { %3950 = vmatpush.bf16.msra.mxu0 %v8778_v7  ;;  %v1795_v27 = vpop.f32.mrf.mxu2  ;;  %v1771_v30 = vpop.f32.mrf.mxu0  ;;  %v8825_v7 = vld [vmem:[%s10782_s1 + $0x9a8] sm:$0xff] }
 0x112   : > { %3963 = vmatpush.bf16.msra.mxu1 %v8786_v8  ;;  %v1796_v28 = vadd.f32 %v1795_v27, %v1783_v22  ;;  %v1808_v29 = vpop.f32.mrf.mxu3  ;;  %v1784_v35 = vpop.f32.mrf.mxu1  ;;  %v8833_v8 = vld [vmem:[%s10782_s1 + $0x9e8] sm:$0xff]  ;;  %v8814_v27 = vld [vmem:[%s10782_s1 + $0x950] sm:$0xff] }
 0x113   : > { %3976 = vmatpush.bf16.msra.mxu2 %v8794_v9  ;;  %v8830_v30 = vld [vmem:[%s10782_s1 + $0x9d0] sm:$0xff] }
 0x114   : > { %3989 = vmatpush.bf16.msra.mxu3 %v8802_v10  ;;  %v9996_v31 = vadd.f32 %v1808_v29, %v1796_v28  ;;  %v8822_v28 = vld [vmem:[%s10782_s1 + $0x990] sm:$0xff] }
 0x115   : > { %3951 = vmatpush.bf16.msra.mxu0 %v8777_v11  ;;  %v8808_v11 = vld [vmem:[%s10782_s1 + $0x920] sm:$0xff] }
 0x116   : > { %3964 = vmatpush.bf16.msra.mxu1 %v8785_v12  ;;  %v8816_v12 = vld [vmem:[%s10782_s1 + $0x960] sm:$0xff] }
 0x117   : > { %3977 = vmatpush.bf16.msra.mxu2 %v8793_v13 }
 0x118   : > { %3990 = vmatpush.bf16.msra.mxu3 %v8801_v14  ;;  %v8824_v14 = vld [vmem:[%s10782_s1 + $0x9a0] sm:$0xff] }
 0x119   : > { %3952 = vmatpush.bf16.msra.mxu0 %v8776_v17  ;;  %v1797_v45 = vpop.f32.mrf.mxu2  ;;  %v8807_v17 = vld [vmem:[%s10782_s1 + $0x918] sm:$0xff] }
 0x11a   : > { %3965 = vmatpush.bf16.msra.mxu1 %v8784_v18  ;;  %v1810_v48 = vpop.f32.mrf.mxu3  ;;  %v8815_v18 = vld [vmem:[%s10782_s1 + $0x958] sm:$0xff] }
 0x11b   : > { %3978 = vmatpush.bf16.msra.mxu2 %v8792_v20  ;;  %v8831_v20 = vld [vmem:[%s10782_s1 + $0x9d8] sm:$0xff]  ;;  %v8828_v48 = vld [vmem:[%s10782_s1 + $0x9c0] sm:$0xff] }
 0x11c   : > { %3991 = vmatpush.bf16.msra.mxu3 %v8800_v21 }
 0x11d   : > { %3953 = vmatpush.bf16.msra.mxu0 %v8775_v23 }
 0x11e   : > { %3966 = vmatpush.bf16.msra.mxu1 %v8783_v24 }
 0x11f   : > { %3979 = vmatpush.bf16.msra.mxu2 %v8791_v25 }
 0x120   : > { %3992 = vmatpush.bf16.msra.mxu3 %v8799_v26  ;;  %v8806_v26 = vld [vmem:[%s10782_s1 + $0x910] sm:$0xff] }
 0x121   : > { %3954 = vmatpush.bf16.msra.mxu0 %v8774_v32  ;;  %v2846_v32 = vld [vmem:[%s9201_s9 + $0x10] sm:$0xcc] }
 0x122   : > { %3967 = vmatpush.bf16.msra.mxu1 %v8782_v33  ;;  %v8805_v33 = vld [vmem:[%s10782_s1 + $0x908] sm:$0xff]  ;;  %v3122_v41 = vunpack.c.h.b16 %v2846_v32 }
 0x123   : > { %3980 = vmatpush.bf16.msra.mxu2 %v8790_v34  ;;  %v8813_v34 = vld [vmem:[%s10782_s1 + $0x948] sm:$0xff] }
 0x124   : > { %3993 = vmatpush.bf16.msra.mxu3 %v8798_v36  ;;  %v3121_v36 = vunpack.c.l.b16 %v2846_v32  ;;  %v8861_v32 = vld [vmem:[%s10782_s1 + $0xac8] sm:$0xff] }
 0x125   : > { %3955 = vmatpush.bf16.msra.mxu0 %v8773_v39 }
 0x126   : > { %3968 = vmatpush.bf16.msra.mxu1 %v8781_v40  ;;  %v3137_v46 = vpack.c.b16 %v3121_v36, %v3121_v36 }
 0x127   : > { %3981 = vmatpush.bf16.msra.mxu2 %v8789_v43  ;;  %v8804_v43 = vld [vmem:[%s10782_s1 + $0x900] sm:$0xff] }
 0x128   : > { %3994 = vmatpush.bf16.msra.mxu3 %v8797_v44  ;;  %v8812_v44 = vld [vmem:[%s10782_s1 + $0x940] sm:$0xff]  ;;  %v3153_v56 = vrot.slane %v3137_v46, 2  ;;  %v8883_v46 = vld [vmem:[%s10782_s1 + $0xb78] sm:$0xff] }
 0x129   : > { %3956 = vmatpush.bf16.msra.mxu0 %v8772_v49  ;;  %v2645_v9 = vpop.f32.mrf.mxu0 }
 0x12a   : > { %3969 = vmatpush.bf16.msra.mxu1 %v8780_v50  ;;  %v2646_v10 = vadd.f32 %v2645_v9, %v9996_v31  ;;  %v2658_v13 = vpop.f32.mrf.mxu1  ;;  %v2847_v31 = vld [vmem:[%s9201_s9 + $0x18] sm:$0xcc]  ;;  %v3138_v50 = vpack.c.b16 %v3122_v41, %v3122_v41  ;;  %v8864_v9 = vld [vmem:[%s10782_s1 + $0xae0] sm:$0xff] }
 0x12b   : > { %3982 = vmatpush.bf16.msra.mxu2 %v8788_v53  ;;  %v3123_v35 = vunpack.c.l.b16 %v2847_v31  ;;  %v3124_v39 = vunpack.c.h.b16 %v2847_v31  ;;  %v8859_v53 = vld [vmem:[%s10782_s1 + $0xab8] sm:$0xff]  ;;  %v8853_v31 = vld [vmem:[%s10782_s1 + $0xa88] sm:$0xff]  ;;  %v8852_v41 = vld [vmem:[%s10782_s1 + $0xa80] sm:$0xff] }
 0x12c   : > { %3995 = vmatpush.bf16.msra.mxu3 %v8796_v54  ;;  %3957 = vmatmul.bf16.vlgmr.msra.gmra.mxu0 %v3149_v62  ;;  %v2659_v16 = vadd.f32 %v2658_v13, %v2646_v10  ;;  %v8867_v54 = vld [vmem:[%s10782_s1 + $0xaf8] sm:$0xff]  ;;  %v8866_v62 = vld [vmem:[%s10782_s1 + $0xaf0] sm:$0xff] }
 0x12d   : > { %4001 = vmatpush.bf16.msrb.mxu0 %v8811_v57  ;;  %3970 = vmatmul.bf16.vlgmr.msra.gmra.mxu1 %v3150_v0  ;;  %v3139_v45 = vpack.c.b16 %v3123_v35, %v3123_v35  ;;  %v3140_v49 = vpack.c.b16 %v3124_v39, %v3124_v39  ;;  %v8849_v0 = vld [vmem:[%s10782_s1 + $0xa68] sm:$0xff]  ;;  %v8855_v13 = vld [vmem:[%s10782_s1 + $0xa98] sm:$0xff] }
 0x12e   : > { %4014 = vmatpush.bf16.msrb.mxu1 %v8819_v58  ;;  %3983 = vmatmul.bf16.vlgmr.msra.gmra.mxu2 %v3151_v61  ;;  %v3154_v58 = vrot.slane %v3138_v50, 2  ;;  %v8858_v61 = vld [vmem:[%s10782_s1 + $0xab0] sm:$0xff] }
 0x12f   : > { %4027 = vmatpush.bf16.msrb.mxu2 %v8827_v59  ;;  %3996 = vmatmul.bf16.vlgmr.msra.gmra.mxu3 %v3152_v63  ;;  %v3155_v55 = vrot.slane %v3139_v45, 2  ;;  %v3156_v57 = vrot.slane %v3140_v49, 2  ;;  %v8842_v59 = vld [vmem:[%s10782_s1 + $0xa30] sm:$0xff]  ;;  %v8841_v63 = vld [vmem:[%s10782_s1 + $0xa28] sm:$0xff]  ;;  %v8875_v45 = vld [vmem:[%s10782_s1 + $0xb38] sm:$0xff] }
 0x130   : > { %4040 = vmatpush.bf16.msrb.mxu3 %v8835_v60  ;;  %v8850_v60 = vld [vmem:[%s10782_s1 + $0xa70] sm:$0xff] }
 0x131   : > { %4002 = vmatpush.bf16.msrb.mxu0 %v8810_v1  ;;  %v2671_v21 = vpop.f32.mrf.mxu2  ;;  %v2647_v24 = vpop.f32.mrf.mxu0  ;;  %v8857_v1 = vld [vmem:[%s10782_s1 + $0xaa8] sm:$0xff] }
 0x132   : > { %4015 = vmatpush.bf16.msrb.mxu1 %v8818_v2  ;;  %v2672_v22 = vadd.f32 %v2671_v21, %v2659_v16  ;;  %v2684_v23 = vpop.f32.mrf.mxu3  ;;  %v2660_v29 = vpop.f32.mrf.mxu1  ;;  %v8865_v2 = vld [vmem:[%s10782_s1 + $0xae8] sm:$0xff]  ;;  %v8846_v21 = vld [vmem:[%s10782_s1 + $0xa50] sm:$0xff] }
 0x133   : > { %4028 = vmatpush.bf16.msrb.mxu2 %v8826_v3  ;;  %v8862_v24 = vld [vmem:[%s10782_s1 + $0xad0] sm:$0xff] }
 0x134   : > { %4041 = vmatpush.bf16.msrb.mxu3 %v8834_v4  ;;  %v10097_v25 = vadd.f32 %v2684_v23, %v2672_v22  ;;  %v8854_v22 = vld [vmem:[%s10782_s1 + $0xa90] sm:$0xff] }
 0x135   : > { %4003 = vmatpush.bf16.msrb.mxu0 %v8809_v5  ;;  %v8840_v5 = vld [vmem:[%s10782_s1 + $0xa20] sm:$0xff] }
 0x136   : > { %4016 = vmatpush.bf16.msrb.mxu1 %v8817_v6  ;;  %v8848_v6 = vld [vmem:[%s10782_s1 + $0xa60] sm:$0xff] }
 0x137   : > { %4029 = vmatpush.bf16.msrb.mxu2 %v8825_v7 }
 0x138   : > { %4042 = vmatpush.bf16.msrb.mxu3 %v8833_v8  ;;  %v8856_v8 = vld [vmem:[%s10782_s1 + $0xaa0] sm:$0xff] }
 0x139   : > { %4004 = vmatpush.bf16.msrb.mxu0 %v8808_v11  ;;  %v2673_v40 = vpop.f32.mrf.mxu2  ;;  %v8839_v11 = vld [vmem:[%s10782_s1 + $0xa18] sm:$0xff] }
 0x13a   : > { %4017 = vmatpush.bf16.msrb.mxu1 %v8816_v12  ;;  %v2686_v42 = vpop.f32.mrf.mxu3  ;;  %v8847_v12 = vld [vmem:[%s10782_s1 + $0xa58] sm:$0xff] }
 0x13b   : > { %4030 = vmatpush.bf16.msrb.mxu2 %v8824_v14  ;;  %v8863_v14 = vld [vmem:[%s10782_s1 + $0xad8] sm:$0xff]  ;;  %v8860_v42 = vld [vmem:[%s10782_s1 + $0xac0] sm:$0xff] }
 0x13c   : > { %4043 = vmatpush.bf16.msrb.mxu3 %v8832_v15 }
 0x13d   : > { %4005 = vmatpush.bf16.msrb.mxu0 %v8807_v17 }
 0x13e   : > { %4018 = vmatpush.bf16.msrb.mxu1 %v8815_v18 }
 0x13f   : > { %4031 = vmatpush.bf16.msrb.mxu2 %v8823_v19 }
 0x140   : > { %4044 = vmatpush.bf16.msrb.mxu3 %v8831_v20  ;;  %v8838_v20 = vld [vmem:[%s10782_s1 + $0xa10] sm:$0xff] }
 0x141   : > { %4006 = vmatpush.bf16.msrb.mxu0 %v8806_v26  ;;  %v2849_v26 = vld [vmem:[%s9201_s9 + $0x28] sm:$0xcc] }
 0x142   : > { %4019 = vmatpush.bf16.msrb.mxu1 %v8814_v27  ;;  %v8837_v27 = vld [vmem:[%s10782_s1 + $0xa08] sm:$0xff] }
 0x143   : > { %4032 = vmatpush.bf16.msrb.mxu2 %v8822_v28  ;;  %v8845_v28 = vld [vmem:[%s10782_s1 + $0xa48] sm:$0xff] }
 0x144   : > { %4045 = vmatpush.bf16.msrb.mxu3 %v8830_v30  ;;  %v3127_v30 = vunpack.c.l.b16 %v2849_v26 }
 0x145   : > { %4007 = vmatpush.bf16.msrb.mxu0 %v8805_v33 }
 0x146   : > { %4020 = vmatpush.bf16.msrb.mxu1 %v8813_v34  ;;  %v3128_v34 = vunpack.c.h.b16 %v2849_v26  ;;  %v3143_v40 = vpack.c.b16 %v3127_v30, %v3127_v30  ;;  %v8893_v26 = vld [vmem:[%s10782_s1 + $0xbc8] sm:$0xff] }
 0x147   : > { %4033 = vmatpush.bf16.msrb.mxu2 %v8821_v37  ;;  %v8836_v37 = vld [vmem:[%s10782_s1 + $0xa00] sm:$0xff] }
 0x148   : > { %4046 = vmatpush.bf16.msrb.mxu3 %v8829_v38  ;;  %v8844_v38 = vld [vmem:[%s10782_s1 + $0xa40] sm:$0xff]  ;;  %v3159_v50 = vrot.slane %v3143_v40, 2  ;;  %v8931_v40 = vld [vmem:[%s10782_s1 + $0xc78] sm:$0xff] }
 0x149   : > { %4008 = vmatpush.bf16.msrb.mxu0 %v8804_v43  ;;  %v2697_v3 = vpop.f32.mrf.mxu0 }
 0x14a   : > { %4021 = vmatpush.bf16.msrb.mxu1 %v8812_v44  ;;  %v2698_v4 = vadd.f32 %v2697_v3, %v10097_v25  ;;  %v2710_v7 = vpop.f32.mrf.mxu1  ;;  %v2848_v25 = vld [vmem:[%s9201_s9 + $0x20] sm:$0xcc]  ;;  %v3144_v44 = vpack.c.b16 %v3128_v34, %v3128_v34 }
 0x14b   : > { %4034 = vmatpush.bf16.msrb.mxu2 %v8820_v47  ;;  %v3125_v29 = vunpack.c.l.b16 %v2848_v25  ;;  %v3126_v33 = vunpack.c.h.b16 %v2848_v25  ;;  %v8891_v47 = vld [vmem:[%s10782_s1 + $0xbb8] sm:$0xff]  ;;  %v8896_v3 = vld [vmem:[%s10782_s1 + $0xbe0] sm:$0xff]  ;;  %v8885_v25 = vld [vmem:[%s10782_s1 + $0xb88] sm:$0xff] }
 0x14c   : > { %4047 = vmatpush.bf16.msrb.mxu3 %v8828_v48  ;;  %4009 = vmatmul.bf16.vlgmr.msrb.gmra.mxu0 %v3153_v56  ;;  %v2711_v10 = vadd.f32 %v2710_v7, %v2698_v4  ;;  %v8899_v48 = vld [vmem:[%s10782_s1 + $0xbf8] sm:$0xff]  ;;  %v8898_v56 = vld [vmem:[%s10782_s1 + $0xbf0] sm:$0xff] }
 0x14d   : > { %4053 = vmatpush.bf16.msra.mxu0 %v8843_v51  ;;  %4022 = vmatmul.bf16.vlgmr.msrb.gmra.mxu1 %v3154_v58  ;;  %v3141_v39 = vpack.c.b16 %v3125_v29, %v3125_v29  ;;  %v3142_v43 = vpack.c.b16 %v3126_v33, %v3126_v33  ;;  %v8881_v58 = vld [vmem:[%s10782_s1 + $0xb68] sm:$0xff]  ;;  %v8887_v7 = vld [vmem:[%s10782_s1 + $0xb98] sm:$0xff] }
 0x14e   : > { %4066 = vmatpush.bf16.msra.mxu1 %v8851_v52  ;;  %4035 = vmatmul.bf16.vlgmr.msrb.gmra.mxu2 %v3155_v55  ;;  %v3160_v52 = vrot.slane %v3144_v44, 2  ;;  %v8890_v55 = vld [vmem:[%s10782_s1 + $0xbb0] sm:$0xff] }
 0x14f   : > { %4079 = vmatpush.bf16.msra.mxu2 %v8859_v53  ;;  %4048 = vmatmul.bf16.vlgmr.msrb.gmra.mxu3 %v3156_v57  ;;  %v3157_v49 = vrot.slane %v3141_v39, 2  ;;  %v3158_v51 = vrot.slane %v3142_v43, 2  ;;  %v8874_v53 = vld [vmem:[%s10782_s1 + $0xb30] sm:$0xff]  ;;  %v8873_v57 = vld [vmem:[%s10782_s1 + $0xb28] sm:$0xff]  ;;  %v8923_v39 = vld [vmem:[%s10782_s1 + $0xc38] sm:$0xff] }
 0x150   : > { %4092 = vmatpush.bf16.msra.mxu3 %v8867_v54  ;;  %v8882_v54 = vld [vmem:[%s10782_s1 + $0xb70] sm:$0xff] }
 0x151   : > { %4054 = vmatpush.bf16.msra.mxu0 %v8842_v59  ;;  %v2723_v15 = vpop.f32.mrf.mxu2  ;;  %v2699_v18 = vpop.f32.mrf.mxu0  ;;  %v8889_v59 = vld [vmem:[%s10782_s1 + $0xba8] sm:$0xff] }
 0x152   : > { %4067 = vmatpush.bf16.msra.mxu1 %v8850_v60  ;;  %v2724_v16 = vadd.f32 %v2723_v15, %v2711_v10  ;;  %v2736_v17 = vpop.f32.mrf.mxu3  ;;  %v2712_v23 = vpop.f32.mrf.mxu1  ;;  %v8897_v60 = vld [vmem:[%s10782_s1 + $0xbe8] sm:$0xff]  ;;  %v8878_v15 = vld [vmem:[%s10782_s1 + $0xb50] sm:$0xff] }
 0x153   : > { %4080 = vmatpush.bf16.msra.mxu2 %v8858_v61  ;;  %v8894_v18 = vld [vmem:[%s10782_s1 + $0xbd0] sm:$0xff] }
 0x154   : > { %4093 = vmatpush.bf16.msra.mxu3 %v8866_v62  ;;  %v10198_v19 = vadd.f32 %v2736_v17, %v2724_v16  ;;  %v8886_v16 = vld [vmem:[%s10782_s1 + $0xb90] sm:$0xff] }
 0x155   : > { %4055 = vmatpush.bf16.msra.mxu0 %v8841_v63  ;;  %v8872_v63 = vld [vmem:[%s10782_s1 + $0xb20] sm:$0xff] }
 0x156   : > { %4068 = vmatpush.bf16.msra.mxu1 %v8849_v0  ;;  %v8880_v0 = vld [vmem:[%s10782_s1 + $0xb60] sm:$0xff] }
 0x157   : > { %4081 = vmatpush.bf16.msra.mxu2 %v8857_v1 }
 0x158   : > { %4094 = vmatpush.bf16.msra.mxu3 %v8865_v2  ;;  %v8888_v2 = vld [vmem:[%s10782_s1 + $0xba0] sm:$0xff] }
 0x159   : > { %4056 = vmatpush.bf16.msra.mxu0 %v8840_v5  ;;  %v2725_v35 = vpop.f32.mrf.mxu2  ;;  %v8871_v5 = vld [vmem:[%s10782_s1 + $0xb18] sm:$0xff] }
 0x15a   : > { %4069 = vmatpush.bf16.msra.mxu1 %v8848_v6  ;;  %v2738_v36 = vpop.f32.mrf.mxu3  ;;  %v8879_v6 = vld [vmem:[%s10782_s1 + $0xb58] sm:$0xff]  ;;  %v8884_v35 = vld [vmem:[%s10782_s1 + $0xb80] sm:$0xff] }
 0x15b   : > { %4082 = vmatpush.bf16.msra.mxu2 %v8856_v8  ;;  %v8895_v8 = vld [vmem:[%s10782_s1 + $0xbd8] sm:$0xff]  ;;  %v8892_v36 = vld [vmem:[%s10782_s1 + $0xbc0] sm:$0xff] }
 0x15c   : > { %4095 = vmatpush.bf16.msra.mxu3 %v8864_v9 }
 0x15d   : > { %4057 = vmatpush.bf16.msra.mxu0 %v8839_v11 }
 0x15e   : > { %4070 = vmatpush.bf16.msra.mxu1 %v8847_v12 }
 0x15f   : > { %4083 = vmatpush.bf16.msra.mxu2 %v8855_v13 }
 0x160   : > { %4096 = vmatpush.bf16.msra.mxu3 %v8863_v14  ;;  %v8870_v14 = vld [vmem:[%s10782_s1 + $0xb10] sm:$0xff] }
 0x161   : > { %4058 = vmatpush.bf16.msra.mxu0 %v8838_v20  ;;  %v2851_v20 = vld [vmem:[%s9201_s9 + $0x38] sm:$0xcc] }
 0x162   : > { %4071 = vmatpush.bf16.msra.mxu1 %v8846_v21  ;;  %v8869_v21 = vld [vmem:[%s10782_s1 + $0xb08] sm:$0xff] }
 0x163   : > { %4084 = vmatpush.bf16.msra.mxu2 %v8854_v22  ;;  %v8877_v22 = vld [vmem:[%s10782_s1 + $0xb48] sm:$0xff] }
 0x164   : > { %4097 = vmatpush.bf16.msra.mxu3 %v8862_v24  ;;  %v3131_v24 = vunpack.c.l.b16 %v2851_v20 }
 0x165   : > { %4059 = vmatpush.bf16.msra.mxu0 %v8837_v27 }
 0x166   : > { %4072 = vmatpush.bf16.msra.mxu1 %v8845_v28  ;;  %v3132_v28 = vunpack.c.h.b16 %v2851_v20  ;;  %v3147_v34 = vpack.c.b16 %v3131_v24, %v3131_v24  ;;  %v7939_v20 = vld [vmem:[%s9201_s9] sm:$0x8]  ;;  %v7949_v24 = vld [vmem:[%s9201_s9 + $0x48] sm:$0x10] }
 0x167   : > { %4085 = vmatpush.bf16.msra.mxu2 %v8853_v31  ;;  %v8868_v31 = vld [vmem:[%s10782_s1 + $0xb00] sm:$0xff] }
 0x168   : > { %4098 = vmatpush.bf16.msra.mxu3 %v8861_v32  ;;  %v8876_v32 = vld [vmem:[%s10782_s1 + $0xb40] sm:$0xff]  ;;  %v3163_v44 = vrot.slane %v3147_v34, 2 }
 0x169   : > { %4060 = vmatpush.bf16.msra.mxu0 %v8836_v37  ;;  %v2749_v61 = vpop.f32.mrf.mxu0 }
 0x16a   : > { %4073 = vmatpush.bf16.msra.mxu1 %v8844_v38  ;;  %v2750_v62 = vadd.f32 %v2749_v61, %v10198_v19  ;;  %v2762_v1 = vpop.f32.mrf.mxu1  ;;  %v2850_v19 = vld [vmem:[%s9201_s9 + $0x30] sm:$0xcc]  ;;  %v3148_v38 = vpack.c.b16 %v3132_v28, %v3132_v28  ;;  %v8944_v61 = vld [vmem:[%s10782_s1 + $0xce0] sm:$0xff] }
 0x16b   : > { %4086 = vmatpush.bf16.msra.mxu2 %v8852_v41  ;;  %v3129_v23 = vunpack.c.l.b16 %v2850_v19  ;;  %v3130_v27 = vunpack.c.h.b16 %v2850_v19  ;;  %v8939_v41 = vld [vmem:[%s10782_s1 + $0xcb8] sm:$0xff]  ;;  %v8924_v28 = vld [vmem:[%s10782_s1 + $0xc40] sm:$0xff] }
 0x16c   : > { %4099 = vmatpush.bf16.msra.mxu3 %v8860_v42  ;;  %4061 = vmatmul.bf16.vlgmr.msra.gmra.mxu0 %v3157_v49  ;;  %v2763_v4 = vadd.f32 %v2762_v1, %v2750_v62  ;;  %v8947_v42 = vld [vmem:[%s10782_s1 + $0xcf8] sm:$0xff]  ;;  %v8938_v49 = vld [vmem:[%s10782_s1 + $0xcb0] sm:$0xff] }
 0x16d   : > { %4105 = vmatpush.bf16.msrb.mxu0 %v8875_v45  ;;  %4074 = vmatmul.bf16.vlgmr.msra.gmra.mxu1 %v3158_v51  ;;  %v3145_v33 = vpack.c.b16 %v3129_v23, %v3129_v23  ;;  %v3146_v37 = vpack.c.b16 %v3130_v27, %v3130_v27  ;;  %v8921_v51 = vld [vmem:[%s10782_s1 + $0xc28] sm:$0xff]  ;;  %v8935_v1 = vld [vmem:[%s10782_s1 + $0xc98] sm:$0xff]  ;;  %v8916_v27 = vld [vmem:[%s10782_s1 + $0xc00] sm:$0xff] }
 0x16e   : > { %4118 = vmatpush.bf16.msrb.mxu1 %v8883_v46  ;;  %4087 = vmatmul.bf16.vlgmr.msra.gmra.mxu2 %v3159_v50  ;;  %v3164_v46 = vrot.slane %v3148_v38, 2  ;;  %v8946_v50 = vld [vmem:[%s10782_s1 + $0xcf0] sm:$0xff]  ;;  %v8979_v38 = vld [vmem:[%s10782_s1 + $0xdf8] sm:$0xff] }
 0x16f   : > { %4131 = vmatpush.bf16.msrb.mxu2 %v8891_v47  ;;  %4100 = vmatmul.bf16.vlgmr.msra.gmra.mxu3 %v3160_v52  ;;  %v3161_v43 = vrot.slane %v3145_v33, 2  ;;  %v3162_v45 = vrot.slane %v3146_v37, 2  ;;  %v8922_v47 = vld [vmem:[%s10782_s1 + $0xc30] sm:$0xff]  ;;  %v8929_v52 = vld [vmem:[%s10782_s1 + $0xc68] sm:$0xff]  ;;  %v8971_v37 = vld [vmem:[%s10782_s1 + $0xdb8] sm:$0xff] }
 0x170   : > { %4144 = vmatpush.bf16.msrb.mxu3 %v8899_v48  ;;  %v8930_v48 = vld [vmem:[%s10782_s1 + $0xc70] sm:$0xff] }
 0x171   : > { %4106 = vmatpush.bf16.msrb.mxu0 %v8874_v53  ;;  %v2775_v9 = vpop.f32.mrf.mxu2  ;;  %v2751_v12 = vpop.f32.mrf.mxu0  ;;  %v8937_v53 = vld [vmem:[%s10782_s1 + $0xca8] sm:$0xff] }
 0x172   : > { %4119 = vmatpush.bf16.msrb.mxu1 %v8882_v54  ;;  %v2776_v10 = vadd.f32 %v2775_v9, %v2763_v4  ;;  %v2788_v11 = vpop.f32.mrf.mxu3  ;;  %v2764_v17 = vpop.f32.mrf.mxu1  ;;  %v8945_v54 = vld [vmem:[%s10782_s1 + $0xce8] sm:$0xff]  ;;  %v8926_v9 = vld [vmem:[%s10782_s1 + $0xc50] sm:$0xff] }
 0x173   : > { %4132 = vmatpush.bf16.msrb.mxu2 %v8890_v55  ;;  %v8942_v12 = vld [vmem:[%s10782_s1 + $0xcd0] sm:$0xff]  ;;  %v7947_v17 = vld [vmem:[%s9201_s9 + $0x8] sm:$0x8] }
 0x174   : > { %4145 = vmatpush.bf16.msrb.mxu3 %v8898_v56  ;;  %v10299_v13 = vadd.f32 %v2788_v11, %v2776_v10  ;;  %v8934_v11 = vld [vmem:[%s10782_s1 + $0xc90] sm:$0xff] }
 0x175   : > { %4107 = vmatpush.bf16.msrb.mxu0 %v8873_v57  ;;  %v8920_v57 = vld [vmem:[%s10782_s1 + $0xc20] sm:$0xff] }
 0x176   : > { %4120 = vmatpush.bf16.msrb.mxu1 %v8881_v58  ;;  %v8928_v58 = vld [vmem:[%s10782_s1 + $0xc60] sm:$0xff] }
 0x177   : > { %4133 = vmatpush.bf16.msrb.mxu2 %v8889_v59 }
 0x178   : > { %4146 = vmatpush.bf16.msrb.mxu3 %v8897_v60  ;;  %v8936_v60 = vld [vmem:[%s10782_s1 + $0xca0] sm:$0xff] }
 0x179   : > { %4108 = vmatpush.bf16.msrb.mxu0 %v8872_v63  ;;  %v2777_v29 = vpop.f32.mrf.mxu2  ;;  %v8919_v63 = vld [vmem:[%s10782_s1 + $0xc18] sm:$0xff] }
 0x17a   : > { %4121 = vmatpush.bf16.msrb.mxu1 %v8880_v0  ;;  %v2790_v30 = vpop.f32.mrf.mxu3  ;;  %v8927_v0 = vld [vmem:[%s10782_s1 + $0xc58] sm:$0xff] }
 0x17b   : > { %4134 = vmatpush.bf16.msrb.mxu2 %v8888_v2  ;;  %v8943_v2 = vld [vmem:[%s10782_s1 + $0xcd8] sm:$0xff] }
 0x17c   : > { %4147 = vmatpush.bf16.msrb.mxu3 %v8896_v3 }
 0x17d   : > { %4109 = vmatpush.bf16.msrb.mxu0 %v8871_v5 }
 0x17e   : > { %4122 = vmatpush.bf16.msrb.mxu1 %v8879_v6 }
 0x17f   : > { %4135 = vmatpush.bf16.msrb.mxu2 %v8887_v7 }
 0x180   : > { %4148 = vmatpush.bf16.msrb.mxu3 %v8895_v8  ;;  %v8918_v8 = vld [vmem:[%s10782_s1 + $0xc10] sm:$0xff] }
 0x181   : > { %4110 = vmatpush.bf16.msrb.mxu0 %v8870_v14  ;;  %v8925_v14 = vld [vmem:[%s10782_s1 + $0xc48] sm:$0xff] }
 0x182   : > { %4123 = vmatpush.bf16.msrb.mxu1 %v8878_v15  ;;  %v8933_v15 = vld [vmem:[%s10782_s1 + $0xc88] sm:$0xff] }
 0x183   : > { %4136 = vmatpush.bf16.msrb.mxu2 %v8886_v16  ;;  %v8941_v16 = vld [vmem:[%s10782_s1 + $0xcc8] sm:$0xff] }
 0x184   : > { %4149 = vmatpush.bf16.msrb.mxu3 %v8894_v18  ;;  %v8909_v18 = vld [vmem:[%s9201_s9 + $0x44] sm:$0x10] }
 0x185   : > { %4111 = vmatpush.bf16.msrb.mxu0 %v8869_v21  ;;  %v8908_v21 = vld [vmem:[%s9201_s9 + $0x3c] sm:$0x10]  ;;  %v7948_v29 = vor.u32 %v8909_v18, %v7947_v17  ;;  %v8903_v17 = vld [vmem:[%s9201_s9 + $0x1c] sm:$0x8] }
 0x186   : > { %4124 = vmatpush.bf16.msrb.mxu1 %v8877_v22  ;;  %v8901_v22 = vld [vmem:[%s9201_s9 + $0xc] sm:$0x8]  ;;  %v7940_v30 = vor.u32 %v8908_v21, %v7939_v20  ;;  %v8902_v20 = vld [vmem:[%s9201_s9 + $0x14] sm:$0x8]  ;;  %v7957_v21 = vld [vmem:[%s9201_s9 + $0x50] sm:$0x10] }
 0x187   : > { %4137 = vmatpush.bf16.msrb.mxu2 %v8885_v25  ;;  %v8900_v25 = vld [vmem:[%s9201_s9 + $0x4] sm:$0x8]  ;;  %v7952_v33 = vor.u32 %v8901_v22, %v7949_v24 }
 0x188   : > { %4150 = vmatpush.bf16.msrb.mxu3 %v8893_v26  ;;  %v7941_v26 = vld [vmem:[%s9201_s9 + $0x40] sm:$0x10] }
 0x189   : > { %4112 = vmatpush.bf16.msrb.mxu0 %v8868_v31  ;;  %v2801_v55 = vpop.f32.mrf.mxu0  ;;  %v8932_v31 = vld [vmem:[%s10782_s1 + $0xc80] sm:$0xff]  ;;  %v7944_v34 = vor.u32 %v8900_v25, %v7941_v26 }
 0x18a   : > { %4125 = vmatpush.bf16.msrb.mxu1 %v8876_v32  ;;  %v2802_v56 = vadd.f32 %v2801_v55, %v10299_v13  ;;  %v2814_v59 = vpop.f32.mrf.mxu1  ;;  %v8917_v13 = vld [vmem:[%s10782_s1 + $0xc08] sm:$0xff]  ;;  %v8940_v32 = vld [vmem:[%s10782_s1 + $0xcc0] sm:$0xff] }
 0x18b   : > { %4138 = vmatpush.bf16.msrb.mxu2 %v8884_v35  ;;  %v8955_v35 = vld [vmem:[%s10782_s1 + $0xd38] sm:$0xff]  ;;  %v8968_v55 = vld [vmem:[%s10782_s1 + $0xda0] sm:$0xff] }
 0x18c   : > { %4151 = vmatpush.bf16.msrb.mxu3 %v8892_v36  ;;  %4113 = vmatmul.bf16.vlgmr.msrb.gmra.mxu0 %v3161_v43  ;;  %v2815_v62 = vadd.f32 %v2814_v59, %v2802_v56  ;;  %v8963_v36 = vld [vmem:[%s10782_s1 + $0xd78] sm:$0xff]  ;;  %v8954_v43 = vld [vmem:[%s10782_s1 + $0xd30] sm:$0xff]  ;;  %v8976_v56 = vld [vmem:[%s10782_s1 + $0xde0] sm:$0xff] }
 0x18d   : > { %5295 = vmatpush.bf16.msra.mxu0 %v8923_v39  ;;  %4126 = vmatmul.bf16.vlgmr.msrb.gmra.mxu1 %v3162_v45  ;;  %v4497_v39 = vrot.slane %v7948_v29, 3  ;;  %v8970_v45 = vld [vmem:[%s10782_s1 + $0xdb0] sm:$0xff]  ;;  %v8959_v59 = vld [vmem:[%s10782_s1 + $0xd58] sm:$0xff]  ;;  %v8956_v24 = vld [vmem:[%s10782_s1 + $0xd40] sm:$0xff] }
 0x18e   : > { %5308 = vmatpush.bf16.msra.mxu1 %v8931_v40  ;;  %4139 = vmatmul.bf16.vlgmr.msrb.gmra.mxu2 %v3163_v44  ;;  %v4495_v40 = vrot.slane %v7940_v30, 3  ;;  %v8962_v44 = vld [vmem:[%s10782_s1 + $0xd70] sm:$0xff]  ;;  %v7960_v30 = vor.u32 %v8902_v20, %v7957_v21  ;;  %v8980_v20 = vld [vmem:[%s10782_s1 + $0xe00] sm:$0xff] }
 0x18f   : > { %5321 = vmatpush.bf16.msra.mxu2 %v8939_v41  ;;  %4152 = vmatmul.bf16.vlgmr.msrb.gmra.mxu3 %v3164_v46  ;;  %v4498_v41 = vrot.slane %v7952_v33, 3  ;;  %v8978_v46 = vld [vmem:[%s10782_s1 + $0xdf0] sm:$0xff]  ;;  %v9003_v33 = vld [vmem:[%s10782_s1 + $0xeb8] sm:$0xff]  ;;  %v8988_v21 = vld [vmem:[%s10782_s1 + $0xe40] sm:$0xff] }
 0x190   : > { %5334 = vmatpush.bf16.msra.mxu3 %v8947_v42  ;;  %v4496_v42 = vrot.slane %v7944_v34, 3  ;;  %v9011_v34 = vld [vmem:[%s10782_s1 + $0xef8] sm:$0xff] }
 0x191   : > { %5296 = vmatpush.bf16.msra.mxu0 %v8922_v47  ;;  %v2827_v3 = vpop.f32.mrf.mxu2  ;;  %v2803_v6 = vpop.f32.mrf.mxu0  ;;  %v8953_v47 = vld [vmem:[%s10782_s1 + $0xd28] sm:$0xff] }
 0x192   : > { %5309 = vmatpush.bf16.msra.mxu1 %v8930_v48  ;;  %v2828_v4 = vadd.f32 %v2827_v3, %v2815_v62  ;;  %v2840_v5 = vpop.f32.mrf.mxu3  ;;  %v2816_v10 = vpop.f32.mrf.mxu1  ;;  %v8961_v48 = vld [vmem:[%s10782_s1 + $0xd68] sm:$0xff]  ;;  %v8958_v3 = vld [vmem:[%s10782_s1 + $0xd50] sm:$0xff] }
 0x193   : > { %5322 = vmatpush.bf16.msra.mxu2 %v8938_v49  ;;  %v8969_v49 = vld [vmem:[%s10782_s1 + $0xda8] sm:$0xff]  ;;  %v8966_v6 = vld [vmem:[%s10782_s1 + $0xd90] sm:$0xff] }
 0x194   : > { %5335 = vmatpush.bf16.msra.mxu3 %v8946_v50  ;;  %v10400_v7 = vadd.f32 %v2840_v5, %v2828_v4  ;;  %v8977_v50 = vld [vmem:[%s10782_s1 + $0xde8] sm:$0xff] }
 0x195   : > { %5297 = vmatpush.bf16.msra.mxu0 %v8921_v51  ;;  %v8957_v10 = vld [vmem:[%s10782_s1 + $0xd48] sm:$0xff] }
 0x196   : > { %5310 = vmatpush.bf16.msra.mxu1 %v8929_v52  ;;  %v8952_v52 = vld [vmem:[%s10782_s1 + $0xd20] sm:$0xff] }
 0x197   : > { %5323 = vmatpush.bf16.msra.mxu2 %v8937_v53  ;;  %v8960_v53 = vld [vmem:[%s10782_s1 + $0xd60] sm:$0xff] }
 0x198   : > { %5336 = vmatpush.bf16.msra.mxu3 %v8945_v54 }
 0x199   : > { %5298 = vmatpush.bf16.msra.mxu0 %v8920_v57  ;;  %v2829_v19 = vpop.f32.mrf.mxu2 }
 0x19a   : > { %5311 = vmatpush.bf16.msra.mxu1 %v8928_v58  ;;  %v2842_v23 = vpop.f32.mrf.mxu3  ;;  %v8951_v58 = vld [vmem:[%s10782_s1 + $0xd18] sm:$0xff] }
 0x19b   : > { %5324 = vmatpush.bf16.msra.mxu2 %v8936_v60  ;;  %v8967_v60 = vld [vmem:[%s10782_s1 + $0xd98] sm:$0xff]  ;;  %v8948_v23 = vld [vmem:[%s10782_s1 + $0xd00] sm:$0xff] }
 0x19c   : > { %5337 = vmatpush.bf16.msra.mxu3 %v8944_v61  ;;  %v8975_v61 = vld [vmem:[%s10782_s1 + $0xdd8] sm:$0xff] }
 0x19d   : > { %5299 = vmatpush.bf16.msra.mxu0 %v8919_v63  ;;  %v7965_v19 = vld [vmem:[%s9201_s9 + $0x58] sm:$0x10] }
 0x19e   : > { %5312 = vmatpush.bf16.msra.mxu1 %v8927_v0  ;;  %v7968_v29 = vor.u32 %v8903_v17, %v7965_v19  ;;  %v8905_v17 = vld [vmem:[%s9201_s9 + $0x2c] sm:$0x8] }
 0x19f   : > { %5325 = vmatpush.bf16.msra.mxu2 %v8935_v1 }
 0x1a0   : > { %5338 = vmatpush.bf16.msra.mxu3 %v8943_v2  ;;  %v8950_v2 = vld [vmem:[%s10782_s1 + $0xd10] sm:$0xff] }
 0x1a1   : > { %5300 = vmatpush.bf16.msra.mxu0 %v8918_v8  ;;  %v8974_v8 = vld [vmem:[%s10782_s1 + $0xdd0] sm:$0xff] }
 0x1a2   : > { %5313 = vmatpush.bf16.msra.mxu1 %v8926_v9  ;;  %v8949_v9 = vld [vmem:[%s10782_s1 + $0xd08] sm:$0xff] }
 0x1a3   : > { %5326 = vmatpush.bf16.msra.mxu2 %v8934_v11  ;;  %v8965_v11 = vld [vmem:[%s10782_s1 + $0xd88] sm:$0xff] }
 0x1a4   : > { %5339 = vmatpush.bf16.msra.mxu3 %v8942_v12  ;;  %v8973_v12 = vld [vmem:[%s10782_s1 + $0xdc8] sm:$0xff] }
 0x1a5   : > { %5301 = vmatpush.bf16.msra.mxu0 %v8917_v13  ;;  %v7963_v13 = vld [vmem:[%s9201_s9 + $0x18] sm:$0x8] }
 0x1a6   : > { %5314 = vmatpush.bf16.msra.mxu1 %v8925_v14  ;;  %v8911_v14 = vld [vmem:[%s9201_s9 + $0x54] sm:$0x10] }
 0x1a7   : > { %5327 = vmatpush.bf16.msra.mxu2 %v8933_v15  ;;  %v7955_v15 = vld [vmem:[%s9201_s9 + $0x10] sm:$0x8]  ;;  %v7964_v25 = vor.u32 %v8911_v14, %v7963_v13  ;;  %v8913_v13 = vld [vmem:[%s9201_s9 + $0x64] sm:$0x10]  ;;  %v8904_v14 = vld [vmem:[%s9201_s9 + $0x24] sm:$0x8] }
 0x1a8   : > { %5340 = vmatpush.bf16.msra.mxu3 %v8941_v16  ;;  %v8910_v16 = vld [vmem:[%s9201_s9 + $0x4c] sm:$0x10] }
 0x1a9   : > { %5302 = vmatpush.bf16.msra.mxu0 %v8916_v27  ;;  %v3958_v51 = vpop.f32.mrf.mxu0  ;;  %v7956_v26 = vor.u32 %v8910_v16, %v7955_v15  ;;  %v8964_v27 = vld [vmem:[%s10782_s1 + $0xd80] sm:$0xff] }
 0x1aa   : > { %5315 = vmatpush.bf16.msra.mxu1 %v8924_v28  ;;  %v3971_v54 = vpop.f32.mrf.mxu1  ;;  %v8972_v28 = vld [vmem:[%s10782_s1 + $0xdc0] sm:$0xff] }
 0x1ab   : > { %5328 = vmatpush.bf16.msra.mxu2 %v8932_v31  ;;  %v3972_v57 = vadd.f32 %v3971_v54, %v3958_v51  ;;  %v8987_v31 = vld [vmem:[%s10782_s1 + $0xe38] sm:$0xff]  ;;  %v7973_v16 = vld [vmem:[%s9201_s9 + $0x60] sm:$0x10] }
 0x1ac   : > { %5341 = vmatpush.bf16.msra.mxu3 %v8940_v32  ;;  %5303 = vmatmul.bf16.vlgmr.msra.gmra.mxu0 %v4495_v40  ;;  %v8995_v32 = vld [vmem:[%s10782_s1 + $0xe78] sm:$0xff]  ;;  %v8994_v40 = vld [vmem:[%s10782_s1 + $0xe70] sm:$0xff] }
 0x1ad   : > { %5347 = vmatpush.bf16.msrb.mxu0 %v8955_v35  ;;  %5316 = vmatmul.bf16.vlgmr.msra.gmra.mxu1 %v4496_v42  ;;  %v4501_v35 = vrot.slane %v7964_v25, 3  ;;  %v9010_v42 = vld [vmem:[%s10782_s1 + $0xef0] sm:$0xff]  ;;  %v9004_v25 = vld [vmem:[%s10782_s1 + $0xec0] sm:$0xff] }
 0x1ae   : > { %5360 = vmatpush.bf16.msrb.mxu1 %v8963_v36  ;;  %5329 = vmatmul.bf16.vlgmr.msra.gmra.mxu2 %v4497_v39  ;;  %v4499_v36 = vrot.slane %v7956_v26, 3  ;;  %v8986_v39 = vld [vmem:[%s10782_s1 + $0xe30] sm:$0xff]  ;;  %v7976_v26 = vor.u32 %v8904_v14, %v7973_v16  ;;  %v7997_v14 = vld [vmem:[%s9201_s9 + $0x78] sm:$0x10] }
 0x1af   : > { %5373 = vmatpush.bf16.msrb.mxu2 %v8971_v37  ;;  %5342 = vmatmul.bf16.vlgmr.msra.gmra.mxu3 %v4498_v41  ;;  %v4502_v37 = vrot.slane %v7968_v29, 3  ;;  %v9002_v41 = vld [vmem:[%s10782_s1 + $0xeb0] sm:$0xff]  ;;  %v9027_v29 = vld [vmem:[%s10782_s1 + $0xf78] sm:$0xff] }
 0x1b0   : > { %5386 = vmatpush.bf16.msrb.mxu3 %v8979_v38  ;;  %v4500_v38 = vrot.slane %v7960_v30, 3  ;;  %v9035_v30 = vld [vmem:[%s10782_s1 + $0xfb8] sm:$0xff] }
 0x1b1   : > { %5348 = vmatpush.bf16.msrb.mxu0 %v8954_v43  ;;  %v3984_v62 = vpop.f32.mrf.mxu2  ;;  %v3960_v1 = vpop.f32.mrf.mxu0  ;;  %v8985_v43 = vld [vmem:[%s10782_s1 + $0xe28] sm:$0xff] }
 0x1b2   : > { %5361 = vmatpush.bf16.msrb.mxu1 %v8962_v44  ;;  %v3985_v63 = vadd.f32 %v3984_v62, %v3972_v57  ;;  %v3997_v0 = vpop.f32.mrf.mxu3  ;;  %v3973_v5 = vpop.f32.mrf.mxu1  ;;  %v8993_v44 = vld [vmem:[%s10782_s1 + $0xe68] sm:$0xff]  ;;  %v8999_v57 = vld [vmem:[%s10782_s1 + $0xe98] sm:$0xff] }
 0x1b3   : > { %5374 = vmatpush.bf16.msrb.mxu2 %v8970_v45  ;;  %v9001_v45 = vld [vmem:[%s10782_s1 + $0xea8] sm:$0xff] }
 0x1b4   : > { %5387 = vmatpush.bf16.msrb.mxu3 %v8978_v46  ;;  %v10512_v4 = vadd.f32 %v3997_v0, %v3985_v63  ;;  %v9009_v46 = vld [vmem:[%s10782_s1 + $0xee8] sm:$0xff]  ;;  %v8982_v63 = vld [vmem:[%s10782_s1 + $0xe10] sm:$0xff] }
 0x1b5   : > { %5349 = vmatpush.bf16.msrb.mxu0 %v8953_v47  ;;  %v8990_v0 = vld [vmem:[%s10782_s1 + $0xe50] sm:$0xff]  ;;  %v8981_v5 = vld [vmem:[%s10782_s1 + $0xe08] sm:$0xff] }
 0x1b6   : > { %5362 = vmatpush.bf16.msrb.mxu1 %v8961_v48  ;;  %v8984_v48 = vld [vmem:[%s10782_s1 + $0xe20] sm:$0xff] }
 0x1b7   : > { %5375 = vmatpush.bf16.msrb.mxu2 %v8969_v49  ;;  %v8992_v49 = vld [vmem:[%s10782_s1 + $0xe60] sm:$0xff] }
 0x1b8   : > { %5388 = vmatpush.bf16.msrb.mxu3 %v8977_v50 }
 0x1b9   : > { %5350 = vmatpush.bf16.msrb.mxu0 %v8952_v52  ;;  %v3986_v18 = vpop.f32.mrf.mxu2  ;;  %v9000_v52 = vld [vmem:[%s10782_s1 + $0xea0] sm:$0xff] }
 0x1ba   : > { %5363 = vmatpush.bf16.msrb.mxu1 %v8960_v53  ;;  %v3999_v22 = vpop.f32.mrf.mxu3  ;;  %v9008_v53 = vld [vmem:[%s10782_s1 + $0xee0] sm:$0xff]  ;;  %v7981_v18 = vld [vmem:[%s9201_s9 + $0x68] sm:$0x10] }
 0x1bb   : > { %5376 = vmatpush.bf16.msrb.mxu2 %v8968_v55  ;;  %v8983_v55 = vld [vmem:[%s10782_s1 + $0xe18] sm:$0xff] }
 0x1bc   : > { %5389 = vmatpush.bf16.msrb.mxu3 %v8976_v56  ;;  %v8991_v56 = vld [vmem:[%s10782_s1 + $0xe58] sm:$0xff] }
 0x1bd   : > { %5351 = vmatpush.bf16.msrb.mxu0 %v8951_v58  ;;  %v9007_v58 = vld [vmem:[%s10782_s1 + $0xed8] sm:$0xff] }
 0x1be   : > { %5364 = vmatpush.bf16.msrb.mxu1 %v8959_v59 }
 0x1bf   : > { %5377 = vmatpush.bf16.msrb.mxu2 %v8967_v60 }
 0x1c0   : > { %5390 = vmatpush.bf16.msrb.mxu3 %v8975_v61 }
 0x1c1   : > { %5352 = vmatpush.bf16.msrb.mxu0 %v8950_v2 }
 0x1c2   : > { %5365 = vmatpush.bf16.msrb.mxu1 %v8958_v3  ;;  %v8998_v3 = vld [vmem:[%s10782_s1 + $0xe90] sm:$0xff] }
 0x1c3   : > { %5378 = vmatpush.bf16.msrb.mxu2 %v8966_v6  ;;  %v8989_v6 = vld [vmem:[%s10782_s1 + $0xe48] sm:$0xff] }
 0x1c4   : > { %5391 = vmatpush.bf16.msrb.mxu3 %v8974_v8  ;;  %v8997_v8 = vld [vmem:[%s10782_s1 + $0xe88] sm:$0xff] }
 0x1c5   : > { %5353 = vmatpush.bf16.msrb.mxu0 %v8949_v9  ;;  %v9005_v9 = vld [vmem:[%s10782_s1 + $0xec8] sm:$0xff] }
 0x1c6   : > { %5366 = vmatpush.bf16.msrb.mxu1 %v8957_v10  ;;  %v7971_v10 = vld [vmem:[%s9201_s9 + $0x20] sm:$0x8] }
 0x1c7   : > { %5379 = vmatpush.bf16.msrb.mxu2 %v8965_v11  ;;  %v8912_v11 = vld [vmem:[%s9201_s9 + $0x5c] sm:$0x10] }
 0x1c8   : > { %5392 = vmatpush.bf16.msrb.mxu3 %v8973_v12  ;;  %v7979_v12 = vld [vmem:[%s9201_s9 + $0x28] sm:$0x8]  ;;  %v7972_v22 = vor.u32 %v8912_v11, %v7971_v10  ;;  %v7989_v10 = vld [vmem:[%s9201_s9 + $0x70] sm:$0x10]  ;;  %v7995_v11 = vld [vmem:[%s9201_s9 + $0x38] sm:$0x8] }
 0x1c9   : > { %5354 = vmatpush.bf16.msrb.mxu0 %v8948_v23  ;;  %v4010_v47 = vpop.f32.mrf.mxu0  ;;  %v7980_v23 = vor.u32 %v8913_v13, %v7979_v12  ;;  %v8915_v12 = vld [vmem:[%s9201_s9 + $0x74] sm:$0x10]  ;;  %v8907_v13 = vld [vmem:[%s9201_s9 + $0x3c] sm:$0x8] }
 0x1ca   : > { %5367 = vmatpush.bf16.msrb.mxu1 %v8956_v24  ;;  %v4011_v50 = vadd.f32 %v4010_v47, %v10512_v4  ;;  %v4023_v51 = vpop.f32.mrf.mxu1  ;;  %v9006_v4 = vld [vmem:[%s10782_s1 + $0xed0] sm:$0xff]  ;;  %v8996_v24 = vld [vmem:[%s10782_s1 + $0xe80] sm:$0xff] }
 0x1cb   : > { %5380 = vmatpush.bf16.msrb.mxu2 %v8964_v27  ;;  %v7984_v27 = vor.u32 %v8905_v17, %v7981_v18  ;;  %v9024_v47 = vld [vmem:[%s10782_s1 + $0xf60] sm:$0xff] }
 0x1cc   : > { %5393 = vmatpush.bf16.msrb.mxu3 %v8972_v28  ;;  %5355 = vmatmul.bf16.vlgmr.msrb.gmra.mxu0 %v4499_v36  ;;  %v4024_v54 = vadd.f32 %v4023_v51, %v4011_v50  ;;  %v9019_v28 = vld [vmem:[%s10782_s1 + $0xf38] sm:$0xff]  ;;  %v9018_v36 = vld [vmem:[%s10782_s1 + $0xf30] sm:$0xff]  ;;  %v9040_v50 = vld [vmem:[%s10782_s1 + $0xfe0] sm:$0xff] }
 0x1cd   : > { %5399 = vmatpush.bf16.msra.mxu0 %v8987_v31  ;;  %5368 = vmatmul.bf16.vlgmr.msrb.gmra.mxu1 %v4500_v38  ;;  %v9043_v31 = vld [vmem:[%s10782_s1 + $0xff8] sm:$0xff]  ;;  %v9034_v38 = vld [vmem:[%s10782_s1 + $0xfb0] sm:$0xff] }
 0x1ce   : > { %5412 = vmatpush.bf16.msra.mxu1 %v8995_v32  ;;  %5381 = vmatmul.bf16.vlgmr.msrb.gmra.mxu2 %v4501_v35  ;;  %v4503_v32 = vrot.slane %v7972_v22, 3  ;;  %v4506_v35 = vrot.slane %v7984_v27, 3  ;;  %v8000_v22 = vor.u32 %v8907_v13, %v7997_v14 }
 0x1cf   : > { %5425 = vmatpush.bf16.msra.mxu2 %v9003_v33  ;;  %5394 = vmatmul.bf16.vlgmr.msrb.gmra.mxu3 %v4502_v37  ;;  %v4505_v33 = vrot.slane %v7980_v23, 3  ;;  %v9026_v37 = vld [vmem:[%s10782_s1 + $0xf70] sm:$0xff]  ;;  %v9028_v23 = vld [vmem:[%s10782_s1 + $0xf80] sm:$0xff] }
 0x1d0   : > { %5438 = vmatpush.bf16.msra.mxu3 %v9011_v34  ;;  %v4504_v34 = vrot.slane %v7976_v26, 3 }
 0x1d1   : > { %5400 = vmatpush.bf16.msra.mxu0 %v8986_v39  ;;  %v4036_v59 = vpop.f32.mrf.mxu2  ;;  %v4012_v62 = vpop.f32.mrf.mxu0  ;;  %v9042_v39 = vld [vmem:[%s10782_s1 + $0xff0] sm:$0xff] }
 0x1d2   : > { %5413 = vmatpush.bf16.msra.mxu1 %v8994_v40  ;;  %v4037_v60 = vadd.f32 %v4036_v59, %v4024_v54  ;;  %v4049_v61 = vpop.f32.mrf.mxu3  ;;  %v4025_v2 = vpop.f32.mrf.mxu1  ;;  %v9017_v40 = vld [vmem:[%s10782_s1 + $0xf28] sm:$0xff]  ;;  %v9031_v54 = vld [vmem:[%s10782_s1 + $0xf98] sm:$0xff]  ;;  %v9022_v62 = vld [vmem:[%s10782_s1 + $0xf50] sm:$0xff] }
 0x1d3   : > { %5426 = vmatpush.bf16.msra.mxu2 %v9002_v41  ;;  %v9025_v41 = vld [vmem:[%s10782_s1 + $0xf68] sm:$0xff] }
 0x1d4   : > { %5439 = vmatpush.bf16.msra.mxu3 %v9010_v42  ;;  %v10619_v1 = vadd.f32 %v4049_v61, %v4037_v60  ;;  %v9033_v42 = vld [vmem:[%s10782_s1 + $0xfa8] sm:$0xff]  ;;  %v9014_v61 = vld [vmem:[%s10782_s1 + $0xf10] sm:$0xff] }
 0x1d5   : > { %5401 = vmatpush.bf16.msra.mxu0 %v8985_v43  ;;  %v9041_v43 = vld [vmem:[%s10782_s1 + $0xfe8] sm:$0xff] }
 0x1d6   : > { %5414 = vmatpush.bf16.msra.mxu1 %v8993_v44  ;;  %v9013_v2 = vld [vmem:[%s10782_s1 + $0xf08] sm:$0xff] }
 0x1d7   : > { %5427 = vmatpush.bf16.msra.mxu2 %v9001_v45 }
 0x1d8   : > { %5440 = vmatpush.bf16.msra.mxu3 %v9009_v46  ;;  %v9016_v46 = vld [vmem:[%s10782_s1 + $0xf20] sm:$0xff] }
 0x1d9   : > { %5402 = vmatpush.bf16.msra.mxu0 %v8984_v48  ;;  %v4038_v15 = vpop.f32.mrf.mxu2 }
 0x1da   : > { %5415 = vmatpush.bf16.msra.mxu1 %v8992_v49  ;;  %v4051_v19 = vpop.f32.mrf.mxu3  ;;  %v9032_v49 = vld [vmem:[%s10782_s1 + $0xfa0] sm:$0xff] }
 0x1db   : > { %5428 = vmatpush.bf16.msra.mxu2 %v9000_v52  ;;  %v9015_v52 = vld [vmem:[%s10782_s1 + $0xf18] sm:$0xff]  ;;  %v9012_v19 = vld [vmem:[%s10782_s1 + $0xf00] sm:$0xff] }
 0x1dc   : > { %5441 = vmatpush.bf16.msra.mxu3 %v9008_v53  ;;  %v9023_v53 = vld [vmem:[%s10782_s1 + $0xf58] sm:$0xff] }
 0x1dd   : > { %5403 = vmatpush.bf16.msra.mxu0 %v8983_v55  ;;  %v9039_v55 = vld [vmem:[%s10782_s1 + $0xfd8] sm:$0xff] }
 0x1de   : > { %5416 = vmatpush.bf16.msra.mxu1 %v8991_v56 }
 0x1df   : > { %5429 = vmatpush.bf16.msra.mxu2 %v8999_v57 }
 0x1e0   : > { %5442 = vmatpush.bf16.msra.mxu3 %v9007_v58 }
 0x1e1   : > { %5404 = vmatpush.bf16.msra.mxu0 %v8982_v63 }
 0x1e2   : > { %5417 = vmatpush.bf16.msra.mxu1 %v8990_v0  ;;  %v9030_v0 = vld [vmem:[%s10782_s1 + $0xf90] sm:$0xff] }
 0x1e3   : > { %5430 = vmatpush.bf16.msra.mxu2 %v8998_v3  ;;  %v9021_v3 = vld [vmem:[%s10782_s1 + $0xf48] sm:$0xff] }
 0x1e4   : > { %5443 = vmatpush.bf16.msra.mxu3 %v9006_v4  ;;  %v9029_v4 = vld [vmem:[%s10782_s1 + $0xf88] sm:$0xff] }
 0x1e5   : > { %5405 = vmatpush.bf16.msra.mxu0 %v8981_v5  ;;  %v9037_v5 = vld [vmem:[%s10782_s1 + $0xfc8] sm:$0xff] }
 0x1e6   : > { %5418 = vmatpush.bf16.msra.mxu1 %v8989_v6  ;;  %v7987_v6 = vld [vmem:[%s9201_s9 + $0x30] sm:$0x8] }
 0x1e7   : > { %5431 = vmatpush.bf16.msra.mxu2 %v8997_v8  ;;  %v8914_v8 = vld [vmem:[%s9201_s9 + $0x6c] sm:$0x10] }
 0x1e8   : > { %5444 = vmatpush.bf16.msra.mxu3 %v9005_v9  ;;  %v8906_v9 = vld [vmem:[%s9201_s9 + $0x34] sm:$0x8]  ;;  %v7988_v17 = vor.u32 %v8914_v8, %v7987_v6 }
 0x1e9   : > { %5406 = vmatpush.bf16.msra.mxu0 %v8980_v20  ;;  %v4062_v44 = vpop.f32.mrf.mxu0  ;;  %v7992_v18 = vor.u32 %v8906_v9, %v7989_v10  ;;  %v9020_v20 = vld [vmem:[%s10782_s1 + $0xf40] sm:$0xff] }
 0x1ea   : > { %5419 = vmatpush.bf16.msra.mxu1 %v8988_v21  ;;  %v4063_v45 = vadd.f32 %v4062_v44, %v10619_v1  ;;  %v4075_v48 = vpop.f32.mrf.mxu1  ;;  %v9038_v1 = vld [vmem:[%s10782_s1 + $0xfd0] sm:$0xff]  ;;  %v7996_v21 = vor.u32 %v8915_v12, %v7995_v11 }
 0x1eb   : > { %5432 = vmatpush.bf16.msra.mxu2 %v8996_v24  ;;  %v9036_v24 = vld [vmem:[%s10782_s1 + $0xfc0] sm:$0xff]  ;;  %v4508_v26 = vrot.slane %v7992_v18, 3 }
 0x1ec   : > { %5445 = vmatpush.bf16.msra.mxu3 %v9004_v25  ;;  %5407 = vmatmul.bf16.vlgmr.msra.gmra.mxu0 %v4503_v32  ;;  %v4076_v51 = vadd.f32 %v4075_v48, %v4063_v45  ;;  %v4507_v25 = vrot.slane %v7988_v17, 3  ;;  %v4509_v27 = vrot.slane %v7996_v21, 3 }
 0x1ed   : > { %5451 = vmatpush.bf16.msrb.mxu0 %v9019_v28  ;;  %5420 = vmatmul.bf16.vlgmr.msra.gmra.mxu1 %v4504_v34  ;;  %v4510_v28 = vrot.slane %v8000_v22, 3 }
 0x1ee   : > { %5464 = vmatpush.bf16.msrb.mxu1 %v9027_v29  ;;  %5433 = vmatmul.bf16.vlgmr.msra.gmra.mxu2 %v4505_v33 }
 0x1ef   : > { %5477 = vmatpush.bf16.msrb.mxu2 %v9035_v30  ;;  %5446 = vmatmul.bf16.vlgmr.msra.gmra.mxu3 %v4506_v35 }
 0x1f0   : > { %5490 = vmatpush.bf16.msrb.mxu3 %v9043_v31 }
 0x1f1   : > { %5452 = vmatpush.bf16.msrb.mxu0 %v9018_v36  ;;  %v4088_v56 = vpop.f32.mrf.mxu2  ;;  %v4064_v59 = vpop.f32.mrf.mxu0 }
 0x1f2   : > { %5465 = vmatpush.bf16.msrb.mxu1 %v9026_v37  ;;  %v4089_v57 = vadd.f32 %v4088_v56, %v4076_v51  ;;  %v4101_v58 = vpop.f32.mrf.mxu3  ;;  %v4077_v63 = vpop.f32.mrf.mxu1 }
 0x1f3   : > { %5478 = vmatpush.bf16.msrb.mxu2 %v9034_v38 }
 0x1f4   : > { %5491 = vmatpush.bf16.msrb.mxu3 %v9042_v39  ;;  %v4102_v60 = vadd.f32 %v4101_v58, %v4089_v57 }
 0x1f5   : > { %5453 = vmatpush.bf16.msrb.mxu0 %v9017_v40 }
 0x1f6   : > { %5466 = vmatpush.bf16.msrb.mxu1 %v9025_v41 }
 0x1f7   : > { %5479 = vmatpush.bf16.msrb.mxu2 %v9033_v42 }
 0x1f8   : > { %5492 = vmatpush.bf16.msrb.mxu3 %v9041_v43 }
 0x1f9   : > { %5454 = vmatpush.bf16.msrb.mxu0 %v9016_v46  ;;  %v4090_v15 = vpop.f32.mrf.mxu2 }
 0x1fa   : > { %5467 = vmatpush.bf16.msrb.mxu1 %v9024_v47  ;;  %v4103_v16 = vpop.f32.mrf.mxu3 }
 0x1fb   : > { %5480 = vmatpush.bf16.msrb.mxu2 %v9032_v49 }
 0x1fc   : > { %5493 = vmatpush.bf16.msrb.mxu3 %v9040_v50 }
 0x1fd   : > { %5455 = vmatpush.bf16.msrb.mxu0 %v9015_v52 }
 0x1fe   : > { %5468 = vmatpush.bf16.msrb.mxu1 %v9023_v53 }
 0x1ff   : > { %5481 = vmatpush.bf16.msrb.mxu2 %v9031_v54 }
 0x200   : > { %5494 = vmatpush.bf16.msrb.mxu3 %v9039_v55 }
 0x201   : > { %5456 = vmatpush.bf16.msrb.mxu0 %v9014_v61 }
 0x202   : > { %5469 = vmatpush.bf16.msrb.mxu1 %v9022_v62 }
 0x203   : > { %5482 = vmatpush.bf16.msrb.mxu2 %v9030_v0 }
 0x204   : > { %5495 = vmatpush.bf16.msrb.mxu3 %v9038_v1 }
 0x205   : > { %5457 = vmatpush.bf16.msrb.mxu0 %v9013_v2 }
 0x206   : > { %5470 = vmatpush.bf16.msrb.mxu1 %v9021_v3 }
 0x207   : > { %5483 = vmatpush.bf16.msrb.mxu2 %v9029_v4 }
 0x208   : > { %5496 = vmatpush.bf16.msrb.mxu3 %v9037_v5 }
 0x209   : > { %5458 = vmatpush.bf16.msrb.mxu0 %v9012_v19  ;;  %v4114_v29 = vpop.f32.mrf.mxu0 }
 0x20a   : > { %5471 = vmatpush.bf16.msrb.mxu1 %v9020_v20  ;;  %v4115_v30 = vadd.f32 %v4114_v29, %v4102_v60  ;;  %v4127_v31 = vpop.f32.mrf.mxu1 }
 0x20b   : > { %5484 = vmatpush.bf16.msrb.mxu2 %v9028_v23  ;;  %v9068_v23 = vld [vmem:[%s10783_s2] ss:$0 sm:$0xff] }
 0x20c   : > { %5497 = vmatpush.bf16.msrb.mxu3 %v9036_v24  ;;  %5459 = vmatmul.bf16.vlgmr.msrb.gmra.mxu0 %v4507_v25  ;;  %v4128_v32 = vadd.f32 %v4127_v31, %v4115_v30 }
 0x20d   : > { %5472 = vmatmul.bf16.vlgmr.msrb.gmra.mxu1 %v4508_v26 }
 0x20e   : > { %5485 = vmatmul.bf16.vlgmr.msrb.gmra.mxu2 %v4509_v27 }
 0x20f   : > { %5498 = vmatmul.bf16.vlgmr.msrb.gmra.mxu3 %v4510_v28 }
 0x211   : > { %v4140_v33 = vpop.f32.mrf.mxu2  ;;  %v4116_v36 = vpop.f32.mrf.mxu0 }
 0x212   : > { %v4141_v34 = vadd.f32 %v4140_v33, %v4128_v32  ;;  %v4153_v35 = vpop.f32.mrf.mxu3  ;;  %v4129_v38 = vpop.f32.mrf.mxu1 }
 0x214   : > { %v4154_v37 = vadd.f32 %v4153_v35, %v4141_v34 }
 0x216   : > { %v4157_v39 = vadd.f32 %v4154_v37, %v10400_v7 }
 0x219   : > { %v4142_v40 = vpop.f32.mrf.mxu2 }
 0x21a   : > { %v4155_v41 = vpop.f32.mrf.mxu3 }
 0x229   : > { %v5304_v42 = vpop.f32.mrf.mxu0 }
 0x22a   : > { %v5317_v43 = vpop.f32.mrf.mxu1 }
 0x22b   : > { %v5318_v44 = vadd.f32 %v5317_v43, %v5304_v42 }
 0x231   : > { %v5330_v45 = vpop.f32.mrf.mxu2  ;;  %v5306_v48 = vpop.f32.mrf.mxu0 }
 0x232   : > { %v5331_v46 = vadd.f32 %v5330_v45, %v5318_v44  ;;  %v5343_v47 = vpop.f32.mrf.mxu3  ;;  %v5319_v50 = vpop.f32.mrf.mxu1 }
 0x234   : > { %v5344_v49 = vadd.f32 %v5343_v47, %v5331_v46 }
 0x239   : > { %v5332_v51 = vpop.f32.mrf.mxu2 }
 0x23a   : > { %v5345_v52 = vpop.f32.mrf.mxu3 }
 0x249   : > { %v5356_v53 = vpop.f32.mrf.mxu0 }
 0x24a   : > { %v5369_v54 = vpop.f32.mrf.mxu1  ;;  %v5357_v62 = vadd.f32 %v5356_v53, %v5344_v49 }
 0x24c   : > { %v5370_v2 = vadd.f32 %v5369_v54, %v5357_v62 }
 0x251   : > { %v5382_v55 = vpop.f32.mrf.mxu2  ;;  %v5358_v57 = vpop.f32.mrf.mxu0 }
 0x252   : > { %v5395_v56 = vpop.f32.mrf.mxu3  ;;  %v5371_v58 = vpop.f32.mrf.mxu1  ;;  %v5383_v4 = vadd.f32 %v5382_v55, %v5370_v2 }
 0x254   : > { %v5396_v8 = vadd.f32 %v5395_v56, %v5383_v4 }
 0x259   : > { %v5384_v7 = vpop.f32.mrf.mxu2 }
 0x25a   : > { %v5397_v59 = vpop.f32.mrf.mxu3 }
 0x269   : > { %v5408_v60 = vpop.f32.mrf.mxu0 }
 0x26a   : > { %v5421_v61 = vpop.f32.mrf.mxu1  ;;  %v5409_v9 = vadd.f32 %v5408_v60, %v5396_v8 }
 0x26c   : > { %v5422_v10 = vadd.f32 %v5421_v61, %v5409_v9 }
 0x271   : > { %v5434_v63 = vpop.f32.mrf.mxu2  ;;  %v5410_v1 = vpop.f32.mrf.mxu0 }
 0x272   : > { %v5447_v0 = vpop.f32.mrf.mxu3  ;;  %v5423_v3 = vpop.f32.mrf.mxu1  ;;  %v5435_v11 = vadd.f32 %v5434_v63, %v5422_v10 }
 0x274   : > { %v5448_v12 = vadd.f32 %v5447_v0, %v5435_v11 }
 0x279   : > { %v5436_v5 = vpop.f32.mrf.mxu2 }
 0x27a   : > { %v5449_v6 = vpop.f32.mrf.mxu3 }
 0x289   : > { %v5460_v13 = vpop.f32.mrf.mxu0 }
 0x28a   : > { %v5473_v14 = vpop.f32.mrf.mxu1  ;;  %v5461_v15 = vadd.f32 %v5460_v13, %v5448_v12 }
 0x28c   : > { %v5474_v16 = vadd.f32 %v5473_v14, %v5461_v15 }
 0x291   : > { %v5486_v17 = vpop.f32.mrf.mxu2  ;;  %v5462_v20 = vpop.f32.mrf.mxu0 }
 0x292   : > { %v5499_v18 = vpop.f32.mrf.mxu3  ;;  %v5487_v19 = vadd.f32 %v5486_v17, %v5474_v16  ;;  %v5475_v21 = vpop.f32.mrf.mxu1 }
 0x294   : > { %v5500_v22 = vadd.f32 %v5499_v18, %v5487_v19 }
 0x296   : > { %v5503_v24 = vadd.f32 %v5500_v22, %v4157_v39 }
 0x298   : > { %v5508_v25 = vadd.f32 %v9068_v23, %v5503_v24 }
 0x299   : > { %v5488_v26 = vpop.f32.mrf.mxu2 }
 0x29a   : > { %v5501_v27 = vpop.f32.mrf.mxu3  ;;  %v5509_v28 = vpack.c.bf16 %v5508_v25, %v5508_v25 }
 0x29c   : > { %5510 = vst [vmem:[%s234_s7] sm:$0x3] %v5509_v28 }
 0x29d PF: > { %s13_s14 = sadd.s32 1, %s9091_s14   ;;  %s10785_s12 = smov %s9087_s13 }
 0x29e   : > { %p10_p5 = scmp.ge.s32.totalorder %s13_s14, 4   ;;  %s10786_s13 = smov %s10788_s15 }
 0x2a0   :  { %12 = sbr.rel (!%p10_p5) target bundleno = 2 (0x2), region = 71 }

</bundles_post_ra>
